<compile_context>
chip_gen: v5e
topology: v5e:2x2
jax: 0.10.0
libtpu: 0.0.40
codegen_flags: <defaults>
</compile_context>

<pallas_src>
import jax
import jax.numpy as jnp
import numpy as np
from jax.experimental import pallas as pl
from jax.experimental.pallas import tpu as pltpu

# Deterministic module parameters (BilateralFilter.__init__ defaults).
SIGMA_SX = 0.5
SIGMA_SY = 0.5
SIGMA_R = 0.1
STD_MULT = 5
NUM_STAGES = 1


def _kernel_size():
    max_sigma = max(SIGMA_SX, SIGMA_SY)
    ks = int(2 * np.ceil(max_sigma * STD_MULT) + 1)
    ks = max(3, ks)
    if ks % 2 == 0:
        ks += 1
    return ks


def _spatial_kernel_flat(ks):
    # coords[0] = row offset (dy), coords[1] = col offset (dx); indexing='ij'
    half = ks // 2
    c = np.arange(-half, half + 1, dtype=np.float64)
    ii, jj = np.meshgrid(c, c, indexing="ij")
    sk = np.exp(-(jj ** 2) / (2.0 * SIGMA_SX ** 2) - (ii ** 2) / (2.0 * SIGMA_SY ** 2))
    return sk.reshape(-1).astype(np.float32)  # flat index dy*ks + dx (matches unfold order)


def _log_spatial_flat(ks):
    # Exact log of the spatial weight (the analytic exponent), flat index dy*ks + dx.
    half = ks // 2
    c = np.arange(-half, half + 1, dtype=np.float64)
    ii, jj = np.meshgrid(c, c, indexing="ij")
    lw = -(jj ** 2) / (2.0 * SIGMA_SX ** 2) - (ii ** 2) / (2.0 * SIGMA_SY ** 2)
    return lw.reshape(-1)


def make_bilateral_kernel(C, L, SEG, Wp, ks, pad):
    log_spatial = _log_spatial_flat(ks)                  # compile-time constants
    inv_two_sr2 = 1.0 / (2.0 * SIGMA_R * SIGMA_R + 1e-8)  # compile-time constant
    OFF = pad * Wp + pad                                  # flat index of first output pixel

    def kernel(xflat_ref, out_ref):
        # xflat_ref: VMEM (C, L)   flattened reflect-padded image (lane-dense)
        # out_ref:   VMEM (C, SEG) flat bilateral output segment (lane-dense)
        center = xflat_ref[:, OFF:OFF + SEG]              # (C, SEG) — the (pad,pad) tap
        num = jnp.zeros((C, SEG), jnp.float32)
        den = jnp.zeros((1, SEG), jnp.float32)
        for dy in range(ks):
            for dx in range(ks):
                s = dy * Wp + dx                          # static flat shift for this tap
                nb = xflat_ref[:, s:s + SEG]              # direct Ref read per tap
                diff = center - nb
                sq = jnp.sum(diff * diff, axis=0, keepdims=True)       # (1, SEG)
                lw = float(log_spatial[dy * ks + dx])
                w = jnp.exp(lw - sq * inv_two_sr2)                      # spatial folded in
                num = num + nb * w
                den = den + w
        inv = pl.reciprocal(den + 1e-8, approx=True)      # EUP, keeps VALU slots free
        out_ref[...] = (num * inv).astype(out_ref.dtype)

    return kernel


def bilateral_filter_pallas(x):
    B, C, H, W = x.shape
    ks = _kernel_size()
    pad = ks // 2
    if H <= pad or W <= pad:
        raise ValueError(f"reflect padding requires H, W > {pad}, got {(H, W)}")

    x = x.astype(jnp.float32)
    x_pad = jnp.pad(x, ((0, 0), (0, 0), (pad, pad), (pad, pad)), mode="reflect")
    Hp, Wp = H + 2 * pad, W + 2 * pad
    L = Hp * Wp                      # 484 for 16x16 input
    SEG = (H - 1) * Wp + W           # 346: flat span covering all output pixels
    x_flat = x_pad.reshape(B, C, L)  # lane-dense minor axis

    kernel = make_bilateral_kernel(C, L, SEG, Wp, ks, pad)
    out_flat = pl.pallas_call(
        kernel,
        out_shape=jax.ShapeDtypeStruct((B, C, SEG), jnp.float32),
        grid=(B,),
        in_specs=[pl.BlockSpec((None, C, L), lambda b: (b, 0, 0))],
        out_specs=pl.BlockSpec((None, C, SEG), lambda b: (b, 0, 0)),
        compiler_params=pltpu.CompilerParams(
            dimension_semantics=("parallel",),
            vmem_limit_bytes=32 * 1024 * 1024,
        ),
    )(x_flat)

    # Un-flatten: segment index q = h*Wp + w  (h in [0,H), w in [0,W)); layout plumbing only.
    out_rows = jnp.pad(out_flat, ((0, 0), (0, 0), (0, H * Wp - SEG)))
    out = out_rows.reshape(B, C, H, Wp)[:, :, :, :W]
    return out


def denoising_pipeline_pallas(x, num_stages=NUM_STAGES):
    for _ in range(num_stages):
        x = bilateral_filter_pallas(x)
    return x


def denoising_pipeline_ref(x, num_stages=NUM_STAGES):
    """Pure-JAX reference mirroring the PyTorch forward exactly."""
    ks = _kernel_size()
    pad = ks // 2
    spatial = jnp.asarray(_spatial_kernel_flat(ks))
    for _ in range(num_stages):
        B, C, H, W = x.shape
        x_pad = jnp.pad(x, ((0, 0), (0, 0), (pad, pad), (pad, pad)), mode="reflect")
        patches = []
        for dy in range(ks):
            for dx in range(ks):
                patches.append(x_pad[:, :, dy:dy + H, dx:dx + W])
        patches = jnp.stack(patches, axis=-1)                      # (B,C,H,W,ks*ks)
        center = x[..., None]
        diff = center - patches
        sq = jnp.sum(diff ** 2, axis=1, keepdims=True)             # (B,1,H,W,ks*ks)
        rk = jnp.exp(-sq / (2.0 * SIGMA_R ** 2 + 1e-8))
        kern = spatial.reshape(1, 1, 1, 1, -1) * rk
        kern = kern / (jnp.sum(kern, axis=-1, keepdims=True) + 1e-8)
        x = jnp.sum(patches * kern, axis=-1)
    return x


if __name__ == "__main__":
    key = jax.random.PRNGKey(0)
    B, C, H, W = 2, 4, 16, 16
    x = jax.random.normal(key, (B, C, H, W), dtype=jnp.float32)

    out = denoising_pipeline_pallas(x)
    out = jax.block_until_ready(out)

    ref = denoising_pipeline_ref(x)
    assert out.shape == (B, C, H, W)
    # Tolerance relaxed slightly vs 1e-5 because normalization uses the EUP
    # approximate reciprocal (pl.reciprocal(approx=True)); outputs are O(1).
    max_diff = jnp.max(jnp.abs(out - ref))
    assert jnp.allclose(out, ref, atol=5e-3, rtol=5e-3), f"max abs diff = {max_diff}"
    print("KERNEL_OK")
</pallas_src>

<mosaic_0001>
module attributes {stable_mosaic.version = 11 : i64} {
  func.func @kernel(%arg0: i32, %arg1: memref<1x4x484xf32, #tpu.memory_space<vmem>>, %arg2: memref<1x4x346xf32, #tpu.memory_space<vmem>>) attributes {dimension_semantics = [#tpu.dimension_semantics<parallel>], iteration_bounds = array<i64: 2>, scalar_prefetch = 0 : i64, scratch_operands = 0 : i64, tpu.core_type = #tpu.core_type<tc>, window_params = [{transform_indices = @transform_0, window_bounds = array<i64: 1, 4, 484>}, {transform_indices = @transform_1, window_bounds = array<i64: 1, 4, 346>}]} {
    %c0 = arith.constant 0 : index
    %c0_0 = arith.constant 0 : index
    %c69 = arith.constant 69 : index
    %0 = vector.load %arg1[%c0, %c0_0, %c69] : memref<1x4x484xf32, #tpu.memory_space<vmem>>, vector<1x4x346xf32>
    %1 = vector.shape_cast %0 : vector<1x4x346xf32> to vector<4x346xf32>
    %cst = arith.constant 0.000000e+00 : f32
    %2 = vector.broadcast %cst : f32 to vector<4x346xf32>
    %cst_1 = arith.constant 0.000000e+00 : f32
    %3 = vector.broadcast %cst_1 : f32 to vector<1x346xf32>
    %c0_2 = arith.constant 0 : index
    %c0_3 = arith.constant 0 : index
    %c0_4 = arith.constant 0 : index
    %4 = vector.load %arg1[%c0_2, %c0_3, %c0_4] : memref<1x4x484xf32, #tpu.memory_space<vmem>>, vector<1x4x346xf32>
    %5 = vector.shape_cast %4 : vector<1x4x346xf32> to vector<4x346xf32>
    %6 = arith.subf %1, %5 : vector<4x346xf32>
    %7 = arith.mulf %6, %6 : vector<4x346xf32>
    %cst_5 = arith.constant dense<0.000000e+00> : vector<346xf32>
    %8 = vector.multi_reduction <add>, %7, %cst_5 [0] : vector<4x346xf32> to vector<346xf32>
    %9 = vector.shape_cast %8 : vector<346xf32> to vector<1x346xf32>
    %cst_6 = arith.constant 49.9999733 : f32
    %10 = vector.broadcast %cst_6 : f32 to vector<1x346xf32>
    %11 = arith.mulf %9, %10 : vector<1x346xf32>
    %cst_7 = arith.constant -3.600000e+01 : f32
    %12 = vector.broadcast %cst_7 : f32 to vector<1x346xf32>
    %13 = arith.subf %12, %11 : vector<1x346xf32>
    %14 = math.exp %13 : vector<1x346xf32>
    %15 = vector.broadcast %14 : vector<1x346xf32> to vector<4x346xf32>
    %16 = arith.mulf %5, %15 : vector<4x346xf32>
    %17 = arith.addf %2, %16 : vector<4x346xf32>
    %18 = arith.addf %3, %14 : vector<1x346xf32>
    %c0_8 = arith.constant 0 : index
    %c0_9 = arith.constant 0 : index
    %c1 = arith.constant 1 : index
    %19 = vector.load %arg1[%c0_8, %c0_9, %c1] : memref<1x4x484xf32, #tpu.memory_space<vmem>>, vector<1x4x346xf32>
    %20 = vector.shape_cast %19 : vector<1x4x346xf32> to vector<4x346xf32>
    %21 = arith.subf %1, %20 : vector<4x346xf32>
    %22 = arith.mulf %21, %21 : vector<4x346xf32>
    %cst_10 = arith.constant dense<0.000000e+00> : vector<346xf32>
    %23 = vector.multi_reduction <add>, %22, %cst_10 [0] : vector<4x346xf32> to vector<346xf32>
    %24 = vector.shape_cast %23 : vector<346xf32> to vector<1x346xf32>
    %cst_11 = arith.constant 49.9999733 : f32
    %25 = vector.broadcast %cst_11 : f32 to vector<1x346xf32>
    %26 = arith.mulf %24, %25 : vector<1x346xf32>
    %cst_12 = arith.constant -2.600000e+01 : f32
    %27 = vector.broadcast %cst_12 : f32 to vector<1x346xf32>
    %28 = arith.subf %27, %26 : vector<1x346xf32>
    %29 = math.exp %28 : vector<1x346xf32>
    %30 = vector.broadcast %29 : vector<1x346xf32> to vector<4x346xf32>
    %31 = arith.mulf %20, %30 : vector<4x346xf32>
    %32 = arith.addf %17, %31 : vector<4x346xf32>
    %33 = arith.addf %18, %29 : vector<1x346xf32>
    %c0_13 = arith.constant 0 : index
    %c0_14 = arith.constant 0 : index
    %c2 = arith.constant 2 : index
    %34 = vector.load %arg1[%c0_13, %c0_14, %c2] : memref<1x4x484xf32, #tpu.memory_space<vmem>>, vector<1x4x346xf32>
    %35 = vector.shape_cast %34 : vector<1x4x346xf32> to vector<4x346xf32>
    %36 = arith.subf %1, %35 : vector<4x346xf32>
    %37 = arith.mulf %36, %36 : vector<4x346xf32>
    %cst_15 = arith.constant dense<0.000000e+00> : vector<346xf32>
    %38 = vector.multi_reduction <add>, %37, %cst_15 [0] : vector<4x346xf32> to vector<346xf32>
    %39 = vector.shape_cast %38 : vector<346xf32> to vector<1x346xf32>
    %cst_16 = arith.constant 49.9999733 : f32
    %40 = vector.broadcast %cst_16 : f32 to vector<1x346xf32>
    %41 = arith.mulf %39, %40 : vector<1x346xf32>
    %cst_17 = arith.constant -2.000000e+01 : f32
    %42 = vector.broadcast %cst_17 : f32 to vector<1x346xf32>
    %43 = arith.subf %42, %41 : vector<1x346xf32>
    %44 = math.exp %43 : vector<1x346xf32>
    %45 = vector.broadcast %44 : vector<1x346xf32> to vector<4x346xf32>
    %46 = arith.mulf %35, %45 : vector<4x346xf32>
    %47 = arith.addf %32, %46 : vector<4x346xf32>
    %48 = arith.addf %33, %44 : vector<1x346xf32>
    %c0_18 = arith.constant 0 : index
    %c0_19 = arith.constant 0 : index
    %c3 = arith.constant 3 : index
    %49 = vector.load %arg1[%c0_18, %c0_19, %c3] : memref<1x4x484xf32, #tpu.memory_space<vmem>>, vector<1x4x346xf32>
    %50 = vector.shape_cast %49 : vector<1x4x346xf32> to vector<4x346xf32>
    %51 = arith.subf %1, %50 : vector<4x346xf32>
    %52 = arith.mulf %51, %51 : vector<4x346xf32>
    %cst_20 = arith.constant dense<0.000000e+00> : vector<346xf32>
    %53 = vector.multi_reduction <add>, %52, %cst_20 [0] : vector<4x346xf32> to vector<346xf32>
    %54 = vector.shape_cast %53 : vector<346xf32> to vector<1x346xf32>
    %cst_21 = arith.constant 49.9999733 : f32
    %55 = vector.broadcast %cst_21 : f32 to vector<1x346xf32>
    %56 = arith.mulf %54, %55 : vector<1x346xf32>
    %cst_22 = arith.constant -1.800000e+01 : f32
    %57 = vector.broadcast %cst_22 : f32 to vector<1x346xf32>
    %58 = arith.subf %57, %56 : vector<1x346xf32>
    %59 = math.exp %58 : vector<1x346xf32>
    %60 = vector.broadcast %59 : vector<1x346xf32> to vector<4x346xf32>
    %61 = arith.mulf %50, %60 : vector<4x346xf32>
    %62 = arith.addf %47, %61 : vector<4x346xf32>
    %63 = arith.addf %48, %59 : vector<1x346xf32>
    %c0_23 = arith.constant 0 : index
    %c0_24 = arith.constant 0 : index
    %c4 = arith.constant 4 : index
    %64 = vector.load %arg1[%c0_23, %c0_24, %c4] : memref<1x4x484xf32, #tpu.memory_space<vmem>>, vector<1x4x346xf32>
    %65 = vector.shape_cast %64 : vector<1x4x346xf32> to vector<4x346xf32>
    %66 = arith.subf %1, %65 : vector<4x346xf32>
    %67 = arith.mulf %66, %66 : vector<4x346xf32>
    %cst_25 = arith.constant dense<0.000000e+00> : vector<346xf32>
    %68 = vector.multi_reduction <add>, %67, %cst_25 [0] : vector<4x346xf32> to vector<346xf32>
    %69 = vector.shape_cast %68 : vector<346xf32> to vector<1x346xf32>
    %cst_26 = arith.constant 49.9999733 : f32
    %70 = vector.broadcast %cst_26 : f32 to vector<1x346xf32>
    %71 = arith.mulf %69, %70 : vector<1x346xf32>
    %cst_27 = arith.constant -2.000000e+01 : f32
    %72 = vector.broadcast %cst_27 : f32 to vector<1x346xf32>
    %73 = arith.subf %72, %71 : vector<1x346xf32>
    %74 = math.exp %73 : vector<1x346xf32>
    %75 = vector.broadcast %74 : vector<1x346xf32> to vector<4x346xf32>
    %76 = arith.mulf %65, %75 : vector<4x346xf32>
    %77 = arith.addf %62, %76 : vector<4x346xf32>
    %78 = arith.addf %63, %74 : vector<1x346xf32>
    %c0_28 = arith.constant 0 : index
    %c0_29 = arith.constant 0 : index
    %c5 = arith.constant 5 : index
    %79 = vector.load %arg1[%c0_28, %c0_29, %c5] : memref<1x4x484xf32, #tpu.memory_space<vmem>>, vector<1x4x346xf32>
    %80 = vector.shape_cast %79 : vector<1x4x346xf32> to vector<4x346xf32>
    %81 = arith.subf %1, %80 : vector<4x346xf32>
    %82 = arith.mulf %81, %81 : vector<4x346xf32>
    %cst_30 = arith.constant dense<0.000000e+00> : vector<346xf32>
    %83 = vector.multi_reduction <add>, %82, %cst_30 [0] : vector<4x346xf32> to vector<346xf32>
    %84 = vector.shape_cast %83 : vector<346xf32> to vector<1x346xf32>
    %cst_31 = arith.constant 49.9999733 : f32
    %85 = vector.broadcast %cst_31 : f32 to vector<1x346xf32>
    %86 = arith.mulf %84, %85 : vector<1x346xf32>
    %cst_32 = arith.constant -2.600000e+01 : f32
    %87 = vector.broadcast %cst_32 : f32 to vector<1x346xf32>
    %88 = arith.subf %87, %86 : vector<1x346xf32>
    %89 = math.exp %88 : vector<1x346xf32>
    %90 = vector.broadcast %89 : vector<1x346xf32> to vector<4x346xf32>
    %91 = arith.mulf %80, %90 : vector<4x346xf32>
    %92 = arith.addf %77, %91 : vector<4x346xf32>
    %93 = arith.addf %78, %89 : vector<1x346xf32>
    %c0_33 = arith.constant 0 : index
    %c0_34 = arith.constant 0 : index
    %c6 = arith.constant 6 : index
    %94 = vector.load %arg1[%c0_33, %c0_34, %c6] : memref<1x4x484xf32, #tpu.memory_space<vmem>>, vector<1x4x346xf32>
    %95 = vector.shape_cast %94 : vector<1x4x346xf32> to vector<4x346xf32>
    %96 = arith.subf %1, %95 : vector<4x346xf32>
    %97 = arith.mulf %96, %96 : vector<4x346xf32>
    %cst_35 = arith.constant dense<0.000000e+00> : vector<346xf32>
    %98 = vector.multi_reduction <add>, %97, %cst_35 [0] : vector<4x346xf32> to vector<346xf32>
    %99 = vector.shape_cast %98 : vector<346xf32> to vector<1x346xf32>
    %cst_36 = arith.constant 49.9999733 : f32
    %100 = vector.broadcast %cst_36 : f32 to vector<1x346xf32>
    %101 = arith.mulf %99, %100 : vector<1x346xf32>
    %cst_37 = arith.constant -3.600000e+01 : f32
    %102 = vector.broadcast %cst_37 : f32 to vector<1x346xf32>
    %103 = arith.subf %102, %101 : vector<1x346xf32>
    %104 = math.exp %103 : vector<1x346xf32>
    %105 = vector.broadcast %104 : vector<1x346xf32> to vector<4x346xf32>
    %106 = arith.mulf %95, %105 : vector<4x346xf32>
    %107 = arith.addf %92, %106 : vector<4x346xf32>
    %108 = arith.addf %93, %104 : vector<1x346xf32>
    %c0_38 = arith.constant 0 : index
    %c0_39 = arith.constant 0 : index
    %c22 = arith.constant 22 : index
    %109 = vector.load %arg1[%c0_38, %c0_39, %c22] : memref<1x4x484xf32, #tpu.memory_space<vmem>>, vector<1x4x346xf32>
    %110 = vector.shape_cast %109 : vector<1x4x346xf32> to vector<4x346xf32>
    %111 = arith.subf %1, %110 : vector<4x346xf32>
    %112 = arith.mulf %111, %111 : vector<4x346xf32>
    %cst_40 = arith.constant dense<0.000000e+00> : vector<346xf32>
    %113 = vector.multi_reduction <add>, %112, %cst_40 [0] : vector<4x346xf32> to vector<346xf32>
    %114 = vector.shape_cast %113 : vector<346xf32> to vector<1x346xf32>
    %cst_41 = arith.constant 49.9999733 : f32
    %115 = vector.broadcast %cst_41 : f32 to vector<1x346xf32>
    %116 = arith.mulf %114, %115 : vector<1x346xf32>
    %cst_42 = arith.constant -2.600000e+01 : f32
    %117 = vector.broadcast %cst_42 : f32 to vector<1x346xf32>
    %118 = arith.subf %117, %116 : vector<1x346xf32>
    %119 = math.exp %118 : vector<1x346xf32>
    %120 = vector.broadcast %119 : vector<1x346xf32> to vector<4x346xf32>
    %121 = arith.mulf %110, %120 : vector<4x346xf32>
    %122 = arith.addf %107, %121 : vector<4x346xf32>
    %123 = arith.addf %108, %119 : vector<1x346xf32>
    %c0_43 = arith.constant 0 : index
    %c0_44 = arith.constant 0 : index
    %c23 = arith.constant 23 : index
    %124 = vector.load %arg1[%c0_43, %c0_44, %c23] : memref<1x4x484xf32, #tpu.memory_space<vmem>>, vector<1x4x346xf32>
    %125 = vector.shape_cast %124 : vector<1x4x346xf32> to vector<4x346xf32>
    %126 = arith.subf %1, %125 : vector<4x346xf32>
    %127 = arith.mulf %126, %126 : vector<4x346xf32>
    %cst_45 = arith.constant dense<0.000000e+00> : vector<346xf32>
    %128 = vector.multi_reduction <add>, %127, %cst_45 [0] : vector<4x346xf32> to vector<346xf32>
    %129 = vector.shape_cast %128 : vector<346xf32> to vector<1x346xf32>
    %cst_46 = arith.constant 49.9999733 : f32
    %130 = vector.broadcast %cst_46 : f32 to vector<1x346xf32>
    %131 = arith.mulf %129, %130 : vector<1x346xf32>
    %cst_47 = arith.constant -1.600000e+01 : f32
    %132 = vector.broadcast %cst_47 : f32 to vector<1x346xf32>
    %133 = arith.subf %132, %131 : vector<1x346xf32>
    %134 = math.exp %133 : vector<1x346xf32>
    %135 = vector.broadcast %134 : vector<1x346xf32> to vector<4x346xf32>
    %136 = arith.mulf %125, %135 : vector<4x346xf32>
    %137 = arith.addf %122, %136 : vector<4x346xf32>
    %138 = arith.addf %123, %134 : vector<1x346xf32>
    %c0_48 = arith.constant 0 : index
    %c0_49 = arith.constant 0 : index
    %c24 = arith.constant 24 : index
    %139 = vector.load %arg1[%c0_48, %c0_49, %c24] : memref<1x4x484xf32, #tpu.memory_space<vmem>>, vector<1x4x346xf32>
    %140 = vector.shape_cast %139 : vector<1x4x346xf32> to vector<4x346xf32>
    %141 = arith.subf %1, %140 : vector<4x346xf32>
    %142 = arith.mulf %141, %141 : vector<4x346xf32>
    %cst_50 = arith.constant dense<0.000000e+00> : vector<346xf32>
    %143 = vector.multi_reduction <add>, %142, %cst_50 [0] : vector<4x346xf32> to vector<346xf32>
    %144 = vector.shape_cast %143 : vector<346xf32> to vector<1x346xf32>
    %cst_51 = arith.constant 49.9999733 : f32
    %145 = vector.broadcast %cst_51 : f32 to vector<1x346xf32>
    %146 = arith.mulf %144, %145 : vector<1x346xf32>
    %cst_52 = arith.constant -1.000000e+01 : f32
    %147 = vector.broadcast %cst_52 : f32 to vector<1x346xf32>
    %148 = arith.subf %147, %146 : vector<1x346xf32>
    %149 = math.exp %148 : vector<1x346xf32>
    %150 = vector.broadcast %149 : vector<1x346xf32> to vector<4x346xf32>
    %151 = arith.mulf %140, %150 : vector<4x346xf32>
    %152 = arith.addf %137, %151 : vector<4x346xf32>
    %153 = arith.addf %138, %149 : vector<1x346xf32>
    %c0_53 = arith.constant 0 : index
    %c0_54 = arith.constant 0 : index
    %c25 = arith.constant 25 : index
    %154 = vector.load %arg1[%c0_53, %c0_54, %c25] : memref<1x4x484xf32, #tpu.memory_space<vmem>>, vector<1x4x346xf32>
    %155 = vector.shape_cast %154 : vector<1x4x346xf32> to vector<4x346xf32>
    %156 = arith.subf %1, %155 : vector<4x346xf32>
    %157 = arith.mulf %156, %156 : vector<4x346xf32>
    %cst_55 = arith.constant dense<0.000000e+00> : vector<346xf32>
    %158 = vector.multi_reduction <add>, %157, %cst_55 [0] : vector<4x346xf32> to vector<346xf32>
    %159 = vector.shape_cast %158 : vector<346xf32> to vector<1x346xf32>
    %cst_56 = arith.constant 49.9999733 : f32
    %160 = vector.broadcast %cst_56 : f32 to vector<1x346xf32>
    %161 = arith.mulf %159, %160 : vector<1x346xf32>
    %cst_57 = arith.constant -8.000000e+00 : f32
    %162 = vector.broadcast %cst_57 : f32 to vector<1x346xf32>
    %163 = arith.subf %162, %161 : vector<1x346xf32>
    %164 = math.exp %163 : vector<1x346xf32>
    %165 = vector.broadcast %164 : vector<1x346xf32> to vector<4x346xf32>
    %166 = arith.mulf %155, %165 : vector<4x346xf32>
    %167 = arith.addf %152, %166 : vector<4x346xf32>
    %168 = arith.addf %153, %164 : vector<1x346xf32>
    %c0_58 = arith.constant 0 : index
    %c0_59 = arith.constant 0 : index
    %c26 = arith.constant 26 : index
    %169 = vector.load %arg1[%c0_58, %c0_59, %c26] : memref<1x4x484xf32, #tpu.memory_space<vmem>>, vector<1x4x346xf32>
    %170 = vector.shape_cast %169 : vector<1x4x346xf32> to vector<4x346xf32>
    %171 = arith.subf %1, %170 : vector<4x346xf32>
    %172 = arith.mulf %171, %171 : vector<4x346xf32>
    %cst_60 = arith.constant dense<0.000000e+00> : vector<346xf32>
    %173 = vector.multi_reduction <add>, %172, %cst_60 [0] : vector<4x346xf32> to vector<346xf32>
    %174 = vector.shape_cast %173 : vector<346xf32> to vector<1x346xf32>
    %cst_61 = arith.constant 49.9999733 : f32
    %175 = vector.broadcast %cst_61 : f32 to vector<1x346xf32>
    %176 = arith.mulf %174, %175 : vector<1x346xf32>
    %cst_62 = arith.constant -1.000000e+01 : f32
    %177 = vector.broadcast %cst_62 : f32 to vector<1x346xf32>
    %178 = arith.subf %177, %176 : vector<1x346xf32>
    %179 = math.exp %178 : vector<1x346xf32>
    %180 = vector.broadcast %179 : vector<1x346xf32> to vector<4x346xf32>
    %181 = arith.mulf %170, %180 : vector<4x346xf32>
    %182 = arith.addf %167, %181 : vector<4x346xf32>
    %183 = arith.addf %168, %179 : vector<1x346xf32>
    %c0_63 = arith.constant 0 : index
    %c0_64 = arith.constant 0 : index
    %c27 = arith.constant 27 : index
    %184 = vector.load %arg1[%c0_63, %c0_64, %c27] : memref<1x4x484xf32, #tpu.memory_space<vmem>>, vector<1x4x346xf32>
    %185 = vector.shape_cast %184 : vector<1x4x346xf32> to vector<4x346xf32>
    %186 = arith.subf %1, %185 : vector<4x346xf32>
    %187 = arith.mulf %186, %186 : vector<4x346xf32>
    %cst_65 = arith.constant dense<0.000000e+00> : vector<346xf32>
    %188 = vector.multi_reduction <add>, %187, %cst_65 [0] : vector<4x346xf32> to vector<346xf32>
    %189 = vector.shape_cast %188 : vector<346xf32> to vector<1x346xf32>
    %cst_66 = arith.constant 49.9999733 : f32
    %190 = vector.broadcast %cst_66 : f32 to vector<1x346xf32>
    %191 = arith.mulf %189, %190 : vector<1x346xf32>
    %cst_67 = arith.constant -1.600000e+01 : f32
    %192 = vector.broadcast %cst_67 : f32 to vector<1x346xf32>
    %193 = arith.subf %192, %191 : vector<1x346xf32>
    %194 = math.exp %193 : vector<1x346xf32>
    %195 = vector.broadcast %194 : vector<1x346xf32> to vector<4x346xf32>
    %196 = arith.mulf %185, %195 : vector<4x346xf32>
    %197 = arith.addf %182, %196 : vector<4x346xf32>
    %198 = arith.addf %183, %194 : vector<1x346xf32>
    %c0_68 = arith.constant 0 : index
    %c0_69 = arith.constant 0 : index
    %c28 = arith.constant 28 : index
    %199 = vector.load %arg1[%c0_68, %c0_69, %c28] : memref<1x4x484xf32, #tpu.memory_space<vmem>>, vector<1x4x346xf32>
    %200 = vector.shape_cast %199 : vector<1x4x346xf32> to vector<4x346xf32>
    %201 = arith.subf %1, %200 : vector<4x346xf32>
    %202 = arith.mulf %201, %201 : vector<4x346xf32>
    %cst_70 = arith.constant dense<0.000000e+00> : vector<346xf32>
    %203 = vector.multi_reduction <add>, %202, %cst_70 [0] : vector<4x346xf32> to vector<346xf32>
    %204 = vector.shape_cast %203 : vector<346xf32> to vector<1x346xf32>
    %cst_71 = arith.constant 49.9999733 : f32
    %205 = vector.broadcast %cst_71 : f32 to vector<1x346xf32>
    %206 = arith.mulf %204, %205 : vector<1x346xf32>
    %cst_72 = arith.constant -2.600000e+01 : f32
    %207 = vector.broadcast %cst_72 : f32 to vector<1x346xf32>
    %208 = arith.subf %207, %206 : vector<1x346xf32>
    %209 = math.exp %208 : vector<1x346xf32>
    %210 = vector.broadcast %209 : vector<1x346xf32> to vector<4x346xf32>
    %211 = arith.mulf %200, %210 : vector<4x346xf32>
    %212 = arith.addf %197, %211 : vector<4x346xf32>
    %213 = arith.addf %198, %209 : vector<1x346xf32>
    %c0_73 = arith.constant 0 : index
    %c0_74 = arith.constant 0 : index
    %c44 = arith.constant 44 : index
    %214 = vector.load %arg1[%c0_73, %c0_74, %c44] : memref<1x4x484xf32, #tpu.memory_space<vmem>>, vector<1x4x346xf32>
    %215 = vector.shape_cast %214 : vector<1x4x346xf32> to vector<4x346xf32>
    %216 = arith.subf %1, %215 : vector<4x346xf32>
    %217 = arith.mulf %216, %216 : vector<4x346xf32>
    %cst_75 = arith.constant dense<0.000000e+00> : vector<346xf32>
    %218 = vector.multi_reduction <add>, %217, %cst_75 [0] : vector<4x346xf32> to vector<346xf32>
    %219 = vector.shape_cast %218 : vector<346xf32> to vector<1x346xf32>
    %cst_76 = arith.constant 49.9999733 : f32
    %220 = vector.broadcast %cst_76 : f32 to vector<1x346xf32>
    %221 = arith.mulf %219, %220 : vector<1x346xf32>
    %cst_77 = arith.constant -2.000000e+01 : f32
    %222 = vector.broadcast %cst_77 : f32 to vector<1x346xf32>
    %223 = arith.subf %222, %221 : vector<1x346xf32>
    %224 = math.exp %223 : vector<1x346xf32>
    %225 = vector.broadcast %224 : vector<1x346xf32> to vector<4x346xf32>
    %226 = arith.mulf %215, %225 : vector<4x346xf32>
    %227 = arith.addf %212, %226 : vector<4x346xf32>
    %228 = arith.addf %213, %224 : vector<1x346xf32>
    %c0_78 = arith.constant 0 : index
    %c0_79 = arith.constant 0 : index
    %c45 = arith.constant 45 : index
    %229 = vector.load %arg1[%c0_78, %c0_79, %c45] : memref<1x4x484xf32, #tpu.memory_space<vmem>>, vector<1x4x346xf32>
    %230 = vector.shape_cast %229 : vector<1x4x346xf32> to vector<4x346xf32>
    %231 = arith.subf %1, %230 : vector<4x346xf32>
    %232 = arith.mulf %231, %231 : vector<4x346xf32>
    %cst_80 = arith.constant dense<0.000000e+00> : vector<346xf32>
    %233 = vector.multi_reduction <add>, %232, %cst_80 [0] : vector<4x346xf32> to vector<346xf32>
    %234 = vector.shape_cast %233 : vector<346xf32> to vector<1x346xf32>
    %cst_81 = arith.constant 49.9999733 : f32
    %235 = vector.broadcast %cst_81 : f32 to vector<1x346xf32>
    %236 = arith.mulf %234, %235 : vector<1x346xf32>
    %cst_82 = arith.constant -1.000000e+01 : f32
    %237 = vector.broadcast %cst_82 : f32 to vector<1x346xf32>
    %238 = arith.subf %237, %236 : vector<1x346xf32>
    %239 = math.exp %238 : vector<1x346xf32>
    %240 = vector.broadcast %239 : vector<1x346xf32> to vector<4x346xf32>
    %241 = arith.mulf %230, %240 : vector<4x346xf32>
    %242 = arith.addf %227, %241 : vector<4x346xf32>
    %243 = arith.addf %228, %239 : vector<1x346xf32>
    %c0_83 = arith.constant 0 : index
    %c0_84 = arith.constant 0 : index
    %c46 = arith.constant 46 : index
    %244 = vector.load %arg1[%c0_83, %c0_84, %c46] : memref<1x4x484xf32, #tpu.memory_space<vmem>>, vector<1x4x346xf32>
    %245 = vector.shape_cast %244 : vector<1x4x346xf32> to vector<4x346xf32>
    %246 = arith.subf %1, %245 : vector<4x346xf32>
    %247 = arith.mulf %246, %246 : vector<4x346xf32>
    %cst_85 = arith.constant dense<0.000000e+00> : vector<346xf32>
    %248 = vector.multi_reduction <add>, %247, %cst_85 [0] : vector<4x346xf32> to vector<346xf32>
    %249 = vector.shape_cast %248 : vector<346xf32> to vector<1x346xf32>
    %cst_86 = arith.constant 49.9999733 : f32
    %250 = vector.broadcast %cst_86 : f32 to vector<1x346xf32>
    %251 = arith.mulf %249, %250 : vector<1x346xf32>
    %cst_87 = arith.constant -4.000000e+00 : f32
    %252 = vector.broadcast %cst_87 : f32 to vector<1x346xf32>
    %253 = arith.subf %252, %251 : vector<1x346xf32>
    %254 = math.exp %253 : vector<1x346xf32>
    %255 = vector.broadcast %254 : vector<1x346xf32> to vector<4x346xf32>
    %256 = arith.mulf %245, %255 : vector<4x346xf32>
    %257 = arith.addf %242, %256 : vector<4x346xf32>
    %258 = arith.addf %243, %254 : vector<1x346xf32>
    %c0_88 = arith.constant 0 : index
    %c0_89 = arith.constant 0 : index
    %c47 = arith.constant 47 : index
    %259 = vector.load %arg1[%c0_88, %c0_89, %c47] : memref<1x4x484xf32, #tpu.memory_space<vmem>>, vector<1x4x346xf32>
    %260 = vector.shape_cast %259 : vector<1x4x346xf32> to vector<4x346xf32>
    %261 = arith.subf %1, %260 : vector<4x346xf32>
    %262 = arith.mulf %261, %261 : vector<4x346xf32>
    %cst_90 = arith.constant dense<0.000000e+00> : vector<346xf32>
    %263 = vector.multi_reduction <add>, %262, %cst_90 [0] : vector<4x346xf32> to vector<346xf32>
    %264 = vector.shape_cast %263 : vector<346xf32> to vector<1x346xf32>
    %cst_91 = arith.constant 49.9999733 : f32
    %265 = vector.broadcast %cst_91 : f32 to vector<1x346xf32>
    %266 = arith.mulf %264, %265 : vector<1x346xf32>
    %cst_92 = arith.constant -2.000000e+00 : f32
    %267 = vector.broadcast %cst_92 : f32 to vector<1x346xf32>
    %268 = arith.subf %267, %266 : vector<1x346xf32>
    %269 = math.exp %268 : vector<1x346xf32>
    %270 = vector.broadcast %269 : vector<1x346xf32> to vector<4x346xf32>
    %271 = arith.mulf %260, %270 : vector<4x346xf32>
    %272 = arith.addf %257, %271 : vector<4x346xf32>
    %273 = arith.addf %258, %269 : vector<1x346xf32>
    %c0_93 = arith.constant 0 : index
    %c0_94 = arith.constant 0 : index
    %c48 = arith.constant 48 : index
    %274 = vector.load %arg1[%c0_93, %c0_94, %c48] : memref<1x4x484xf32, #tpu.memory_space<vmem>>, vector<1x4x346xf32>
    %275 = vector.shape_cast %274 : vector<1x4x346xf32> to vector<4x346xf32>
    %276 = arith.subf %1, %275 : vector<4x346xf32>
    %277 = arith.mulf %276, %276 : vector<4x346xf32>
    %cst_95 = arith.constant dense<0.000000e+00> : vector<346xf32>
    %278 = vector.multi_reduction <add>, %277, %cst_95 [0] : vector<4x346xf32> to vector<346xf32>
    %279 = vector.shape_cast %278 : vector<346xf32> to vector<1x346xf32>
    %cst_96 = arith.constant 49.9999733 : f32
    %280 = vector.broadcast %cst_96 : f32 to vector<1x346xf32>
    %281 = arith.mulf %279, %280 : vector<1x346xf32>
    %cst_97 = arith.constant -4.000000e+00 : f32
    %282 = vector.broadcast %cst_97 : f32 to vector<1x346xf32>
    %283 = arith.subf %282, %281 : vector<1x346xf32>
    %284 = math.exp %283 : vector<1x346xf32>
    %285 = vector.broadcast %284 : vector<1x346xf32> to vector<4x346xf32>
    %286 = arith.mulf %275, %285 : vector<4x346xf32>
    %287 = arith.addf %272, %286 : vector<4x346xf32>
    %288 = arith.addf %273, %284 : vector<1x346xf32>
    %c0_98 = arith.constant 0 : index
    %c0_99 = arith.constant 0 : index
    %c49 = arith.constant 49 : index
    %289 = vector.load %arg1[%c0_98, %c0_99, %c49] : memref<1x4x484xf32, #tpu.memory_space<vmem>>, vector<1x4x346xf32>
    %290 = vector.shape_cast %289 : vector<1x4x346xf32> to vector<4x346xf32>
    %291 = arith.subf %1, %290 : vector<4x346xf32>
    %292 = arith.mulf %291, %291 : vector<4x346xf32>
    %cst_100 = arith.constant dense<0.000000e+00> : vector<346xf32>
    %293 = vector.multi_reduction <add>, %292, %cst_100 [0] : vector<4x346xf32> to vector<346xf32>
    %294 = vector.shape_cast %293 : vector<346xf32> to vector<1x346xf32>
    %cst_101 = arith.constant 49.9999733 : f32
    %295 = vector.broadcast %cst_101 : f32 to vector<1x346xf32>
    %296 = arith.mulf %294, %295 : vector<1x346xf32>
    %cst_102 = arith.constant -1.000000e+01 : f32
    %297 = vector.broadcast %cst_102 : f32 to vector<1x346xf32>
    %298 = arith.subf %297, %296 : vector<1x346xf32>
    %299 = math.exp %298 : vector<1x346xf32>
    %300 = vector.broadcast %299 : vector<1x346xf32> to vector<4x346xf32>
    %301 = arith.mulf %290, %300 : vector<4x346xf32>
    %302 = arith.addf %287, %301 : vector<4x346xf32>
    %303 = arith.addf %288, %299 : vector<1x346xf32>
    %c0_103 = arith.constant 0 : index
    %c0_104 = arith.constant 0 : index
    %c50 = arith.constant 50 : index
    %304 = vector.load %arg1[%c0_103, %c0_104, %c50] : memref<1x4x484xf32, #tpu.memory_space<vmem>>, vector<1x4x346xf32>
    %305 = vector.shape_cast %304 : vector<1x4x346xf32> to vector<4x346xf32>
    %306 = arith.subf %1, %305 : vector<4x346xf32>
    %307 = arith.mulf %306, %306 : vector<4x346xf32>
    %cst_105 = arith.constant dense<0.000000e+00> : vector<346xf32>
    %308 = vector.multi_reduction <add>, %307, %cst_105 [0] : vector<4x346xf32> to vector<346xf32>
    %309 = vector.shape_cast %308 : vector<346xf32> to vector<1x346xf32>
    %cst_106 = arith.constant 49.9999733 : f32
    %310 = vector.broadcast %cst_106 : f32 to vector<1x346xf32>
    %311 = arith.mulf %309, %310 : vector<1x346xf32>
    %cst_107 = arith.constant -2.000000e+01 : f32
    %312 = vector.broadcast %cst_107 : f32 to vector<1x346xf32>
    %313 = arith.subf %312, %311 : vector<1x346xf32>
    %314 = math.exp %313 : vector<1x346xf32>
    %315 = vector.broadcast %314 : vector<1x346xf32> to vector<4x346xf32>
    %316 = arith.mulf %305, %315 : vector<4x346xf32>
    %317 = arith.addf %302, %316 : vector<4x346xf32>
    %318 = arith.addf %303, %314 : vector<1x346xf32>
    %c0_108 = arith.constant 0 : index
    %c0_109 = arith.constant 0 : index
    %c66 = arith.constant 66 : index
    %319 = vector.load %arg1[%c0_108, %c0_109, %c66] : memref<1x4x484xf32, #tpu.memory_space<vmem>>, vector<1x4x346xf32>
    %320 = vector.shape_cast %319 : vector<1x4x346xf32> to vector<4x346xf32>
    %321 = arith.subf %1, %320 : vector<4x346xf32>
    %322 = arith.mulf %321, %321 : vector<4x346xf32>
    %cst_110 = arith.constant dense<0.000000e+00> : vector<346xf32>
    %323 = vector.multi_reduction <add>, %322, %cst_110 [0] : vector<4x346xf32> to vector<346xf32>
    %324 = vector.shape_cast %323 : vector<346xf32> to vector<1x346xf32>
    %cst_111 = arith.constant 49.9999733 : f32
    %325 = vector.broadcast %cst_111 : f32 to vector<1x346xf32>
    %326 = arith.mulf %324, %325 : vector<1x346xf32>
    %cst_112 = arith.constant -1.800000e+01 : f32
    %327 = vector.broadcast %cst_112 : f32 to vector<1x346xf32>
    %328 = arith.subf %327, %326 : vector<1x346xf32>
    %329 = math.exp %328 : vector<1x346xf32>
    %330 = vector.broadcast %329 : vector<1x346xf32> to vector<4x346xf32>
    %331 = arith.mulf %320, %330 : vector<4x346xf32>
    %332 = arith.addf %317, %331 : vector<4x346xf32>
    %333 = arith.addf %318, %329 : vector<1x346xf32>
    %c0_113 = arith.constant 0 : index
    %c0_114 = arith.constant 0 : index
    %c67 = arith.constant 67 : index
    %334 = vector.load %arg1[%c0_113, %c0_114, %c67] : memref<1x4x484xf32, #tpu.memory_space<vmem>>, vector<1x4x346xf32>
    %335 = vector.shape_cast %334 : vector<1x4x346xf32> to vector<4x346xf32>
    %336 = arith.subf %1, %335 : vector<4x346xf32>
    %337 = arith.mulf %336, %336 : vector<4x346xf32>
    %cst_115 = arith.constant dense<0.000000e+00> : vector<346xf32>
    %338 = vector.multi_reduction <add>, %337, %cst_115 [0] : vector<4x346xf32> to vector<346xf32>
    %339 = vector.shape_cast %338 : vector<346xf32> to vector<1x346xf32>
    %cst_116 = arith.constant 49.9999733 : f32
    %340 = vector.broadcast %cst_116 : f32 to vector<1x346xf32>
    %341 = arith.mulf %339, %340 : vector<1x346xf32>
    %cst_117 = arith.constant -8.000000e+00 : f32
    %342 = vector.broadcast %cst_117 : f32 to vector<1x346xf32>
    %343 = arith.subf %342, %341 : vector<1x346xf32>
    %344 = math.exp %343 : vector<1x346xf32>
    %345 = vector.broadcast %344 : vector<1x346xf32> to vector<4x346xf32>
    %346 = arith.mulf %335, %345 : vector<4x346xf32>
    %347 = arith.addf %332, %346 : vector<4x346xf32>
    %348 = arith.addf %333, %344 : vector<1x346xf32>
    %c0_118 = arith.constant 0 : index
    %c0_119 = arith.constant 0 : index
    %c68 = arith.constant 68 : index
    %349 = vector.load %arg1[%c0_118, %c0_119, %c68] : memref<1x4x484xf32, #tpu.memory_space<vmem>>, vector<1x4x346xf32>
    %350 = vector.shape_cast %349 : vector<1x4x346xf32> to vector<4x346xf32>
    %351 = arith.subf %1, %350 : vector<4x346xf32>
    %352 = arith.mulf %351, %351 : vector<4x346xf32>
    %cst_120 = arith.constant dense<0.000000e+00> : vector<346xf32>
    %353 = vector.multi_reduction <add>, %352, %cst_120 [0] : vector<4x346xf32> to vector<346xf32>
    %354 = vector.shape_cast %353 : vector<346xf32> to vector<1x346xf32>
    %cst_121 = arith.constant 49.9999733 : f32
    %355 = vector.broadcast %cst_121 : f32 to vector<1x346xf32>
    %356 = arith.mulf %354, %355 : vector<1x346xf32>
    %cst_122 = arith.constant -2.000000e+00 : f32
    %357 = vector.broadcast %cst_122 : f32 to vector<1x346xf32>
    %358 = arith.subf %357, %356 : vector<1x346xf32>
    %359 = math.exp %358 : vector<1x346xf32>
    %360 = vector.broadcast %359 : vector<1x346xf32> to vector<4x346xf32>
    %361 = arith.mulf %350, %360 : vector<4x346xf32>
    %362 = arith.addf %347, %361 : vector<4x346xf32>
    %363 = arith.addf %348, %359 : vector<1x346xf32>
    %c0_123 = arith.constant 0 : index
    %c0_124 = arith.constant 0 : index
    %c69_125 = arith.constant 69 : index
    %364 = vector.load %arg1[%c0_123, %c0_124, %c69_125] : memref<1x4x484xf32, #tpu.memory_space<vmem>>, vector<1x4x346xf32>
    %365 = vector.shape_cast %364 : vector<1x4x346xf32> to vector<4x346xf32>
    %366 = arith.subf %1, %365 : vector<4x346xf32>
    %367 = arith.mulf %366, %366 : vector<4x346xf32>
    %cst_126 = arith.constant dense<0.000000e+00> : vector<346xf32>
    %368 = vector.multi_reduction <add>, %367, %cst_126 [0] : vector<4x346xf32> to vector<346xf32>
    %369 = vector.shape_cast %368 : vector<346xf32> to vector<1x346xf32>
    %cst_127 = arith.constant 49.9999733 : f32
    %370 = vector.broadcast %cst_127 : f32 to vector<1x346xf32>
    %371 = arith.mulf %369, %370 : vector<1x346xf32>
    %cst_128 = arith.constant -0.000000e+00 : f32
    %372 = vector.broadcast %cst_128 : f32 to vector<1x346xf32>
    %373 = arith.subf %372, %371 : vector<1x346xf32>
    %374 = math.exp %373 : vector<1x346xf32>
    %375 = vector.broadcast %374 : vector<1x346xf32> to vector<4x346xf32>
    %376 = arith.mulf %365, %375 : vector<4x346xf32>
    %377 = arith.addf %362, %376 : vector<4x346xf32>
    %378 = arith.addf %363, %374 : vector<1x346xf32>
    %c0_129 = arith.constant 0 : index
    %c0_130 = arith.constant 0 : index
    %c70 = arith.constant 70 : index
    %379 = vector.load %arg1[%c0_129, %c0_130, %c70] : memref<1x4x484xf32, #tpu.memory_space<vmem>>, vector<1x4x346xf32>
    %380 = vector.shape_cast %379 : vector<1x4x346xf32> to vector<4x346xf32>
    %381 = arith.subf %1, %380 : vector<4x346xf32>
    %382 = arith.mulf %381, %381 : vector<4x346xf32>
    %cst_131 = arith.constant dense<0.000000e+00> : vector<346xf32>
    %383 = vector.multi_reduction <add>, %382, %cst_131 [0] : vector<4x346xf32> to vector<346xf32>
    %384 = vector.shape_cast %383 : vector<346xf32> to vector<1x346xf32>
    %cst_132 = arith.constant 49.9999733 : f32
    %385 = vector.broadcast %cst_132 : f32 to vector<1x346xf32>
    %386 = arith.mulf %384, %385 : vector<1x346xf32>
    %cst_133 = arith.constant -2.000000e+00 : f32
    %387 = vector.broadcast %cst_133 : f32 to vector<1x346xf32>
    %388 = arith.subf %387, %386 : vector<1x346xf32>
    %389 = math.exp %388 : vector<1x346xf32>
    %390 = vector.broadcast %389 : vector<1x346xf32> to vector<4x346xf32>
    %391 = arith.mulf %380, %390 : vector<4x346xf32>
    %392 = arith.addf %377, %391 : vector<4x346xf32>
    %393 = arith.addf %378, %389 : vector<1x346xf32>
    %c0_134 = arith.constant 0 : index
    %c0_135 = arith.constant 0 : index
    %c71 = arith.constant 71 : index
    %394 = vector.load %arg1[%c0_134, %c0_135, %c71] : memref<1x4x484xf32, #tpu.memory_space<vmem>>, vector<1x4x346xf32>
    %395 = vector.shape_cast %394 : vector<1x4x346xf32> to vector<4x346xf32>
    %396 = arith.subf %1, %395 : vector<4x346xf32>
    %397 = arith.mulf %396, %396 : vector<4x346xf32>
    %cst_136 = arith.constant dense<0.000000e+00> : vector<346xf32>
    %398 = vector.multi_reduction <add>, %397, %cst_136 [0] : vector<4x346xf32> to vector<346xf32>
    %399 = vector.shape_cast %398 : vector<346xf32> to vector<1x346xf32>
    %cst_137 = arith.constant 49.9999733 : f32
    %400 = vector.broadcast %cst_137 : f32 to vector<1x346xf32>
    %401 = arith.mulf %399, %400 : vector<1x346xf32>
    %cst_138 = arith.constant -8.000000e+00 : f32
    %402 = vector.broadcast %cst_138 : f32 to vector<1x346xf32>
    %403 = arith.subf %402, %401 : vector<1x346xf32>
    %404 = math.exp %403 : vector<1x346xf32>
    %405 = vector.broadcast %404 : vector<1x346xf32> to vector<4x346xf32>
    %406 = arith.mulf %395, %405 : vector<4x346xf32>
    %407 = arith.addf %392, %406 : vector<4x346xf32>
    %408 = arith.addf %393, %404 : vector<1x346xf32>
    %c0_139 = arith.constant 0 : index
    %c0_140 = arith.constant 0 : index
    %c72 = arith.constant 72 : index
    %409 = vector.load %arg1[%c0_139, %c0_140, %c72] : memref<1x4x484xf32, #tpu.memory_space<vmem>>, vector<1x4x346xf32>
    %410 = vector.shape_cast %409 : vector<1x4x346xf32> to vector<4x346xf32>
    %411 = arith.subf %1, %410 : vector<4x346xf32>
    %412 = arith.mulf %411, %411 : vector<4x346xf32>
    %cst_141 = arith.constant dense<0.000000e+00> : vector<346xf32>
    %413 = vector.multi_reduction <add>, %412, %cst_141 [0] : vector<4x346xf32> to vector<346xf32>
    %414 = vector.shape_cast %413 : vector<346xf32> to vector<1x346xf32>
    %cst_142 = arith.constant 49.9999733 : f32
    %415 = vector.broadcast %cst_142 : f32 to vector<1x346xf32>
    %416 = arith.mulf %414, %415 : vector<1x346xf32>
    %cst_143 = arith.constant -1.800000e+01 : f32
    %417 = vector.broadcast %cst_143 : f32 to vector<1x346xf32>
    %418 = arith.subf %417, %416 : vector<1x346xf32>
    %419 = math.exp %418 : vector<1x346xf32>
    %420 = vector.broadcast %419 : vector<1x346xf32> to vector<4x346xf32>
    %421 = arith.mulf %410, %420 : vector<4x346xf32>
    %422 = arith.addf %407, %421 : vector<4x346xf32>
    %423 = arith.addf %408, %419 : vector<1x346xf32>
    %c0_144 = arith.constant 0 : index
    %c0_145 = arith.constant 0 : index
    %c88 = arith.constant 88 : index
    %424 = vector.load %arg1[%c0_144, %c0_145, %c88] : memref<1x4x484xf32, #tpu.memory_space<vmem>>, vector<1x4x346xf32>
    %425 = vector.shape_cast %424 : vector<1x4x346xf32> to vector<4x346xf32>
    %426 = arith.subf %1, %425 : vector<4x346xf32>
    %427 = arith.mulf %426, %426 : vector<4x346xf32>
    %cst_146 = arith.constant dense<0.000000e+00> : vector<346xf32>
    %428 = vector.multi_reduction <add>, %427, %cst_146 [0] : vector<4x346xf32> to vector<346xf32>
    %429 = vector.shape_cast %428 : vector<346xf32> to vector<1x346xf32>
    %cst_147 = arith.constant 49.9999733 : f32
    %430 = vector.broadcast %cst_147 : f32 to vector<1x346xf32>
    %431 = arith.mulf %429, %430 : vector<1x346xf32>
    %cst_148 = arith.constant -2.000000e+01 : f32
    %432 = vector.broadcast %cst_148 : f32 to vector<1x346xf32>
    %433 = arith.subf %432, %431 : vector<1x346xf32>
    %434 = math.exp %433 : vector<1x346xf32>
    %435 = vector.broadcast %434 : vector<1x346xf32> to vector<4x346xf32>
    %436 = arith.mulf %425, %435 : vector<4x346xf32>
    %437 = arith.addf %422, %436 : vector<4x346xf32>
    %438 = arith.addf %423, %434 : vector<1x346xf32>
    %c0_149 = arith.constant 0 : index
    %c0_150 = arith.constant 0 : index
    %c89 = arith.constant 89 : index
    %439 = vector.load %arg1[%c0_149, %c0_150, %c89] : memref<1x4x484xf32, #tpu.memory_space<vmem>>, vector<1x4x346xf32>
    %440 = vector.shape_cast %439 : vector<1x4x346xf32> to vector<4x346xf32>
    %441 = arith.subf %1, %440 : vector<4x346xf32>
    %442 = arith.mulf %441, %441 : vector<4x346xf32>
    %cst_151 = arith.constant dense<0.000000e+00> : vector<346xf32>
    %443 = vector.multi_reduction <add>, %442, %cst_151 [0] : vector<4x346xf32> to vector<346xf32>
    %444 = vector.shape_cast %443 : vector<346xf32> to vector<1x346xf32>
    %cst_152 = arith.constant 49.9999733 : f32
    %445 = vector.broadcast %cst_152 : f32 to vector<1x346xf32>
    %446 = arith.mulf %444, %445 : vector<1x346xf32>
    %cst_153 = arith.constant -1.000000e+01 : f32
    %447 = vector.broadcast %cst_153 : f32 to vector<1x346xf32>
    %448 = arith.subf %447, %446 : vector<1x346xf32>
    %449 = math.exp %448 : vector<1x346xf32>
    %450 = vector.broadcast %449 : vector<1x346xf32> to vector<4x346xf32>
    %451 = arith.mulf %440, %450 : vector<4x346xf32>
    %452 = arith.addf %437, %451 : vector<4x346xf32>
    %453 = arith.addf %438, %449 : vector<1x346xf32>
    %c0_154 = arith.constant 0 : index
    %c0_155 = arith.constant 0 : index
    %c90 = arith.constant 90 : index
    %454 = vector.load %arg1[%c0_154, %c0_155, %c90] : memref<1x4x484xf32, #tpu.memory_space<vmem>>, vector<1x4x346xf32>
    %455 = vector.shape_cast %454 : vector<1x4x346xf32> to vector<4x346xf32>
    %456 = arith.subf %1, %455 : vector<4x346xf32>
    %457 = arith.mulf %456, %456 : vector<4x346xf32>
    %cst_156 = arith.constant dense<0.000000e+00> : vector<346xf32>
    %458 = vector.multi_reduction <add>, %457, %cst_156 [0] : vector<4x346xf32> to vector<346xf32>
    %459 = vector.shape_cast %458 : vector<346xf32> to vector<1x346xf32>
    %cst_157 = arith.constant 49.9999733 : f32
    %460 = vector.broadcast %cst_157 : f32 to vector<1x346xf32>
    %461 = arith.mulf %459, %460 : vector<1x346xf32>
    %cst_158 = arith.constant -4.000000e+00 : f32
    %462 = vector.broadcast %cst_158 : f32 to vector<1x346xf32>
    %463 = arith.subf %462, %461 : vector<1x346xf32>
    %464 = math.exp %463 : vector<1x346xf32>
    %465 = vector.broadcast %464 : vector<1x346xf32> to vector<4x346xf32>
    %466 = arith.mulf %455, %465 : vector<4x346xf32>
    %467 = arith.addf %452, %466 : vector<4x346xf32>
    %468 = arith.addf %453, %464 : vector<1x346xf32>
    %c0_159 = arith.constant 0 : index
    %c0_160 = arith.constant 0 : index
    %c91 = arith.constant 91 : index
    %469 = vector.load %arg1[%c0_159, %c0_160, %c91] : memref<1x4x484xf32, #tpu.memory_space<vmem>>, vector<1x4x346xf32>
    %470 = vector.shape_cast %469 : vector<1x4x346xf32> to vector<4x346xf32>
    %471 = arith.subf %1, %470 : vector<4x346xf32>
    %472 = arith.mulf %471, %471 : vector<4x346xf32>
    %cst_161 = arith.constant dense<0.000000e+00> : vector<346xf32>
    %473 = vector.multi_reduction <add>, %472, %cst_161 [0] : vector<4x346xf32> to vector<346xf32>
    %474 = vector.shape_cast %473 : vector<346xf32> to vector<1x346xf32>
    %cst_162 = arith.constant 49.9999733 : f32
    %475 = vector.broadcast %cst_162 : f32 to vector<1x346xf32>
    %476 = arith.mulf %474, %475 : vector<1x346xf32>
    %cst_163 = arith.constant -2.000000e+00 : f32
    %477 = vector.broadcast %cst_163 : f32 to vector<1x346xf32>
    %478 = arith.subf %477, %476 : vector<1x346xf32>
    %479 = math.exp %478 : vector<1x346xf32>
    %480 = vector.broadcast %479 : vector<1x346xf32> to vector<4x346xf32>
    %481 = arith.mulf %470, %480 : vector<4x346xf32>
    %482 = arith.addf %467, %481 : vector<4x346xf32>
    %483 = arith.addf %468, %479 : vector<1x346xf32>
    %c0_164 = arith.constant 0 : index
    %c0_165 = arith.constant 0 : index
    %c92 = arith.constant 92 : index
    %484 = vector.load %arg1[%c0_164, %c0_165, %c92] : memref<1x4x484xf32, #tpu.memory_space<vmem>>, vector<1x4x346xf32>
    %485 = vector.shape_cast %484 : vector<1x4x346xf32> to vector<4x346xf32>
    %486 = arith.subf %1, %485 : vector<4x346xf32>
    %487 = arith.mulf %486, %486 : vector<4x346xf32>
    %cst_166 = arith.constant dense<0.000000e+00> : vector<346xf32>
    %488 = vector.multi_reduction <add>, %487, %cst_166 [0] : vector<4x346xf32> to vector<346xf32>
    %489 = vector.shape_cast %488 : vector<346xf32> to vector<1x346xf32>
    %cst_167 = arith.constant 49.9999733 : f32
    %490 = vector.broadcast %cst_167 : f32 to vector<1x346xf32>
    %491 = arith.mulf %489, %490 : vector<1x346xf32>
    %cst_168 = arith.constant -4.000000e+00 : f32
    %492 = vector.broadcast %cst_168 : f32 to vector<1x346xf32>
    %493 = arith.subf %492, %491 : vector<1x346xf32>
    %494 = math.exp %493 : vector<1x346xf32>
    %495 = vector.broadcast %494 : vector<1x346xf32> to vector<4x346xf32>
    %496 = arith.mulf %485, %495 : vector<4x346xf32>
    %497 = arith.addf %482, %496 : vector<4x346xf32>
    %498 = arith.addf %483, %494 : vector<1x346xf32>
    %c0_169 = arith.constant 0 : index
    %c0_170 = arith.constant 0 : index
    %c93 = arith.constant 93 : index
    %499 = vector.load %arg1[%c0_169, %c0_170, %c93] : memref<1x4x484xf32, #tpu.memory_space<vmem>>, vector<1x4x346xf32>
    %500 = vector.shape_cast %499 : vector<1x4x346xf32> to vector<4x346xf32>
    %501 = arith.subf %1, %500 : vector<4x346xf32>
    %502 = arith.mulf %501, %501 : vector<4x346xf32>
    %cst_171 = arith.constant dense<0.000000e+00> : vector<346xf32>
    %503 = vector.multi_reduction <add>, %502, %cst_171 [0] : vector<4x346xf32> to vector<346xf32>
    %504 = vector.shape_cast %503 : vector<346xf32> to vector<1x346xf32>
    %cst_172 = arith.constant 49.9999733 : f32
    %505 = vector.broadcast %cst_172 : f32 to vector<1x346xf32>
    %506 = arith.mulf %504, %505 : vector<1x346xf32>
    %cst_173 = arith.constant -1.000000e+01 : f32
    %507 = vector.broadcast %cst_173 : f32 to vector<1x346xf32>
    %508 = arith.subf %507, %506 : vector<1x346xf32>
    %509 = math.exp %508 : vector<1x346xf32>
    %510 = vector.broadcast %509 : vector<1x346xf32> to vector<4x346xf32>
    %511 = arith.mulf %500, %510 : vector<4x346xf32>
    %512 = arith.addf %497, %511 : vector<4x346xf32>
    %513 = arith.addf %498, %509 : vector<1x346xf32>
    %c0_174 = arith.constant 0 : index
    %c0_175 = arith.constant 0 : index
    %c94 = arith.constant 94 : index
    %514 = vector.load %arg1[%c0_174, %c0_175, %c94] : memref<1x4x484xf32, #tpu.memory_space<vmem>>, vector<1x4x346xf32>
    %515 = vector.shape_cast %514 : vector<1x4x346xf32> to vector<4x346xf32>
    %516 = arith.subf %1, %515 : vector<4x346xf32>
    %517 = arith.mulf %516, %516 : vector<4x346xf32>
    %cst_176 = arith.constant dense<0.000000e+00> : vector<346xf32>
    %518 = vector.multi_reduction <add>, %517, %cst_176 [0] : vector<4x346xf32> to vector<346xf32>
    %519 = vector.shape_cast %518 : vector<346xf32> to vector<1x346xf32>
    %cst_177 = arith.constant 49.9999733 : f32
    %520 = vector.broadcast %cst_177 : f32 to vector<1x346xf32>
    %521 = arith.mulf %519, %520 : vector<1x346xf32>
    %cst_178 = arith.constant -2.000000e+01 : f32
    %522 = vector.broadcast %cst_178 : f32 to vector<1x346xf32>
    %523 = arith.subf %522, %521 : vector<1x346xf32>
    %524 = math.exp %523 : vector<1x346xf32>
    %525 = vector.broadcast %524 : vector<1x346xf32> to vector<4x346xf32>
    %526 = arith.mulf %515, %525 : vector<4x346xf32>
    %527 = arith.addf %512, %526 : vector<4x346xf32>
    %528 = arith.addf %513, %524 : vector<1x346xf32>
    %c0_179 = arith.constant 0 : index
    %c0_180 = arith.constant 0 : index
    %c110 = arith.constant 110 : index
    %529 = vector.load %arg1[%c0_179, %c0_180, %c110] : memref<1x4x484xf32, #tpu.memory_space<vmem>>, vector<1x4x346xf32>
    %530 = vector.shape_cast %529 : vector<1x4x346xf32> to vector<4x346xf32>
    %531 = arith.subf %1, %530 : vector<4x346xf32>
    %532 = arith.mulf %531, %531 : vector<4x346xf32>
    %cst_181 = arith.constant dense<0.000000e+00> : vector<346xf32>
    %533 = vector.multi_reduction <add>, %532, %cst_181 [0] : vector<4x346xf32> to vector<346xf32>
    %534 = vector.shape_cast %533 : vector<346xf32> to vector<1x346xf32>
    %cst_182 = arith.constant 49.9999733 : f32
    %535 = vector.broadcast %cst_182 : f32 to vector<1x346xf32>
    %536 = arith.mulf %534, %535 : vector<1x346xf32>
    %cst_183 = arith.constant -2.600000e+01 : f32
    %537 = vector.broadcast %cst_183 : f32 to vector<1x346xf32>
    %538 = arith.subf %537, %536 : vector<1x346xf32>
    %539 = math.exp %538 : vector<1x346xf32>
    %540 = vector.broadcast %539 : vector<1x346xf32> to vector<4x346xf32>
    %541 = arith.mulf %530, %540 : vector<4x346xf32>
    %542 = arith.addf %527, %541 : vector<4x346xf32>
    %543 = arith.addf %528, %539 : vector<1x346xf32>
    %c0_184 = arith.constant 0 : index
    %c0_185 = arith.constant 0 : index
    %c111 = arith.constant 111 : index
    %544 = vector.load %arg1[%c0_184, %c0_185, %c111] : memref<1x4x484xf32, #tpu.memory_space<vmem>>, vector<1x4x346xf32>
    %545 = vector.shape_cast %544 : vector<1x4x346xf32> to vector<4x346xf32>
    %546 = arith.subf %1, %545 : vector<4x346xf32>
    %547 = arith.mulf %546, %546 : vector<4x346xf32>
    %cst_186 = arith.constant dense<0.000000e+00> : vector<346xf32>
    %548 = vector.multi_reduction <add>, %547, %cst_186 [0] : vector<4x346xf32> to vector<346xf32>
    %549 = vector.shape_cast %548 : vector<346xf32> to vector<1x346xf32>
    %cst_187 = arith.constant 49.9999733 : f32
    %550 = vector.broadcast %cst_187 : f32 to vector<1x346xf32>
    %551 = arith.mulf %549, %550 : vector<1x346xf32>
    %cst_188 = arith.constant -1.600000e+01 : f32
    %552 = vector.broadcast %cst_188 : f32 to vector<1x346xf32>
    %553 = arith.subf %552, %551 : vector<1x346xf32>
    %554 = math.exp %553 : vector<1x346xf32>
    %555 = vector.broadcast %554 : vector<1x346xf32> to vector<4x346xf32>
    %556 = arith.mulf %545, %555 : vector<4x346xf32>
    %557 = arith.addf %542, %556 : vector<4x346xf32>
    %558 = arith.addf %543, %554 : vector<1x346xf32>
    %c0_189 = arith.constant 0 : index
    %c0_190 = arith.constant 0 : index
    %c112 = arith.constant 112 : index
    %559 = vector.load %arg1[%c0_189, %c0_190, %c112] : memref<1x4x484xf32, #tpu.memory_space<vmem>>, vector<1x4x346xf32>
    %560 = vector.shape_cast %559 : vector<1x4x346xf32> to vector<4x346xf32>
    %561 = arith.subf %1, %560 : vector<4x346xf32>
    %562 = arith.mulf %561, %561 : vector<4x346xf32>
    %cst_191 = arith.constant dense<0.000000e+00> : vector<346xf32>
    %563 = vector.multi_reduction <add>, %562, %cst_191 [0] : vector<4x346xf32> to vector<346xf32>
    %564 = vector.shape_cast %563 : vector<346xf32> to vector<1x346xf32>
    %cst_192 = arith.constant 49.9999733 : f32
    %565 = vector.broadcast %cst_192 : f32 to vector<1x346xf32>
    %566 = arith.mulf %564, %565 : vector<1x346xf32>
    %cst_193 = arith.constant -1.000000e+01 : f32
    %567 = vector.broadcast %cst_193 : f32 to vector<1x346xf32>
    %568 = arith.subf %567, %566 : vector<1x346xf32>
    %569 = math.exp %568 : vector<1x346xf32>
    %570 = vector.broadcast %569 : vector<1x346xf32> to vector<4x346xf32>
    %571 = arith.mulf %560, %570 : vector<4x346xf32>
    %572 = arith.addf %557, %571 : vector<4x346xf32>
    %573 = arith.addf %558, %569 : vector<1x346xf32>
    %c0_194 = arith.constant 0 : index
    %c0_195 = arith.constant 0 : index
    %c113 = arith.constant 113 : index
    %574 = vector.load %arg1[%c0_194, %c0_195, %c113] : memref<1x4x484xf32, #tpu.memory_space<vmem>>, vector<1x4x346xf32>
    %575 = vector.shape_cast %574 : vector<1x4x346xf32> to vector<4x346xf32>
    %576 = arith.subf %1, %575 : vector<4x346xf32>
    %577 = arith.mulf %576, %576 : vector<4x346xf32>
    %cst_196 = arith.constant dense<0.000000e+00> : vector<346xf32>
    %578 = vector.multi_reduction <add>, %577, %cst_196 [0] : vector<4x346xf32> to vector<346xf32>
    %579 = vector.shape_cast %578 : vector<346xf32> to vector<1x346xf32>
    %cst_197 = arith.constant 49.9999733 : f32
    %580 = vector.broadcast %cst_197 : f32 to vector<1x346xf32>
    %581 = arith.mulf %579, %580 : vector<1x346xf32>
    %cst_198 = arith.constant -8.000000e+00 : f32
    %582 = vector.broadcast %cst_198 : f32 to vector<1x346xf32>
    %583 = arith.subf %582, %581 : vector<1x346xf32>
    %584 = math.exp %583 : vector<1x346xf32>
    %585 = vector.broadcast %584 : vector<1x346xf32> to vector<4x346xf32>
    %586 = arith.mulf %575, %585 : vector<4x346xf32>
    %587 = arith.addf %572, %586 : vector<4x346xf32>
    %588 = arith.addf %573, %584 : vector<1x346xf32>
    %c0_199 = arith.constant 0 : index
    %c0_200 = arith.constant 0 : index
    %c114 = arith.constant 114 : index
    %589 = vector.load %arg1[%c0_199, %c0_200, %c114] : memref<1x4x484xf32, #tpu.memory_space<vmem>>, vector<1x4x346xf32>
    %590 = vector.shape_cast %589 : vector<1x4x346xf32> to vector<4x346xf32>
    %591 = arith.subf %1, %590 : vector<4x346xf32>
    %592 = arith.mulf %591, %591 : vector<4x346xf32>
    %cst_201 = arith.constant dense<0.000000e+00> : vector<346xf32>
    %593 = vector.multi_reduction <add>, %592, %cst_201 [0] : vector<4x346xf32> to vector<346xf32>
    %594 = vector.shape_cast %593 : vector<346xf32> to vector<1x346xf32>
    %cst_202 = arith.constant 49.9999733 : f32
    %595 = vector.broadcast %cst_202 : f32 to vector<1x346xf32>
    %596 = arith.mulf %594, %595 : vector<1x346xf32>
    %cst_203 = arith.constant -1.000000e+01 : f32
    %597 = vector.broadcast %cst_203 : f32 to vector<1x346xf32>
    %598 = arith.subf %597, %596 : vector<1x346xf32>
    %599 = math.exp %598 : vector<1x346xf32>
    %600 = vector.broadcast %599 : vector<1x346xf32> to vector<4x346xf32>
    %601 = arith.mulf %590, %600 : vector<4x346xf32>
    %602 = arith.addf %587, %601 : vector<4x346xf32>
    %603 = arith.addf %588, %599 : vector<1x346xf32>
    %c0_204 = arith.constant 0 : index
    %c0_205 = arith.constant 0 : index
    %c115 = arith.constant 115 : index
    %604 = vector.load %arg1[%c0_204, %c0_205, %c115] : memref<1x4x484xf32, #tpu.memory_space<vmem>>, vector<1x4x346xf32>
    %605 = vector.shape_cast %604 : vector<1x4x346xf32> to vector<4x346xf32>
    %606 = arith.subf %1, %605 : vector<4x346xf32>
    %607 = arith.mulf %606, %606 : vector<4x346xf32>
    %cst_206 = arith.constant dense<0.000000e+00> : vector<346xf32>
    %608 = vector.multi_reduction <add>, %607, %cst_206 [0] : vector<4x346xf32> to vector<346xf32>
    %609 = vector.shape_cast %608 : vector<346xf32> to vector<1x346xf32>
    %cst_207 = arith.constant 49.9999733 : f32
    %610 = vector.broadcast %cst_207 : f32 to vector<1x346xf32>
    %611 = arith.mulf %609, %610 : vector<1x346xf32>
    %cst_208 = arith.constant -1.600000e+01 : f32
    %612 = vector.broadcast %cst_208 : f32 to vector<1x346xf32>
    %613 = arith.subf %612, %611 : vector<1x346xf32>
    %614 = math.exp %613 : vector<1x346xf32>
    %615 = vector.broadcast %614 : vector<1x346xf32> to vector<4x346xf32>
    %616 = arith.mulf %605, %615 : vector<4x346xf32>
    %617 = arith.addf %602, %616 : vector<4x346xf32>
    %618 = arith.addf %603, %614 : vector<1x346xf32>
    %c0_209 = arith.constant 0 : index
    %c0_210 = arith.constant 0 : index
    %c116 = arith.constant 116 : index
    %619 = vector.load %arg1[%c0_209, %c0_210, %c116] : memref<1x4x484xf32, #tpu.memory_space<vmem>>, vector<1x4x346xf32>
    %620 = vector.shape_cast %619 : vector<1x4x346xf32> to vector<4x346xf32>
    %621 = arith.subf %1, %620 : vector<4x346xf32>
    %622 = arith.mulf %621, %621 : vector<4x346xf32>
    %cst_211 = arith.constant dense<0.000000e+00> : vector<346xf32>
    %623 = vector.multi_reduction <add>, %622, %cst_211 [0] : vector<4x346xf32> to vector<346xf32>
    %624 = vector.shape_cast %623 : vector<346xf32> to vector<1x346xf32>
    %cst_212 = arith.constant 49.9999733 : f32
    %625 = vector.broadcast %cst_212 : f32 to vector<1x346xf32>
    %626 = arith.mulf %624, %625 : vector<1x346xf32>
    %cst_213 = arith.constant -2.600000e+01 : f32
    %627 = vector.broadcast %cst_213 : f32 to vector<1x346xf32>
    %628 = arith.subf %627, %626 : vector<1x346xf32>
    %629 = math.exp %628 : vector<1x346xf32>
    %630 = vector.broadcast %629 : vector<1x346xf32> to vector<4x346xf32>
    %631 = arith.mulf %620, %630 : vector<4x346xf32>
    %632 = arith.addf %617, %631 : vector<4x346xf32>
    %633 = arith.addf %618, %629 : vector<1x346xf32>
    %c0_214 = arith.constant 0 : index
    %c0_215 = arith.constant 0 : index
    %c132 = arith.constant 132 : index
    %634 = vector.load %arg1[%c0_214, %c0_215, %c132] : memref<1x4x484xf32, #tpu.memory_space<vmem>>, vector<1x4x346xf32>
    %635 = vector.shape_cast %634 : vector<1x4x346xf32> to vector<4x346xf32>
    %636 = arith.subf %1, %635 : vector<4x346xf32>
    %637 = arith.mulf %636, %636 : vector<4x346xf32>
    %cst_216 = arith.constant dense<0.000000e+00> : vector<346xf32>
    %638 = vector.multi_reduction <add>, %637, %cst_216 [0] : vector<4x346xf32> to vector<346xf32>
    %639 = vector.shape_cast %638 : vector<346xf32> to vector<1x346xf32>
    %cst_217 = arith.constant 49.9999733 : f32
    %640 = vector.broadcast %cst_217 : f32 to vector<1x346xf32>
    %641 = arith.mulf %639, %640 : vector<1x346xf32>
    %cst_218 = arith.constant -3.600000e+01 : f32
    %642 = vector.broadcast %cst_218 : f32 to vector<1x346xf32>
    %643 = arith.subf %642, %641 : vector<1x346xf32>
    %644 = math.exp %643 : vector<1x346xf32>
    %645 = vector.broadcast %644 : vector<1x346xf32> to vector<4x346xf32>
    %646 = arith.mulf %635, %645 : vector<4x346xf32>
    %647 = arith.addf %632, %646 : vector<4x346xf32>
    %648 = arith.addf %633, %644 : vector<1x346xf32>
    %c0_219 = arith.constant 0 : index
    %c0_220 = arith.constant 0 : index
    %c133 = arith.constant 133 : index
    %649 = vector.load %arg1[%c0_219, %c0_220, %c133] : memref<1x4x484xf32, #tpu.memory_space<vmem>>, vector<1x4x346xf32>
    %650 = vector.shape_cast %649 : vector<1x4x346xf32> to vector<4x346xf32>
    %651 = arith.subf %1, %650 : vector<4x346xf32>
    %652 = arith.mulf %651, %651 : vector<4x346xf32>
    %cst_221 = arith.constant dense<0.000000e+00> : vector<346xf32>
    %653 = vector.multi_reduction <add>, %652, %cst_221 [0] : vector<4x346xf32> to vector<346xf32>
    %654 = vector.shape_cast %653 : vector<346xf32> to vector<1x346xf32>
    %cst_222 = arith.constant 49.9999733 : f32
    %655 = vector.broadcast %cst_222 : f32 to vector<1x346xf32>
    %656 = arith.mulf %654, %655 : vector<1x346xf32>
    %cst_223 = arith.constant -2.600000e+01 : f32
    %657 = vector.broadcast %cst_223 : f32 to vector<1x346xf32>
    %658 = arith.subf %657, %656 : vector<1x346xf32>
    %659 = math.exp %658 : vector<1x346xf32>
    %660 = vector.broadcast %659 : vector<1x346xf32> to vector<4x346xf32>
    %661 = arith.mulf %650, %660 : vector<4x346xf32>
    %662 = arith.addf %647, %661 : vector<4x346xf32>
    %663 = arith.addf %648, %659 : vector<1x346xf32>
    %c0_224 = arith.constant 0 : index
    %c0_225 = arith.constant 0 : index
    %c134 = arith.constant 134 : index
    %664 = vector.load %arg1[%c0_224, %c0_225, %c134] : memref<1x4x484xf32, #tpu.memory_space<vmem>>, vector<1x4x346xf32>
    %665 = vector.shape_cast %664 : vector<1x4x346xf32> to vector<4x346xf32>
    %666 = arith.subf %1, %665 : vector<4x346xf32>
    %667 = arith.mulf %666, %666 : vector<4x346xf32>
    %cst_226 = arith.constant dense<0.000000e+00> : vector<346xf32>
    %668 = vector.multi_reduction <add>, %667, %cst_226 [0] : vector<4x346xf32> to vector<346xf32>
    %669 = vector.shape_cast %668 : vector<346xf32> to vector<1x346xf32>
    %cst_227 = arith.constant 49.9999733 : f32
    %670 = vector.broadcast %cst_227 : f32 to vector<1x346xf32>
    %671 = arith.mulf %669, %670 : vector<1x346xf32>
    %cst_228 = arith.constant -2.000000e+01 : f32
    %672 = vector.broadcast %cst_228 : f32 to vector<1x346xf32>
    %673 = arith.subf %672, %671 : vector<1x346xf32>
    %674 = math.exp %673 : vector<1x346xf32>
    %675 = vector.broadcast %674 : vector<1x346xf32> to vector<4x346xf32>
    %676 = arith.mulf %665, %675 : vector<4x346xf32>
    %677 = arith.addf %662, %676 : vector<4x346xf32>
    %678 = arith.addf %663, %674 : vector<1x346xf32>
    %c0_229 = arith.constant 0 : index
    %c0_230 = arith.constant 0 : index
    %c135 = arith.constant 135 : index
    %679 = vector.load %arg1[%c0_229, %c0_230, %c135] : memref<1x4x484xf32, #tpu.memory_space<vmem>>, vector<1x4x346xf32>
    %680 = vector.shape_cast %679 : vector<1x4x346xf32> to vector<4x346xf32>
    %681 = arith.subf %1, %680 : vector<4x346xf32>
    %682 = arith.mulf %681, %681 : vector<4x346xf32>
    %cst_231 = arith.constant dense<0.000000e+00> : vector<346xf32>
    %683 = vector.multi_reduction <add>, %682, %cst_231 [0] : vector<4x346xf32> to vector<346xf32>
    %684 = vector.shape_cast %683 : vector<346xf32> to vector<1x346xf32>
    %cst_232 = arith.constant 49.9999733 : f32
    %685 = vector.broadcast %cst_232 : f32 to vector<1x346xf32>
    %686 = arith.mulf %684, %685 : vector<1x346xf32>
    %cst_233 = arith.constant -1.800000e+01 : f32
    %687 = vector.broadcast %cst_233 : f32 to vector<1x346xf32>
    %688 = arith.subf %687, %686 : vector<1x346xf32>
    %689 = math.exp %688 : vector<1x346xf32>
    %690 = vector.broadcast %689 : vector<1x346xf32> to vector<4x346xf32>
    %691 = arith.mulf %680, %690 : vector<4x346xf32>
    %692 = arith.addf %677, %691 : vector<4x346xf32>
    %693 = arith.addf %678, %689 : vector<1x346xf32>
    %c0_234 = arith.constant 0 : index
    %c0_235 = arith.constant 0 : index
    %c136 = arith.constant 136 : index
    %694 = vector.load %arg1[%c0_234, %c0_235, %c136] : memref<1x4x484xf32, #tpu.memory_space<vmem>>, vector<1x4x346xf32>
    %695 = vector.shape_cast %694 : vector<1x4x346xf32> to vector<4x346xf32>
    %696 = arith.subf %1, %695 : vector<4x346xf32>
    %697 = arith.mulf %696, %696 : vector<4x346xf32>
    %cst_236 = arith.constant dense<0.000000e+00> : vector<346xf32>
    %698 = vector.multi_reduction <add>, %697, %cst_236 [0] : vector<4x346xf32> to vector<346xf32>
    %699 = vector.shape_cast %698 : vector<346xf32> to vector<1x346xf32>
    %cst_237 = arith.constant 49.9999733 : f32
    %700 = vector.broadcast %cst_237 : f32 to vector<1x346xf32>
    %701 = arith.mulf %699, %700 : vector<1x346xf32>
    %cst_238 = arith.constant -2.000000e+01 : f32
    %702 = vector.broadcast %cst_238 : f32 to vector<1x346xf32>
    %703 = arith.subf %702, %701 : vector<1x346xf32>
    %704 = math.exp %703 : vector<1x346xf32>
    %705 = vector.broadcast %704 : vector<1x346xf32> to vector<4x346xf32>
    %706 = arith.mulf %695, %705 : vector<4x346xf32>
    %707 = arith.addf %692, %706 : vector<4x346xf32>
    %708 = arith.addf %693, %704 : vector<1x346xf32>
    %c0_239 = arith.constant 0 : index
    %c0_240 = arith.constant 0 : index
    %c137 = arith.constant 137 : index
    %709 = vector.load %arg1[%c0_239, %c0_240, %c137] : memref<1x4x484xf32, #tpu.memory_space<vmem>>, vector<1x4x346xf32>
    %710 = vector.shape_cast %709 : vector<1x4x346xf32> to vector<4x346xf32>
    %711 = arith.subf %1, %710 : vector<4x346xf32>
    %712 = arith.mulf %711, %711 : vector<4x346xf32>
    %cst_241 = arith.constant dense<0.000000e+00> : vector<346xf32>
    %713 = vector.multi_reduction <add>, %712, %cst_241 [0] : vector<4x346xf32> to vector<346xf32>
    %714 = vector.shape_cast %713 : vector<346xf32> to vector<1x346xf32>
    %cst_242 = arith.constant 49.9999733 : f32
    %715 = vector.broadcast %cst_242 : f32 to vector<1x346xf32>
    %716 = arith.mulf %714, %715 : vector<1x346xf32>
    %cst_243 = arith.constant -2.600000e+01 : f32
    %717 = vector.broadcast %cst_243 : f32 to vector<1x346xf32>
    %718 = arith.subf %717, %716 : vector<1x346xf32>
    %719 = math.exp %718 : vector<1x346xf32>
    %720 = vector.broadcast %719 : vector<1x346xf32> to vector<4x346xf32>
    %721 = arith.mulf %710, %720 : vector<4x346xf32>
    %722 = arith.addf %707, %721 : vector<4x346xf32>
    %723 = arith.addf %708, %719 : vector<1x346xf32>
    %c0_244 = arith.constant 0 : index
    %c0_245 = arith.constant 0 : index
    %c138 = arith.constant 138 : index
    %724 = vector.load %arg1[%c0_244, %c0_245, %c138] : memref<1x4x484xf32, #tpu.memory_space<vmem>>, vector<1x4x346xf32>
    %725 = vector.shape_cast %724 : vector<1x4x346xf32> to vector<4x346xf32>
    %726 = arith.subf %1, %725 : vector<4x346xf32>
    %727 = arith.mulf %726, %726 : vector<4x346xf32>
    %cst_246 = arith.constant dense<0.000000e+00> : vector<346xf32>
    %728 = vector.multi_reduction <add>, %727, %cst_246 [0] : vector<4x346xf32> to vector<346xf32>
    %729 = vector.shape_cast %728 : vector<346xf32> to vector<1x346xf32>
    %cst_247 = arith.constant 49.9999733 : f32
    %730 = vector.broadcast %cst_247 : f32 to vector<1x346xf32>
    %731 = arith.mulf %729, %730 : vector<1x346xf32>
    %cst_248 = arith.constant -3.600000e+01 : f32
    %732 = vector.broadcast %cst_248 : f32 to vector<1x346xf32>
    %733 = arith.subf %732, %731 : vector<1x346xf32>
    %734 = math.exp %733 : vector<1x346xf32>
    %735 = vector.broadcast %734 : vector<1x346xf32> to vector<4x346xf32>
    %736 = arith.mulf %725, %735 : vector<4x346xf32>
    %737 = arith.addf %722, %736 : vector<4x346xf32>
    %738 = arith.addf %723, %734 : vector<1x346xf32>
    %cst_249 = arith.constant 9.99999993E-9 : f32
    %739 = vector.broadcast %cst_249 : f32 to vector<1x346xf32>
    %740 = arith.addf %738, %739 : vector<1x346xf32>
    %741 = tpu.reciprocal %740 {approx = true} : vector<1x346xf32> -> vector<1x346xf32>
    %742 = vector.broadcast %741 : vector<1x346xf32> to vector<4x346xf32>
    %743 = arith.mulf %737, %742 : vector<4x346xf32>
    %c0_250 = arith.constant 0 : index
    %c0_251 = arith.constant 0 : index
    %c0_252 = arith.constant 0 : index
    %744 = vector.load %arg2[%c0_250, %c0_251, %c0_252] : memref<1x4x346xf32, #tpu.memory_space<vmem>>, vector<1x4x346xf32>
    %745 = vector.shape_cast %744 : vector<1x4x346xf32> to vector<4x346xf32>
    %746 = vector.shape_cast %743 : vector<4x346xf32> to vector<1x4x346xf32>
    tpu.vector_store %arg2[%c0_250, %c0_251, %c0_252], %746 {strides = array<i32>} : memref<1x4x346xf32, #tpu.memory_space<vmem>>, vector<1x4x346xf32>,
    return
  }
  func.func @transform_0(%arg0: i32) -> (i32, i32, i32) {
    %c0_i32 = arith.constant 0 : i32
    %c0_i32_0 = arith.constant 0 : i32
    %c0_i32_1 = arith.constant 0 : i32
    return %arg0, %c0_i32, %c0_i32_0 : i32, i32, i32
  }
  func.func @transform_1(%arg0: i32) -> (i32, i32, i32) {
    %c0_i32 = arith.constant 0 : i32
    %c0_i32_0 = arith.constant 0 : i32
    %c0_i32_1 = arith.constant 0 : i32
    return %arg0, %c0_i32, %c0_i32_0 : i32, i32, i32
  }
}

</mosaic_0001>

<bundles_post_ra>
// kernel: tpu_custom_call.1
= control target key start
LH: loop header
LB: loop body
LE: loop exit
PB: predicated region body
PF: predicated region fallthrough
CT: control target
= control target key end

     0   :  { %6 = vsyncpa [#allocation3], 0  ;;  %s9964_s0 = inlined_call_operand.hbm [shape: f32[2,4,484], index: 0, kind: input, shape index: {}]   ;;  %s9965_s1 = inlined_call_operand.hbm [shape: f32[2,4,346], index: 1, kind: output, shape index: {}]  }
   0x1   :  { %8 = vsyncpa [#allocation3 + $0x1], 0 }
   0x2   :  { %9 = vsyncpa [#allocation4], 0 }
   0x3   :  { %11 = vsyncpa [#allocation4 + $0x1], 0  ;;  %s6724_s6 = smov 0   ;;  %s6726_s7 = smov 0  }
   0x4   :  { %s6728_s8 = smov 0   ;;  %s6730_s9 = smov 0  }
   0x5 LB: > { %s6745_s10 = sadd.s32 4294967295, %s6637_s9   ;;  %s5960_s11 = sadd.s32 4294967294, %s6637_s9   ;;  %s6637_s9 = sphi %s6730_s9, %s10316_s9   ;;  %s6633_s8 = sphi %s6728_s8, %s10315_s8   ;;  %s6629_s7 = sphi %s6726_s7, %s10314_s7   ;;  %s6625_s6 = sphi %s6724_s6, %s10313_s6  }
   0x6   : > { %s6749_s12 = sadd.s32 1, %s6637_s9   ;;  %s24_s13 = sadd.s32 1, %s6633_s8 }
   0x7   : > { %s21_s14 = ssub.s32 %s6637_s9, %s6749_s12  ;;  %p31_p0 = scmp.ne.s32.totalorder %s6633_s8, %s6629_s7 }
   0x8   : > { %p22_p1 = scmp.eq.s32.totalorder %s21_s14, 0  ;;  %p32_p2 = scmp.eq.s32.totalorder %s6637_s9, 0 }
   0x9   : > { %p37_p3 = scmp.ne.s32.totalorder %s6629_s7, %s6625_s6  ;;  %p38_p4 = scmp.eq.s32.totalorder %s6745_s10, 0 }
   0xa   : > { %s6761_s15 = scalar_select %p22_p1, %s6633_s8, %s24_s13  }
   0xb   : > { %p6763_p5 = por %p32_p2, %p31_p0  ;;  %p6767_p6 = por %p38_p4, %p37_p3 }
   0xc   : > { %p61_p7 = scmp.eq.s32.totalorder %s6745_s10, 1  ;;  %p67_p8 = scmp.eq.s32.totalorder %s5960_s11, 1 }
   0xd   : > { %p5986_p10 = scmp.lt.s32.totalorder %s6637_s9, 2  ;;  %s87_s20 = sand.u32 1, %s6633_s8  }
   0xe   : > { %p6774_p11 = por %p61_p7, %p31_p0  ;;  %p6778_p12 = por %p67_p8, %p37_p3 }
   0xf   : > { %s5971_s21 = sshll.u32 %s6637_s9, 4  ;;  %s5963_s22 = sshll.u32 %s87_s20, 4 }
  0x10   : > { %s96_s25 = scalar_lea.hbm %s9964_s0, %s5971_s21  ;;  %s91_s27 = scalar_lea.vmem [#allocation2], %s5963_s22 }
  0x11   : > { %s98_s26 = sshll.u32 %s96_s25, 4  ;;  %s100_s28 = sshll.u32 %s91_s27, 4  ;;  %s99_s26 = int_to_ptr.hbm [resolvable:$true] %s98_s26  ;;  %s101_s28 = int_to_ptr.vmem [resolvable:$true] %s100_s28 }
  0x12   : > { %p6789_p13 = pnand %p5986_p10, %p6763_p5  ;;  %p5966_p0 = scmp.ge.s32.totalorder %s6637_s9, 1 }
  0x13   : > { %p105_p1 = scmp.lt.s32.totalorder %s6637_s9, 3  ;;  %s88_s30 = scalar_lea.sflag [#allocation3], %s87_s20 }
  0x14   : > { %s6541_s2 = sshra.s32 %s99_s26, 4  ;;  %p6545_p3 = pneg %p6789_p13  ;;  %s6542_s2 = int_to_ptr.hbm [resolvable:$true] %s6541_s2 }
  0x15   : > { %s6543_s3 = scalar_lea.hbm %s6542_s2, 16  ;;  %s6548_s11 = scalar_lea.hbm %s9964_s0, 32 }
  0x16   : > { %p6544_p2 = scmp.ne.s32.totalorder %s6542_s2, %s6543_s3  ;;  %p6549_p5 = scmp.lt.s32.totalorder %s6542_s2, %s9964_s0 }
  0x17   : > { %p6550_p8 = scmp.lt.s32.totalorder %s6548_s11, %s6543_s3 }
  0x18   : > { %p6546_p4 = pnand %p6545_p3, %p6544_p2 }
  0x19   : > { %p6551_p10 = por %p6550_p8, %p6549_p5 }
  0x1a   : > { %p6547_p7 = pneg %p6546_p4 }
  0x1c   : > { %p6552_p9 = pnand %p6551_p10, %p6547_p7 }
  0x1e   : > { %6555 = shalt.err (!%p6552_p9)
}
  0x1f   : > { %5981 = dma.hbm_to_vmem [thread:$0]  (!%p6789_p13), %s99_s26, 256, %s101_s28, %s88_s30  }
  0x20   : > { %p106_p2 = pnand %p5966_p0, %p105_p1 }
  0x22   : > { %109 = sbr.rel (%p106_p2) target bundleno = 2447 (0x98f), region = 24 }
  0x27   : > { %s6810_s16 = sand.u32 1, %s6629_s7  }
  0x28   : > { %s5967_s20 = sshll.u32 %s6810_s16, 4  ;;  %s112_s21 = scalar_lea.sflag [#allocation3], %s6810_s16 }
  0x29   : > { %s6814_s22 = scalar_lea.vmem [#allocation2], %s5967_s20 }
  0x2a   : > { %6616 = dma.done.wait (%p6767_p6), %s112_s21, 256  }
  0x2b   : > { %6618 = vsyncadd (%p6767_p6), %s112_s21, 4294967040  ;;  %v6821_v0 = vld [vmem:[%s6814_s22] sm:$0xff]  ;;  %s9966_s23 = smov 67   ;;  %s9968_s24 = smov 69   ;;  %v137_v1 = vld [vmem:[%s6814_s22 + $0x8] sm:$0xf] }
  0x2c   : > { %366 = vrot.lane.b32.xlu1 %v6821_v0, %s9966_s23  ;;  %140 = vrot.lane.b32.xlu0 %v6821_v0, %s9968_s24  ;;  %s9970_s25 = smov 68   ;;  %v245_v2 = vld [vmem:[%s6814_s22 + $0x8] sm:$0xf]  ;;  %s9972_s17 = smov 66   ;;  %vm9982_vm0 = vcmask 564224   ;;  %vm9983_vm1 = vcmask 556032  }
  0x2d   : > { %248 = vrot.lane.b32.xlu2 %v6821_v0, %s9970_s25  ;;  %v363_v3 = vld [vmem:[%s6814_s22 + $0x8] sm:$0xf]  ;;  %s10000_s26 = smov 65   ;;  %s9997_s27 = smov 64   ;;  %vm148_vm2 = vcmask 1043456   ;;  %vm9984_vm3 = vcmask 547840  }
  0x2e   : > { %v481_v4 = vld [vmem:[%s6814_s22 + $0x8] sm:$0xf]  ;;  %s9994_s28 = smov 63   ;;  %s9974_s29 = smov 47   ;;  %vm10082_vm4 = vcmask 1044008   ;;  %vm9987_vm5 = vcmask 539648  }
  0x2f   : > { %v599_v5 = vld [vmem:[%s6814_s22 + $0x8] sm:$0xf]  ;;  %s9976_s30 = smov 46   ;;  %s9978_s2 = smov 45   ;;  %vm10042_vm6 = vcmask 531456   ;;  %vm192_vm7 = vcmask 248832  }
  0x30   : > { %v717_v6 = vld [vmem:[%s6814_s22 + $0x8] sm:$0xf]  ;;  %s9980_s3 = smov 44   ;;  %s9985_s4 = smov 43   ;;  %vm10041_vm8 = vcmask 523264   ;;  %vm10040_vm9 = vcmask 515072  }
  0x31   : > { %v834_v7 = vld [vmem:[%s6814_s22 + $0x8] sm:$0xf]  ;;  %s9988_s5 = smov 42   ;;  %s9991_s11 = smov 41   ;;  %vm9990_vm10 = vcmask 384000   ;;  %vm9993_vm11 = vcmask 375808  }
  0x32   : > { %v950_v8 = vld [vmem:[%s6814_s22 + $0x8] sm:$0xf]  ;;  %s10002_s13 = smov 25   ;;  %s10005_s14 = smov 24   ;;  %vm9996_vm12 = vcmask 367616   ;;  %vm9999_vm13 = vcmask 359424  }
  0x33   : > { %v1068_v9 = vld [vmem:[%s6814_s22 + $0x8] sm:$0xf]  ;;  %s10015_s20 = smov 23   ;;  %s10018_s21 = smov 22   ;;  %vm10004_vm14 = vcmask 351232   ;;  %vm10009_vm15 = vcmask 343040  }
  0x34   : > { %484 = vrot.lane.b32.xlu1 %v6821_v0, %s9972_s17  ;;  %142 = vrot.lane.b32.xlu0 %v137_v1, %s9968_s24  ;;  %v1186_v10 = vld [vmem:[%s6814_s22 + $0x8] sm:$0xf]  ;;  %s10034_s24 = smov 20  }
  0x35   : > { %250 = vrot.lane.b32.xlu2 %v245_v2, %s9970_s25  ;;  %v1304_v11 = vld [vmem:[%s6814_s22 + $0x8] sm:$0xf]  ;;  %s6659_s25 = smov 19  }
  0x36   : > { %v1422_v12 = vld [vmem:[%s6814_s22 + $0x8] sm:$0xf] }
  0x37   : > { %v1540_v14 = vld [vmem:[%s6814_s22 + $0x8] sm:$0xf] }
  0x38   : > { %v1658_v16 = vld [vmem:[%s6814_s22 + $0x8] sm:$0xf] }
  0x39   : > { %v6886_v18 = vld [vmem:[%s6814_s22 + $0x8] sm:$0xff] }
  0x3c   : > { %602 = vrot.lane.b32.xlu1 %v6821_v0, %s10000_s26 }
  0x3d   : > { %368 = vrot.lane.b32.xlu2 %v363_v3, %s9966_s23  ;;  %s10030_s23 = smov 21  }
  0x44   : > { %720 = vrot.lane.b32.xlu1 %v6821_v0, %s9997_s27 }
  0x45   : > { %486 = vrot.lane.b32.xlu2 %v481_v4, %s9972_s17  ;;  %s6660_s17 = smov 3  }
  0x4c   : > { %837 = vrot.lane.b32.xlu1 %v6821_v0, %s9994_s28 }
  0x4d   : > { %604 = vrot.lane.b32.xlu2 %v599_v5, %s10000_s26 }
  0x54   : > { %953 = vrot.lane.b32.xlu1 %v6821_v0, %s9974_s29 }
  0x55   : > { %722 = vrot.lane.b32.xlu2 %v717_v6, %s9997_s27 }
  0x5c   : > { %1071 = vrot.lane.b32.xlu1 %v6821_v0, %s9976_s30 }
  0x5d   : > { %839 = vrot.lane.b32.xlu2 %v834_v7, %s9994_s28 }
  0x64   : > { %1189 = vrot.lane.b32.xlu1 %v6821_v0, %s9978_s2 }
  0x65   : > { %955 = vrot.lane.b32.xlu2 %v950_v8, %s9974_s29  ;;  %s6661_s29 = smov 59  }
  0x6c   : > { %1307 = vrot.lane.b32.xlu1 %v6821_v0, %s9980_s3 }
  0x6d   : > { %1073 = vrot.lane.b32.xlu2 %v1068_v9, %s9976_s30  ;;  %s10020_s30 = smov 60  }
  0x74   : > { %1425 = vrot.lane.b32.xlu1 %v6821_v0, %s9985_s4 }
  0x75   : > { %1191 = vrot.lane.b32.xlu2 %v1186_v10, %s9978_s2  ;;  %s10022_s2 = smov 61  }
  0x7c   : > { %1543 = vrot.lane.b32.xlu1 %v6821_v0, %s9988_s5 }
  0x7d   : > { %1309 = vrot.lane.b32.xlu2 %v1304_v11, %s9980_s3  ;;  %s10024_s3 = smov 62  }
  0x84   : > { %1661 = vrot.lane.b32.xlu1 %v6821_v0, %s9991_s11 }
  0x85   : > { %1427 = vrot.lane.b32.xlu2 %v1422_v12, %s9985_s4  ;;  %s10026_s4 = smov 81  }
  0x87   : > { %v249_v13 = vpop.permute.xlu2 %248 }
  0x88   : > { %v252_v23 = vrot.slane %v249_v13, 4 }
  0x8a   : > { %v255_v27 = vsel %vm9983_vm1, %v252_v23, %v249_v13 }
  0x8b   : > { %v260_v32 = vsub.f32 %v6821_v0, %v255_v27 }
  0x8c   : > { %1779 = vrot.lane.b32.xlu1 %v6821_v0, %s10002_s13 }
  0x8d   : > { %1545 = vrot.lane.b32.xlu2 %v1540_v14, %s9988_s5  ;;  %v262_v38 = vmul.f32 %v260_v32, %v260_v32  ;;  %s10028_s5 = smov 82  }
  0x8f   : > { %v251_v15 = vpop.permute.xlu2 %250 }
  0x90   : > { %v253_v33 = vrot.slane %v251_v15, 4 }
  0x92   : > { %v256_v39 = vsel %vm148_vm2, %v252_v23, %v253_v33 }
  0x93   : > { %v257_v47 = vsel %vm9983_vm1, %v256_v39, %v251_v15  ;;  %vm10017_vm1 = vcmask 203776  }
  0x94   : > { %1896 = vrot.lane.b32.xlu1 %v6821_v0, %s10005_s14  ;;  %v261_v56 = vsub.f32 %v6886_v18, %v257_v47 }
  0x95   : > { %1663 = vrot.lane.b32.xlu2 %v1658_v16, %s9991_s11  ;;  %s10032_s11 = smov 83  }
  0x96   : > { %v263_v3 = vmul.f32 %v261_v56, %v261_v56 }
  0x97   : > { %v6883_v17 = vpop.permute.xlu2 %368 }
  0x98   : > { %v371_v48 = vrot.slane %v6883_v17, 4 }
  0x9c   : > { %2013 = vrot.lane.b32.xlu1 %v6821_v0, %s10015_s20 }
  0x9d   : > { %1781 = vrot.lane.b32.xlu2 %v6886_v18, %s10002_s13  ;;  %s10013_s13 = smov 87  }
  0x9e   : > { %v367_v19 = vpop.permute.xlu1 %366  ;;  %v141_v20 = vpop.permute.xlu0 %140 }
  0x9f   : > { %v144_v21 = vrot.slane %v141_v20, 4  ;;  %v6892_v22 = vpop.permute.xlu2 %486  ;;  %v370_v34 = vrot.slane %v367_v19, 4 }
  0xa0   : > { %v489_v8 = vrot.slane %v6892_v22, 4 }
  0xa1   : > { %v147_v24 = vsel %vm9982_vm0, %v144_v21, %v141_v20  ;;  %v373_v40 = vsel %vm9984_vm3, %v370_v34, %v367_v19  ;;  %v374_v57 = vsel %vm148_vm2, %v370_v34, %v371_v48 }
  0xa2   : > { %v153_v25 = vsub.f32 %v6821_v0, %v147_v24  ;;  %v378_v52 = vsub.f32 %v6821_v0, %v373_v40  ;;  %v375_v4 = vsel %vm9984_vm3, %v374_v57, %v6883_v17  ;;  %vm10036_vm3 = vcmask 195584  }
  0xa3   : > { %v379_v17 = vsub.f32 %v6886_v18, %v375_v4 }
  0xa4   : > { %v155_v26 = vmul.f32 %v153_v25, %v153_v25  ;;  %2130 = vrot.lane.b32.xlu1 %v6821_v0, %s10018_s21  ;;  %v380_v60 = vmul.f32 %v378_v52, %v378_v52 }
  0xa5   : > { %1898 = vrot.lane.b32.xlu2 %v6886_v18, %s10005_s14  ;;  %s6672_s14 = smov 103  }
  0xa6   : > { %159 = vst [vmem:[#allocation1] ss:$2 sm:$0xff] %v155_v26  ;;  %v6901_v28 = vpop.permute.xlu1 %484  ;;  %v143_v29 = vpop.permute.xlu0 %142 }
  0xa7   : > { %v145_v30 = vrot.slane %v143_v29, 4  ;;  %v6903_v31 = vpop.permute.xlu2 %604  ;;  %v488_v53 = vrot.slane %v6901_v28, 4 }
  0xa8   : > { %v607_v23 = vrot.slane %v6903_v31, 4 }
  0xa9   : > { %v149_v35 = vsel %vm148_vm2, %v144_v21, %v145_v30  ;;  %v491_v63 = vsel %vm9987_vm5, %v488_v53, %v6901_v28  ;;  %v492_v26 = vsel %vm148_vm2, %v488_v53, %v489_v8 }
  0xaa   : > { %v150_v36 = vsel %vm9982_vm0, %v149_v35, %v143_v29  ;;  %v496_v12 = vsub.f32 %v6821_v0, %v491_v63  ;;  %v381_v35 = vmul.f32 %v379_v17, %v379_v17  ;;  %vm10012_vm0 = vcmask 334848  }
  0xab   : > { %v154_v37 = vsub.f32 %v6886_v18, %v150_v36 }
  0xac   : > { %2247 = vrot.lane.b32.xlu1 %v6821_v0, %s10030_s23  ;;  %v498_v30 = vmul.f32 %v496_v12, %v496_v12 }
  0xad   : > { %v162_v41 = vld.sshfl [vmem:[#allocation1] sm:$0xff pattern:$0x75316420]  ;;  %v163_v42 = vld.sshfl [vmem:[#allocation1 + $0x8] sm:$0xff pattern:$0x75316420]  ;;  %v156_v43 = vmul.f32 %v154_v37, %v154_v37  ;;  %2015 = vrot.lane.b32.xlu2 %v6886_v18, %s10015_s20 }
  0xae   : > { %266 = vst [vmem:[#allocation1] ss:$2 sm:$0xff] %v262_v38  ;;  %v6915_v44 = vpop.permute.xlu1 %602  ;;  %v171_v45 = vsel %vm10082_vm4, %v162_v41, 0.0  ;;  %v178_v46 = vsel %vm148_vm2, %v163_v42, 0.0  ;;  %s6676_s20 = smov 126  }
  0xaf   : > { %161 = vst [vmem:[#allocation1 + $0x10] ss:$2 sm:$0xff] %v156_v43  ;;  %v6921_v49 = vpop.permute.xlu2 %722  ;;  %v172_v50 = vrot.slane %v171_v45, 4  ;;  %v179_v51 = vrot.slane %v178_v46, 4  ;;  %v606_v19 = vrot.slane %v6915_v44, 4 }
  0xb1   : > { %v173_v54 = vadd.f32 %v172_v50, %v171_v45  ;;  %v180_v55 = vadd.f32 %v179_v51, %v178_v46  ;;  %v609_v38 = vsel %vm10042_vm6, %v606_v19, %v6915_v44  ;;  %v493_v46 = vsel %vm9987_vm5, %v492_v26, %v6892_v22 }
  0xb2   : > { %v614_v44 = vsub.f32 %v6821_v0, %v609_v38  ;;  %v497_v57 = vsub.f32 %v6886_v18, %v493_v46  ;;  %vm10039_vm5 = vcmask 187392  }
  0xb3   : > { %v174_v58 = vrot.slane %v173_v54, 2  ;;  %v181_v59 = vrot.slane %v180_v55, 2 }
  0xb4   : > { %2366 = vrot.lane.b32.xlu1 %v6821_v0, %s10034_s24  ;;  %v499_v8 = vmul.f32 %v497_v57, %v497_v57 }
  0xb5   : > { %v269_v61 = vld.sshfl [vmem:[#allocation1] sm:$0xff pattern:$0x75316420]  ;;  %v270_v62 = vld.sshfl [vmem:[#allocation1 + $0x8] sm:$0xff pattern:$0x75316420]  ;;  %2132 = vrot.lane.b32.xlu2 %v6886_v18, %s10018_s21  ;;  %v175_v1 = vadd.f32 %v174_v58, %v173_v54  ;;  %v182_v2 = vadd.f32 %v181_v59, %v180_v55  ;;  %v610_v59 = vsel %vm148_vm2, %v606_v19, %v607_v23 }
  0xb6   : > { %384 = vst [vmem:[#allocation1] ss:$2 sm:$0xff] %v380_v60  ;;  %v164_v5 = vld.sshfl [vmem:[#allocation1 + $0x10] sm:$0xff pattern:$0x75316420]  ;;  %v6935_v6 = vpop.permute.xlu1 %720  ;;  %v277_v7 = vsel %vm10082_vm4, %v269_v61, 0.0 }
  0xb7   : > { %v165_v9 = vld.sshfl [vmem:[#allocation1 + $0x18] sm:$0xff pattern:$0x75316420]  ;;  %v176_v10 = vrot.slane %v175_v1, 1  ;;  %v183_v11 = vrot.slane %v182_v2, 1  ;;  %v6940_v13 = vpop.permute.xlu2 %839  ;;  %v278_v14 = vrot.slane %v277_v7, 4 }
  0xb8   : > { %268 = vst [vmem:[#allocation1 + $0x10] ss:$2 sm:$0xff] %v263_v3  ;;  %v284_v15 = vsel %vm148_vm2, %v270_v62, 0.0  ;;  %v185_v16 = vsel %vm148_vm2, %v164_v5, 0.0  ;;  %v193_v34 = vsel %vm192_vm7, %v165_v9, 0.0  ;;  %v724_v50 = vrot.slane %v6935_v6, 4 }
  0xb9   : > { %v177_v20 = vadd.f32 %v176_v10, %v175_v1  ;;  %v184_v21 = vadd.f32 %v183_v11, %v182_v2  ;;  %v279_v24 = vadd.f32 %v278_v14, %v277_v7  ;;  %v285_v25 = vrot.slane %v284_v15, 4  ;;  %s6677_s21 = smov 125  }
  0xba   : > { %v186_v29 = vrot.slane %v185_v16, 4  ;;  %v194_v56 = vrot.slane %v193_v34, 4  ;;  %v725_v60 = vrot.slane %v6921_v49, 4  ;;  %v616_v62 = vmul.f32 %v614_v44, %v614_v44 }
  0xbb   : > { %v200_v27 = vmul.f32 49.999973, %v177_v20  ;;  %v201_v28 = vmul.f32 49.999973, %v184_v21  ;;  %v280_v32 = vrot.slane %v279_v24, 2  ;;  %v286_v33 = vadd.f32 %v285_v25, %v284_v15 }
  0xbc   : > { %2485 = vrot.lane.b32.xlu1 %v6821_v0, %s6659_s25  ;;  %v187_v39 = vadd.f32 %v186_v29, %v185_v16  ;;  %v727_v63 = vsel %vm10041_vm8, %v724_v50, %v6935_v6  ;;  %v195_v7 = vadd.f32 %v194_v56, %v193_v34  ;;  %v611_v6 = vsel %vm10042_vm6, %v610_v59, %v6903_v31 }
  0xbd   : > { %v6951_v36 = vld.sshfl [vmem:[#allocation1] sm:$0xff pattern:$0x75316420]  ;;  %v6953_v37 = vld.sshfl [vmem:[#allocation1 + $0x8] sm:$0xff pattern:$0x75316420]  ;;  %2249 = vrot.lane.b32.xlu2 %v6886_v18, %s10030_s23  ;;  %v281_v43 = vadd.f32 %v280_v32, %v279_v24  ;;  %v732_v15 = vsub.f32 %v6821_v0, %v727_v63  ;;  %v615_v20 = vsub.f32 %v6886_v18, %v611_v6  ;;  %v728_v24 = vsel %vm148_vm2, %v724_v50, %v725_v60 }
  0xbe   : > { %502 = vst [vmem:[#allocation1] ss:$2 sm:$0xff] %v498_v30  ;;  %v6959_v40 = vpop.permute.xlu1 %837  ;;  %v204_v41 = vsub.f32 -36.0, %v200_v27  ;;  %v205_v42 = vsub.f32 -36.0, %v201_v28  ;;  %v287_v45 = vrot.slane %v286_v33, 2  ;;  %v188_v55 = vrot.slane %v187_v39, 2 }
  0xbf   : > { %v6963_v47 = vld.sshfl [vmem:[#allocation1 + $0x10] sm:$0xff pattern:$0x75316420]  ;;  %v6965_v48 = vld.sshfl [vmem:[#allocation1 + $0x18] sm:$0xff pattern:$0x75316420]  ;;  %v6970_v58 = vpop.permute.xlu2 %955  ;;  %v734_v29 = vmul.f32 %v732_v15, %v732_v15 }
  0xc0   : > { %386 = vst [vmem:[#allocation1 + $0x10] ss:$2 sm:$0xff] %v381_v35  ;;  %v208_v51 = vmul.f32 1.442695, %v204_v41  ;;  %v288_v52 = vadd.f32 %v287_v45, %v286_v33  ;;  %v210_v53 = vmul.f32 1.442695, %v205_v42  ;;  %v189_v5 = vadd.f32 %v188_v55, %v187_v39 }
  0xc1   : > { %v282_v54 = vrot.slane %v281_v43, 1  ;;  %v841_v1 = vrot.slane %v6959_v40, 4  ;;  %v842_v21 = vrot.slane %v6940_v13, 4  ;;  %v196_v23 = vrot.slane %v195_v7, 2  ;;  %s6683_s23 = smov 2  }
  0xc2   : > { %v289_v22 = vrot.slane %v288_v52, 1  ;;  %6095 = vpow2.f32 %v210_v53  ;;  %v190_v31 = vrot.slane %v189_v5, 1  ;;  %v395_v33 = vsel %vm10082_vm4, %v6951_v36, 0.0 }
  0xc3   : > { %v283_v61 = vadd.f32 %v282_v54, %v281_v43  ;;  %6097 = vpow2.f32 %v208_v51  ;;  %v843_v25 = vsel %vm10040_vm9, %v841_v1, %v6959_v40  ;;  %v197_v39 = vadd.f32 %v196_v23, %v195_v7 }
  0xc4   : > { %2604 = vrot.lane.b32.xlu1 %v6821_v0, %s6660_s17  ;;  %v290_v2 = vadd.f32 %v289_v22, %v288_v52  ;;  %v191_v32 = vadd.f32 %v190_v31, %v189_v5  ;;  %v617_v42 = vmul.f32 %v615_v20, %v615_v20  ;;  %v729_v43 = vsel %vm10041_vm8, %v728_v24, %v6921_v49 }
  0xc5   : > { %v6979_v3 = vld.sshfl [vmem:[#allocation1] sm:$0xff pattern:$0x75316420]  ;;  %v6981_v4 = vld.sshfl [vmem:[#allocation1 + $0x8] sm:$0xff pattern:$0x75316420]  ;;  %2368 = vrot.lane.b32.xlu2 %v6886_v18, %s10034_s24  ;;  %v848_v45 = vsub.f32 %v6821_v0, %v843_v25  ;;  %v844_v36 = vsel %vm148_vm2, %v841_v1, %v842_v21  ;;  %v733_v53 = vsub.f32 %v6886_v18, %v729_v43 }
  0xc6   : > { %620 = vst [vmem:[#allocation1] ss:$2 sm:$0xff] %v616_v62  ;;  %v6987_v9 = vpop.permute.xlu1 %953  ;;  %v305_v10 = vmul.f32 49.999973, %v283_v61  ;;  %v306_v11 = vmul.f32 49.999973, %v290_v2  ;;  %v845_v57 = vsel %vm10040_vm9, %v844_v36, %v6940_v13 }
  0xc7   : > { %v6989_v12 = vld.sshfl [vmem:[#allocation1 + $0x10] sm:$0xff pattern:$0x75316420]  ;;  %v6991_v14 = vld.sshfl [vmem:[#allocation1 + $0x18] sm:$0xff pattern:$0x75316420]  ;;  %v7003_v38 = vpop.permute.xlu2 %1073  ;;  %v850_v56 = vmul.f32 %v848_v45, %v848_v45 }
  0xc8   : > { %504 = vst [vmem:[#allocation1 + $0x10] ss:$2 sm:$0xff] %v499_v8  ;;  %v309_v16 = vsub.f32 -26.0, %v305_v10  ;;  %v310_v17 = vsub.f32 -26.0, %v306_v11  ;;  %v6096_v19 = vpop.eup %6095  ;;  %v957_v34 = vrot.slane %v6987_v9, 4  ;;  %v198_v44 = vrot.slane %v197_v39, 1 }
  0xc9   : > { %v220_v26 = vrot.slane %v6096_v19, 4  ;;  %v6098_v28 = vpop.eup %6097  ;;  %v202_v50 = vmul.f32 49.999973, %v191_v32  ;;  %v396_v51 = vrot.slane %v395_v33, 4  ;;  %v958_v22 = vrot.slane %v6970_v58, 4  ;;  %s6685_s24 = smov 109  }
  0xca   : > { %v313_v27 = vmul.f32 1.442695, %v309_v16  ;;  %v315_v30 = vmul.f32 1.442695, %v310_v17  ;;  %v199_v54 = vadd.f32 %v198_v44, %v197_v39  ;;  %v960_v61 = vsel %vm9990_vm10, %v957_v34, %v6987_v9 }
  0xcb   : > { %v222_v35 = vsel %vm148_vm2, %v6098_v28, %v220_v26  ;;  %v206_v55 = vsub.f32 -36.0, %v202_v50  ;;  %v397_v59 = vadd.f32 %v396_v51, %v395_v33  ;;  %v1076_v63 = vrot.slane %v7003_v38, 4 }
  0xcc   : > { %6099 = vpow2.f32 %v313_v27  ;;  %224 = vrot.lane.b32.xlu1 %v222_v35, %s6661_s29  ;;  %v203_v1 = vmul.f32 49.999973, %v199_v54  ;;  %v402_v8 = vsel %vm148_vm2, %v6953_v37, 0.0  ;;  %v291_v13 = vsel %vm148_vm2, %v6963_v47, 0.0 }
  0xcd   : > { %v7005_v41 = vld.sshfl [vmem:[#allocation1] sm:$0xff pattern:$0x75316420]  ;;  %v7007_v40 = vld.sshfl [vmem:[#allocation1 + $0x8] sm:$0xff pattern:$0x75316420]  ;;  %6101 = vpow2.f32 %v315_v30  ;;  %2487 = vrot.lane.b32.xlu2 %v6886_v18, %s6659_s25  ;;  %v735_v17 = vmul.f32 %v733_v53, %v733_v53  ;;  %v961_v20 = vsel %vm148_vm2, %v957_v34, %v958_v22  ;;  %v849_v27 = vsub.f32 %v6886_v18, %v845_v57 }
  0xce   : > { %738 = vst [vmem:[#allocation1] ss:$2 sm:$0xff] %v734_v29  ;;  %v7016_v46 = vpop.permute.xlu1 %1071  ;;  %v398_v7 = vrot.slane %v397_v59, 2  ;;  %v207_v11 = vsub.f32 -36.0, %v203_v1  ;;  %v212_v9 = vmul.f32 1.442695, %v206_v55  ;;  %v962_v32 = vsel %vm9990_vm10, %v961_v20, %v6970_v58 }
  0xcf   : > { %v7018_v52 = vld.sshfl [vmem:[#allocation1 + $0x10] sm:$0xff pattern:$0x75316420]  ;;  %v7020_v49 = vld.sshfl [vmem:[#allocation1 + $0x18] sm:$0xff pattern:$0x75316420]  ;;  %v851_v55 = vmul.f32 %v849_v27, %v849_v27  ;;  %v966_v1 = vsub.f32 %v6886_v18, %v962_v32 }
  0xd0   : > { %622 = vst [vmem:[#allocation1 + $0x10] ss:$2 sm:$0xff] %v617_v42  ;;  %v1075_v62 = vrot.slane %v7016_v46, 4  ;;  %v399_v21 = vadd.f32 %v398_v7, %v397_v59  ;;  %v214_v47 = vmul.f32 1.442695, %v207_v11  ;;  %v403_v23 = vrot.slane %v402_v8, 4 }
  0xd1   : > { %v298_v24 = vsel %vm192_vm7, %v6965_v48, 0.0  ;;  %v292_v48 = vrot.slane %v291_v13, 4  ;;  %v513_v34 = vsel %vm10082_vm4, %v6979_v3, 0.0  ;;  %vm10049_vm10 = vcmask 179200  }
  0xd2   : > { %v6100_v60 = vpop.eup %6099  ;;  %6103 = vpow2.f32 %v214_v47  ;;  %v400_v29 = vrot.slane %v399_v21, 1  ;;  %v404_v30 = vadd.f32 %v403_v23, %v402_v8  ;;  %v299_v33 = vrot.slane %v298_v24, 4 }
  0xd3   : > { %v6102_v2 = vpop.eup %6101  ;;  %v7030_v5 = vadd.f32 %v6100_v60, %v6098_v28  ;;  %v965_v28 = vsub.f32 %v6821_v0, %v960_v61  ;;  %v1078_v35 = vsel %vm9993_vm11, %v1075_v62, %v7016_v46  ;;  %6105 = vpow2.f32 %v212_v9 }
  0xd4   : > { %v325_v6 = vrot.slane %v6102_v2, 4  ;;  %v7036_v10 = vadd.f32 %v6102_v2, %v6096_v19  ;;  %v7048_v19 = vpop.permute.xlu2 %1191  ;;  %v401_v42 = vadd.f32 %v400_v29, %v399_v21  ;;  %v405_v43 = vrot.slane %v404_v30, 2 }
  0xd5   : > { %v7038_v15 = vld.sshfl [vmem:[#allocation1] sm:$0xff pattern:$0x75316420]  ;;  %v7040_v16 = vld.sshfl [vmem:[#allocation1 + $0x8] sm:$0xff pattern:$0x75316420]  ;;  %2606 = vrot.lane.b32.xlu2 %v6886_v18, %s6660_s17  ;;  %v967_v45 = vmul.f32 %v965_v28, %v965_v28  ;;  %v293_v44 = vadd.f32 %v292_v48, %v291_v13  ;;  %v1079_v50 = vsel %vm148_vm2, %v1075_v62, %v1076_v63  ;;  %v1083_v46 = vsub.f32 %v6821_v0, %v1078_v35 }
  0xd6   : > { %854 = vst [vmem:[#allocation1] ss:$2 sm:$0xff] %v850_v56  ;;  %v327_v37 = vsel %vm148_vm2, %v6100_v60, %v325_v6  ;;  %v7046_v31 = vpop.permute.xlu1 %1189  ;;  %v1194_v36 = vrot.slane %v7048_v19, 4  ;;  %v406_v58 = vadd.f32 %v405_v43, %v404_v30  ;;  %v423_v51 = vmul.f32 49.999973, %v401_v42 }
  0xd7   : > { %v7052_v25 = vld.sshfl [vmem:[#allocation1 + $0x10] sm:$0xff pattern:$0x75316420]  ;;  %v7054_v26 = vld.sshfl [vmem:[#allocation1 + $0x18] sm:$0xff pattern:$0x75316420]  ;;  %329 = vrot.lane.b32.xlu0 %v327_v37, %s10020_s30  ;;  %v300_v56 = vadd.f32 %v299_v33, %v298_v24  ;;  %v1080_v2 = vsel %vm9993_vm11, %v1079_v50, %v7003_v38  ;;  %v1085_v21 = vmul.f32 %v1083_v46, %v1083_v46  ;;  %v968_v35 = vmul.f32 %v966_v1, %v966_v1 }
  0xd8   : > { %740 = vst [vmem:[#allocation1 + $0x10] ss:$2 sm:$0xff] %v735_v17  ;;  %v1193_v39 = vrot.slane %v7046_v31, 4  ;;  %v514_v53 = vrot.slane %v513_v34, 4  ;;  %v7073_v57 = vpop.eup %6103  ;;  %v407_v59 = vrot.slane %v406_v58, 1  ;;  %v427_v60 = vsub.f32 -20.0, %v423_v51 }
  0xd9   : > { %v294_v61 = vrot.slane %v293_v44, 2  ;;  %v221_v8 = vrot.slane %v7073_v57, 4  ;;  %v7087_v20 = vpop.eup %6105  ;;  %v301_v47 = vrot.slane %v300_v56, 2  ;;  %v1084_v43 = vsub.f32 %v6886_v18, %v1080_v2 }
  0xda   : > { %v1196_v22 = vsel %vm9996_vm12, %v1193_v39, %v7046_v31  ;;  %v515_v7 = vadd.f32 %v514_v53, %v513_v34  ;;  %v408_v13 = vadd.f32 %v407_v59, %v406_v58  ;;  %v431_v6 = vmul.f32 1.442695, %v427_v60 }
  0xdb   : > { %v295_v11 = vadd.f32 %v294_v61, %v293_v44  ;;  %v1201_v37 = vsub.f32 %v6821_v0, %v1196_v22  ;;  %v520_v31 = vsel %vm148_vm2, %v6981_v4, 0.0  ;;  %v223_v38 = vsel %vm148_vm2, %v7087_v20, %v221_v8 }
  0xdc   : > { %v7085_v17 = vpop.permute.xlu2 %1309  ;;  %v424_v23 = vmul.f32 49.999973, %v408_v13  ;;  %6107 = vpow2.f32 %v431_v6  ;;  %226 = vrot.lane.b32.xlu1 %v223_v38, %s6661_s29  ;;  %v302_v27 = vadd.f32 %v301_v47, %v300_v56  ;;  %v516_v30 = vrot.slane %v515_v7, 2 }
  0xdd   : > { %v7068_v54 = vld.sshfl [vmem:[#allocation1] sm:$0xff pattern:$0x75316420]  ;;  %v7070_v3 = vld.sshfl [vmem:[#allocation1 + $0x8] sm:$0xff pattern:$0x75316420]  ;;  %v1197_v32 = vsel %vm148_vm2, %v1193_v39, %v1194_v36  ;;  %v1203_v39 = vmul.f32 %v1201_v37, %v1201_v37  ;;  %v1086_v38 = vmul.f32 %v1084_v43, %v1084_v43 }
  0xde   : > { %971 = vst [vmem:[#allocation1] ss:$2 sm:$0xff] %v967_v45  ;;  %v1308_v9 = vpop.permute.xlu1 %1307  ;;  %v296_v24 = vrot.slane %v295_v11, 1  ;;  %v1312_v29 = vrot.slane %v7085_v17, 4  ;;  %v428_v48 = vsub.f32 -20.0, %v424_v23  ;;  %v517_v42 = vadd.f32 %v516_v30, %v515_v7 }
  0xdf   : > { %v7077_v62 = vld.sshfl [vmem:[#allocation1 + $0x10] sm:$0xff pattern:$0x75316420]  ;;  %v7079_v63 = vld.sshfl [vmem:[#allocation1 + $0x18] sm:$0xff pattern:$0x75316420]  ;;  %v1198_v36 = vsel %vm9996_vm12, %v1197_v32, %v7048_v19 }
  0xe0   : > { %856 = vst [vmem:[#allocation1 + $0x10] ss:$2 sm:$0xff] %v851_v55  ;;  %v1311_v28 = vrot.slane %v1308_v9, 4  ;;  %v297_v33 = vadd.f32 %v296_v24, %v295_v11  ;;  %v433_v45 = vmul.f32 1.442695, %v428_v48  ;;  %v303_v44 = vrot.slane %v302_v27, 1 }
  0xe1   : > { %v521_v50 = vrot.slane %v520_v31, 4  ;;  %v518_v59 = vrot.slane %v517_v42, 1  ;;  %v409_v1 = vsel %vm148_vm2, %v6989_v12, 0.0  ;;  %v416_v19 = vsel %vm192_vm7, %v6991_v14, 0.0 }
  0xe2   : > { %v1314_v53 = vsel %vm9999_vm13, %v1311_v28, %v1308_v9  ;;  %v1315_v55 = vsel %vm148_vm2, %v1311_v28, %v1312_v29  ;;  %v6108_v46 = vpop.eup %6107  ;;  %6109 = vpow2.f32 %v433_v45  ;;  %v304_v56 = vadd.f32 %v303_v44, %v302_v27 }
  0xe3   : > { %v307_v22 = vmul.f32 49.999973, %v297_v33  ;;  %v7111_v60 = vadd.f32 %v6108_v46, %v7030_v5  ;;  %v522_v61 = vadd.f32 %v521_v50, %v520_v31  ;;  %v519_v8 = vadd.f32 %v518_v59, %v517_v42 }
  0xe4   : > { %v308_v2 = vmul.f32 49.999973, %v304_v56  ;;  %v410_v13 = vrot.slane %v409_v1, 4  ;;  %v417_v11 = vrot.slane %v416_v19, 4  ;;  %v631_v9 = vsel %vm10082_vm4, %v7005_v41, 0.0  ;;  %v1428_v32 = vpop.permute.xlu2 %1427 }
  0xe5   : > { %v7097_v34 = vld.sshfl [vmem:[#allocation1] sm:$0xff pattern:$0x75316420]  ;;  %v7099_v4 = vld.sshfl [vmem:[#allocation1 + $0x8] sm:$0xff pattern:$0x75316420]  ;;  %v1202_v33 = vsub.f32 %v6886_v18, %v1198_v36  ;;  %v1319_v42 = vsub.f32 %v6821_v0, %v1314_v53  ;;  %v1316_v43 = vsel %vm9999_vm13, %v1315_v55, %v7085_v17 }
  0xe6   : > { %1089 = vst [vmem:[#allocation1] ss:$2 sm:$0xff] %v1085_v21  ;;  %v311_v7 = vsub.f32 -26.0, %v307_v22  ;;  %v523_v6 = vrot.slane %v522_v61, 2  ;;  %v312_v21 = vsub.f32 -26.0, %v308_v2  ;;  %v411_v47 = vadd.f32 %v410_v13, %v409_v1  ;;  %v1426_v30 = vpop.permute.xlu1 %1425 }
  0xe7   : > { %v7102_v58 = vld.sshfl [vmem:[#allocation1 + $0x10] sm:$0xff pattern:$0x75316420]  ;;  %v7104_v51 = vld.sshfl [vmem:[#allocation1 + $0x18] sm:$0xff pattern:$0x75316420]  ;;  %v418_v23 = vadd.f32 %v417_v11, %v416_v19  ;;  %v1321_v53 = vmul.f32 %v1319_v42, %v1319_v42 }
  0xe8   : > { %973 = vst [vmem:[#allocation1 + $0x10] ss:$2 sm:$0xff] %v968_v35  ;;  %v317_v5 = vmul.f32 1.442695, %v311_v7  ;;  %v541_v37 = vmul.f32 49.999973, %v519_v8  ;;  %v524_v14 = vadd.f32 %v523_v6, %v522_v61  ;;  %v6110_v24 = vpop.eup %6109 }
  0xe9   : > { %v319_v27 = vmul.f32 1.442695, %v312_v21  ;;  %v412_v29 = vrot.slane %v411_v47, 2  ;;  %v7129_v35 = vadd.f32 %v6110_v24, %v7036_v10  ;;  %v443_v45 = vrot.slane %v6110_v24, 4 }
  0xea   : > { %6111 = vpow2.f32 %v317_v5  ;;  %v545_v28 = vsub.f32 -18.0, %v541_v37  ;;  %v525_v44 = vrot.slane %v524_v14, 1  ;;  %v419_v56 = vrot.slane %v418_v23, 2 }
  0xeb   : > { %6113 = vpow2.f32 %v319_v27  ;;  %v1429_v22 = vrot.slane %v1426_v30, 4  ;;  %v1430_v59 = vrot.slane %v1428_v32, 4  ;;  %v445_v61 = vsel %vm148_vm2, %v6108_v46, %v443_v45 }
  0xec   : > { %v549_v50 = vmul.f32 1.442695, %v545_v28  ;;  %v526_v36 = vadd.f32 %v525_v44, %v524_v14  ;;  %v632_v10 = vrot.slane %v631_v9, 4  ;;  %447 = vrot.lane.b32.xlu0 %v445_v61, %s10022_s2  ;;  %v420_v17 = vadd.f32 %v419_v56, %v418_v23 }
  0xed   : > { %v7119_v31 = vld.sshfl [vmem:[#allocation1] sm:$0xff pattern:$0x75316420]  ;;  %v7121_v12 = vld.sshfl [vmem:[#allocation1 + $0x8] sm:$0xff pattern:$0x75316420]  ;;  %v1432_v55 = vsel %vm10004_vm14, %v1429_v22, %v1426_v30  ;;  %v1433_v8 = vsel %vm148_vm2, %v1429_v22, %v1430_v59  ;;  %v1204_v37 = vmul.f32 %v1202_v33, %v1202_v33  ;;  %v1320_v24 = vsub.f32 %v6886_v18, %v1316_v43 }
  0xee   : > { %1207 = vst [vmem:[#allocation1] ss:$2 sm:$0xff] %v1203_v39  ;;  %v413_v39 = vadd.f32 %v412_v29, %v411_v47  ;;  %6115 = vpow2.f32 %v549_v50  ;;  %v542_v2 = vmul.f32 49.999973, %v526_v36  ;;  %v1437_v7 = vsub.f32 %v6821_v0, %v1432_v55 }
  0xef   : > { %v7123_v41 = vld.sshfl [vmem:[#allocation1 + $0x10] sm:$0xff pattern:$0x75316420]  ;;  %v7125_v48 = vld.sshfl [vmem:[#allocation1 + $0x18] sm:$0xff pattern:$0x75316420]  ;;  %v633_v13 = vadd.f32 %v632_v10, %v631_v9 }
  0xf0   : > { %1091 = vst [vmem:[#allocation1 + $0x10] ss:$2 sm:$0xff] %v1086_v38  ;;  %v414_v1 = vrot.slane %v413_v39, 1  ;;  %v6112_v19 = vpop.eup %6111  ;;  %v546_v47 = vsub.f32 -18.0, %v542_v2  ;;  %v421_v38 = vrot.slane %v420_v17, 1  ;;  %v1439_v27 = vmul.f32 %v1437_v7, %v1437_v7 }
  0xf1   : > { %v7144_v11 = vadd.f32 %v6112_v19, %v7087_v20  ;;  %v6114_v5 = vpop.eup %6113  ;;  %v634_v14 = vrot.slane %v633_v13, 2  ;;  %v1434_v20 = vsel %vm10004_vm14, %v1433_v8, %v1428_v32  ;;  %v638_v50 = vsel %vm148_vm2, %v7007_v40, 0.0 }
  0xf2   : > { %v415_v21 = vadd.f32 %v414_v1, %v413_v39  ;;  %v7151_v9 = vadd.f32 %v6114_v5, %v7073_v57  ;;  %v326_v29 = vrot.slane %v6114_v5, 4  ;;  %v551_v30 = vmul.f32 1.442695, %v546_v47 }
  0xf3   : > { %v422_v33 = vadd.f32 %v421_v38, %v420_v17  ;;  %v635_v42 = vadd.f32 %v634_v14, %v633_v13  ;;  %v527_v57 = vsel %vm148_vm2, %v7018_v52, 0.0  ;;  %v639_v22 = vrot.slane %v638_v50, 4  ;;  %v1544_v13 = vpop.permute.xlu1 %1543  ;;  %v1546_v38 = vpop.permute.xlu2 %1545 }
  0xf4   : > { %v6116_v28 = vpop.eup %6115  ;;  %v425_v44 = vmul.f32 49.999973, %v415_v21  ;;  %v328_v43 = vsel %vm148_vm2, %v6112_v19, %v326_v29  ;;  %6117 = vpow2.f32 %v551_v30  ;;  %v528_v59 = vrot.slane %v527_v57, 4 }
  0xf5   : > { %v7139_v6 = vld.sshfl [vmem:[#allocation1] sm:$0xff pattern:$0x75316420]  ;;  %v7141_v46 = vld.sshfl [vmem:[#allocation1 + $0x8] sm:$0xff pattern:$0x75316420]  ;;  %v7156_v45 = vadd.f32 %v6116_v28, %v7111_v60  ;;  %331 = vrot.lane.b32.xlu1 %v328_v43, %s10020_s30  ;;  %v1322_v17 = vmul.f32 %v1320_v24, %v1320_v24 }
  0xf6   : > { %1325 = vst [vmem:[#allocation1] ss:$2 sm:$0xff] %v1321_v53  ;;  %v426_v32 = vmul.f32 49.999973, %v422_v33  ;;  %v636_v39 = vrot.slane %v635_v42, 1  ;;  %v429_v56 = vsub.f32 -20.0, %v425_v44  ;;  %v640_v53 = vadd.f32 %v639_v22, %v638_v50 }
  0xf7   : > { %v7146_v23 = vld.sshfl [vmem:[#allocation1 + $0x10] sm:$0xff pattern:$0x75316420]  ;;  %v7148_v0 = vld.sshfl [vmem:[#allocation1 + $0x18] sm:$0xff pattern:$0x75316420]  ;;  %v529_v1 = vadd.f32 %v528_v59, %v527_v57 }
  0xf8   : > { %1209 = vst [vmem:[#allocation1 + $0x10] ss:$2 sm:$0xff] %v1204_v37  ;;  %v534_v60 = vsel %vm192_vm7, %v7020_v49, 0.0  ;;  %v430_v61 = vsub.f32 -20.0, %v426_v32  ;;  %v637_v36 = vadd.f32 %v636_v39, %v635_v42  ;;  %v435_v55 = vmul.f32 1.442695, %v429_v56 }
  0xf9   : > { %v535_v10 = vrot.slane %v534_v60, 4  ;;  %v1438_v49 = vsub.f32 %v6886_v18, %v1434_v20  ;;  %v641_v5 = vrot.slane %v640_v53, 2  ;;  %v530_v47 = vrot.slane %v529_v1, 2  ;;  %v7184_v22 = vld [vmem:[%s6814_s22] sm:$0xff]  ;;  %s6678_s30 = smov 106  }
  0xfa   : > { %v437_v19 = vmul.f32 1.442695, %v430_v61  ;;  %v6118_v21 = vpop.eup %6117  ;;  %6119 = vpow2.f32 %v435_v55  ;;  %v659_v37 = vmul.f32 49.999973, %v637_v36  ;;  %v1547_v42 = vrot.slane %v1544_v13, 4 }
  0xfb   : > { %v536_v2 = vadd.f32 %v535_v10, %v534_v60  ;;  %v561_v14 = vrot.slane %v6118_v21, 4  ;;  %v7176_v24 = vadd.f32 %v6118_v21, %v7129_v35  ;;  %v642_v29 = vadd.f32 %v641_v5, %v640_v53 }
  0xfc   : > { %6121 = vpow2.f32 %v437_v19  ;;  %v663_v30 = vsub.f32 -20.0, %v659_v37  ;;  %v531_v33 = vadd.f32 %v530_v47, %v529_v1  ;;  %v1548_v50 = vrot.slane %v1546_v38, 4 }
  0xfd   : > { %v7166_v40 = vld.sshfl [vmem:[#allocation1] sm:$0xff pattern:$0x75316420]  ;;  %v7168_v52 = vld.sshfl [vmem:[#allocation1 + $0x8] sm:$0xff pattern:$0x75316420]  ;;  %v563_v20 = vsel %vm148_vm2, %v6116_v28, %v561_v14  ;;  %v1550_v35 = vsel %vm10009_vm15, %v1547_v42, %v1544_v13  ;;  %v1440_v56 = vmul.f32 %v1438_v49, %v1438_v49 }
  0xfe   : > { %1443 = vst [vmem:[#allocation1] ss:$2 sm:$0xff] %v1439_v27  ;;  %v537_v27 = vrot.slane %v536_v2, 2  ;;  %565 = vrot.lane.b32.xlu0 %v563_v20, %s10024_s3  ;;  %v643_v57 = vrot.slane %v642_v29, 1  ;;  %v667_v43 = vmul.f32 1.442695, %v663_v30  ;;  %v1555_v59 = vsub.f32 %v7184_v22, %v1550_v35 }
  0xff   : > { %v7170_v7 = vld.sshfl [vmem:[#allocation1 + $0x10] sm:$0xff pattern:$0x75316420]  ;;  %v7172_v8 = vld.sshfl [vmem:[#allocation1 + $0x18] sm:$0xff pattern:$0x75316420]  ;;  %v1551_v60 = vsel %vm148_vm2, %v1547_v42, %v1548_v50 }
 0x100   : > { %1327 = vst [vmem:[#allocation1 + $0x10] ss:$2 sm:$0xff] %v1322_v17  ;;  %v538_v44 = vadd.f32 %v537_v27, %v536_v2  ;;  %v532_v32 = vrot.slane %v531_v33, 1  ;;  %v749_v28 = vsel %vm10082_vm4, %v7038_v15, 0.0  ;;  %v6120_v61 = vpop.eup %6119  ;;  %v644_v10 = vadd.f32 %v643_v57, %v642_v29 }
 0x101   : > { %6123 = vpow2.f32 %v667_v43  ;;  %v478_v2 = vadd.f32 %v6120_v61, %v7144_v11  ;;  %v1557_v49 = vmul.f32 %v1555_v59, %v1555_v59  ;;  %v1552_v13 = vsel %vm10009_vm15, %v1551_v60, %v1546_v38 }
 0x102   : > { %v533_v53 = vadd.f32 %v532_v32, %v531_v33  ;;  %v539_v1 = vrot.slane %v538_v44, 1  ;;  %v6122_v17 = vpop.eup %6121  ;;  %v660_v5 = vmul.f32 49.999973, %v644_v10  ;;  %v1556_v14 = vsub.f32 %v6886_v18, %v1552_v13 }
 0x103   : > { %v444_v21 = vrot.slane %v6122_v17, 4  ;;  %v479_v15 = vadd.f32 %v6122_v17, %v7151_v9  ;;  %v750_v27 = vrot.slane %v749_v28, 4  ;;  %v756_v29 = vsel %vm148_vm2, %v7040_v16, 0.0 }
 0x104   : > { %v540_v37 = vadd.f32 %v539_v1, %v538_v44  ;;  %v543_v47 = vmul.f32 49.999973, %v533_v53  ;;  %v664_v11 = vsub.f32 -20.0, %v660_v5  ;;  %v757_v42 = vrot.slane %v756_v29, 4 }
 0x105   : > { %v7181_v39 = vld.sshfl [vmem:[#allocation1] sm:$0xff pattern:$0x75316420]  ;;  %v7190_v36 = vld.sshfl [vmem:[#allocation1 + $0x8] sm:$0xff pattern:$0x75316420]  ;;  %v446_v30 = vsel %vm148_vm2, %v6120_v61, %v444_v21  ;;  %v1558_v9 = vmul.f32 %v1556_v14, %v1556_v14  ;;  %v751_v20 = vadd.f32 %v750_v27, %v749_v28 }
 0x106   : > { %1561 = vst [vmem:[#allocation1] ss:$2 sm:$0xff] %v1557_v49  ;;  %v544_v33 = vmul.f32 49.999973, %v540_v37  ;;  %449 = vrot.lane.b32.xlu1 %v446_v30, %s10022_s2  ;;  %v547_v38 = vsub.f32 -18.0, %v543_v47  ;;  %v645_v44 = vsel %vm148_vm2, %v7052_v25, 0.0  ;;  %v758_v43 = vadd.f32 %v757_v42, %v756_v29 }
 0x107   : > { %v7192_v55 = vld.sshfl [vmem:[#allocation1 + $0x10] sm:$0xff pattern:$0x75316420]  ;;  %v7194_v19 = vld.sshfl [vmem:[#allocation1 + $0x18] sm:$0xff pattern:$0x75316420]  ;;  %v6124_v50 = vpop.eup %6123 }
 0x108   : > { %1445 = vst [vmem:[#allocation1 + $0x10] ss:$2 sm:$0xff] %v1440_v56  ;;  %v669_v57 = vmul.f32 1.442695, %v664_v11  ;;  %v548_v18 = vsub.f32 -18.0, %v544_v33  ;;  %v646_v32 = vrot.slane %v645_v44, 4  ;;  %v7207_v16 = vadd.f32 %v6124_v50, %v7156_v45 }
 0x109   : > { %v553_v35 = vmul.f32 1.442695, %v547_v38  ;;  %v752_v56 = vrot.slane %v751_v20, 2  ;;  %v652_v59 = vsel %vm192_vm7, %v7054_v26, 0.0  ;;  %v759_v61 = vrot.slane %v758_v43, 2  ;;  %s10090_s2 = smov 124  }
 0x10a   : > { %6125 = vpow2.f32 %v669_v57  ;;  %v555_v60 = vmul.f32 1.442695, %v548_v18  ;;  %v647_v28 = vadd.f32 %v646_v32, %v645_v44  ;;  %v653_v17 = vrot.slane %v652_v59, 4 }
 0x10b   : > { %6127 = vpow2.f32 %v553_v35  ;;  %v753_v53 = vadd.f32 %v752_v56, %v751_v20  ;;  %v760_v1 = vadd.f32 %v759_v61, %v758_v43  ;;  %v865_v26 = vsel %vm10082_vm4, %v7068_v54, 0.0 }
 0x10c   : > { %6129 = vpow2.f32 %v555_v60  ;;  %v648_v45 = vrot.slane %v647_v28, 2  ;;  %v654_v5 = vadd.f32 %v653_v17, %v652_v59  ;;  %v866_v38 = vrot.slane %v865_v26, 4 }
 0x10d   : > { %v754_v49 = vrot.slane %v753_v53, 1  ;;  %v761_v13 = vrot.slane %v760_v1, 1  ;;  %vm10047_vm11 = vcmask 171008   ;;  %vm10048_vm12 = vcmask 162816  }
 0x10e   : > { %v649_v21 = vadd.f32 %v648_v45, %v647_v28  ;;  %v655_v29 = vrot.slane %v654_v5, 2  ;;  %v867_v28 = vadd.f32 %v866_v38, %v865_v26  ;;  %v1662_v45 = vpop.permute.xlu1 %1661  ;;  %vm10051_vm13 = vcmask 154624  }
 0x10f   : > { %v7211_v10 = vld.sshfl [vmem:[#allocation1 + $0x10] sm:$0xff pattern:$0x75316420]  ;;  %v7213_v25 = vld.sshfl [vmem:[#allocation1 + $0x18] sm:$0xff pattern:$0x75316420]  ;;  %v755_v37 = vadd.f32 %v754_v49, %v753_v53  ;;  %v762_v14 = vadd.f32 %v761_v13, %v760_v1 }
 0x110   : > { %1563 = vst [vmem:[#allocation1 + $0x10] ss:$2 sm:$0xff] %v1558_v9  ;;  %v6126_v47 = vpop.eup %6125  ;;  %v650_v27 = vrot.slane %v649_v21, 1  ;;  %v656_v18 = vadd.f32 %v655_v29, %v654_v5  ;;  %v7230_v5 = vpop.permute.xlu2 %1663  ;;  %v1665_v38 = vrot.slane %v1662_v45, 4  ;;  %vm10052_vm14 = vcmask 23552  }
 0x111   : > { %v6128_v30 = vpop.eup %6127  ;;  %v679_v11 = vrot.slane %v6126_v47, 4  ;;  %v713_v33 = vadd.f32 %v6126_v47, %v7176_v24  ;;  %v777_v42 = vmul.f32 49.999973, %v755_v37  ;;  %v778_v44 = vmul.f32 49.999973, %v762_v14 }
 0x112   : > { %v6130_v9 = vpop.eup %6129  ;;  %v7218_v20 = vadd.f32 %v6128_v30, %v478_v2  ;;  %v651_v57 = vadd.f32 %v650_v27, %v649_v21  ;;  %v657_v59 = vrot.slane %v656_v18, 1  ;;  %v763_v21 = vsel %vm148_vm2, %v7077_v62, 0.0 }
 0x113   : > { %v681_v43 = vsel %vm148_vm2, %v6124_v50, %v679_v11  ;;  %v562_v54 = vrot.slane %v6130_v9, 4  ;;  %v7221_v32 = vadd.f32 %v6130_v9, %v479_v15  ;;  %v781_v35 = vsub.f32 -26.0, %v777_v42 }
 0x114   : > { %683 = vrot.lane.b32.xlu0 %v681_v43, %s9994_s28  ;;  %v782_v56 = vsub.f32 -26.0, %v778_v44  ;;  %v661_v60 = vmul.f32 49.999973, %v651_v57  ;;  %v658_v53 = vadd.f32 %v657_v59, %v656_v18  ;;  %v872_v15 = vsel %vm148_vm2, %v7070_v3, 0.0 }
 0x115   : > { %v564_v24 = vsel %vm148_vm2, %v6128_v30, %v562_v54  ;;  %v785_v61 = vmul.f32 1.442695, %v781_v35  ;;  %v868_v50 = vrot.slane %v867_v28, 2  ;;  %v873_v17 = vrot.slane %v872_v15, 4 }
 0x116   : > { %567 = vrot.lane.b32.xlu1 %v564_v24, %s10024_s3  ;;  %v787_v2 = vmul.f32 1.442695, %v782_v56  ;;  %v665_v1 = vsub.f32 -20.0, %v661_v60  ;;  %v662_v49 = vmul.f32 49.999973, %v658_v53  ;;  %v764_v47 = vrot.slane %v763_v21, 4 }
 0x117   : > { %6131 = vpow2.f32 %v785_v61  ;;  %v869_v26 = vadd.f32 %v868_v50, %v867_v28  ;;  %v874_v37 = vadd.f32 %v873_v17, %v872_v15  ;;  %v770_v14 = vsel %vm192_vm7, %v7079_v63, 0.0  ;;  %v1780_v15 = vpop.permute.xlu1 %1779  ;;  %s6680_s3 = smov 107  }
 0x118   : > { %6133 = vpow2.f32 %v787_v2  ;;  %v671_v13 = vmul.f32 1.442695, %v665_v1  ;;  %v666_v27 = vsub.f32 -20.0, %v662_v49  ;;  %v771_v3 = vrot.slane %v770_v14, 4 }
 0x119   : > { %v870_v29 = vrot.slane %v869_v26, 1  ;;  %v875_v30 = vrot.slane %v874_v37, 2  ;;  %v765_v11 = vadd.f32 %v764_v47, %v763_v21  ;;  %v1666_v62 = vrot.slane %v7230_v5, 4  ;;  %v1782_v47 = vpop.permute.xlu2 %1781 }
 0x11a   : > { %6135 = vpow2.f32 %v671_v13  ;;  %v673_v42 = vmul.f32 1.442695, %v666_v27  ;;  %v772_v9 = vadd.f32 %v771_v3, %v770_v14  ;;  %v982_v56 = vsel %vm10082_vm4, %v7097_v34, 0.0 }
 0x11b   : > { %v871_v57 = vadd.f32 %v870_v29, %v869_v26  ;;  %v876_v18 = vadd.f32 %v875_v30, %v874_v37  ;;  %v766_v43 = vrot.slane %v765_v11, 2  ;;  %v1668_v2 = vsel %vm10012_vm0, %v1665_v38, %v1662_v45 }
 0x11c   : > { %6137 = vpow2.f32 %v673_v42  ;;  %v773_v63 = vrot.slane %v772_v9, 2  ;;  %v1669_v34 = vsel %vm148_vm2, %v1665_v38, %v1666_v62  ;;  %v983_v21 = vrot.slane %v982_v56, 4 }
 0x11d   : > { %v6132_v44 = vpop.eup %6131  ;;  %v877_v24 = vrot.slane %v876_v18, 1  ;;  %v893_v61 = vmul.f32 49.999973, %v871_v57  ;;  %v767_v53 = vadd.f32 %v766_v43, %v765_v11  ;;  %v1783_v45 = vrot.slane %v1780_v15, 4 }
 0x11e   : > { %v6134_v54 = vpop.eup %6133  ;;  %v829_v35 = vadd.f32 %v6132_v44, %v7207_v16  ;;  %v774_v1 = vadd.f32 %v773_v63, %v772_v9  ;;  %v989_v14 = vsel %vm148_vm2, %v7099_v4, 0.0  ;;  %v984_v29 = vadd.f32 %v983_v21, %v982_v56 }
 0x11f   : > { %v797_v59 = vrot.slane %v6134_v54, 4  ;;  %v7238_v60 = vadd.f32 %v6134_v54, %v713_v33  ;;  %v878_v17 = vadd.f32 %v877_v24, %v876_v18  ;;  %v897_v49 = vsub.f32 -36.0, %v893_v61 }
 0x120   : > { %v6136_v28 = vpop.eup %6135  ;;  %v768_v33 = vrot.slane %v767_v53, 1  ;;  %v775_v13 = vrot.slane %v774_v1, 1  ;;  %v990_v30 = vrot.slane %v989_v14, 4  ;;  %v1784_v62 = vrot.slane %v1782_v47, 4 }
 0x121   : > { %v799_v50 = vsel %vm148_vm2, %v6132_v44, %v797_v59  ;;  %v7243_v16 = vadd.f32 %v6136_v28, %v7218_v20  ;;  %v894_v26 = vmul.f32 49.999973, %v878_v17  ;;  %v901_v37 = vmul.f32 1.442695, %v897_v49 }
 0x122   : > { %801 = vrot.lane.b32.xlu0 %v799_v50, %s9997_s27  ;;  %v6138_v27 = vpop.eup %6137  ;;  %v769_v3 = vadd.f32 %v768_v33, %v767_v53  ;;  %v776_v20 = vadd.f32 %v775_v13, %v774_v1  ;;  %v985_v57 = vrot.slane %v984_v29, 2  ;;  %v991_v54 = vadd.f32 %v990_v30, %v989_v14 }
 0x123   : > { %v680_v11 = vrot.slane %v6138_v27, 4  ;;  %v7250_v42 = vadd.f32 %v6138_v27, %v7221_v32  ;;  %v898_v38 = vsub.f32 -36.0, %v894_v26  ;;  %6139 = vpow2.f32 %v901_v37 }
 0x124   : > { %v779_v9 = vmul.f32 49.999973, %v769_v3  ;;  %v780_v44 = vmul.f32 49.999973, %v776_v20  ;;  %v879_v4 = vsel %vm148_vm2, %v7102_v58, 0.0  ;;  %v986_v59 = vadd.f32 %v985_v57, %v984_v29  ;;  %v7274_v57 = vld [vmem:[%s6814_s22 + $0x8] sm:$0xff] }
 0x125   : > { %v682_v18 = vsel %vm148_vm2, %v6136_v28, %v680_v11  ;;  %v903_v43 = vmul.f32 1.442695, %v898_v38  ;;  %v880_v32 = vrot.slane %v879_v4, 4  ;;  %v1673_v24 = vsub.f32 %v7184_v22, %v1668_v2 }
 0x126   : > { %685 = vrot.lane.b32.xlu1 %v682_v18, %s9994_s28  ;;  %v783_v63 = vsub.f32 -26.0, %v779_v9  ;;  %v784_v56 = vsub.f32 -26.0, %v780_v44  ;;  %v992_v61 = vrot.slane %v991_v54, 2  ;;  %v886_v53 = vsel %vm192_vm7, %v7104_v51, 0.0  ;;  %s10037_s28 = smov 84  }
 0x127   : > { %6141 = vpow2.f32 %v903_v43  ;;  %v987_v50 = vrot.slane %v986_v59, 1  ;;  %v881_v17 = vadd.f32 %v880_v32, %v879_v4  ;;  %v1787_v58 = vsel %vm148_vm2, %v1783_v45, %v1784_v62 }
 0x128   : > { %v789_v1 = vmul.f32 1.442695, %v783_v63  ;;  %v791_v28 = vmul.f32 1.442695, %v784_v56  ;;  %v993_v33 = vadd.f32 %v992_v61, %v991_v54  ;;  %v887_v13 = vrot.slane %v886_v53, 4 }
 0x129   : > { %v6140_v49 = vpop.eup %6139  ;;  %v988_v26 = vadd.f32 %v987_v50, %v986_v59  ;;  %v882_v2 = vrot.slane %v881_v17, 2  ;;  %v1670_v37 = vsel %vm10012_vm0, %v1669_v34, %v7230_v5  ;;  %v7264_v27 = vmul.f32 %v1673_v24, %v1673_v24 }
 0x12a   : > { %v7260_v21 = vadd.f32 %v6140_v49, %v829_v35  ;;  %6143 = vpow2.f32 %v789_v1  ;;  %v994_v51 = vrot.slane %v993_v33, 1  ;;  %v888_v14 = vadd.f32 %v887_v13, %v886_v53 }
 0x12b   : > { %6145 = vpow2.f32 %v791_v28  ;;  %v1786_v3 = vsel %vm10017_vm1, %v1783_v45, %v1780_v15  ;;  %v1010_v20 = vmul.f32 49.999973, %v988_v26  ;;  %v883_v29 = vadd.f32 %v882_v2, %v881_v17  ;;  %v1897_v17 = vpop.permute.xlu1 %1896  ;;  %v1899_v2 = vpop.permute.xlu2 %1898 }
 0x12c   : > { %v1788_v35 = vsel %vm10017_vm1, %v1787_v58, %v1782_v47  ;;  %v995_v11 = vadd.f32 %v994_v51, %v993_v33  ;;  %v889_v38 = vrot.slane %v888_v14, 2  ;;  %v1100_v9 = vsel %vm10082_vm4, %v7119_v31, 0.0 }
 0x12d   : > { %v6142_v30 = vpop.eup %6141  ;;  %v1014_v34 = vsub.f32 -26.0, %v1010_v20  ;;  %v884_v62 = vrot.slane %v883_v29, 1  ;;  %v1674_v15 = vsub.f32 %v7274_v57, %v1670_v37  ;;  %v1791_v45 = vsub.f32 %v7184_v22, %v1786_v3 }
 0x12e   : > { %v913_v44 = vrot.slane %v6142_v30, 4  ;;  %v7271_v5 = vadd.f32 %v6142_v30, %v7238_v60  ;;  %v1011_v18 = vmul.f32 49.999973, %v995_v11  ;;  %v890_v43 = vadd.f32 %v889_v38, %v888_v14 }
 0x12f   : > { %v1018_v4 = vmul.f32 1.442695, %v1014_v34  ;;  %v885_v63 = vadd.f32 %v884_v62, %v883_v29  ;;  %v1101_v31 = vrot.slane %v1100_v9, 4  ;;  %v1792_v59 = vsub.f32 %v7274_v57, %v1788_v35 }
 0x130   : > { %v6144_v47 = vpop.eup %6143  ;;  %v915_v54 = vsel %vm148_vm2, %v6140_v49, %v913_v44  ;;  %v1015_v32 = vsub.f32 -26.0, %v1011_v18  ;;  %v891_v24 = vrot.slane %v890_v43, 1  ;;  %v1107_v58 = vsel %vm148_vm2, %v7121_v12, 0.0 }
 0x131   : > { %v6146_v56 = vpop.eup %6145  ;;  %917 = vrot.lane.b32.xlu0 %v915_v54, %s10000_s26  ;;  %v7281_v60 = vadd.f32 %v6144_v47, %v7243_v16  ;;  %6147 = vpow2.f32 %v1018_v4  ;;  %v895_v1 = vmul.f32 49.999973, %v885_v63  ;;  %v1102_v49 = vadd.f32 %v1101_v31, %v1100_v9 }
 0x132   : > { %v798_v61 = vrot.slane %v6146_v56, 4  ;;  %v7285_v53 = vadd.f32 %v6146_v56, %v7250_v42  ;;  %v1020_v28 = vmul.f32 1.442695, %v1015_v32  ;;  %v892_v50 = vadd.f32 %v891_v24, %v890_v43 }
 0x133   : > { %v899_v33 = vsub.f32 -36.0, %v895_v1  ;;  %v1108_v13 = vrot.slane %v1107_v58, 4  ;;  %v996_v26 = vsel %vm148_vm2, %v7123_v41, 0.0  ;;  %v1103_v37 = vrot.slane %v1102_v49, 2 }
 0x134   : > { %v800_v16 = vsel %vm148_vm2, %v6144_v47, %v798_v61  ;;  %6149 = vpow2.f32 %v1020_v28  ;;  %v896_v42 = vmul.f32 49.999973, %v892_v50  ;;  %v997_v51 = vrot.slane %v996_v26, 4 }
 0x135   : > { %803 = vrot.lane.b32.xlu1 %v800_v16, %s9997_s27  ;;  %v905_v14 = vmul.f32 1.442695, %v899_v33  ;;  %v1900_v3 = vrot.slane %v1897_v17, 4  ;;  %v1109_v20 = vadd.f32 %v1108_v13, %v1107_v58  ;;  %v1003_v12 = vsel %vm192_vm7, %v7125_v48, 0.0  ;;  %s10007_s27 = smov 85  }
 0x136   : > { %v900_v29 = vsub.f32 -36.0, %v896_v42  ;;  %v1104_v30 = vadd.f32 %v1103_v37, %v1102_v49  ;;  %v998_v35 = vadd.f32 %v997_v51, %v996_v26  ;;  %v1004_v11 = vrot.slane %v1003_v12, 4 }
 0x137   : > { %v6148_v38 = vpop.eup %6147  ;;  %6151 = vpow2.f32 %v905_v14  ;;  %v1901_v41 = vrot.slane %v1899_v2, 4  ;;  %v1110_v9 = vrot.slane %v1109_v20, 2  ;;  %v7298_v43 = vmul.f32 %v1674_v15, %v1674_v15 }
 0x138   : > { %v7296_v44 = vadd.f32 %v6148_v38, %v7260_v21  ;;  %v907_v34 = vmul.f32 1.442695, %v900_v29  ;;  %v1105_v62 = vrot.slane %v1104_v30, 1  ;;  %v999_v18 = vrot.slane %v998_v35, 2 }
 0x139   : > { %v7300_v47 = vmul.f32 %v1791_v45, %v1791_v45  ;;  %v1111_v48 = vadd.f32 %v1110_v9, %v1109_v20  ;;  %v1005_v54 = vadd.f32 %v1004_v11, %v1003_v12  ;;  %v1903_v63 = vsel %vm10036_vm3, %v1900_v3, %v1897_v17 }
 0x13a   : > { %v6150_v4 = vpop.eup %6149  ;;  %6153 = vpow2.f32 %v907_v34  ;;  %v1106_v31 = vadd.f32 %v1105_v62, %v1104_v30  ;;  %v1000_v56 = vadd.f32 %v999_v18, %v998_v35  ;;  %v7306_v1 = vmul.f32 %v1792_v59, %v1792_v59  ;;  %v2014_v18 = vpop.permute.xlu1 %2013 }
 0x13b   : > { %v1030_v32 = vrot.slane %v6150_v4, 4  ;;  %v7304_v24 = vadd.f32 %v6150_v4, %v7271_v5  ;;  %v1112_v21 = vrot.slane %v1111_v48, 1  ;;  %v1006_v61 = vrot.slane %v1005_v54, 2  ;;  %v2016_v4 = vpop.permute.xlu2 %2015 }
 0x13c   : > { %v1904_v15 = vsel %vm148_vm2, %v1900_v3, %v1901_v41  ;;  %v1128_v45 = vmul.f32 49.999973, %v1106_v31  ;;  %v1001_v28 = vrot.slane %v1000_v56, 1  ;;  %v1908_v58 = vsub.f32 %v7184_v22, %v1903_v63 }
 0x13d   : > { %v6152_v50 = vpop.eup %6151  ;;  %v1032_v49 = vsel %vm148_vm2, %v6148_v38, %v1030_v32  ;;  %v1113_v17 = vadd.f32 %v1112_v21, %v1111_v48  ;;  %v1007_v16 = vadd.f32 %v1006_v61, %v1005_v54  ;;  %v1218_v13 = vsel %vm10082_vm4, %v7139_v6, 0.0 }
 0x13e   : > { %1034 = vrot.lane.b32.xlu0 %v1032_v49, %s10026_s4  ;;  %v7313_v5 = vadd.f32 %v6152_v50, %v7281_v60  ;;  %v1132_v33 = vsub.f32 -16.0, %v1128_v45  ;;  %v1002_v59 = vadd.f32 %v1001_v28, %v1000_v56  ;;  %v1905_v26 = vsel %vm10036_vm3, %v1904_v15, %v1899_v2 }
 0x13f   : > { %v1129_v42 = vmul.f32 49.999973, %v1113_v17  ;;  %v1008_v37 = vrot.slane %v1007_v16, 1  ;;  %v1219_v51 = vrot.slane %v1218_v13, 4  ;;  %v1225_v12 = vsel %vm148_vm2, %v7141_v46, 0.0 }
 0x140   : > { %v6154_v14 = vpop.eup %6153  ;;  %v1136_v3 = vmul.f32 1.442695, %v1132_v33  ;;  %v1012_v20 = vmul.f32 49.999973, %v1002_v59  ;;  %v1114_v60 = vsel %vm148_vm2, %v7146_v23, 0.0  ;;  %v1226_v38 = vrot.slane %v1225_v12, 4 }
 0x141   : > { %v914_v29 = vrot.slane %v6154_v14, 4  ;;  %v7323_v30 = vadd.f32 %v6154_v14, %v7285_v53  ;;  %v1133_v35 = vsub.f32 -16.0, %v1129_v42  ;;  %v1009_v6 = vadd.f32 %v1008_v37, %v1007_v16  ;;  %v7339_v14 = vld.sshfl [vmem:[#allocation1 + $0x8] sm:$0xff pattern:$0x75316420] }
 0x142   : > { %6155 = vpow2.f32 %v1136_v3  ;;  %v1016_v2 = vsub.f32 -26.0, %v1012_v20  ;;  %v1220_v11 = vadd.f32 %v1219_v51, %v1218_v13  ;;  %v1115_v62 = vrot.slane %v1114_v60, 4  ;;  %v7333_v13 = vld.sshfl [vmem:[#allocation1] sm:$0xff pattern:$0x75316420] }
 0x143   : > { %v916_v41 = vsel %vm148_vm2, %v6152_v50, %v914_v29  ;;  %v1138_v9 = vmul.f32 1.442695, %v1133_v35  ;;  %v1013_v34 = vmul.f32 49.999973, %v1009_v6  ;;  %v1227_v48 = vadd.f32 %v1226_v38, %v1225_v12  ;;  %1679 = vst [vmem:[#allocation1] ss:$2 sm:$0xff] %v7264_v27 }
 0x144   : > { %919 = vrot.lane.b32.xlu1 %v916_v41, %s10000_s26  ;;  %v1022_v46 = vmul.f32 1.442695, %v1016_v2  ;;  %v1221_v23 = vrot.slane %v1220_v11, 2  ;;  %v1121_v53 = vsel %vm192_vm7, %v7148_v0, 0.0  ;;  %v1116_v63 = vadd.f32 %v1115_v62, %v1114_v60  ;;  %s10010_s26 = smov 86  }
 0x145   : > { %6157 = vpow2.f32 %v1138_v9  ;;  %v1017_v54 = vsub.f32 -26.0, %v1013_v34  ;;  %v1122_v31 = vrot.slane %v1121_v53, 4  ;;  %v1909_v56 = vsub.f32 %v7274_v57, %v1905_v26 }
 0x146   : > { %6159 = vpow2.f32 %v1022_v46  ;;  %v1222_v32 = vadd.f32 %v1221_v23, %v1220_v11  ;;  %v1228_v21 = vrot.slane %v1227_v48, 2  ;;  %v2017_v15 = vrot.slane %v2014_v18, 4 }
 0x147   : > { %v1024_v61 = vmul.f32 1.442695, %v1017_v54  ;;  %v1117_v45 = vrot.slane %v1116_v63, 2  ;;  %v1123_v28 = vadd.f32 %v1122_v31, %v1121_v53  ;;  %v2018_v49 = vrot.slane %v2016_v4, 4 }
 0x148   : > { %v6156_v50 = vpop.eup %6155  ;;  %v1223_v17 = vrot.slane %v1222_v32, 1  ;;  %v1229_v16 = vadd.f32 %v1228_v21, %v1227_v48  ;;  %v7335_v26 = vmul.f32 %v1908_v58, %v1908_v58  ;;  %v7337_v42 = vmul.f32 %v1909_v56, %v1909_v56 }
 0x149   : > { %v7331_v0 = vadd.f32 %v6156_v50, %v7296_v44  ;;  %6161 = vpow2.f32 %v1024_v61  ;;  %v1118_v33 = vadd.f32 %v1117_v45, %v1116_v63  ;;  %v1124_v59 = vrot.slane %v1123_v28, 2 }
 0x14a   : > { %v1224_v37 = vadd.f32 %v1223_v17, %v1222_v32  ;;  %v1230_v51 = vrot.slane %v1229_v16, 1  ;;  %v2020_v20 = vsel %vm10039_vm5, %v2017_v15, %v2014_v18  ;;  %v1336_v44 = vsel %vm10082_vm4, %v7166_v40, 0.0 }
 0x14b   : > { %v6158_v3 = vpop.eup %6157  ;;  %v1119_v12 = vrot.slane %v1118_v33, 1  ;;  %v1125_v60 = vadd.f32 %v1124_v59, %v1123_v28  ;;  %v2021_v38 = vsel %vm148_vm2, %v2017_v15, %v2018_v49  ;;  %v2025_v40 = vsub.f32 %v7184_v22, %v2020_v20  ;;  %v7367_v59 = vpop.permute.xlu2 %2132 }
 0x14c   : > { %v6160_v29 = vpop.eup %6159  ;;  %v1148_v35 = vrot.slane %v6158_v3, 4  ;;  %v7346_v58 = vadd.f32 %v6158_v3, %v7304_v24  ;;  %v1231_v6 = vadd.f32 %v1230_v51, %v1229_v16  ;;  %v1246_v2 = vmul.f32 49.999973, %v1224_v37 }
 0x14d   : > { %v7349_v11 = vadd.f32 %v6160_v29, %v7313_v5  ;;  %v1120_v41 = vadd.f32 %v1119_v12, %v1118_v33  ;;  %v1126_v9 = vrot.slane %v1125_v60, 1  ;;  %v1337_v23 = vrot.slane %v1336_v44, 4 }
 0x14e   : > { %v1150_v34 = vsel %vm148_vm2, %v6156_v50, %v1148_v35  ;;  %v1247_v62 = vmul.f32 49.999973, %v1231_v6  ;;  %v1250_v27 = vsub.f32 -10.0, %v1246_v2  ;;  %v1343_v5 = vsel %vm148_vm2, %v7168_v52, 0.0  ;;  %v2131_v50 = vpop.permute.xlu1 %2130 }
 0x14f   : > { %v6162_v46 = vpop.eup %6161  ;;  %1152 = vrot.lane.b32.xlu0 %v1150_v34, %s10028_s5  ;;  %v1127_v24 = vadd.f32 %v1126_v9, %v1125_v60  ;;  %v1130_v18 = vmul.f32 49.999973, %v1120_v41  ;;  %v2022_v31 = vsel %vm10039_vm5, %v2021_v38, %v2016_v4  ;;  %v1338_v21 = vadd.f32 %v1337_v23, %v1336_v44  ;;  %v7382_v23 = vld.sshfl [vmem:[#allocation1 + $0x8] sm:$0xff pattern:$0x75316420] }
 0x150   : > { %v1031_v48 = vrot.slane %v6162_v46, 4  ;;  %v7358_v53 = vadd.f32 %v6162_v46, %v7323_v30  ;;  %v1251_v54 = vsub.f32 -10.0, %v1247_v62  ;;  %v1254_v63 = vmul.f32 1.442695, %v1250_v27 }
 0x151   : > { %v1131_v56 = vmul.f32 49.999973, %v1127_v24  ;;  %v1134_v32 = vsub.f32 -16.0, %v1130_v18  ;;  %v1344_v45 = vrot.slane %v1343_v5, 4  ;;  %v1339_v49 = vrot.slane %v1338_v21, 2 }
 0x152   : > { %v1033_v61 = vsel %vm148_vm2, %v6160_v29, %v1031_v48  ;;  %6163 = vpow2.f32 %v1254_v63  ;;  %v1256_v15 = vmul.f32 1.442695, %v1251_v54  ;;  %v1232_v30 = vsel %vm148_vm2, %v7170_v7, 0.0 }
 0x153   : > { %1036 = vrot.lane.b32.xlu1 %v1033_v61, %s10026_s4  ;;  %v1135_v28 = vsub.f32 -16.0, %v1131_v56  ;;  %v1140_v52 = vmul.f32 1.442695, %v1134_v32  ;;  %v1345_v17 = vadd.f32 %v1344_v45, %v1343_v5  ;;  %v1233_v4 = vrot.slane %v1232_v30, 4  ;;  %s10088_s4 = smov 123  }
 0x154   : > { %6165 = vpow2.f32 %v1256_v15  ;;  %v1239_v16 = vsel %vm192_vm7, %v7172_v8, 0.0  ;;  %v1340_v37 = vadd.f32 %v1339_v49, %v1338_v21  ;;  %v7369_v3 = vmul.f32 %v2025_v40, %v2025_v40  ;;  %v7378_v40 = vld.sshfl [vmem:[#allocation1] sm:$0xff pattern:$0x75316420] }
 0x155   : > { %6167 = vpow2.f32 %v1140_v52  ;;  %v1142_v33 = vmul.f32 1.442695, %v1135_v28  ;;  %v1240_v51 = vrot.slane %v1239_v16, 4  ;;  %v2026_v20 = vsub.f32 %v7274_v57, %v2022_v31  ;;  %1797 = vst [vmem:[#allocation1] ss:$2 sm:$0xff] %v7300_v47 }
 0x156   : > { %v1346_v12 = vrot.slane %v1345_v17, 2  ;;  %v1234_v60 = vadd.f32 %v1233_v4, %v1232_v30  ;;  %v1341_v7 = vrot.slane %v1340_v37, 1  ;;  %v2134_v35 = vrot.slane %v2131_v50, 4  ;;  %v7396_v52 = vld.sshfl [vmem:[#allocation1 + $0x10] sm:$0xff pattern:$0x75316420] }
 0x157   : > { %6169 = vpow2.f32 %v1142_v33  ;;  %v1241_v44 = vadd.f32 %v1240_v51, %v1239_v16  ;;  %v1454_v2 = vsel %vm10082_vm4, %v7181_v39, 0.0  ;;  %v2135_v41 = vrot.slane %v7367_v59, 4  ;;  %v7402_v30 = vld.sshfl [vmem:[#allocation1 + $0x18] sm:$0xff pattern:$0x75316420]  ;;  %v7405_v33 = vpop.permute.xlu2 %2249 }
 0x158   : > { %v6164_v29 = vpop.eup %6163  ;;  %v1347_v6 = vadd.f32 %v1346_v12, %v1345_v17  ;;  %v1235_v8 = vrot.slane %v1234_v60, 2  ;;  %v1342_v9 = vadd.f32 %v1341_v7, %v1340_v37  ;;  %v7380_v27 = vmul.f32 %v2026_v20, %v2026_v20  ;;  %1681 = vst [vmem:[#allocation1 + $0x10] ss:$2 sm:$0xff] %v7298_v43 }
 0x159   : > { %v7375_v38 = vadd.f32 %v6164_v29, %v7331_v0  ;;  %v1242_v34 = vrot.slane %v1241_v44, 2  ;;  %v1455_v18 = vrot.slane %v1454_v2, 4  ;;  %v2137_v31 = vsel %vm10049_vm10, %v2134_v35, %v2131_v50 }
 0x15a   : > { %v6166_v62 = vpop.eup %6165  ;;  %v1348_v46 = vrot.slane %v1347_v6, 1  ;;  %v1236_v24 = vadd.f32 %v1235_v8, %v1234_v60  ;;  %v1364_v0 = vmul.f32 49.999973, %v1342_v9  ;;  %v2138_v15 = vsel %vm148_vm2, %v2134_v35, %v2135_v41 }
 0x15b   : > { %v6168_v5 = vpop.eup %6167  ;;  %v1266_v48 = vrot.slane %v6166_v62, 4  ;;  %v7385_v39 = vadd.f32 %v6166_v62, %v7346_v58  ;;  %v1243_v54 = vadd.f32 %v1242_v34, %v1241_v44  ;;  %v7394_v58 = vpop.permute.xlu1 %2247  ;;  %v2142_v17 = vsub.f32 %v7184_v22, %v2137_v31 }
 0x15c   : > { %v7389_v63 = vadd.f32 %v6168_v5, %v7349_v11  ;;  %v1349_v56 = vadd.f32 %v1348_v46, %v1347_v6  ;;  %v1237_v32 = vrot.slane %v1236_v24, 1  ;;  %v1368_v45 = vsub.f32 -8.0, %v1364_v0 }
 0x15d   : > { %v6170_v21 = vpop.eup %6169  ;;  %v1268_v61 = vsel %vm148_vm2, %v6164_v29, %v1266_v48  ;;  %v1244_v28 = vrot.slane %v1243_v54, 1  ;;  %v1456_v37 = vadd.f32 %v1455_v18, %v1454_v2  ;;  %v2139_v60 = vsel %vm10049_vm10, %v2138_v15, %v7367_v59 }
 0x15e   : > { %1270 = vrot.lane.b32.xlu0 %v1268_v61, %s10032_s11  ;;  %v1149_v47 = vrot.slane %v6170_v21, 4  ;;  %v7400_v11 = vadd.f32 %v6170_v21, %v7358_v53  ;;  %v1365_v50 = vmul.f32 49.999973, %v1349_v56  ;;  %v1238_v49 = vadd.f32 %v1237_v32, %v1236_v24 }
 0x15f   : > { %v1372_v4 = vmul.f32 1.442695, %v1368_v45  ;;  %v1245_v16 = vadd.f32 %v1244_v28, %v1243_v54  ;;  %v1461_v53 = vsel %vm148_vm2, %v7190_v36, 0.0  ;;  %v1457_v7 = vrot.slane %v1456_v37, 2 }
 0x160   : > { %v1151_v51 = vsel %vm148_vm2, %v6168_v5, %v1149_v47  ;;  %v1369_v20 = vsub.f32 -8.0, %v1365_v50  ;;  %v1248_v12 = vmul.f32 49.999973, %v1238_v49  ;;  %v1462_v35 = vrot.slane %v1461_v53, 4  ;;  %v7430_v47 = vpop.permute.xlu2 %2368 }
 0x161   : > { %1154 = vrot.lane.b32.xlu1 %v1151_v51, %s10028_s5  ;;  %6171 = vpow2.f32 %v1372_v4  ;;  %v1249_v22 = vmul.f32 49.999973, %v1245_v16  ;;  %v1350_v43 = vsel %vm148_vm2, %v7192_v55, 0.0  ;;  %v1458_v8 = vadd.f32 %v1457_v7, %v1456_v37  ;;  %v7432_v50 = vld.sshfl [vmem:[#allocation1] sm:$0xff pattern:$0x75316420] }
 0x162   : > { %v1374_v44 = vmul.f32 1.442695, %v1369_v20  ;;  %v1252_v29 = vsub.f32 -10.0, %v1248_v12  ;;  %v1351_v2 = vrot.slane %v1350_v43, 4  ;;  %v1357_v36 = vsel %vm192_vm7, %v7194_v19, 0.0  ;;  %s6682_s5 = smov 108  }
 0x163   : > { %v1253_v6 = vsub.f32 -10.0, %v1249_v22  ;;  %v1463_v9 = vadd.f32 %v1462_v35, %v1461_v53  ;;  %v1358_v34 = vrot.slane %v1357_v36, 4  ;;  %v2143_v59 = vsub.f32 %v7274_v57, %v2139_v60  ;;  %v7420_v19 = vpop.permute.xlu1 %2366  ;;  %v7439_v37 = vld.sshfl [vmem:[#allocation1 + $0x8] sm:$0xff pattern:$0x75316420] }
 0x164   : > { %6173 = vpow2.f32 %v1374_v44  ;;  %v1258_v41 = vmul.f32 1.442695, %v1252_v29  ;;  %v1459_v46 = vrot.slane %v1458_v8, 1  ;;  %v1352_v24 = vadd.f32 %v1351_v2, %v1350_v43  ;;  %1914 = vst [vmem:[#allocation1] ss:$2 sm:$0xff] %v7335_v26 }
 0x165   : > { %v1260_v62 = vmul.f32 1.442695, %v1253_v6  ;;  %v2251_v18 = vrot.slane %v7394_v58, 4  ;;  %v1464_v5 = vrot.slane %v1463_v9, 2  ;;  %v1359_v55 = vadd.f32 %v1358_v34, %v1357_v36 }
 0x166   : > { %6175 = vpow2.f32 %v1258_v41  ;;  %v1460_v0 = vadd.f32 %v1459_v46, %v1458_v8  ;;  %v1353_v54 = vrot.slane %v1352_v24, 2  ;;  %v7422_v31 = vmul.f32 %v2142_v17, %v2142_v17  ;;  %v7457_v34 = vld.sshfl [vmem:[#allocation1 + $0x10] sm:$0xff pattern:$0x75316420] }
 0x167   : > { %v6172_v48 = vpop.eup %6171  ;;  %6177 = vpow2.f32 %v1260_v62  ;;  %v1465_v32 = vadd.f32 %v1464_v5, %v1463_v9  ;;  %v1360_v21 = vrot.slane %v1359_v55, 2  ;;  %v7427_v61 = vmul.f32 %v2143_v59, %v2143_v59 }
 0x168   : > { %v7425_v56 = vadd.f32 %v6172_v48, %v7375_v38  ;;  %v2252_v15 = vrot.slane %v7405_v33, 4  ;;  %v1482_v45 = vmul.f32 49.999973, %v1460_v0  ;;  %v1354_v28 = vadd.f32 %v1353_v54, %v1352_v24 }
 0x169   : > { %v7436_v17 = vsel %vm10047_vm11, %v2251_v18, %v7394_v58  ;;  %v1466_v4 = vrot.slane %v1465_v32, 1  ;;  %v1361_v38 = vadd.f32 %v1360_v21, %v1359_v55  ;;  %v2370_v16 = vrot.slane %v7420_v19, 4  ;;  %v7465_v55 = vld.sshfl [vmem:[#allocation1 + $0x18] sm:$0xff pattern:$0x75316420] }
 0x16a   : > { %v6174_v49 = vpop.eup %6173  ;;  %v1486_v12 = vsub.f32 -10.0, %v1482_v45  ;;  %v1355_v53 = vrot.slane %v1354_v28, 1  ;;  %v2371_v58 = vrot.slane %v7430_v47, 4  ;;  %v1572_v44 = vsel %vm10082_vm4, %v7333_v13, 0.0  ;;  %1799 = vst [vmem:[#allocation1 + $0x10] ss:$2 sm:$0xff] %v7306_v1 }
 0x16b   : > { %v1384_v51 = vrot.slane %v6174_v49, 4  ;;  %v7442_v20 = vadd.f32 %v6174_v49, %v7385_v39  ;;  %v1467_v22 = vadd.f32 %v1466_v4, %v1465_v32  ;;  %v1362_v7 = vrot.slane %v1361_v38, 1 }
 0x16c   : > { %v6176_v60 = vpop.eup %6175  ;;  %v1490_v39 = vmul.f32 1.442695, %v1486_v12  ;;  %v1356_v6 = vadd.f32 %v1355_v53, %v1354_v28  ;;  %v2255_v41 = vsel %vm148_vm2, %v2251_v18, %v2252_v15  ;;  %v1573_v9 = vrot.slane %v1572_v44, 4 }
 0x16d   : > { %v6178_v29 = vpop.eup %6177  ;;  %v1386_v35 = vsel %vm148_vm2, %v6172_v48, %v1384_v51  ;;  %v7450_v43 = vadd.f32 %v6176_v60, %v7389_v63  ;;  %v1483_v2 = vmul.f32 49.999973, %v1467_v22  ;;  %v1363_v36 = vadd.f32 %v1362_v7, %v1361_v38  ;;  %v7479_v7 = vld [vmem:[%s6814_s22] sm:$0xff] }
 0x16e   : > { %1388 = vrot.lane.b32.xlu0 %v1386_v35, %s10037_s28  ;;  %v1267_v26 = vrot.slane %v6178_v29, 4  ;;  %v7454_v8 = vadd.f32 %v6178_v29, %v7400_v11  ;;  %6179 = vpow2.f32 %v1490_v39  ;;  %v1366_v13 = vmul.f32 49.999973, %v1356_v6 }
 0x16f   : > { %v1487_v59 = vsub.f32 -10.0, %v1483_v2  ;;  %v1367_v62 = vmul.f32 49.999973, %v1363_v36  ;;  %v1579_v46 = vsel %vm148_vm2, %v7339_v14, 0.0  ;;  %v1574_v24 = vadd.f32 %v1573_v9, %v1572_v44 }
 0x170   : > { %v1269_v63 = vsel %vm148_vm2, %v6176_v60, %v1267_v26  ;;  %v1370_v11 = vsub.f32 -8.0, %v1366_v13  ;;  %v1580_v5 = vrot.slane %v1579_v46, 4  ;;  %v1468_v18 = vsel %vm148_vm2, %v7211_v10, 0.0  ;;  %v7492_v2 = vld.sshfl [vmem:[#allocation1] sm:$0xff pattern:$0x75316420] }
 0x171   : > { %1272 = vrot.lane.b32.xlu1 %v1269_v63, %s10032_s11  ;;  %v1492_v48 = vmul.f32 1.442695, %v1487_v59  ;;  %v1371_v0 = vsub.f32 -8.0, %v1367_v62  ;;  %v1469_v54 = vrot.slane %v1468_v18, 4  ;;  %v1475_v32 = vsel %vm192_vm7, %v7213_v25, 0.0  ;;  %s10086_s11 = smov 122  }
 0x172   : > { %v1376_v21 = vmul.f32 1.442695, %v1370_v11  ;;  %v1575_v15 = vrot.slane %v1574_v24, 2  ;;  %v1581_v45 = vadd.f32 %v1580_v5, %v1579_v46  ;;  %v1476_v14 = vrot.slane %v1475_v32, 4 }
 0x173   : > { %v2256_v28 = vsel %vm10047_vm11, %v2255_v41, %v7405_v33  ;;  %6181 = vpow2.f32 %v1492_v48  ;;  %v1378_v10 = vmul.f32 1.442695, %v1371_v0  ;;  %v1470_v49 = vadd.f32 %v1469_v54, %v1468_v18  ;;  %v7509_v5 = vld.sshfl [vmem:[#allocation1 + $0x10] sm:$0xff pattern:$0x75316420] }
 0x174   : > { %v6180_v4 = vpop.eup %6179  ;;  %6183 = vpow2.f32 %v1376_v21  ;;  %v1576_v38 = vadd.f32 %v1575_v15, %v1574_v24  ;;  %v1582_v51 = vrot.slane %v1581_v45, 2  ;;  %v1477_v12 = vadd.f32 %v1476_v14, %v1475_v32  ;;  %v7515_v54 = vld.sshfl [vmem:[#allocation1 + $0x18] sm:$0xff pattern:$0x75316420]  ;;  %v2486_v15 = vpop.permute.xlu1 %2485 }
 0x175   : > { %v7473_v25 = vadd.f32 %v6180_v4, %v7425_v56  ;;  %6185 = vpow2.f32 %v1378_v10  ;;  %v1471_v53 = vrot.slane %v1470_v49, 2  ;;  %v2374_v1 = vsel %vm148_vm2, %v2370_v16, %v2371_v58  ;;  %1916 = vst [vmem:[#allocation1 + $0x10] ss:$2 sm:$0xff] %v7337_v42 }
 0x176   : > { %v1577_v33 = vrot.slane %v1576_v38, 1  ;;  %v1583_v60 = vadd.f32 %v1582_v51, %v1581_v45  ;;  %v1478_v22 = vrot.slane %v1477_v12, 2  ;;  %v7483_v44 = vsub.f32 %v7479_v7, %v7436_v17 }
 0x177   : > { %v7486_v29 = vsub.f32 %v7274_v57, %v2256_v28  ;;  %v1472_v56 = vadd.f32 %v1471_v53, %v1470_v49  ;;  %v1690_v35 = vsel %vm10082_vm4, %v7378_v40, 0.0  ;;  %v1697_v58 = vsel %vm148_vm2, %v7382_v23, 0.0  ;;  %v7500_v40 = vld.sshfl [vmem:[#allocation1 + $0x8] sm:$0xff pattern:$0x75316420] }
 0x178   : > { %v1578_v39 = vadd.f32 %v1577_v33, %v1576_v38  ;;  %v1584_v6 = vrot.slane %v1583_v60, 1  ;;  %v1479_v26 = vadd.f32 %v1478_v22, %v1477_v12  ;;  %v2373_v17 = vsel %vm10048_vm12, %v2370_v16, %v7420_v19  ;;  %2031 = vst [vmem:[#allocation1] ss:$2 sm:$0xff] %v7369_v3 }
 0x179   : > { %v6182_v36 = vpop.eup %6181  ;;  %v2375_v41 = vsel %vm10048_vm12, %v2374_v1, %v7430_v47  ;;  %v1473_v13 = vrot.slane %v1472_v56, 1  ;;  %v1691_v9 = vrot.slane %v1690_v35, 4  ;;  %v1698_v47 = vrot.slane %v1697_v58, 4 }
 0x17a   : > { %v6184_v63 = vpop.eup %6183  ;;  %v1502_v59 = vrot.slane %v6182_v36, 4  ;;  %v7503_v62 = vadd.f32 %v6182_v36, %v7442_v20  ;;  %v1585_v23 = vadd.f32 %v1584_v6, %v1583_v60  ;;  %v1600_v46 = vmul.f32 49.999973, %v1578_v39  ;;  %v2488_v60 = vpop.permute.xlu2 %2487 }
 0x17b   : > { %v6186_v11 = vpop.eup %6185  ;;  %v7507_v24 = vadd.f32 %v6184_v63, %v7450_v43  ;;  %v1474_v19 = vadd.f32 %v1473_v13, %v1472_v56  ;;  %v1480_v16 = vrot.slane %v1479_v26, 1  ;;  %v2378_v3 = vsub.f32 %v7479_v7, %v2373_v17 }
 0x17c   : > { %v1504_v18 = vsel %vm148_vm2, %v6180_v4, %v1502_v59  ;;  %v1385_v48 = vrot.slane %v6186_v11, 4  ;;  %v7513_v0 = vadd.f32 %v6186_v11, %v7454_v8  ;;  %v1601_v20 = vmul.f32 49.999973, %v1585_v23 }
 0x17d   : > { %1506 = vrot.lane.b32.xlu0 %v1504_v18, %s10007_s27  ;;  %v1604_v43 = vsub.f32 -16.0, %v1600_v46  ;;  %v1481_v32 = vadd.f32 %v1480_v16, %v1479_v26  ;;  %v1484_v21 = vmul.f32 49.999973, %v1474_v19  ;;  %v2379_v14 = vsub.f32 %v7274_v57, %v2375_v41 }
 0x17e   : > { %v1387_v45 = vsel %vm148_vm2, %v6184_v63, %v1385_v48  ;;  %v1605_v8 = vsub.f32 -16.0, %v1601_v20  ;;  %v1692_v28 = vadd.f32 %v1691_v9, %v1690_v35  ;;  %v1699_v38 = vadd.f32 %v1698_v47, %v1697_v58 }
 0x17f   : > { %1390 = vrot.lane.b32.xlu1 %v1387_v45, %s10037_s28  ;;  %v1608_v10 = vmul.f32 1.442695, %v1604_v43  ;;  %v1485_v49 = vmul.f32 49.999973, %v1481_v32  ;;  %v1488_v4 = vsub.f32 -10.0, %v1484_v21  ;;  %v2489_v12 = vrot.slane %v2486_v15, 4 }
 0x180   : > { %v1610_v51 = vmul.f32 1.442695, %v1605_v8  ;;  %v1693_v53 = vrot.slane %v1692_v28, 2  ;;  %v1586_v1 = vsel %vm148_vm2, %v7396_v52, 0.0  ;;  %v1700_v22 = vrot.slane %v1699_v38, 2  ;;  %s6686_s28 = smov 1  }
 0x181   : > { %6187 = vpow2.f32 %v1608_v10  ;;  %v1489_v42 = vsub.f32 -10.0, %v1485_v49  ;;  %v1494_v33 = vmul.f32 1.442695, %v1488_v4  ;;  %v1587_v56 = vrot.slane %v1586_v1, 4 }
 0x182   : > { %6189 = vpow2.f32 %v1610_v51  ;;  %v1694_v57 = vadd.f32 %v1693_v53, %v1692_v28  ;;  %v1593_v35 = vsel %vm192_vm7, %v7402_v30, 0.0  ;;  %v1701_v6 = vadd.f32 %v1700_v22, %v1699_v38  ;;  %v7531_v9 = vld.sshfl [vmem:[#allocation1] sm:$0xff pattern:$0x75316420]  ;;  %v7573_v22 = vpop.permute.xlu1 %2604 }
 0x183   : > { %6191 = vpow2.f32 %v1494_v33  ;;  %v1496_v39 = vmul.f32 1.442695, %v1489_v42  ;;  %v1594_v26 = vrot.slane %v1593_v35, 4  ;;  %v2490_v58 = vrot.slane %v2488_v60, 4 }
 0x184   : > { %v1695_v36 = vrot.slane %v1694_v57, 1  ;;  %v1588_v17 = vadd.f32 %v1587_v56, %v1586_v1  ;;  %v7529_v52 = vmul.f32 %v7483_v44, %v7483_v44  ;;  %v1702_v41 = vrot.slane %v1701_v6, 1  ;;  %v7539_v46 = vld.sshfl [vmem:[#allocation1 + $0x8] sm:$0xff pattern:$0x75316420] }
 0x185   : > { %6193 = vpow2.f32 %v1496_v39  ;;  %v1595_v13 = vadd.f32 %v1594_v26, %v1593_v35  ;;  %v7535_v30 = vmul.f32 %v7486_v29, %v7486_v29  ;;  %v7537_v63 = vmul.f32 %v2378_v3, %v2378_v3  ;;  %2148 = vst [vmem:[#allocation1] ss:$2 sm:$0xff] %v7422_v31  ;;  %v7557_v28 = vld.sshfl [vmem:[#allocation1 + $0x10] sm:$0xff pattern:$0x75316420] }
 0x186   : > { %v1696_v59 = vadd.f32 %v1695_v36, %v1694_v57  ;;  %v1589_v23 = vrot.slane %v1588_v17, 2  ;;  %v7541_v19 = vmul.f32 %v2379_v14, %v2379_v14  ;;  %v2492_v44 = vsel %vm10051_vm13, %v2489_v12, %v2486_v15  ;;  %v7563_v51 = vld.sshfl [vmem:[#allocation1 + $0x18] sm:$0xff pattern:$0x75316420] }
 0x187   : > { %v6188_v11 = vpop.eup %6187  ;;  %v1703_v16 = vadd.f32 %v1702_v41, %v1701_v6  ;;  %v1596_v47 = vrot.slane %v1595_v13, 2  ;;  %v2493_v29 = vsel %vm148_vm2, %v2489_v12, %v2490_v58  ;;  %v7561_v4 = vsub.f32 %v7479_v7, %v2492_v44  ;;  %2033 = vst [vmem:[#allocation1 + $0x10] ss:$2 sm:$0xff] %v7380_v27 }
 0x188   : > { %v6190_v18 = vpop.eup %6189  ;;  %v7546_v48 = vadd.f32 %v6188_v11, %v7473_v25  ;;  %v1718_v20 = vmul.f32 49.999973, %v1696_v59  ;;  %v1590_v3 = vadd.f32 %v1589_v23, %v1588_v17  ;;  %v1808_v25 = vsel %vm10082_vm4, %v7432_v50, 0.0 }
 0x189   : > { %v6192_v43 = vpop.eup %6191  ;;  %v1620_v32 = vrot.slane %v6190_v18, 4  ;;  %v7550_v21 = vadd.f32 %v6190_v18, %v7503_v62  ;;  %v1719_v45 = vmul.f32 49.999973, %v1703_v16  ;;  %v1597_v14 = vadd.f32 %v1596_v47, %v1595_v13 }
 0x18a   : > { %v7553_v15 = vadd.f32 %v6192_v43, %v7507_v24  ;;  %v1722_v8 = vsub.f32 -26.0, %v1718_v20  ;;  %v1591_v31 = vrot.slane %v1590_v3, 1  ;;  %v7571_v1 = vsel %vm10051_vm13, %v2493_v29, %v2488_v60 }
 0x18b   : > { %v6194_v10 = vpop.eup %6193  ;;  %v1622_v49 = vsel %vm148_vm2, %v6188_v11, %v1620_v32  ;;  %v1723_v62 = vsub.f32 -26.0, %v1719_v45  ;;  %v1598_v38 = vrot.slane %v1597_v14, 1  ;;  %v1809_v57 = vrot.slane %v1808_v25, 4 }
 0x18c   : > { %1624 = vrot.lane.b32.xlu0 %v1622_v49, %s10010_s26  ;;  %v1503_v24 = vrot.slane %v6194_v10, 4  ;;  %v7567_v12 = vadd.f32 %v6194_v10, %v7513_v0  ;;  %v1726_v50 = vmul.f32 1.442695, %v1722_v8  ;;  %v1592_v53 = vadd.f32 %v1591_v31, %v1590_v3 }
 0x18d   : > { %v1728_v42 = vmul.f32 1.442695, %v1723_v62  ;;  %v1599_v33 = vadd.f32 %v1598_v38, %v1597_v14  ;;  %v1815_v0 = vsel %vm148_vm2, %v7439_v37, 0.0  ;;  %v1810_v27 = vadd.f32 %v1809_v57, %v1808_v25 }
 0x18e   : > { %v1505_v56 = vsel %vm148_vm2, %v6192_v43, %v1503_v24  ;;  %6195 = vpow2.f32 %v1726_v50  ;;  %v1602_v35 = vmul.f32 49.999973, %v1592_v53  ;;  %v1816_v6 = vrot.slane %v1815_v0, 4  ;;  %v7596_v10 = vld.sshfl [vmem:[#allocation1 + $0x18] sm:$0xff pattern:$0x75316420] }
 0x18f   : > { %1508 = vrot.lane.b32.xlu1 %v1505_v56, %s10007_s27  ;;  %6197 = vpow2.f32 %v1728_v42  ;;  %v1603_v39 = vmul.f32 49.999973, %v1599_v33  ;;  %v2608_v26 = vrot.slane %v7573_v22, 4  ;;  %v1704_v58 = vsel %vm148_vm2, %v7457_v34, 0.0  ;;  %s6673_s27 = smov 104  }
 0x190   : > { %v1606_v60 = vsub.f32 -16.0, %v1602_v35  ;;  %v1711_v36 = vsel %vm192_vm7, %v7465_v55, 0.0  ;;  %v1811_v41 = vrot.slane %v1810_v27, 2  ;;  %v1817_v13 = vadd.f32 %v1816_v6, %v1815_v0  ;;  %v7604_v33 = vld.sshfl [vmem:[#allocation1 + $0x8] sm:$0xff pattern:$0x75316420] }
 0x191   : > { %v1607_v17 = vsub.f32 -16.0, %v1603_v39  ;;  %v1705_v59 = vrot.slane %v1704_v58, 4  ;;  %v1712_v23 = vrot.slane %v1711_v36, 4  ;;  %v1925_v11 = vsel %vm10082_vm4, %v7492_v2, 0.0 }
 0x192   : > { %v1612_v37 = vmul.f32 1.442695, %v1606_v60  ;;  %v1932_v44 = vsel %vm148_vm2, %v7500_v40, 0.0  ;;  %v1812_v47 = vadd.f32 %v1811_v41, %v1810_v27  ;;  %v1818_v18 = vrot.slane %v1817_v13, 2  ;;  %v7613_v41 = vpop.permute.xlu1 %224 }
 0x193   : > { %v1614_v16 = vmul.f32 1.442695, %v1607_v17  ;;  %v1706_v29 = vadd.f32 %v1705_v59, %v1704_v58  ;;  %v1713_v20 = vadd.f32 %v1712_v23, %v1711_v36  ;;  %v1926_v55 = vrot.slane %v1925_v11, 4  ;;  %v7591_v2 = vld.sshfl [vmem:[#allocation1 + $0x10] sm:$0xff pattern:$0x75316420] }
 0x194   : > { %v6196_v34 = vpop.eup %6195  ;;  %6199 = vpow2.f32 %v1612_v37  ;;  %v1933_v3 = vrot.slane %v1932_v44, 4  ;;  %v1813_v45 = vrot.slane %v1812_v47, 1  ;;  %v1819_v14 = vadd.f32 %v1818_v18, %v1817_v13  ;;  %2150 = vst [vmem:[#allocation1 + $0x10] ss:$2 sm:$0xff] %v7427_v61 }
 0x195   : > { %v6198_v43 = vpop.eup %6197  ;;  %v7589_v32 = vadd.f32 %v6196_v34, %v7546_v48  ;;  %6201 = vpow2.f32 %v1614_v16  ;;  %v1707_v31 = vrot.slane %v1706_v29, 2  ;;  %v1714_v25 = vrot.slane %v1713_v20, 2  ;;  %v7599_v48 = vld.sshfl [vmem:[#allocation1] sm:$0xff pattern:$0x75316420]  ;;  %10108 = vst [vmem:[#allocation8_spill] sm:$0xff] %v7613_v41 }
 0x196   : > { %v1738_v8 = vrot.slane %v6198_v43, 4  ;;  %v7594_v40 = vadd.f32 %v6198_v43, %v7550_v21  ;;  %v1814_v49 = vadd.f32 %v1813_v45, %v1812_v47  ;;  %v1820_v62 = vrot.slane %v1819_v14, 1  ;;  %2265 = vst [vmem:[#allocation1] ss:$2 sm:$0xff] %v7529_v52 }
 0x197   : > { %v1927_v38 = vadd.f32 %v1926_v55, %v1925_v11  ;;  %v1934_v24 = vadd.f32 %v1933_v3, %v1932_v44  ;;  %v1708_v53 = vadd.f32 %v1707_v31, %v1706_v29  ;;  %v1715_v42 = vadd.f32 %v1714_v25, %v1713_v20 }
 0x198   : > { %v1740_v50 = vsel %vm148_vm2, %v6196_v34, %v1738_v8  ;;  %v1822_v21 = vsel %vm148_vm2, %v7509_v5, 0.0  ;;  %v1821_v57 = vadd.f32 %v1820_v62, %v1819_v14  ;;  %v1836_v56 = vmul.f32 49.999973, %v1814_v49  ;;  %v7624_v49 = vpop.permute.xlu2 %2606 }
 0x199   : > { %1742 = vrot.lane.b32.xlu0 %v1740_v50, %s10013_s13  ;;  %v1928_v35 = vrot.slane %v1927_v38, 2  ;;  %v1935_v0 = vrot.slane %v1934_v24, 2  ;;  %v1709_v39 = vrot.slane %v1708_v53, 1  ;;  %v1716_v27 = vrot.slane %v1715_v42, 1 }
 0x19a   : > { %v6200_v61 = vpop.eup %6199  ;;  %v1823_v6 = vrot.slane %v1822_v21, 4  ;;  %v1829_v60 = vsel %vm192_vm7, %v7515_v54, 0.0  ;;  %v1837_v36 = vmul.f32 49.999973, %v1821_v57  ;;  %v1840_v17 = vsub.f32 -20.0, %v1836_v56 }
 0x19b   : > { %v6202_v58 = vpop.eup %6201  ;;  %v7611_v5 = vadd.f32 %v6200_v61, %v7553_v15  ;;  %v1929_v13 = vadd.f32 %v1928_v35, %v1927_v38  ;;  %v1710_v52 = vadd.f32 %v1709_v39, %v1708_v53  ;;  %v1717_v23 = vadd.f32 %v1716_v27, %v1715_v42  ;;  %v7620_v3 = vld.sshfl [vmem:[#allocation1 + $0x10] sm:$0xff pattern:$0x75316420]  ;;  %v7622_v25 = vld.sshfl [vmem:[#allocation1 + $0x18] sm:$0xff pattern:$0x75316420] }
 0x19c   : > { %v1621_v59 = vrot.slane %v6202_v58, 4  ;;  %v7616_v37 = vadd.f32 %v6202_v58, %v7567_v12  ;;  %v1841_v11 = vsub.f32 -20.0, %v1837_v36  ;;  %v1844_v44 = vmul.f32 1.442695, %v1840_v17  ;;  %2267 = vst [vmem:[#allocation1 + $0x10] ss:$2 sm:$0xff] %v7535_v30 }
 0x19d   : > { %v1930_v16 = vrot.slane %v1929_v13, 1  ;;  %v1936_v47 = vadd.f32 %v1935_v0, %v1934_v24  ;;  %v1720_v18 = vmul.f32 49.999973, %v1710_v52  ;;  %v1721_v15 = vmul.f32 49.999973, %v1717_v23  ;;  %v7632_v42 = vld [vmem:[%s6814_s22 + $0x8] sm:$0xff] }
 0x19e   : > { %v1623_v54 = vsel %vm148_vm2, %v6200_v61, %v1621_v59  ;;  %v1824_v29 = vadd.f32 %v1823_v6, %v1822_v21  ;;  %6203 = vpow2.f32 %v1844_v44  ;;  %v1846_v34 = vmul.f32 1.442695, %v1841_v11  ;;  %v7641_v6 = vpop.permute.xlu1 %226 }
 0x19f   : > { %1626 = vrot.lane.b32.xlu1 %v1623_v54, %s10010_s26  ;;  %v1931_v20 = vadd.f32 %v1930_v16, %v1929_v13  ;;  %v1937_v55 = vrot.slane %v1936_v47, 1  ;;  %v1724_v12 = vsub.f32 -26.0, %v1720_v18  ;;  %v1725_v43 = vsub.f32 -26.0, %v1721_v15  ;;  %10109 = vst [vmem:[#allocation9_spill] sm:$0xff] %v7641_v6  ;;  %s6674_s26 = smov 127  }
 0x1a0   : > { %v1825_v45 = vrot.slane %v1824_v29, 2  ;;  %v1830_v14 = vrot.slane %v1829_v60, 4  ;;  %6205 = vpow2.f32 %v1846_v34  ;;  %v7629_v53 = vmul.f32 %v7561_v4, %v7561_v4 }
 0x1a1   : > { %v1938_v8 = vadd.f32 %v1937_v55, %v1936_v47  ;;  %v1953_v31 = vmul.f32 49.999973, %v1931_v20  ;;  %v1730_v62 = vmul.f32 1.442695, %v1724_v12  ;;  %v1732_v38 = vmul.f32 1.442695, %v1725_v43 }
 0x1a2   : > { %v1826_v24 = vadd.f32 %v1825_v45, %v1824_v29  ;;  %v1831_v50 = vadd.f32 %v1830_v14, %v1829_v60  ;;  %v2498_v21 = vsub.f32 %v7632_v42, %v7571_v1  ;;  %v2611_v35 = vsel %vm10052_vm14, %v2608_v26, %v7573_v22  ;;  %v7658_v20 = vld.sshfl [vmem:[#allocation1] sm:$0xff pattern:$0x75316420]  ;;  %v7666_v12 = vld.sshfl [vmem:[#allocation1 + $0x8] sm:$0xff pattern:$0x75316420] }
 0x1a3   : > { %v1954_v57 = vmul.f32 49.999973, %v1938_v8  ;;  %v1957_v56 = vsub.f32 -10.0, %v1953_v31  ;;  %6207 = vpow2.f32 %v1730_v62  ;;  %v2609_v39 = vrot.slane %v7624_v49, 4  ;;  %2384 = vst [vmem:[#allocation1] ss:$2 sm:$0xff] %v7537_v63 }
 0x1a4   : > { %v1827_v0 = vrot.slane %v1826_v24, 1  ;;  %v1832_v61 = vrot.slane %v1831_v50, 2  ;;  %v6204_v30 = vpop.eup %6203  ;;  %6209 = vpow2.f32 %v1732_v38  ;;  %v2042_v36 = vsel %vm10082_vm4, %v7531_v9, 0.0 }
 0x1a5   : > { %v1958_v4 = vsub.f32 -10.0, %v1954_v57  ;;  %v1961_v27 = vmul.f32 1.442695, %v1957_v56  ;;  %v1888_v1 = vadd.f32 %v6204_v30, %v7589_v32  ;;  %v7646_v13 = vmul.f32 %v2498_v21, %v2498_v21  ;;  %v330_v21 = vpop.permute.xlu0 %329 }
 0x1a6   : > { %v1828_v60 = vadd.f32 %v1827_v0, %v1826_v24  ;;  %v1833_v58 = vadd.f32 %v1832_v61, %v1831_v50  ;;  %v6206_v17 = vpop.eup %6205  ;;  %v7649_v59 = vsub.f32 %v7479_v7, %v2611_v35  ;;  %v2612_v32 = vsel %vm148_vm2, %v2608_v26, %v2609_v39  ;;  %v7676_v61 = vpop.permute.xlu1 %331 }
 0x1a7   : > { %6211 = vpow2.f32 %v1961_v27  ;;  %v1963_v52 = vmul.f32 1.442695, %v1958_v4  ;;  %v1856_v23 = vrot.slane %v6206_v17, 4  ;;  %v1889_v11 = vadd.f32 %v6206_v17, %v7594_v40 }
 0x1a8   : > { %v1834_v44 = vrot.slane %v1833_v58, 1  ;;  %v1838_v16 = vmul.f32 49.999973, %v1828_v60  ;;  %v2043_v47 = vrot.slane %v2042_v36, 4  ;;  %v2049_v9 = vsel %vm148_vm2, %v7539_v46, 0.0 }
 0x1a9   : > { %6213 = vpow2.f32 %v1963_v52  ;;  %v6208_v54 = vpop.eup %6207  ;;  %v1858_v18 = vsel %vm148_vm2, %v6204_v30, %v1856_v23  ;;  %v2050_v34 = vrot.slane %v2049_v9, 4  ;;  %v1939_v55 = vsel %vm148_vm2, %v7557_v28, 0.0 }
 0x1aa   : > { %v1835_v15 = vadd.f32 %v1834_v44, %v1833_v58  ;;  %v1842_v29 = vsub.f32 -20.0, %v1838_v16  ;;  %v6210_v40 = vpop.eup %6209  ;;  %1860 = vrot.lane.b32.xlu0 %v1858_v18, %s6672_s14  ;;  %v1773_v22 = vadd.f32 %v6208_v54, %v7611_v5  ;;  %v2044_v26 = vadd.f32 %v2043_v47, %v2042_v36  ;;  %v7692_v18 = vld.sshfl [vmem:[#allocation1 + $0x18] sm:$0xff pattern:$0x75316420] }
 0x1ab   : > { %v1946_v46 = vsel %vm192_vm7, %v7563_v51, 0.0  ;;  %v1739_v43 = vrot.slane %v6210_v40, 4  ;;  %v7669_v45 = vadd.f32 %v6210_v40, %v7616_v37  ;;  %v2051_v38 = vadd.f32 %v2050_v34, %v2049_v9 }
 0x1ac   : > { %v1839_v14 = vmul.f32 49.999973, %v1835_v15  ;;  %v1848_v8 = vmul.f32 1.442695, %v1842_v29  ;;  %v2045_v62 = vrot.slane %v2044_v26, 2  ;;  %v1940_v24 = vrot.slane %v1939_v55, 4 }
 0x1ad   : > { %v6212_v31 = vpop.eup %6211  ;;  %v1947_v5 = vrot.slane %v1946_v46, 4  ;;  %v1741_v28 = vsel %vm148_vm2, %v6208_v54, %v1739_v43  ;;  %v2052_v56 = vrot.slane %v2051_v38, 2  ;;  %v2613_v30 = vsel %vm10052_vm14, %v2612_v32, %v7624_v49 }
 0x1ae   : > { %v7673_v50 = vadd.f32 %v6212_v31, %v1888_v1  ;;  %v1843_v51 = vsub.f32 -20.0, %v1839_v14  ;;  %6215 = vpow2.f32 %v1848_v8  ;;  %1744 = vrot.lane.b32.xlu1 %v1741_v28, %s10013_s13  ;;  %v2046_v37 = vadd.f32 %v2045_v62, %v2044_v26  ;;  %s6675_s13 = smov 105  }
 0x1af   : > { %v6214_v57 = vpop.eup %6213  ;;  %v1941_v35 = vadd.f32 %v1940_v24, %v1939_v55  ;;  %v1948_v0 = vadd.f32 %v1947_v5, %v1946_v46  ;;  %v2053_v1 = vadd.f32 %v2052_v56, %v2051_v38  ;;  %v333_v17 = vrot.slane %v330_v21, 4 }
 0x1b0   : > { %v1973_v63 = vrot.slane %v6214_v57, 4  ;;  %v7680_v39 = vadd.f32 %v6214_v57, %v1889_v11  ;;  %v1850_v4 = vmul.f32 1.442695, %v1843_v51  ;;  %v2047_v27 = vrot.slane %v2046_v37, 1 }
 0x1b1   : > { %v1942_v60 = vrot.slane %v1941_v35, 2  ;;  %v1949_v58 = vrot.slane %v1948_v0, 2  ;;  %v334_v52 = vrot.slane %v7676_v61, 4  ;;  %v2054_v44 = vrot.slane %v2053_v1, 1 }
 0x1b2   : > { %v1975_v36 = vsel %vm148_vm2, %v6212_v31, %v1973_v63  ;;  %6217 = vpow2.f32 %v1850_v4  ;;  %v2048_v23 = vadd.f32 %v2047_v27, %v2046_v37  ;;  %v7685_v11 = vld.sshfl [vmem:[#allocation1 + $0x10] sm:$0xff pattern:$0x75316420]  ;;  %vm10058_vm15 = vcmask 490496  }
 0x1b3   : > { %1977 = vrot.lane.b32.xlu0 %v1975_v36, %s6673_s27  ;;  %v1943_v49 = vadd.f32 %v1942_v60, %v1941_v35  ;;  %v1950_v16 = vadd.f32 %v1949_v58, %v1948_v0  ;;  %v2056_v47 = vsel %vm148_vm2, %v7591_v2, 0.0  ;;  %v2063_v9 = vsel %vm192_vm7, %v7596_v10, 0.0  ;;  %2386 = vst [vmem:[#allocation1 + $0x10] ss:$2 sm:$0xff] %v7541_v19 }
 0x1b4   : > { %v6216_v32 = vpop.eup %6215  ;;  %v335_v54 = vsel %vm148_vm2, %v333_v17, %v334_v52  ;;  %v2055_v29 = vadd.f32 %v2054_v44, %v2053_v1  ;;  %v2070_v34 = vmul.f32 49.999973, %v2048_v23  ;;  %v7698_v26 = vsub.f32 %v7632_v42, %v2613_v30  ;;  %v7711_v1 = vpop.permute.xlu1 %449 }
 0x1b5   : > { %v7694_v15 = vadd.f32 %v6216_v32, %v1773_v22  ;;  %v1944_v40 = vrot.slane %v1943_v49, 1  ;;  %v1951_v55 = vrot.slane %v1950_v16, 1  ;;  %v2057_v46 = vrot.slane %v2056_v47, 4  ;;  %v7701_v22 = vpop.permute.xlu0 %447 }
 0x1b6   : > { %v2064_v2 = vrot.slane %v2063_v9, 4  ;;  %v2071_v43 = vmul.f32 49.999973, %v2055_v29  ;;  %v2074_v14 = vsub.f32 -4.0, %v2070_v34  ;;  %v337_v8 = vsel %vm10058_vm15, %v330_v21, %v335_v54 }
 0x1b7   : > { %v1945_v10 = vadd.f32 %v1944_v40, %v1943_v49  ;;  %v1952_v62 = vadd.f32 %v1951_v55, %v1950_v16  ;;  %v2058_v38 = vadd.f32 %v2057_v46, %v2056_v47  ;;  %v341_v5 = vmul.f32 %v7479_v7, %v337_v8  ;;  %v7731_v46 = vld.sshfl [vmem:[#allocation1] sm:$0xff pattern:$0x75316420] }
 0x1b8   : > { %v6218_v31 = vpop.eup %6217  ;;  %v2065_v24 = vadd.f32 %v2064_v2, %v2063_v9  ;;  %v2075_v28 = vsub.f32 -4.0, %v2071_v43  ;;  %v2078_v51 = vmul.f32 1.442695, %v2074_v14  ;;  %v451_v30 = vrot.slane %v7701_v22, 4 }
 0x1b9   : > { %v1857_v19 = vrot.slane %v6218_v31, 4  ;;  %v7705_v42 = vadd.f32 %v6218_v31, %v7669_v45  ;;  %v1955_v57 = vmul.f32 49.999973, %v1945_v10  ;;  %v1956_v37 = vmul.f32 49.999973, %v1952_v62  ;;  %345 = vrot.lane.b32.xlu2 %v341_v5, %s6674_s26 }
 0x1ba   : > { %v2059_v56 = vrot.slane %v2058_v38, 2  ;;  %v2066_v35 = vrot.slane %v2065_v24, 2  ;;  %6219 = vpow2.f32 %v2078_v51  ;;  %v2080_v0 = vmul.f32 1.442695, %v2075_v28 }
 0x1bb   : > { %v1859_v21 = vsel %vm148_vm2, %v6216_v32, %v1857_v19  ;;  %v1959_v63 = vsub.f32 -10.0, %v1955_v57  ;;  %v1960_v45 = vsub.f32 -10.0, %v1956_v37  ;;  %v7713_v60 = vld.sshfl [vmem:[#allocation1 + $0x10] sm:$0xff pattern:$0x75316420]  ;;  %v7717_v58 = vsel %vm10058_vm15, %v7676_v61, %v334_v52 }
 0x1bc   : > { %1862 = vrot.lane.b32.xlu1 %v1859_v21, %s6672_s14  ;;  %v2060_v4 = vadd.f32 %v2059_v56, %v2058_v38  ;;  %v2067_v27 = vadd.f32 %v2066_v35, %v2065_v24  ;;  %6221 = vpow2.f32 %v2080_v0  ;;  %vm10078_vm0 = vcmask 498688   ;;  %v7721_v17 = vld.sshfl [vmem:[#allocation1 + $0x18] sm:$0xff pattern:$0x75316420] }
 0x1bd   : > { %v2173_v36 = vsel %vm148_vm2, %v7620_v3, 0.0  ;;  %v1965_v23 = vmul.f32 1.442695, %v1959_v63  ;;  %v1967_v44 = vmul.f32 1.442695, %v1960_v45  ;;  %v452_v32 = vrot.slane %v7711_v1, 4  ;;  %v7746_v21 = vpop.permute.xlu0 %565 }
 0x1be   : > { %v2061_v49 = vrot.slane %v2060_v4, 1  ;;  %v2068_v16 = vrot.slane %v2067_v27, 1  ;;  %v2174_v47 = vrot.slane %v2173_v36, 4  ;;  %v2180_v9 = vsel %vm192_vm7, %v7622_v25, 0.0  ;;  %2505 = vst [vmem:[#allocation1 + $0x10] ss:$2 sm:$0xff] %v7646_v13 }
 0x1bf   : > { %v2159_v61 = vsel %vm10082_vm4, %v7599_v48, 0.0  ;;  %6223 = vpow2.f32 %v1965_v23  ;;  %v2181_v54 = vrot.slane %v2180_v9, 4  ;;  %v2166_v55 = vsel %vm148_vm2, %v7604_v33, 0.0  ;;  %v7739_v62 = vld.sshfl [vmem:[#allocation1 + $0x8] sm:$0xff pattern:$0x75316420]  ;;  %v7753_v23 = vpop.permute.xlu1 %567 }
 0x1c0   : > { %v2062_v52 = vadd.f32 %v2061_v49, %v2060_v4  ;;  %v2069_v3 = vadd.f32 %v2068_v16, %v2067_v27  ;;  %v6220_v29 = vpop.eup %6219  ;;  %6225 = vpow2.f32 %v1967_v44  ;;  %v2175_v34 = vadd.f32 %v2174_v47, %v2173_v36  ;;  %2503 = vst [vmem:[#allocation1] ss:$2 sm:$0xff] %v7629_v53 }
 0x1c1   : > { %v2160_v40 = vrot.slane %v2159_v61, 4  ;;  %v7734_v25 = vadd.f32 %v6220_v29, %v7673_v50  ;;  %v2182_v43 = vadd.f32 %v2181_v54, %v2180_v9  ;;  %v2167_v8 = vrot.slane %v2166_v55, 4 }
 0x1c2   : > { %v2072_v2 = vmul.f32 49.999973, %v2062_v52  ;;  %v2073_v48 = vmul.f32 49.999973, %v2069_v3  ;;  %v6222_v13 = vpop.eup %6221  ;;  %v2176_v14 = vrot.slane %v2175_v34, 2  ;;  %v453_v31 = vsel %vm148_vm2, %v451_v30, %v452_v32 }
 0x1c3   : > { %v2161_v10 = vadd.f32 %v2160_v40, %v2159_v61  ;;  %v2090_v38 = vrot.slane %v6222_v13, 4  ;;  %v7742_v33 = vadd.f32 %v6222_v13, %v7680_v39  ;;  %v2183_v19 = vrot.slane %v2182_v43, 2  ;;  %v6499_v61 = vld [vmem:[%s6814_s22 + $0x8] sm:$0xf] }
 0x1c4   : > { %v2076_v24 = vsub.f32 -4.0, %v2072_v2  ;;  %v2077_v50 = vsub.f32 -4.0, %v2073_v48  ;;  %v2177_v5 = vadd.f32 %v2176_v14, %v2175_v34  ;;  %v2168_v51 = vadd.f32 %v2167_v8, %v2166_v55 }
 0x1c5   : > { %v2162_v28 = vrot.slane %v2161_v10, 2  ;;  %v6224_v57 = vpop.eup %6223  ;;  %v2092_v37 = vsel %vm148_vm2, %v6220_v29, %v2090_v38  ;;  %v455_v0 = vsel %vm10078_vm0, %v7701_v22, %v453_v31  ;;  %v2184_v63 = vadd.f32 %v2183_v19, %v2182_v43  ;;  %v7770_v19 = vpop.permute.xlu0 %683 }
 0x1c6   : > { %v2082_v56 = vmul.f32 1.442695, %v2076_v24  ;;  %v2084_v35 = vmul.f32 1.442695, %v2077_v50  ;;  %v6226_v39 = vpop.eup %6225  ;;  %2094 = vrot.lane.b32.xlu0 %v2092_v37, %s6675_s13  ;;  %v2007_v53 = vadd.f32 %v6224_v57, %v7694_v15  ;;  %v2178_v30 = vrot.slane %v2177_v5, 1 }
 0x1c7   : > { %v2163_v45 = vadd.f32 %v2162_v28, %v2161_v10  ;;  %v1974_v4 = vrot.slane %v6226_v39, 4  ;;  %v2008_v27 = vadd.f32 %v6226_v39, %v7705_v42  ;;  %v2169_v36 = vrot.slane %v2168_v51, 2 }
 0x1c8   : > { %6227 = vpow2.f32 %v2082_v56  ;;  %v2179_v44 = vadd.f32 %v2178_v30, %v2177_v5  ;;  %v2185_v22 = vrot.slane %v2184_v63, 1  ;;  %v2619_v16 = vmul.f32 %v7698_v26, %v7698_v26  ;;  %v7778_v30 = vld.sshfl [vmem:[#allocation1 + $0x10] sm:$0xff pattern:$0x75316420] }
 0x1c9   : > { %6229 = vpow2.f32 %v2084_v35  ;;  %v2164_v49 = vrot.slane %v2163_v45, 1  ;;  %v1976_v15 = vsel %vm148_vm2, %v6224_v57, %v1974_v4  ;;  %v2170_v47 = vadd.f32 %v2169_v36, %v2168_v51 }
 0x1ca   : > { %v459_v9 = vmul.f32 %v7479_v7, %v455_v0  ;;  %1979 = vrot.lane.b32.xlu1 %v1976_v15, %s6673_s27  ;;  %v342_v42 = vmul.f32 %v6499_v61, %v7717_v58  ;;  %v2186_v52 = vadd.f32 %v2185_v22, %v2184_v63  ;;  %v2189_v3 = vmul.f32 49.999973, %v2179_v44 }
 0x1cb   : > { %v2165_v54 = vadd.f32 %v2164_v49, %v2163_v45  ;;  %v569_v29 = vrot.slane %v7746_v21, 4  ;;  %v2171_v34 = vrot.slane %v2170_v47, 1  ;;  %v2290_v26 = vsel %vm148_vm2, %v7685_v11, 0.0 }
 0x1cc   : > { %463 = vrot.lane.b32.xlu2 %v459_v9, %s6676_s20  ;;  %v2297_v40 = vsel %vm192_vm7, %v7692_v18, 0.0  ;;  %v2190_v55 = vmul.f32 49.999973, %v2186_v52  ;;  %v2193_v2 = vsub.f32 -2.0, %v2189_v3  ;;  %v2291_v43 = vrot.slane %v2290_v26, 4 }
 0x1cd   : > { %v2187_v48 = vmul.f32 49.999973, %v2165_v54  ;;  %v2172_v13 = vadd.f32 %v2171_v34, %v2170_v47  ;;  %vm10079_vm1 = vcmask 506880   ;;  %v570_v14 = vrot.slane %v7753_v23, 4 }
 0x1ce   : > { %v6228_v58 = vpop.eup %6227  ;;  %v2298_v10 = vrot.slane %v2297_v40, 4  ;;  %347 = vrot.lane.b32.xlu0 %v342_v42, %s6674_s26  ;;  %v2194_v38 = vsub.f32 -2.0, %v2190_v55  ;;  %v2199_v24 = vmul.f32 1.442695, %v2193_v2  ;;  %v2292_v28 = vadd.f32 %v2291_v43, %v2290_v26 }
 0x1cf   : > { %v6230_v8 = vpop.eup %6229  ;;  %v2124_v31 = vadd.f32 %v6228_v58, %v2007_v53  ;;  %v2191_v11 = vsub.f32 -2.0, %v2187_v48  ;;  %v2188_v18 = vmul.f32 49.999973, %v2172_v13  ;;  %v571_v39 = vsel %vm148_vm2, %v569_v29, %v570_v14  ;;  %v7776_v53 = vpop.permute.xlu1 %685  ;;  %v7799_v54 = vld.sshfl [vmem:[#allocation1] sm:$0xff pattern:$0x75316420] }
 0x1d0   : > { %v2091_v50 = vrot.slane %v6230_v8, 4  ;;  %v2125_v5 = vadd.f32 %v6230_v8, %v2008_v27  ;;  %6231 = vpow2.f32 %v2199_v24  ;;  %v2201_v51 = vmul.f32 1.442695, %v2194_v38  ;;  %v7784_v27 = vld.sshfl [vmem:[#allocation1 + $0x18] sm:$0xff pattern:$0x75316420] }
 0x1d1   : > { %v2195_v57 = vmul.f32 1.442695, %v2191_v11  ;;  %v2299_v37 = vadd.f32 %v2298_v10, %v2297_v40  ;;  %v2192_v35 = vsub.f32 -2.0, %v2188_v18  ;;  %v2293_v0 = vrot.slane %v2292_v28, 2  ;;  %2624 = vst [vmem:[#allocation1 + $0x10] ss:$2 sm:$0xff] %v2619_v16 }
 0x1d2   : > { %v2093_v56 = vsel %vm148_vm2, %v6228_v58, %v2091_v50  ;;  %6233 = vpow2.f32 %v2201_v51  ;;  %v687_v63 = vrot.slane %v7770_v19, 4  ;;  %v573_v4 = vsel %vm10079_vm1, %v7746_v21, %v571_v39  ;;  %v7803_v40 = vld.sshfl [vmem:[#allocation1 + $0x8] sm:$0xff pattern:$0x75316420] }
 0x1d3   : > { %2096 = vrot.lane.b32.xlu1 %v2093_v56, %s6675_s13  ;;  %v2300_v45 = vrot.slane %v2299_v37, 2  ;;  %6235 = vpow2.f32 %v2195_v57  ;;  %v2197_v36 = vmul.f32 1.442695, %v2192_v35  ;;  %v2294_v44 = vadd.f32 %v2293_v0, %v2292_v28 }
 0x1d4   : > { %v577_v22 = vmul.f32 %v7479_v7, %v573_v4  ;;  %v688_v15 = vrot.slane %v7776_v53, 4  ;;  %v2409_v47 = vsel %vm148_vm2, %v7713_v60, 0.0  ;;  %v2416_v9 = vsel %vm192_vm7, %v7721_v17, 0.0 }
 0x1d5   : > { %v2301_v49 = vadd.f32 %v2300_v45, %v2299_v37  ;;  %6237 = vpow2.f32 %v2197_v36  ;;  %v2295_v61 = vrot.slane %v2294_v44, 1  ;;  %v2410_v21 = vrot.slane %v2409_v47, 4 }
 0x1d6   : > { %581 = vrot.lane.b32.xlu2 %v577_v22, %s6677_s21  ;;  %v2417_v42 = vrot.slane %v2416_v9, 4  ;;  %v6232_v52 = vpop.eup %6231  ;;  %v2618_v7 = vmul.f32 %v7649_v59, %v7649_v59  ;;  %v2276_v3 = vsel %vm10082_vm4, %v7658_v20, 0.0  ;;  %v2283_v60 = vsel %vm148_vm2, %v7666_v12, 0.0 }
 0x1d7   : > { %v2302_v16 = vrot.slane %v2301_v49, 1  ;;  %v7801_v17 = vadd.f32 %v6232_v52, %v2124_v31  ;;  %v2296_v29 = vadd.f32 %v2295_v61, %v2294_v44  ;;  %v2411_v34 = vadd.f32 %v2410_v21, %v2409_v47  ;;  %v7829_v21 = vld [vmem:[%s6814_s22] sm:$0xff] }
 0x1d8   : > { %v2418_v26 = vadd.f32 %v2417_v42, %v2416_v9  ;;  %v6234_v55 = vpop.eup %6233  ;;  %v2277_v48 = vrot.slane %v2276_v3, 4  ;;  %v2284_v59 = vrot.slane %v2283_v60, 4  ;;  %v689_v20 = vsel %vm148_vm2, %v687_v63, %v688_v15  ;;  %2622 = vst [vmem:[#allocation1] ss:$2 sm:$0xff] %v2618_v7  ;;  %v7818_v63 = vpop.permute.xlu1 %803 }
 0x1d9   : > { %v2303_v2 = vadd.f32 %v2302_v16, %v2301_v49  ;;  %v6236_v43 = vpop.eup %6235  ;;  %v2208_v12 = vrot.slane %v6234_v55, 4  ;;  %v7808_v58 = vadd.f32 %v6234_v55, %v2125_v5  ;;  %v2306_v13 = vmul.f32 49.999973, %v2296_v29 }
 0x1da   : > { %v2412_v10 = vrot.slane %v2411_v34, 2  ;;  %v7811_v8 = vadd.f32 %v6236_v43, %v7734_v25  ;;  %v2419_v38 = vrot.slane %v2418_v26, 2  ;;  %v2278_v24 = vadd.f32 %v2277_v48, %v2276_v3 }
 0x1db   : > { %v2307_v31 = vmul.f32 49.999973, %v2303_v2  ;;  %v6238_v11 = vpop.eup %6237  ;;  %v2210_v50 = vsel %vm148_vm2, %v6232_v52, %v2208_v12  ;;  %v2310_v18 = vsub.f32 -4.0, %v2306_v13  ;;  %v2285_v51 = vadd.f32 %v2284_v59, %v2283_v60 }
 0x1dc   : > { %v2413_v28 = vadd.f32 %v2412_v10, %v2411_v34  ;;  %2213 = vrot.lane.b32.xlu1 %v2210_v50, %s6678_s30  ;;  %v2207_v57 = vrot.slane %v6238_v11, 4  ;;  %v7816_v5 = vadd.f32 %v6238_v11, %v7742_v33  ;;  %v2420_v56 = vadd.f32 %v2419_v38, %v2418_v26  ;;  %v802_v33 = vpop.permute.xlu0 %801 }
 0x1dd   : > { %v2311_v37 = vsub.f32 -4.0, %v2307_v31  ;;  %v2316_v25 = vmul.f32 1.442695, %v2310_v18  ;;  %v2279_v0 = vrot.slane %v2278_v24, 2  ;;  %v2286_v39 = vrot.slane %v2285_v51, 2 }
 0x1de   : > { %v2414_v35 = vrot.slane %v2413_v28, 1  ;;  %v2209_v45 = vsel %vm148_vm2, %v6236_v43, %v2207_v57  ;;  %v2421_v36 = vrot.slane %v2420_v56, 1  ;;  %v691_v44 = vsel %vm10040_vm9, %v7770_v19, %v689_v20 }
 0x1df   : > { %v2318_v4 = vmul.f32 1.442695, %v2311_v37  ;;  %2211 = vrot.lane.b32.xlu0 %v2209_v45, %s6678_s30  ;;  %6239 = vpow2.f32 %v2316_v25  ;;  %v2280_v49 = vadd.f32 %v2279_v0, %v2278_v24  ;;  %v2287_v47 = vadd.f32 %v2286_v39, %v2285_v51  ;;  %v2627_v37 = vld.sshfl [vmem:[#allocation1 + $0x10] sm:$0xff pattern:$0x75316420] }
 0x1e0   : > { %v2415_v22 = vadd.f32 %v2414_v35, %v2413_v28  ;;  %v456_v9 = vsel %vm10078_vm0, %v7711_v1, %v452_v32  ;;  %v2422_v61 = vadd.f32 %v2421_v36, %v2420_v56  ;;  %v695_v42 = vmul.f32 %v7829_v21, %v691_v44  ;;  %v6501_v32 = vld [vmem:[%s6814_s22 + $0x8] sm:$0xf]  ;;  %v7846_v57 = vpop.permute.xlu1 %919  ;;  %v2628_v0 = vld.sshfl [vmem:[#allocation1 + $0x18] sm:$0xff pattern:$0x75316420] }
 0x1e1   : > { %6241 = vpow2.f32 %v2318_v4  ;;  %v2281_v52 = vrot.slane %v2280_v49, 1  ;;  %v2288_v7 = vrot.slane %v2287_v47, 1  ;;  %v806_v16 = vrot.slane %v7818_v63, 4 }
 0x1e2   : > { %v2425_v19 = vmul.f32 49.999973, %v2415_v22  ;;  %v805_v3 = vrot.slane %v802_v33, 4  ;;  %v2426_v60 = vmul.f32 49.999973, %v2422_v61  ;;  %699 = vrot.lane.b32.xlu2 %v695_v42, %s10090_s2  ;;  %v2528_v29 = vsel %vm148_vm2, %v7778_v30, 0.0 }
 0x1e3   : > { %v2535_v1 = vsel %vm192_vm7, %v7784_v27, 0.0  ;;  %v460_v34 = vmul.f32 %v6501_v32, %v456_v9  ;;  %v2282_v55 = vadd.f32 %v2281_v52, %v2280_v49  ;;  %v2289_v2 = vadd.f32 %v2288_v7, %v2287_v47 }
 0x1e4   : > { %v2429_v26 = vsub.f32 -10.0, %v2425_v19  ;;  %v2430_v48 = vsub.f32 -10.0, %v2426_v60  ;;  %v2529_v59 = vrot.slane %v2528_v29, 4  ;;  %v2536_v20 = vrot.slane %v2535_v1, 4 }
 0x1e5   : > { %v807_v43 = vsel %vm148_vm2, %v805_v3, %v806_v16  ;;  %v6240_v12 = vpop.eup %6239  ;;  %v2304_v10 = vmul.f32 49.999973, %v2282_v55  ;;  %v2305_v31 = vmul.f32 49.999973, %v2289_v2  ;;  %v2647_v44 = vsel %vm148_vm2, %v2627_v37, 0.0 }
 0x1e6   : > { %v2435_v13 = vmul.f32 1.442695, %v2429_v26  ;;  %v808_v30 = vsel %vm10041_vm8, %v802_v33, %v807_v43  ;;  %v2360_v27 = vadd.f32 %v6240_v12, %v7801_v17  ;;  %v2437_v24 = vmul.f32 1.442695, %v2430_v48  ;;  %v7863_v43 = vld [vmem:[%s6814_s22 + $0x8] sm:$0xff] }
 0x1e7   : > { %v6242_v38 = vpop.eup %6241  ;;  %v2530_v11 = vadd.f32 %v2529_v59, %v2528_v29  ;;  %v2537_v50 = vadd.f32 %v2536_v20, %v2535_v1  ;;  %465 = vrot.lane.b32.xlu0 %v460_v34, %s6676_s20  ;;  %v2308_v51 = vsub.f32 -4.0, %v2304_v10  ;;  %v2309_v56 = vsub.f32 -4.0, %v2305_v31 }
 0x1e8   : > { %v2325_v18 = vrot.slane %v6242_v38, 4  ;;  %v2361_v28 = vadd.f32 %v6242_v38, %v7808_v58  ;;  %6243 = vpow2.f32 %v2435_v13  ;;  %v812_v45 = vmul.f32 %v7829_v21, %v808_v30  ;;  %v7867_v30 = vpop.permute.xlu1 %1036 }
 0x1e9   : > { %6245 = vpow2.f32 %v2437_v24  ;;  %v2531_v25 = vrot.slane %v2530_v11, 2  ;;  %v2538_v35 = vrot.slane %v2537_v50, 2  ;;  %v2312_v39 = vmul.f32 1.442695, %v2308_v51 }
 0x1ea   : > { %v2327_v17 = vsel %vm148_vm2, %v6240_v12, %v2325_v18  ;;  %v2314_v58 = vmul.f32 1.442695, %v2309_v56  ;;  %816 = vrot.lane.b32.xlu2 %v812_v45, %s10088_s4  ;;  %v2654_v33 = vsel %vm192_vm7, %v2628_v0, 0.0  ;;  %v2395_v22 = vsel %vm10082_vm4, %v7731_v46, 0.0  ;;  %v918_v46 = vpop.permute.xlu0 %917 }
 0x1eb   : > { %2330 = vrot.lane.b32.xlu1 %v2327_v17, %s6680_s3  ;;  %v2532_v4 = vadd.f32 %v2531_v25, %v2530_v11  ;;  %v2539_v36 = vadd.f32 %v2538_v35, %v2537_v50  ;;  %6247 = vpow2.f32 %v2312_v39  ;;  %v2648_v61 = vrot.slane %v2647_v44, 4 }
 0x1ec   : > { %6249 = vpow2.f32 %v2314_v58  ;;  %v2655_v42 = vrot.slane %v2654_v33, 4  ;;  %v2396_v19 = vrot.slane %v2395_v22, 4  ;;  %v2402_v52 = vsel %vm148_vm2, %v7739_v62, 0.0 }
 0x1ed   : > { %v2533_v49 = vrot.slane %v2532_v4, 1  ;;  %v2540_v47 = vrot.slane %v2539_v36, 1  ;;  %v2403_v1 = vrot.slane %v2402_v52, 4  ;;  %v2649_v26 = vadd.f32 %v2648_v61, %v2647_v44 }
 0x1ee   : > { %v6244_v9 = vpop.eup %6243  ;;  %v2656_v55 = vadd.f32 %v2655_v42, %v2654_v33  ;;  %v2397_v59 = vadd.f32 %v2396_v19, %v2395_v22  ;;  %v922_v13 = vrot.slane %v7846_v57, 4  ;;  %v921_v45 = vrot.slane %v918_v46, 4 }
 0x1ef   : > { %v6246_v7 = vpop.eup %6245  ;;  %v7858_v3 = vadd.f32 %v6244_v9, %v2360_v27  ;;  %v2534_v60 = vadd.f32 %v2533_v49, %v2532_v4  ;;  %v2541_v29 = vadd.f32 %v2540_v47, %v2539_v36  ;;  %v2404_v20 = vadd.f32 %v2403_v1, %v2402_v52 }
 0x1f0   : > { %v2444_v32 = vrot.slane %v6246_v7, 4  ;;  %v7860_v34 = vadd.f32 %v6246_v7, %v2361_v28  ;;  %v2650_v10 = vrot.slane %v2649_v26, 2  ;;  %v2657_v31 = vrot.slane %v2656_v55, 2 }
 0x1f1   : > { %v2544_v2 = vmul.f32 49.999973, %v2534_v60  ;;  %v2545_v48 = vmul.f32 49.999973, %v2541_v29  ;;  %v6248_v12 = vpop.eup %6247  ;;  %v2398_v50 = vrot.slane %v2397_v59, 2  ;;  %v2405_v0 = vrot.slane %v2404_v20, 2 }
 0x1f2   : > { %v2446_v62 = vsel %vm148_vm2, %v6244_v9, %v2444_v32  ;;  %v6250_v38 = vpop.eup %6249  ;;  %v7871_v27 = vadd.f32 %v6248_v12, %v7811_v8  ;;  %v2651_v51 = vadd.f32 %v2650_v10, %v2649_v26  ;;  %v2658_v37 = vadd.f32 %v2657_v31, %v2656_v55  ;;  %2723 = vrot.lane.b32.xlu2 %v7863_v43, %s6683_s23  ;;  %v7887_v47 = vpop.permute.xlu0 %1034  ;;  %v6502_v60 = vld [vmem:[%s6814_s22 + $0x8] sm:$0xf] }
 0x1f3   : > { %2449 = vrot.lane.b32.xlu1 %v2446_v62, %s6682_s5  ;;  %v2548_v24 = vsub.f32 -20.0, %v2544_v2  ;;  %v2549_v11 = vsub.f32 -20.0, %v2545_v48  ;;  %v2324_v18 = vrot.slane %v6250_v38, 4  ;;  %v7874_v28 = vadd.f32 %v6250_v38, %v7816_v5  ;;  %v2625_v10 = vld.sshfl [vmem:[#allocation1] sm:$0xff pattern:$0x75316420] }
 0x1f4   : > { %v2399_v35 = vadd.f32 %v2398_v50, %v2397_v59  ;;  %v2652_v17 = vrot.slane %v2651_v51, 1  ;;  %v2659_v39 = vrot.slane %v2658_v37, 1  ;;  %v2406_v58 = vadd.f32 %v2405_v0, %v2404_v20 }
 0x1f5   : > { %v2554_v56 = vmul.f32 1.442695, %v2548_v24  ;;  %v2556_v25 = vmul.f32 1.442695, %v2549_v11  ;;  %v2326_v8 = vsel %vm148_vm2, %v6248_v12, %v2324_v18  ;;  %v574_v44 = vsel %vm10079_vm1, %v7753_v23, %v570_v14  ;;  %v7892_v14 = vpop.permute.xlu1 %1154 }
 0x1f6   : > { %2328 = vrot.lane.b32.xlu0 %v2326_v8, %s6680_s3  ;;  %v2400_v5 = vrot.slane %v2399_v35, 1  ;;  %v2653_v4 = vadd.f32 %v2652_v17, %v2651_v51  ;;  %v2660_v36 = vadd.f32 %v2659_v39, %v2658_v37  ;;  %v2407_v22 = vrot.slane %v2406_v58, 1  ;;  %v2626_v18 = vld.sshfl [vmem:[#allocation1 + $0x8] sm:$0xff pattern:$0x75316420] }
 0x1f7   : > { %6251 = vpow2.f32 %v2554_v56  ;;  %v923_v49 = vsel %vm148_vm2, %v921_v45, %v922_v13  ;;  %v578_v29 = vmul.f32 %v6502_v60, %v574_v44  ;;  %v2514_v32 = vsel %vm10082_vm4, %v7799_v54, 0.0 }
 0x1f8   : > { %6253 = vpow2.f32 %v2556_v25  ;;  %v2401_v33 = vadd.f32 %v2400_v5, %v2399_v35  ;;  %v2663_v9 = vmul.f32 49.999973, %v2653_v4  ;;  %v2664_v61 = vmul.f32 49.999973, %v2660_v36 }
 0x1f9   : > { %v924_v42 = vsel %vm10042_vm6, %v918_v46, %v923_v49  ;;  %v2408_v19 = vadd.f32 %v2407_v22, %v2406_v58  ;;  %v2515_v46 = vrot.slane %v2514_v32, 4  ;;  %v2521_v48 = vsel %vm148_vm2, %v7803_v40, 0.0 }
 0x1fa   : > { %v2423_v52 = vmul.f32 49.999973, %v2401_v33  ;;  %v928_v7 = vmul.f32 %v7829_v21, %v924_v42  ;;  %v2667_v1 = vsub.f32 -18.0, %v2663_v9  ;;  %v2668_v23 = vsub.f32 -18.0, %v2664_v61  ;;  %v1153_v0 = vpop.permute.xlu0 %1152 }
 0x1fb   : > { %v2424_v55 = vmul.f32 49.999973, %v2408_v19  ;;  %v2516_v11 = vadd.f32 %v2515_v46, %v2514_v32  ;;  %v2522_v50 = vrot.slane %v2521_v48, 4  ;;  %v1038_v56 = vrot.slane %v7887_v47, 4 }
 0x1fc   : > { %v2427_v2 = vsub.f32 -10.0, %v2423_v52  ;;  %932 = vrot.lane.b32.xlu2 %v928_v7, %s10086_s11  ;;  %v2673_v12 = vmul.f32 1.442695, %v2667_v1  ;;  %v2675_v62 = vmul.f32 1.442695, %v2668_v23  ;;  %v2633_v25 = vsel %vm10082_vm4, %v2625_v10, 0.0 }
 0x1fd   : > { %v6252_v26 = vpop.eup %6251  ;;  %v2428_v54 = vsub.f32 -10.0, %v2424_v55  ;;  %v2517_v37 = vrot.slane %v2516_v11, 2  ;;  %v2640_v35 = vsel %vm148_vm2, %v2626_v18, 0.0  ;;  %vm10080_vm3 = vcmask 662528   ;;  %v7913_v44 = vpop.permute.xlu1 %1272 }
 0x1fe   : > { %v6254_v59 = vpop.eup %6253  ;;  %v2598_v20 = vadd.f32 %v6252_v26, %v7858_v3  ;;  %583 = vrot.lane.b32.xlu0 %v578_v29, %s6677_s21  ;;  %v2431_v24 = vmul.f32 1.442695, %v2427_v2  ;;  %6255 = vpow2.f32 %v2673_v12  ;;  %v1039_v3 = vrot.slane %v7867_v30, 4 }
 0x1ff   : > { %v2563_v31 = vrot.slane %v6254_v59, 4  ;;  %v2599_v38 = vadd.f32 %v6254_v59, %v7860_v34  ;;  %6257 = vpow2.f32 %v2675_v62  ;;  %v2433_v40 = vmul.f32 1.442695, %v2428_v54 }
 0x200   : > { %6259 = vpow2.f32 %v2431_v24  ;;  %v2523_v34 = vadd.f32 %v2522_v50, %v2521_v48  ;;  %v2518_v8 = vadd.f32 %v2517_v37, %v2516_v11  ;;  %v2634_v39 = vrot.slane %v2633_v25, 4 }
 0x201   : > { %v2565_v51 = vsel %vm148_vm2, %v6252_v26, %v2563_v31  ;;  %6261 = vpow2.f32 %v2433_v40  ;;  %v1040_v45 = vsel %vm148_vm2, %v1038_v56, %v1039_v3  ;;  %v2641_v5 = vrot.slane %v2640_v35, 4 }
 0x202   : > { %2568 = vrot.lane.b32.xlu1 %v2565_v51, %s6685_s24  ;;  %v2524_v17 = vrot.slane %v2523_v34, 2  ;;  %v2519_v4 = vrot.slane %v2518_v8, 1  ;;  %v1156_v49 = vrot.slane %v1153_v0, 4  ;;  %v1042_v9 = vsel %vm10080_vm3, %v7887_v47, %v1040_v45  ;;  %v7938_v51 = vld [vmem:[%s6814_s22] sm:$0xff]  ;;  %v1271_v40 = vpop.permute.xlu0 %1270 }
 0x203   : > { %v2635_v61 = vadd.f32 %v2634_v39, %v2633_v25  ;;  %v10044_v23 = vrot.slane %v7892_v14, 4  ;;  %v2642_v26 = vadd.f32 %v2641_v5, %v2640_v35  ;;  %v1046_v59 = vmul.f32 %v7829_v21, %v1042_v9 }
 0x204   : > { %2840 = vrot.lane.b32.xlu2 %v7863_v43, %s6686_s28  ;;  %v6256_v58 = vpop.eup %6255  ;;  %v2525_v36 = vadd.f32 %v2524_v17, %v2523_v34  ;;  %v2520_v7 = vadd.f32 %v2519_v4, %v2518_v8  ;;  %vm1159_vm5 = vcmask 670720   ;;  %v692_v24 = vsel %vm10040_vm9, %v7776_v53, %v688_v15  ;;  %v6503_v17 = vld [vmem:[%s6814_s22 + $0x8] sm:$0xf] }
 0x205   : > { %v6258_v33 = vpop.eup %6257  ;;  %v7915_v22 = vadd.f32 %v6256_v58, %v2598_v20  ;;  %v2636_v32 = vrot.slane %v2635_v61, 2  ;;  %v2643_v12 = vrot.slane %v2642_v26, 2  ;;  %v7940_v34 = vpop.permute.xlu1 %1390  ;;  %v10043_v25 = vrot.slane %v7913_v44, 4 }
 0x206   : > { %v6260_v42 = vpop.eup %6259  ;;  %v2682_v19 = vrot.slane %v6258_v33, 4  ;;  %v7919_v52 = vadd.f32 %v6258_v33, %v2599_v38  ;;  %v2526_v60 = vrot.slane %v2525_v36, 1  ;;  %v2542_v48 = vmul.f32 49.999973, %v2520_v7 }
 0x207   : > { %v6262_v29 = vpop.eup %6261  ;;  %v2477_v1 = vadd.f32 %v6260_v42, %v7871_v27  ;;  %v2637_v20 = vadd.f32 %v2636_v32, %v2635_v61  ;;  %v1158_v38 = vsel %vm148_vm2, %v1156_v49, %v10044_v23  ;;  %v696_v39 = vmul.f32 %v6503_v17, %v692_v24 }
 0x208   : > { %v2684_v55 = vsel %vm148_vm2, %v6256_v58, %v2682_v19  ;;  %v2443_v2 = vrot.slane %v6262_v29, 4  ;;  %v2478_v46 = vadd.f32 %v6262_v29, %v7874_v28  ;;  %v2527_v47 = vadd.f32 %v2526_v60, %v2525_v36 }
 0x209   : > { %v2546_v10 = vsub.f32 -20.0, %v2542_v48  ;;  %v2638_v31 = vrot.slane %v2637_v20, 1  ;;  %v2644_v28 = vadd.f32 %v2643_v12, %v2642_v26  ;;  %v1160_v56 = vsel %vm1159_vm5, %v1153_v0, %v1158_v38 }
 0x20a   : > { %2687 = vrot.lane.b32.xlu1 %v2684_v55, %s6677_s21  ;;  %v2445_v27 = vsel %vm148_vm2, %v6260_v42, %v2443_v2  ;;  %v2543_v62 = vmul.f32 49.999973, %v2527_v47  ;;  %v1274_v53 = vrot.slane %v1271_v40, 4  ;;  %v1164_v5 = vmul.f32 %v7829_v21, %v1160_v56 }
 0x20b   : > { %2447 = vrot.lane.b32.xlu0 %v2445_v27, %s6682_s5  ;;  %v2550_v11 = vmul.f32 1.442695, %v2546_v10  ;;  %v2639_v50 = vadd.f32 %v2638_v31, %v2637_v20  ;;  %v2645_v18 = vrot.slane %v2644_v28, 1  ;;  %vm1277_vm9 = vcmask 678912  }
 0x20c   : > { %1050 = vrot.lane.b32.xlu2 %v1046_v59, %s6678_s30  ;;  %v2547_v54 = vsub.f32 -20.0, %v2543_v62  ;;  %v1276_v4 = vsel %vm148_vm2, %v1274_v53, %v10043_v25  ;;  %v809_v55 = vsel %vm10041_vm8, %v7818_v63, %v806_v16  ;;  %v925_v63 = vsel %vm10042_vm6, %v7846_v57, %v922_v13  ;;  %v6505_v16 = vld [vmem:[%s6814_s22 + $0x8] sm:$0xf] }
 0x20d   : > { %6263 = vpow2.f32 %v2550_v11  ;;  %v2646_v35 = vadd.f32 %v2645_v18, %v2644_v28  ;;  %v2661_v8 = vmul.f32 49.999973, %v2639_v50  ;;  %v1278_v61 = vsel %vm1277_vm9, %v1271_v40, %v1276_v4  ;;  %v7954_v7 = vpop.permute.xlu1 %1508 }
 0x20e   : > { %v2552_v37 = vmul.f32 1.442695, %v2547_v54  ;;  %v1282_v60 = vmul.f32 %v7829_v21, %v1278_v61  ;;  %v929_v27 = vmul.f32 %v6505_v16, %v925_v63  ;;  %vm10053_vm8 = vcmask 15360  }
 0x20f   : > { %v2662_v15 = vmul.f32 49.999973, %v2646_v35  ;;  %v2665_v45 = vsub.f32 -18.0, %v2661_v8  ;;  %vm10056_vm6 = vcmask 7168   ;;  %vm1395_vm11 = vcmask 687104  }
 0x210   : > { %6265 = vpow2.f32 %v2552_v37  ;;  %vm352_vm12 = vcmask 1039360   ;;  %vm10066_vm10 = vcmask 695296   ;;  %vm10069_vm13 = vcmask 703488  }
 0x211   : > { %v2666_v0 = vsub.f32 -18.0, %v2662_v15  ;;  %v2669_v58 = vmul.f32 1.442695, %v2665_v45  ;;  %v8013_v45 = vld [vmem:[%s6814_s22 + $0x8] sm:$0xff]  ;;  %vm470_vm14 = vcmask 1031168   ;;  %vm588_vm15 = vcmask 1022976  }
 0x212   : > { %2721 = vrot.lane.b32.xlu1 %v7938_v51, %s6683_s23  ;;  %vm2335_vm0 = vcmask 875520   ;;  %vm1057_vm1 = vcmask 867328  }
 0x213   : > { %701 = vrot.lane.b32.xlu0 %v696_v39, %s10090_s2  ;;  %v6264_v36 = vpop.eup %6263  ;;  %6267 = vpow2.f32 %v2669_v58  ;;  %v2671_v33 = vmul.f32 1.442695, %v2666_v0  ;;  %v7988_v28 = vpop.permute.xlu2 %345  ;;  %s10191_s2 = smov 24  }
 0x214   : > { %1168 = vrot.lane.b32.xlu2 %v1164_v5, %s6675_s13  ;;  %v2596_v9 = vadd.f32 %v6264_v36, %v2477_v1  ;;  %10110 = vst [vmem:[#allocation10_spill] sm:$0xff] %v7988_v28 }
 0x215   : > { %6269 = vpow2.f32 %v2671_v33  ;;  %v7969_v48 = vpop.permute.xlu1 %1626 }
 0x216   : > { %v6266_v49 = vpop.eup %6265 }
 0x217   : > { %v2562_v42 = vrot.slane %v6266_v49, 4  ;;  %v2597_v19 = vadd.f32 %v6266_v49, %v2478_v46  ;;  %v6504_v46 = vld [vmem:[%s6814_s22 + $0x8] sm:$0xf] }
 0x218   : > { %v813_v47 = vmul.f32 %v6504_v46, %v809_v55 }
 0x219   : > { %v2564_v29 = vsel %vm148_vm2, %v6264_v36, %v2562_v42  ;;  %v6268_v32 = vpop.eup %6267 }
 0x21a   : > { %v7960_v26 = vadd.f32 %v6268_v32, %v2596_v9 }
 0x21b   : > { %2566 = vrot.lane.b32.xlu0 %v2564_v29, %s6685_s24  ;;  %v6270_v1 = vpop.eup %6269 }
 0x21c   : > { %1286 = vrot.lane.b32.xlu2 %v1282_v60, %s6673_s27  ;;  %v7966_v2 = vadd.f32 %v6270_v1, %v2597_v19  ;;  %v2681_v59 = vrot.slane %v6270_v1, 4 }
 0x21e   : > { %v2683_v20 = vsel %vm148_vm2, %v6268_v32, %v2681_v59 }
 0x220   : > { %v7974_v12 = vpop.permute.xlu1 %1744 }
 0x223   : > { %818 = vrot.lane.b32.xlu0 %v813_v47, %s10088_s4  ;;  %s6699_s4 = smov 37  }
 0x226   : > { %v7992_v54 = vpop.permute.xlu2 %463 }
 0x227   : > { %10111 = vst [vmem:[#allocation11_spill] sm:$0xff] %v7992_v54 }
 0x22b   : > { %2685 = vrot.lane.b32.xlu0 %v2683_v20, %s6677_s21 }
 0x22e   : > { %v7982_v62 = vpop.permute.xlu1 %1862 }
 0x230   : > { %v7996_v57 = vpop.permute.xlu2 %581 }
 0x231   : > { %10112 = vst [vmem:[#allocation12_spill] sm:$0xff] %v7996_v57 }
 0x233   : > { %934 = vrot.lane.b32.xlu0 %v929_v27, %s10086_s11  ;;  %s6698_s11 = smov 38  }
 0x23c   : > { %v7984_v10 = vpop.permute.xlu1 %1979  ;;  %v8000_v11 = vpop.permute.xlu2 %699 }
 0x23d   : > { %10113 = vst [vmem:[#allocation13_spill] sm:$0xff] %v8000_v11 }
 0x244   : > { %v8004_v18 = vpop.permute.xlu2 %816 }
 0x245   : > { %v7986_v31 = vpop.permute.xlu1 %2096  ;;  %10114 = vst [vmem:[#allocation14_spill] sm:$0xff] %v8004_v18 }
 0x24c   : > { %v2724_v37 = vpop.permute.xlu2 %2723 }
 0x24d   : > { %v2726_v56 = vrot.slane %v2724_v37, 4 }
 0x24e   : > { %v7990_v38 = vpop.permute.xlu1 %2213 }
 0x25d   : > { %v7994_v24 = vpop.permute.xlu1 %2330 }
 0x265   : > { %v7998_v13 = vpop.permute.xlu1 %2449 }
 0x274   : > { %v8002_v50 = vpop.permute.xlu1 %2568 }
 0x27c   : > { %v8006_v40 = vpop.permute.xlu1 %2687 }
 0x284   : > { %v2722_v35 = vpop.permute.xlu1 %2721 }
 0x285   : > { %v2725_v8 = vrot.slane %v2722_v35, 4 }
 0x287   : > { %v2728_v17 = vsel %vm10053_vm8, %v2725_v8, %v2722_v35  ;;  %v2729_v39 = vsel %vm148_vm2, %v2725_v8, %v2726_v56 }
 0x288   : > { %v2730_v53 = vsel %vm10053_vm8, %v2729_v39, %v2724_v37  ;;  %v2733_v15 = vsub.f32 %v7829_v21, %v2728_v17  ;;  %vm1749_vm8 = vcmask 711680  }
 0x289   : > { %v2734_v5 = vsub.f32 %v8013_v45, %v2730_v53 }
 0x28a   : > { %v2735_v0 = vmul.f32 %v2733_v15, %v2733_v15 }
 0x28b   : > { %v2736_v58 = vmul.f32 %v2734_v5, %v2734_v5 }
 0x28c   : > { %2739 = vst [vmem:[#allocation1] ss:$2 sm:$0xff] %v2735_v0 }
 0x28d   : > { %2741 = vst [vmem:[#allocation1 + $0x10] ss:$2 sm:$0xff] %v2736_v58 }
 0x293   : > { %v2742_v4 = vld.sshfl [vmem:[#allocation1] sm:$0xff pattern:$0x75316420]  ;;  %v2743_v36 = vld.sshfl [vmem:[#allocation1 + $0x8] sm:$0xff pattern:$0x75316420] }
 0x294   : > { %v2750_v33 = vsel %vm10082_vm4, %v2742_v4, 0.0  ;;  %v2757_v49 = vsel %vm148_vm2, %v2743_v36, 0.0  ;;  %v2744_v9 = vld.sshfl [vmem:[#allocation1 + $0x10] sm:$0xff pattern:$0x75316420] }
 0x295   : > { %v2751_v61 = vrot.slane %v2750_v33, 4  ;;  %v2758_v42 = vrot.slane %v2757_v49, 4  ;;  %v2745_v19 = vld.sshfl [vmem:[#allocation1 + $0x18] sm:$0xff pattern:$0x75316420]  ;;  %v2764_v60 = vsel %vm148_vm2, %v2744_v9, 0.0 }
 0x296   : > { %v2765_v29 = vrot.slane %v2764_v60, 4  ;;  %v2771_v32 = vsel %vm192_vm7, %v2745_v19, 0.0 }
 0x297   : > { %v2752_v1 = vadd.f32 %v2751_v61, %v2750_v33  ;;  %v2759_v55 = vadd.f32 %v2758_v42, %v2757_v49  ;;  %v2772_v47 = vrot.slane %v2771_v32, 4 }
 0x298   : > { %v2766_v46 = vadd.f32 %v2765_v29, %v2764_v60 }
 0x299   : > { %v2753_v59 = vrot.slane %v2752_v1, 2  ;;  %v2760_v20 = vrot.slane %v2759_v55, 2  ;;  %v2773_v16 = vadd.f32 %v2772_v47, %v2771_v32 }
 0x29a   : > { %v2767_v63 = vrot.slane %v2766_v46, 2 }
 0x29b   : > { %v2754_v27 = vadd.f32 %v2753_v59, %v2752_v1  ;;  %v2761_v37 = vadd.f32 %v2760_v20, %v2759_v55  ;;  %v2774_v35 = vrot.slane %v2773_v16, 2 }
 0x29c   : > { %v2768_v56 = vadd.f32 %v2767_v63, %v2766_v46 }
 0x29d   : > { %v2755_v8 = vrot.slane %v2754_v27, 1  ;;  %v2762_v17 = vrot.slane %v2761_v37, 1  ;;  %v2775_v53 = vadd.f32 %v2774_v35, %v2773_v16 }
 0x29e   : > { %v2769_v39 = vrot.slane %v2768_v56, 1 }
 0x29f   : > { %v2756_v15 = vadd.f32 %v2755_v8, %v2754_v27  ;;  %v2763_v5 = vadd.f32 %v2762_v17, %v2761_v37  ;;  %v2776_v58 = vrot.slane %v2775_v53, 1  ;;  %v6507_v17 = vld [vmem:[%s6814_s22 + $0x8] sm:$0xf] }
 0x2a0   : > { %v2770_v0 = vadd.f32 %v2769_v39, %v2768_v56 }
 0x2a1   : > { %v2778_v4 = vmul.f32 49.999973, %v2756_v15  ;;  %v2779_v36 = vmul.f32 49.999973, %v2763_v5  ;;  %v2777_v33 = vadd.f32 %v2776_v58, %v2775_v53  ;;  %v8050_v15 = vpop.permute.xlu2 %932 }
 0x2a2   : > { %v2780_v49 = vmul.f32 49.999973, %v2770_v0  ;;  %10115 = vst [vmem:[#allocation15_spill] sm:$0xff] %v8050_v15 }
 0x2a3   : > { %v2782_v9 = vsub.f32 -8.0, %v2778_v4  ;;  %v2783_v61 = vsub.f32 -8.0, %v2779_v36  ;;  %v2781_v42 = vmul.f32 49.999973, %v2777_v33 }
 0x2a4   : > { %v2784_v19 = vsub.f32 -8.0, %v2780_v49 }
 0x2a5   : > { %v2786_v60 = vmul.f32 1.442695, %v2782_v9  ;;  %v2788_v29 = vmul.f32 1.442695, %v2783_v61  ;;  %v2785_v32 = vsub.f32 -8.0, %v2781_v42 }
 0x2a6   : > { %v2790_v1 = vmul.f32 1.442695, %v2784_v19 }
 0x2a7   : > { %6271 = vpow2.f32 %v2786_v60  ;;  %v2792_v55 = vmul.f32 1.442695, %v2785_v32  ;;  %v2952_v32 = vsub.f32 %v8013_v45, %v8013_v45 }
 0x2a8   : > { %6273 = vpow2.f32 %v2788_v29  ;;  %v2951_v29 = vsub.f32 %v7829_v21, %v7829_v21 }
 0x2a9   : > { %6275 = vpow2.f32 %v2790_v1 }
 0x2aa   : > { %6277 = vpow2.f32 %v2792_v55  ;;  %v2953_v55 = vmul.f32 %v2951_v29, %v2951_v29 }
 0x2ad   : > { %v6272_v46 = vpop.eup %6271 }
 0x2ae   : > { %v6274_v47 = vpop.eup %6273  ;;  %v8021_v59 = vadd.f32 %v6272_v46, %v7960_v26 }
 0x2af   : > { %v6276_v20 = vpop.eup %6275  ;;  %v2798_v63 = vrot.slane %v6274_v47, 4  ;;  %v8024_v16 = vadd.f32 %v6274_v47, %v7966_v2  ;;  %v1043_v2 = vsel %vm10080_vm3, %v7867_v30, %v1039_v3  ;;  %v2841_v30 = vpop.permute.xlu2 %2840  ;;  %vm1175_vm3 = vcmask 859136  }
 0x2b0   : > { %v6278_v27 = vpop.eup %6277  ;;  %v8027_v37 = vadd.f32 %v6276_v20, %v7915_v22  ;;  %v1047_v22 = vmul.f32 %v6507_v17, %v1043_v2  ;;  %v2843_v3 = vrot.slane %v2841_v30, 4 }
 0x2b1   : > { %v2800_v56 = vsel %vm148_vm2, %v6272_v46, %v2798_v63  ;;  %v2799_v35 = vrot.slane %v6278_v27, 4  ;;  %v8031_v8 = vadd.f32 %v6278_v27, %v7919_v52  ;;  %v8044_v52 = vpop.permute.xlu0 %1388 }
 0x2b2   : > { %2802 = vrot.lane.b32.xlu0 %v2800_v56, %s6676_s20 }
 0x2b3   : > { %v2801_v26 = vsel %vm148_vm2, %v6276_v20, %v2799_v35  ;;  %v2954_v20 = vmul.f32 %v2952_v32, %v2952_v32 }
 0x2b4   : > { %2804 = vrot.lane.b32.xlu1 %v2801_v26, %s6676_s20 }
 0x2b9   : > { %v8046_v39 = vpop.permute.xlu0 %1506 }
 0x2ba   : > { %1052 = vrot.lane.b32.xlu0 %v1047_v22, %s6678_s30 }
 0x2bc   : > { %2838 = vrot.lane.b32.xlu1 %v7938_v51, %s6686_s28 }
 0x2c1   : > { %v8048_v53 = vpop.permute.xlu0 %1624 }
 0x2c9   : > { %v8054_v0 = vpop.permute.xlu0 %1742 }
 0x2d1   : > { %v8058_v49 = vpop.permute.xlu0 %1860 }
 0x2d9   : > { %v8067_v1 = vpop.permute.xlu0 %1977 }
 0x2e1   : > { %v8073_v29 = vpop.permute.xlu0 %2094 }
 0x326   : > { %v8052_v5 = vpop.permute.xlu1 %2804 }
 0x32e   : > { %v2839_v58 = vpop.permute.xlu1 %2838 }
 0x32f   : > { %v2842_v4 = vrot.slane %v2839_v58, 4 }
 0x331   : > { %v2845_v36 = vsel %vm10056_vm6, %v2842_v4, %v2839_v58  ;;  %v2846_v33 = vsel %vm148_vm2, %v2842_v4, %v2843_v3 }
 0x332   : > { %v2847_v9 = vsel %vm10056_vm6, %v2846_v33, %v2841_v30  ;;  %v2850_v61 = vsub.f32 %v7829_v21, %v2845_v36  ;;  %vm1411_vm6 = vcmask 842752  }
 0x333   : > { %v2851_v42 = vsub.f32 %v8013_v45, %v2847_v9 }
 0x334   : > { %v2852_v19 = vmul.f32 %v2850_v61, %v2850_v61 }
 0x335   : > { %v2853_v60 = vmul.f32 %v2851_v42, %v2851_v42 }
 0x336   : > { %2856 = vst [vmem:[#allocation1] ss:$2 sm:$0xff] %v2852_v19 }
 0x337   : > { %2858 = vst [vmem:[#allocation1 + $0x10] ss:$2 sm:$0xff] %v2853_v60 }
 0x33d   : > { %v2859_v46 = vld.sshfl [vmem:[#allocation1] sm:$0xff pattern:$0x75316420]  ;;  %v2860_v47 = vld.sshfl [vmem:[#allocation1 + $0x8] sm:$0xff pattern:$0x75316420] }
 0x33e   : > { %v2867_v63 = vsel %vm10082_vm4, %v2859_v46, 0.0  ;;  %v2874_v27 = vsel %vm148_vm2, %v2860_v47, 0.0  ;;  %v2861_v56 = vld.sshfl [vmem:[#allocation1 + $0x10] sm:$0xff pattern:$0x75316420] }
 0x33f   : > { %v2868_v35 = vrot.slane %v2867_v63, 4  ;;  %v2875_v26 = vrot.slane %v2874_v27, 4  ;;  %v2862_v2 = vld.sshfl [vmem:[#allocation1 + $0x18] sm:$0xff pattern:$0x75316420]  ;;  %v2881_v17 = vsel %vm148_vm2, %v2861_v56, 0.0 }
 0x340   : > { %v2882_v21 = vrot.slane %v2881_v17, 4  ;;  %v2888_v22 = vsel %vm192_vm7, %v2862_v2, 0.0  ;;  %2957 = vst [vmem:[#allocation1] ss:$2 sm:$0xff] %v2953_v55 }
 0x341   : > { %v2869_v30 = vadd.f32 %v2868_v35, %v2867_v63  ;;  %v2876_v3 = vadd.f32 %v2875_v26, %v2874_v27  ;;  %v2889_v58 = vrot.slane %v2888_v22, 4  ;;  %2959 = vst [vmem:[#allocation1 + $0x10] ss:$2 sm:$0xff] %v2954_v20 }
 0x342   : > { %v2883_v4 = vadd.f32 %v2882_v21, %v2881_v17 }
 0x343   : > { %v2870_v36 = vrot.slane %v2869_v30, 2  ;;  %v2877_v33 = vrot.slane %v2876_v3, 2  ;;  %v2890_v9 = vadd.f32 %v2889_v58, %v2888_v22 }
 0x344   : > { %v2884_v61 = vrot.slane %v2883_v4, 2 }
 0x345   : > { %v2871_v42 = vadd.f32 %v2870_v36, %v2869_v30  ;;  %v2878_v19 = vadd.f32 %v2877_v33, %v2876_v3  ;;  %v2891_v60 = vrot.slane %v2890_v9, 2 }
 0x346   : > { %v2885_v32 = vadd.f32 %v2884_v61, %v2883_v4 }
 0x347   : > { %v2872_v46 = vrot.slane %v2871_v42, 1  ;;  %v2879_v47 = vrot.slane %v2878_v19, 1  ;;  %v2892_v56 = vadd.f32 %v2891_v60, %v2890_v9  ;;  %v2960_v2 = vld.sshfl [vmem:[#allocation1] sm:$0xff pattern:$0x75316420] }
 0x348   : > { %v2886_v55 = vrot.slane %v2885_v32, 1  ;;  %v2961_v63 = vld.sshfl [vmem:[#allocation1 + $0x8] sm:$0xff pattern:$0x75316420]  ;;  %v2968_v27 = vsel %vm10082_vm4, %v2960_v2, 0.0 }
 0x349   : > { %v2873_v20 = vadd.f32 %v2872_v46, %v2871_v42  ;;  %v2880_v35 = vadd.f32 %v2879_v47, %v2878_v19  ;;  %v2893_v26 = vrot.slane %v2892_v56, 1  ;;  %v2969_v17 = vrot.slane %v2968_v27, 4  ;;  %v2962_v21 = vld.sshfl [vmem:[#allocation1 + $0x10] sm:$0xff pattern:$0x75316420] }
 0x34a   : > { %v2887_v22 = vadd.f32 %v2886_v55, %v2885_v32  ;;  %v2975_v30 = vsel %vm148_vm2, %v2961_v63, 0.0  ;;  %v2963_v3 = vld.sshfl [vmem:[#allocation1 + $0x18] sm:$0xff pattern:$0x75316420]  ;;  %v2982_v58 = vsel %vm148_vm2, %v2962_v21, 0.0 }
 0x34b   : > { %v2895_v4 = vmul.f32 49.999973, %v2873_v20  ;;  %v2896_v36 = vmul.f32 49.999973, %v2880_v35  ;;  %v2894_v33 = vadd.f32 %v2893_v26, %v2892_v56  ;;  %v2970_v9 = vadd.f32 %v2969_v17, %v2968_v27  ;;  %v8079_v35 = vpop.permute.xlu0 %347 }
 0x34c   : > { %v2897_v61 = vmul.f32 49.999973, %v2887_v22  ;;  %v2976_v60 = vrot.slane %v2975_v30, 4  ;;  %v2983_v25 = vrot.slane %v2982_v58, 4  ;;  %v2989_v2 = vsel %vm192_vm7, %v2963_v3, 0.0  ;;  %10116 = vst [vmem:[#allocation16_spill] sm:$0xff] %v8079_v35 }
 0x34d   : > { %v2899_v42 = vsub.f32 -2.0, %v2895_v4  ;;  %v2900_v19 = vsub.f32 -2.0, %v2896_v36  ;;  %v2898_v46 = vmul.f32 49.999973, %v2894_v33  ;;  %v2971_v47 = vrot.slane %v2970_v9, 2 }
 0x34e   : > { %v2901_v23 = vsub.f32 -2.0, %v2897_v61  ;;  %v2977_v32 = vadd.f32 %v2976_v60, %v2975_v30  ;;  %v2984_v55 = vadd.f32 %v2983_v25, %v2982_v58  ;;  %v2990_v63 = vrot.slane %v2989_v2, 4 }
 0x34f   : > { %v2903_v15 = vmul.f32 1.442695, %v2899_v42  ;;  %v2905_v18 = vmul.f32 1.442695, %v2900_v19  ;;  %v2902_v21 = vsub.f32 -2.0, %v2898_v46  ;;  %v2972_v20 = vadd.f32 %v2971_v47, %v2970_v9 }
 0x350   : > { %v2907_v56 = vmul.f32 1.442695, %v2901_v23  ;;  %v2978_v27 = vrot.slane %v2977_v32, 2  ;;  %v2985_v26 = vrot.slane %v2984_v55, 2  ;;  %v2991_v17 = vadd.f32 %v2990_v63, %v2989_v2 }
 0x351   : > { %6279 = vpow2.f32 %v2903_v15  ;;  %v2909_v22 = vmul.f32 1.442695, %v2902_v21  ;;  %v2973_v3 = vrot.slane %v2972_v20, 1 }
 0x352   : > { %6281 = vpow2.f32 %v2905_v18  ;;  %v2979_v4 = vadd.f32 %v2978_v27, %v2977_v32  ;;  %v2986_v36 = vadd.f32 %v2985_v26, %v2984_v55  ;;  %v2992_v33 = vrot.slane %v2991_v17, 2 }
 0x353   : > { %6283 = vpow2.f32 %v2907_v56  ;;  %v2974_v25 = vadd.f32 %v2973_v3, %v2972_v20  ;;  %v8083_v27 = vpop.permute.xlu0 %2211 }
 0x354   : > { %6285 = vpow2.f32 %v2909_v22  ;;  %v2980_v30 = vrot.slane %v2979_v4, 1  ;;  %v2987_v58 = vrot.slane %v2986_v36, 1  ;;  %v2993_v61 = vadd.f32 %v2992_v33, %v2991_v17 }
 0x355   : > { %v2996_v9 = vmul.f32 49.999973, %v2974_v25 }
 0x356   : > { %v2981_v60 = vadd.f32 %v2980_v30, %v2979_v4  ;;  %v2988_v42 = vadd.f32 %v2987_v58, %v2986_v36  ;;  %v2994_v23 = vrot.slane %v2993_v61, 1  ;;  %v10117_v58 = vrot.slane %v7892_v14, 4 }
 0x357   : > { %v6280_v19 = vpop.eup %6279  ;;  %v3000_v46 = vsub.f32 -0.0, %v2996_v9  ;;  %v6508_v9 = vld [vmem:[%s6814_s22 + $0x8] sm:$0xf] }
 0x358   : > { %v6282_v2 = vpop.eup %6281  ;;  %v2947_v15 = vadd.f32 %v6280_v19, %v8021_v59  ;;  %v2997_v47 = vmul.f32 49.999973, %v2981_v60  ;;  %v2995_v18 = vadd.f32 %v2994_v23, %v2993_v61  ;;  %v2998_v32 = vmul.f32 49.999973, %v2988_v42 }
 0x359   : > { %v6284_v55 = vpop.eup %6283  ;;  %v2915_v63 = vrot.slane %v6282_v2, 4  ;;  %v2948_v21 = vadd.f32 %v6282_v2, %v8024_v16  ;;  %v3004_v20 = vmul.f32 1.442695, %v3000_v46  ;;  %v1161_v61 = vsel %vm1159_vm5, %v7892_v14, %v10117_v58 }
 0x35a   : > { %v6286_v56 = vpop.eup %6285  ;;  %v2949_v26 = vadd.f32 %v6284_v55, %v8027_v37  ;;  %v3001_v17 = vsub.f32 -0.0, %v2997_v47  ;;  %v2999_v22 = vmul.f32 49.999973, %v2995_v18  ;;  %v3002_v3 = vsub.f32 -0.0, %v2998_v32 }
 0x35b   : > { %v2917_v4 = vsel %vm148_vm2, %v6280_v19, %v2915_v63  ;;  %v2916_v59 = vrot.slane %v6286_v56, 4  ;;  %v2950_v36 = vadd.f32 %v6286_v56, %v8031_v8  ;;  %6287 = vpow2.f32 %v3004_v20  ;;  %v8098_v19 = vpop.permute.xlu0 %465  ;;  %v8113_v56 = vld [vmem:[%s6814_s22] sm:$0xff] }
 0x35c   : > { %2919 = vrot.lane.b32.xlu0 %v2917_v4, %s6674_s26  ;;  %v3006_v33 = vmul.f32 1.442695, %v3001_v17  ;;  %v3003_v16 = vsub.f32 -0.0, %v2999_v22  ;;  %v3008_v25 = vmul.f32 1.442695, %v3002_v3  ;;  %v1165_v60 = vmul.f32 %v6508_v9, %v1161_v61  ;;  %10118 = vst [vmem:[#allocation17_spill] sm:$0xff] %v8098_v19 }
 0x35d   : > { %v2918_v30 = vsel %vm148_vm2, %v6284_v55, %v2916_v59  ;;  %v10119_v32 = vrot.slane %v7913_v44, 4 }
 0x35e   : > { %2921 = vrot.lane.b32.xlu1 %v2918_v30, %s6674_s26  ;;  %6289 = vpow2.f32 %v3006_v33  ;;  %v3010_v37 = vmul.f32 1.442695, %v3003_v16  ;;  %v1393_v16 = vrot.slane %v7940_v34, 4 }
 0x35f   : > { %6291 = vpow2.f32 %v3008_v25  ;;  %v1279_v55 = vsel %vm1277_vm9, %v7913_v44, %v10119_v32 }
 0x360   : > { %6293 = vpow2.f32 %v3010_v37  ;;  %v1397_v25 = vsel %vm1395_vm11, %v7940_v34, %v1393_v16  ;;  %v6511_v37 = vld [vmem:[%s6814_s22 + $0x8] sm:$0xf] }
 0x361   : > { %v6288_v8 = vpop.eup %6287  ;;  %v1401_v58 = vmul.f32 %v6511_v37, %v1397_v25 }
 0x362   : > { %v8096_v42 = vadd.f32 %v6288_v8, %v2947_v15 }
 0x363   : > { %v8122_v44 = vpop.permute.xlu0 %2328 }
 0x364   : > { %v6290_v23 = vpop.eup %6289  ;;  %1170 = vrot.lane.b32.xlu0 %v1165_v60, %s6675_s13 }
 0x365   : > { %v6292_v46 = vpop.eup %6291  ;;  %v3016_v2 = vrot.slane %v6290_v23, 4  ;;  %v8101_v47 = vadd.f32 %v6290_v23, %v2948_v21 }
 0x366   : > { %v6294_v18 = vpop.eup %6293  ;;  %v8103_v14 = vadd.f32 %v6292_v46, %v2949_v26  ;;  %v6510_v26 = vld [vmem:[%s6814_s22 + $0x8] sm:$0xf] }
 0x367   : > { %v3018_v15 = vsel %vm148_vm2, %v6288_v8, %v3016_v2  ;;  %v3017_v63 = vrot.slane %v6294_v18, 4  ;;  %v8110_v20 = vadd.f32 %v6294_v18, %v2950_v36  ;;  %v1283_v22 = vmul.f32 %v6510_v26, %v1279_v55 }
 0x368   : > { %v3022_v17 = vmul.f32 %v8113_v56, %v3018_v15 }
 0x369   : > { %v3019_v21 = vsel %vm148_vm2, %v6292_v46, %v3017_v63 }
 0x36a   : > { %3026 = vrot.lane.b32.xlu1 %v3022_v17, %s6661_s29  ;;  %v3023_v3 = vmul.f32 %v8013_v45, %v3019_v21 }
 0x36b   : > { %v8128_v4 = vpop.permute.xlu0 %583 }
 0x36c   : > { %1288 = vrot.lane.b32.xlu0 %v1283_v22, %s6673_s27  ;;  %3028 = vrot.lane.b32.xlu2 %v3023_v3, %s6661_s29  ;;  %10120 = vst [vmem:[#allocation18_spill] sm:$0xff] %v8128_v4  ;;  %v1392_v22 = vrot.slane %v8044_v52, 4  ;;  %v1511_v3 = vrot.slane %v7954_v7, 4 }
 0x372   : > { %3049 = vrot.lane.b32.xlu1 %v7863_v43, %s6674_s26 }
 0x373   : > { %v8134_v59 = vpop.permute.xlu0 %2447 }
 0x374   : > { %3047 = vrot.lane.b32.xlu0 %v7938_v51, %s6674_s26  ;;  %s6688_s26 = smov 101  }
 0x37a   : > { %3166 = vrot.lane.b32.xlu1 %v7863_v43, %s6676_s20 }
 0x37b   : > { %v8142_v36 = vpop.permute.xlu0 %701 }
 0x37c   : > { %3164 = vrot.lane.b32.xlu0 %v7938_v51, %s6676_s20  ;;  %10121 = vst [vmem:[#allocation19_spill] sm:$0xff] %v8142_v36  ;;  %s10143_s20 = smov 81  }
 0x382   : > { %3283 = vrot.lane.b32.xlu1 %v7863_v43, %s6677_s21 }
 0x383   : > { %v8150_v33 = vpop.permute.xlu0 %2566 }
 0x384   : > { %3281 = vrot.lane.b32.xlu0 %v7938_v51, %s6677_s21  ;;  %s6690_s21 = smov 80  }
 0x38a   : > { %3400 = vrot.lane.b32.xlu1 %v7863_v43, %s6685_s24 }
 0x38b   : > { %v8159_v30 = vpop.permute.xlu0 %818 }
 0x38c   : > { %3398 = vrot.lane.b32.xlu0 %v7938_v51, %s6685_s24  ;;  %10122 = vst [vmem:[#allocation20_spill] sm:$0xff] %v8159_v30  ;;  %s6687_s24 = smov 102  }
 0x392   : > { %3517 = vrot.lane.b32.xlu1 %v7863_v43, %s6682_s5 }
 0x393   : > { %v8165_v61 = vpop.permute.xlu0 %2685 }
 0x394   : > { %3515 = vrot.lane.b32.xlu0 %v7938_v51, %s6682_s5  ;;  %10123 = vst [vmem:[#allocation21_spill] sm:$0xff] %v8165_v61  ;;  %s10141_s5 = smov 82  }
 0x39a   : > { %3634 = vrot.lane.b32.xlu1 %v7863_v43, %s6680_s3 }
 0x39b   : > { %v8169_v8 = vpop.permute.xlu0 %934 }
 0x39c   : > { %3632 = vrot.lane.b32.xlu0 %v7938_v51, %s6680_s3  ;;  %10124 = vst [vmem:[#allocation22_spill] sm:$0xff] %v8169_v8  ;;  %s10140_s3 = smov 21  }
 0x3a2   : > { %3751 = vrot.lane.b32.xlu1 %v7863_v43, %s6678_s30 }
 0x3a3   : > { %v8171_v51 = vpop.permute.xlu0 %2802 }
 0x3a4   : > { %1406 = vrot.lane.b32.xlu0 %v1401_v58, %s6672_s14  ;;  %10125 = vst [vmem:[#allocation23_spill] sm:$0xff] %v8171_v51  ;;  %v1629_v58 = vrot.slane %v7969_v48, 4 }
 0x3aa   : > { %3868 = vrot.lane.b32.xlu1 %v7863_v43, %s6675_s13 }
 0x3ab   : > { %v8173_v9 = vpop.permute.xlu0 %1052 }
 0x3ac   : > { %10126 = vst [vmem:[#allocation24_spill] sm:$0xff] %v8173_v9 }
 0x3ce   : > { %v8175_v34 = vpop.permute.xlu0 %2919 }
 0x3cf   : > { %10127 = vst [vmem:[#allocation25_spill] sm:$0xff] %v8175_v34 }
 0x3d0   : > { %v8177_v60 = vpop.permute.xlu1 %2921 }
 0x3d1   : > { %10128 = vst [vmem:[#allocation26_spill] sm:$0xff] %v8177_v60 }
 0x3d6   : > { %v8179_v23 = vpop.permute.xlu0 %1170 }
 0x3d7   : > { %10129 = vst [vmem:[#allocation27_spill] sm:$0xff] %v8179_v23  ;;  %v10132_v23 = vrot.slane %v7974_v12, 4 }
 0x3dc   : > { %v8181_v46 = vpop.permute.xlu1 %3026 }
 0x3dd   : > { %10130 = vst [vmem:[#allocation28_spill] sm:$0xff] %v8181_v46 }
 0x3de   : > { %v8183_v2 = vpop.permute.xlu0 %1288 }
 0x3df   : > { %10131 = vst [vmem:[#allocation29_spill] sm:$0xff] %v8183_v2  ;;  %v1633_v2 = vsel %vm10069_vm13, %v7969_v48, %v1629_v58 }
 0x3e4   : > { %v3050_v18 = vpop.permute.xlu1 %3049 }
 0x3e5   : > { %v3052_v32 = vrot.slane %v3050_v18, 4 }
 0x3e6   : > { %v3048_v43 = vpop.permute.xlu0 %3047 }
 0x3e7   : > { %v3055_v55 = vsel %vm352_vm12, %v3050_v18, %v3052_v32  ;;  %v3051_v15 = vrot.slane %v3048_v43, 4 }
 0x3e8   : > { %v3059_v63 = vsub.f32 %v8013_v45, %v3055_v55  ;;  %v1394_v55 = vsel %vm148_vm2, %v1392_v22, %v1393_v16 }
 0x3e9   : > { %v3053_v17 = vsel %vm148_vm2, %v3051_v15, %v3052_v32  ;;  %v1510_v32 = vrot.slane %v8046_v39, 4  ;;  %v1628_v15 = vrot.slane %v8048_v53, 4  ;;  %v1396_v16 = vsel %vm1395_vm11, %v8044_v52, %v1394_v55 }
 0x3ea   : > { %v3061_v21 = vmul.f32 %v3059_v63, %v3059_v63  ;;  %v3054_v26 = vsel %vm352_vm12, %v3048_v43, %v3053_v17  ;;  %v1515_v63 = vsel %vm10066_vm10, %v7954_v7, %v1511_v3  ;;  %v8215_v52 = vsel %vm1749_vm8, %v7974_v12, %v10132_v23 }
 0x3eb   : > { %v3058_v25 = vsub.f32 %v8113_v56, %v3054_v26  ;;  %v1512_v22 = vsel %vm148_vm2, %v1510_v32, %v1511_v3 }
 0x3ec   : > { %3066 = vst [vmem:[#allocation1 + $0x10] ss:$2 sm:$0xff] %v3061_v21  ;;  %v3167_v37 = vpop.permute.xlu1 %3166 }
 0x3ed   : > { %v3060_v18 = vmul.f32 %v3058_v25, %v3058_v25  ;;  %v3169_v46 = vrot.slane %v3167_v37, 4 }
 0x3ee   : > { %v3165_v43 = vpop.permute.xlu0 %3164 }
 0x3ef   : > { %3064 = vst [vmem:[#allocation1] ss:$2 sm:$0xff] %v3060_v18  ;;  %v3172_v21 = vsel %vm470_vm14, %v3167_v37, %v3169_v46  ;;  %v3168_v26 = vrot.slane %v3165_v43, 4  ;;  %v1630_v18 = vsel %vm148_vm2, %v1628_v15, %v1629_v58  ;;  %v10062_v37 = vrot.slane %v7982_v62, 4 }
 0x3f0   : > { %v3176_v25 = vsub.f32 %v8013_v45, %v3172_v21  ;;  %v1514_v58 = vsel %vm10066_vm10, %v8046_v39, %v1512_v22  ;;  %v1632_v23 = vsel %vm10069_vm13, %v8048_v53, %v1630_v18  ;;  %vm2573_vm10 = vcmask 891904  }
 0x3f1   : > { %v3170_v7 = vsel %vm148_vm2, %v3168_v26, %v3169_v46  ;;  %v8219_v46 = vmul.f32 %v8113_v56, %v1396_v16  ;;  %v8231_v39 = vsel %vm1411_vm6, %v7982_v62, %v10062_v37  ;;  %v8240_v53 = vmul.f32 %v8113_v56, %v1514_v58 }
 0x3f2   : > { %v3178_v17 = vmul.f32 %v3176_v25, %v3176_v25  ;;  %v3171_v21 = vsel %vm470_vm14, %v3165_v43, %v3170_v7  ;;  %vm2454_vm13 = vcmask 883712  }
 0x3f3   : > { %v3175_v3 = vsub.f32 %v8113_v56, %v3171_v21  ;;  %v3069_v55 = vld.sshfl [vmem:[#allocation1 + $0x10] sm:$0xff pattern:$0x75316420]  ;;  %v3070_v48 = vld.sshfl [vmem:[#allocation1 + $0x18] sm:$0xff pattern:$0x75316420] }
 0x3f4   : > { %v3284_v32 = vpop.permute.xlu1 %3283  ;;  %v3089_v15 = vsel %vm148_vm2, %v3069_v55, 0.0  ;;  %v3096_v43 = vsel %vm192_vm7, %v3070_v48, 0.0  ;;  %3183 = vst [vmem:[#allocation1 + $0x10] ss:$2 sm:$0xff] %v3178_v17  ;;  %v6512_v55 = vld [vmem:[%s6814_s22 + $0x8] sm:$0xf] }
 0x3f5   : > { %v3177_v26 = vmul.f32 %v3175_v3, %v3175_v3  ;;  %v3286_v25 = vrot.slane %v3284_v32, 4  ;;  %v3090_v7 = vrot.slane %v3089_v15, 4  ;;  %v3097_v16 = vrot.slane %v3096_v43, 4  ;;  %v6513_v17 = vld [vmem:[%s6814_s22 + $0x8] sm:$0xf] }
 0x3f6   : > { %v3282_v22 = vpop.permute.xlu0 %3281  ;;  %v3067_v21 = vld.sshfl [vmem:[#allocation1] sm:$0xff pattern:$0x75316420]  ;;  %v3068_v34 = vld.sshfl [vmem:[#allocation1 + $0x8] sm:$0xff pattern:$0x75316420]  ;;  %v8234_v9 = vmul.f32 %v6512_v55, %v1515_v63  ;;  %v8237_v48 = vmul.f32 %v6513_v17, %v1633_v2  ;;  %v8247_v63 = vmul.f32 %v8113_v56, %v1632_v23 }
 0x3f7   : > { %v3289_v18 = vsel %vm588_vm15, %v3284_v32, %v3286_v25  ;;  %v3285_v3 = vrot.slane %v3282_v22, 4  ;;  %v3091_v8 = vadd.f32 %v3090_v7, %v3089_v15  ;;  %v3098_v30 = vadd.f32 %v3097_v16, %v3096_v43  ;;  %3181 = vst [vmem:[#allocation1] ss:$2 sm:$0xff] %v3177_v26 }
 0x3f8   : > { %v3293_v37 = vsub.f32 %v8013_v45, %v3289_v18  ;;  %v3075_v11 = vsel %vm10082_vm4, %v3067_v21, 0.0  ;;  %v3082_v36 = vsel %vm148_vm2, %v3068_v34, 0.0 }
 0x3f9   : > { %v3287_v2 = vsel %vm148_vm2, %v3285_v3, %v3286_v25  ;;  %v3092_v55 = vrot.slane %v3091_v8, 2  ;;  %v3099_v58 = vrot.slane %v3098_v30, 2  ;;  %v3076_v17 = vrot.slane %v3075_v11, 4 }
 0x3fa   : > { %v3295_v57 = vmul.f32 %v3293_v37, %v3293_v37  ;;  %v3288_v15 = vsel %vm588_vm15, %v3282_v22, %v3287_v2  ;;  %v3083_v43 = vrot.slane %v3082_v36, 4 }
 0x3fb   : > { %v3292_v26 = vsub.f32 %v8113_v56, %v3288_v15  ;;  %v3093_v7 = vadd.f32 %v3092_v55, %v3091_v8  ;;  %v3100_v16 = vadd.f32 %v3099_v58, %v3098_v30  ;;  %v3077_v21 = vadd.f32 %v3076_v17, %v3075_v11  ;;  %v3186_v34 = vld.sshfl [vmem:[#allocation1 + $0x10] sm:$0xff pattern:$0x75316420]  ;;  %v3187_v18 = vld.sshfl [vmem:[#allocation1 + $0x18] sm:$0xff pattern:$0x75316420] }
 0x3fc   : > { %v3401_v23 = vpop.permute.xlu1 %3400  ;;  %v3084_v4 = vadd.f32 %v3083_v43, %v3082_v36  ;;  %v3206_v25 = vsel %vm148_vm2, %v3186_v34, 0.0  ;;  %v3213_v3 = vsel %vm192_vm7, %v3187_v18, 0.0  ;;  %3300 = vst [vmem:[#allocation1 + $0x10] ss:$2 sm:$0xff] %v3295_v57 }
 0x3fd   : > { %v3294_v32 = vmul.f32 %v3292_v26, %v3292_v26  ;;  %v3403_v37 = vrot.slane %v3401_v23, 4  ;;  %v3094_v54 = vrot.slane %v3093_v7, 1  ;;  %v3101_v22 = vrot.slane %v3100_v16, 1 }
 0x3fe   : > { %v3399_v2 = vpop.permute.xlu0 %3398  ;;  %v3078_v15 = vrot.slane %v3077_v21, 2  ;;  %v3085_v8 = vrot.slane %v3084_v4, 2  ;;  %v3207_v30 = vrot.slane %v3206_v25, 4  ;;  %v3214_v11 = vrot.slane %v3213_v3, 4 }
 0x3ff   : > { %v3406_v55 = vsel %vm2573_vm10, %v3401_v23, %v3403_v37  ;;  %v3402_v58 = vrot.slane %v3399_v2, 4  ;;  %v3095_v17 = vadd.f32 %v3094_v54, %v3093_v7  ;;  %v3102_v36 = vadd.f32 %v3101_v22, %v3100_v16  ;;  %v3184_v43 = vld.sshfl [vmem:[#allocation1] sm:$0xff pattern:$0x75316420] }
 0x400   : > { %v3410_v34 = vsub.f32 %v8013_v45, %v3406_v55  ;;  %v3079_v18 = vadd.f32 %v3078_v15, %v3077_v21  ;;  %v3086_v57 = vadd.f32 %v3085_v8, %v3084_v4  ;;  %v3208_v26 = vadd.f32 %v3207_v30, %v3206_v25  ;;  %v3185_v19 = vld.sshfl [vmem:[#allocation1 + $0x8] sm:$0xff pattern:$0x75316420] }
 0x401   : > { %v3404_v28 = vsel %vm148_vm2, %v3402_v58, %v3403_v37  ;;  %v3105_v35 = vmul.f32 49.999973, %v3095_v17  ;;  %v3106_v41 = vmul.f32 49.999973, %v3102_v36  ;;  %v3215_v6 = vadd.f32 %v3214_v11, %v3213_v3  ;;  %3298 = vst [vmem:[#allocation1] ss:$2 sm:$0xff] %v3294_v32 }
 0x402   : > { %v3412_v51 = vmul.f32 %v3410_v34, %v3410_v34  ;;  %v3405_v60 = vsel %vm2573_vm10, %v3399_v2, %v3404_v28  ;;  %v3080_v23 = vrot.slane %v3079_v18, 1  ;;  %v3087_v61 = vrot.slane %v3086_v57, 1 }
 0x403   : > { %v3409_v54 = vsub.f32 %v8113_v56, %v3405_v60  ;;  %v3109_v7 = vsub.f32 -2.0, %v3105_v35  ;;  %v3110_v16 = vsub.f32 -2.0, %v3106_v41  ;;  %v3209_v22 = vrot.slane %v3208_v26, 2  ;;  %v3303_v21 = vld.sshfl [vmem:[#allocation1 + $0x10] sm:$0xff pattern:$0x75316420] }
 0x404   : > { %v3518_v4 = vpop.permute.xlu1 %3517  ;;  %v3081_v25 = vadd.f32 %v3080_v23, %v3079_v18  ;;  %v3088_v15 = vadd.f32 %v3087_v61, %v3086_v57  ;;  %v3216_v8 = vrot.slane %v3215_v6, 2  ;;  %v3192_v37 = vsel %vm10082_vm4, %v3184_v43, 0.0  ;;  %v8261_v30 = vld.sshfl [vmem:[#allocation1 + $0x18] sm:$0xff pattern:$0x75316420] }
 0x405   : > { %v3411_v32 = vmul.f32 %v3409_v54, %v3409_v54  ;;  %v3520_v3 = vrot.slane %v3518_v4, 4  ;;  %v3115_v11 = vmul.f32 1.442695, %v3109_v7  ;;  %v3117_v28 = vmul.f32 1.442695, %v3110_v16 }
 0x406   : > { %v3516_v2 = vpop.permute.xlu0 %3515  ;;  %v3103_v55 = vmul.f32 49.999973, %v3081_v25  ;;  %v3104_v60 = vmul.f32 49.999973, %v3088_v15  ;;  %v3210_v35 = vadd.f32 %v3209_v22, %v3208_v26  ;;  %v3217_v41 = vadd.f32 %v3216_v8, %v3215_v6  ;;  %3417 = vst [vmem:[#allocation1 + $0x10] ss:$2 sm:$0xff] %v3412_v51 }
 0x407   : > { %v3523_v58 = vsel %vm2454_vm13, %v3518_v4, %v3520_v3  ;;  %v3519_v17 = vrot.slane %v3516_v2, 4  ;;  %6295 = vpow2.f32 %v3115_v11  ;;  %v3193_v61 = vrot.slane %v3192_v37, 4 }
 0x408   : > { %v3527_v36 = vsub.f32 %v8013_v45, %v3523_v58  ;;  %6297 = vpow2.f32 %v3117_v28  ;;  %v3107_v43 = vsub.f32 -2.0, %v3103_v55  ;;  %v3108_v34 = vsub.f32 -2.0, %v3104_v60  ;;  %v8265_v18 = vld.sshfl [vmem:[#allocation1] sm:$0xff pattern:$0x75316420] }
 0x409   : > { %v3521_v57 = vsel %vm148_vm2, %v3519_v17, %v3520_v3  ;;  %v3211_v23 = vrot.slane %v3210_v35, 1  ;;  %v3218_v54 = vrot.slane %v3217_v41, 1  ;;  %v3194_v7 = vadd.f32 %v3193_v61, %v3192_v37  ;;  %v8268_v26 = vld.sshfl [vmem:[#allocation1 + $0x8] sm:$0xff pattern:$0x75316420] }
 0x40a   : > { %v3529_v6 = vmul.f32 %v3527_v36, %v3527_v36  ;;  %v3522_v51 = vsel %vm2454_vm13, %v3516_v2, %v3521_v57  ;;  %v3111_v16 = vmul.f32 1.442695, %v3107_v43  ;;  %v3113_v22 = vmul.f32 1.442695, %v3108_v34  ;;  %3415 = vst [vmem:[#allocation1] ss:$2 sm:$0xff] %v3411_v32 }
 0x40b   : > { %v3526_v4 = vsub.f32 %v8113_v56, %v3522_v51  ;;  %v3212_v25 = vadd.f32 %v3211_v23, %v3210_v35  ;;  %v3219_v15 = vadd.f32 %v3218_v54, %v3217_v41  ;;  %v3195_v8 = vrot.slane %v3194_v7, 2 }
 0x40c   : > { %v3635_v11 = vpop.permute.xlu1 %3634  ;;  %6299 = vpow2.f32 %v3111_v16  ;;  %v3199_v3 = vsel %vm148_vm2, %v3185_v19, 0.0  ;;  %v3323_v28 = vsel %vm148_vm2, %v3303_v21, 0.0  ;;  %v10133_v37 = vrot.slane %v7974_v12, 4 }
 0x40d   : > { %v10134_v55 = vrot.slane %v8054_v0, 4  ;;  %v6296_v60 = vpop.eup %6295  ;;  %v3528_v32 = vmul.f32 %v3526_v4, %v3526_v4  ;;  %v3637_v58 = vrot.slane %v3635_v11, 4  ;;  %6301 = vpow2.f32 %v3113_v22  ;;  %v8281_v41 = vld.sshfl [vmem:[#allocation1 + $0x10] sm:$0xff pattern:$0x75316420] }
 0x40e   : > { %v3222_v35 = vmul.f32 49.999973, %v3212_v25  ;;  %v6298_v17 = vpop.eup %6297  ;;  %v8284_v19 = vadd.f32 %v6296_v60, %v8103_v14  ;;  %v3633_v21 = vpop.permute.xlu0 %3632  ;;  %v3223_v61 = vmul.f32 49.999973, %v3219_v15  ;;  %v3196_v12 = vadd.f32 %v3195_v8, %v3194_v7 }
 0x40f   : > { %v8279_v2 = vsel %vm148_vm2, %v10134_v55, %v10133_v37  ;;  %v3200_v36 = vrot.slane %v3199_v3, 4  ;;  %v8286_v43 = vld.sshfl [vmem:[#allocation1 + $0x18] sm:$0xff pattern:$0x75316420]  ;;  %v3640_v34 = vsel %vm2335_vm0, %v3635_v11, %v3637_v58  ;;  %v3124_v57 = vrot.slane %v6298_v17, 4 }
 0x410   : > { %v8290_v23 = vadd.f32 %v6298_v17, %v8110_v20  ;;  %v3636_v54 = vrot.slane %v3633_v21, 4  ;;  %3534 = vst [vmem:[#allocation1 + $0x10] ss:$2 sm:$0xff] %v3529_v6  ;;  %v3644_v51 = vsub.f32 %v8013_v45, %v3640_v34  ;;  %v3226_v16 = vsub.f32 -8.0, %v3222_v35 }
 0x411   : > { %v3227_v22 = vsub.f32 -8.0, %v3223_v61  ;;  %v3197_v14 = vrot.slane %v3196_v12, 1  ;;  %v3126_v4 = vsel %vm148_vm2, %v6296_v60, %v3124_v57  ;;  %v3201_v25 = vadd.f32 %v3200_v36, %v3199_v3  ;;  %v8295_v8 = vld.sshfl [vmem:[#allocation1] sm:$0xff pattern:$0x75316420] }
 0x412   : > { %v3638_v7 = vsel %vm148_vm2, %v3636_v54, %v3637_v58  ;;  %v3324_v15 = vrot.slane %v3323_v28, 4  ;;  %v6300_v11 = vpop.eup %6299  ;;  %3129 = vrot.lane.b32.xlu0 %v3126_v4, %s6686_s28  ;;  %v3232_v37 = vmul.f32 1.442695, %v3226_v16  ;;  %v3330_v55 = vsel %vm192_vm7, %v8261_v30, 0.0 }
 0x413   : > { %v3639_v20 = vsel %vm2335_vm0, %v3633_v21, %v3638_v7  ;;  %v3234_v6 = vmul.f32 1.442695, %v3227_v22  ;;  %v6302_v35 = vpop.eup %6301  ;;  %v8303_v60 = vadd.f32 %v6300_v11, %v8096_v42  ;;  %v3198_v3 = vadd.f32 %v3197_v14, %v3196_v12  ;;  %v8305_v61 = vld.sshfl [vmem:[#allocation1 + $0x8] sm:$0xff pattern:$0x75316420] }
 0x414   : > { %v3643_v17 = vsub.f32 %v8113_v56, %v3639_v20  ;;  %v3202_v58 = vrot.slane %v3201_v25, 2  ;;  %v8307_v36 = vpop.permute.xlu1 %3751  ;;  %v3123_v34 = vrot.slane %v6302_v35, 4  ;;  %v8310_v21 = vadd.f32 %v6302_v35, %v8101_v47  ;;  %3532 = vst [vmem:[#allocation1] ss:$2 sm:$0xff] %v3528_v32  ;;  %v6514_v32 = vld [vmem:[%s6814_s22 + $0x8] sm:$0xf] }
 0x415   : > { %6303 = vpow2.f32 %v3232_v37  ;;  %v3325_v57 = vadd.f32 %v3324_v15, %v3323_v28  ;;  %v3646_v30 = vmul.f32 %v3644_v51, %v3644_v51  ;;  %v3754_v56 = vrot.slane %v8307_v36, 4 }
 0x416   : > { %6305 = vpow2.f32 %v3234_v6  ;;  %v3203_v42 = vadd.f32 %v3202_v58, %v3201_v25  ;;  %v3125_v12 = vsel %vm148_vm2, %v6300_v11, %v3123_v34  ;;  %v3220_v54 = vmul.f32 49.999973, %v3198_v3 }
 0x417   : > { %v3326_v16 = vrot.slane %v3325_v57, 2  ;;  %v3331_v22 = vrot.slane %v3330_v55, 4  ;;  %v3645_v14 = vmul.f32 %v3643_v17, %v3643_v17  ;;  %v3757_v47 = vsel %vm1057_vm1, %v8307_v36, %v3754_v56  ;;  %3127 = vrot.lane.b32.xlu2 %v3125_v12, %s6686_s28  ;;  %v8323_v4 = vld.sshfl [vmem:[#allocation1 + $0x10] sm:$0xff pattern:$0x75316420]  ;;  %s10138_s28 = smov 83  }
 0x418   : > { %v3204_v28 = vrot.slane %v3203_v42, 1  ;;  %v8321_v51 = vmul.f32 %v6514_v32, %v8215_v52  ;;  %v3761_v7 = vsub.f32 %v8013_v45, %v3757_v47  ;;  %v3224_v25 = vsub.f32 -8.0, %v3220_v54  ;;  %v8326_v20 = vld.sshfl [vmem:[#allocation1 + $0x18] sm:$0xff pattern:$0x75316420] }
 0x419   : > { %v3327_v15 = vadd.f32 %v3326_v16, %v3325_v57  ;;  %v3332_v11 = vadd.f32 %v3331_v22, %v3330_v55  ;;  %v3309_v6 = vsel %vm10082_vm4, %v8265_v18, 0.0  ;;  %v3316_v35 = vsel %vm148_vm2, %v8268_v26, 0.0  ;;  %3651 = vst [vmem:[#allocation1 + $0x10] ss:$2 sm:$0xff] %v3646_v30 }
 0x41a   : > { %v3205_v37 = vadd.f32 %v3204_v28, %v3203_v42  ;;  %v3440_v52 = vsel %vm148_vm2, %v8281_v41, 0.0  ;;  %v3763_v3 = vmul.f32 %v3761_v7, %v3761_v7  ;;  %1524 = vrot.lane.b32.xlu0 %v8234_v9, %s6687_s24  ;;  %v3228_v45 = vmul.f32 1.442695, %v3224_v25 }
 0x41b   : > { %v6304_v17 = vpop.eup %6303  ;;  %v3328_v55 = vrot.slane %v3327_v15, 1  ;;  %v3333_v58 = vrot.slane %v3332_v11, 2  ;;  %v3310_v42 = vrot.slane %v3309_v6, 4  ;;  %v3317_v26 = vrot.slane %v3316_v35, 4 }
 0x41c   : > { %v6306_v34 = vpop.eup %6305  ;;  %v8337_v57 = vadd.f32 %v6304_v17, %v8284_v19  ;;  %v3221_v18 = vmul.f32 49.999973, %v3205_v37  ;;  %v8339_v12 = vpop.permute.xlu1 %3868  ;;  %6307 = vpow2.f32 %v3228_v45  ;;  %v8344_v16 = vld.sshfl [vmem:[#allocation1] sm:$0xff pattern:$0x75316420]  ;;  %v3441_v37 = vrot.slane %v3440_v52, 4 }
 0x41d   : > { %v3241_v41 = vrot.slane %v6306_v34, 4  ;;  %v8342_v30 = vadd.f32 %v6306_v34, %v8290_v23  ;;  %v3329_v54 = vadd.f32 %v3328_v55, %v3327_v15  ;;  %v10081_v9 = vrot.slane %v8339_v12, 4  ;;  %v8347_v28 = vld.sshfl [vmem:[#allocation1 + $0x8] sm:$0xff pattern:$0x75316420] }
 0x41e   : > { %v3225_v22 = vsub.f32 -8.0, %v3221_v18  ;;  %v3334_v47 = vadd.f32 %v3333_v58, %v3332_v11  ;;  %v3311_v19 = vadd.f32 %v3310_v42, %v3309_v6  ;;  %v3318_v25 = vadd.f32 %v3317_v26, %v3316_v35  ;;  %3649 = vst [vmem:[#allocation1] ss:$2 sm:$0xff] %v3645_v14  ;;  %v8357_v6 = vld [vmem:[%s6814_s22 + $0x8] sm:$0xff] }
 0x41f   : > { %v3243_v32 = vsel %vm148_vm2, %v6304_v17, %v3241_v41  ;;  %v3339_v7 = vmul.f32 49.999973, %v3329_v54  ;;  %v3874_v23 = vsel %vm1175_vm3, %v8339_v12, %v10081_v9  ;;  %1404 = vrot.lane.b32.xlu2 %v8219_v46, %s6672_s14  ;;  %v3442_v35 = vadd.f32 %v3441_v37, %v3440_v52 }
 0x420   : > { %v3230_v15 = vmul.f32 1.442695, %v3225_v22  ;;  %v3335_v45 = vrot.slane %v3334_v47, 1  ;;  %v3312_v11 = vrot.slane %v3311_v19, 2  ;;  %v3878_v55 = vsub.f32 %v8357_v6, %v3874_v23 }
 0x421   : > { %v3343_v17 = vsub.f32 -18.0, %v3339_v7  ;;  %v3319_v58 = vrot.slane %v3318_v25, 2  ;;  %v8360_v34 = vld.sshfl [vmem:[#allocation1 + $0x10] sm:$0xff pattern:$0x75316420]  ;;  %v3447_v42 = vsel %vm192_vm7, %v8286_v43, 0.0 }
 0x422   : > { %6309 = vpow2.f32 %v3230_v15  ;;  %v3336_v14 = vadd.f32 %v3335_v45, %v3334_v47  ;;  %v3313_v18 = vadd.f32 %v3312_v11, %v3311_v19  ;;  %v8364_v26 = vld.sshfl [vmem:[#allocation1 + $0x18] sm:$0xff pattern:$0x75316420]  ;;  %v6308_v46 = vpop.eup %6307  ;;  %v3880_v41 = vmul.f32 %v3878_v55, %v3878_v55  ;;  %3246 = vrot.lane.b32.xlu0 %v3243_v32, %s6683_s23 }
 0x423   : > { %v3349_v54 = vmul.f32 1.442695, %v3343_v17  ;;  %v3320_v22 = vadd.f32 %v3319_v58, %v3318_v25  ;;  %v3443_v23 = vrot.slane %v3442_v35, 2  ;;  %3768 = vst [vmem:[#allocation1 + $0x10] ss:$2 sm:$0xff] %v3763_v3  ;;  %v8368_v52 = vadd.f32 %v6308_v46, %v8303_v60 }
 0x424   : > { %v3340_v7 = vmul.f32 49.999973, %v3336_v14  ;;  %v3314_v37 = vrot.slane %v3313_v18, 1  ;;  %v3448_v47 = vrot.slane %v3447_v42, 4  ;;  %v3426_v43 = vsel %vm10082_vm4, %v8295_v8, 0.0 }
 0x425   : > { %6311 = vpow2.f32 %v3349_v54  ;;  %v3321_v19 = vrot.slane %v3320_v22, 1  ;;  %v3444_v15 = vadd.f32 %v3443_v23, %v3442_v35  ;;  %v3427_v32 = vrot.slane %v3426_v43, 4 }
 0x426   : > { %v3344_v45 = vsub.f32 -18.0, %v3340_v7  ;;  %v3315_v11 = vadd.f32 %v3314_v37, %v3313_v18  ;;  %v3449_v55 = vadd.f32 %v3448_v47, %v3447_v42  ;;  %v3433_v3 = vsel %vm148_vm2, %v8305_v61, 0.0 }
 0x427   : > { %v3322_v17 = vadd.f32 %v3321_v19, %v3320_v22  ;;  %v3445_v25 = vrot.slane %v3444_v15, 1  ;;  %v3557_v60 = vsel %vm148_vm2, %v8323_v4, 0.0  ;;  %v3428_v35 = vadd.f32 %v3427_v32, %v3426_v43 }
 0x428   : > { %v6310_v58 = vpop.eup %6309  ;;  %v3351_v14 = vmul.f32 1.442695, %v3344_v45  ;;  %v3337_v54 = vmul.f32 49.999973, %v3315_v11  ;;  %v3450_v9 = vrot.slane %v3449_v55, 2  ;;  %v3434_v45 = vrot.slane %v3433_v3, 4 }
 0x429   : > { %v3240_v23 = vrot.slane %v6310_v58, 4  ;;  %v8377_v8 = vadd.f32 %v6310_v58, %v8310_v21  ;;  %v3338_v18 = vmul.f32 49.999973, %v3322_v17  ;;  %v3446_v42 = vadd.f32 %v3445_v25, %v3444_v15 }
 0x42a   : > { %6313 = vpow2.f32 %v3351_v14  ;;  %v3341_v22 = vsub.f32 -18.0, %v3337_v54  ;;  %v3451_v7 = vadd.f32 %v3450_v9, %v3449_v55  ;;  %v3429_v37 = vrot.slane %v3428_v35, 2  ;;  %v8379_v47 = vld.sshfl [vmem:[#allocation1 + $0x10] sm:$0xff pattern:$0x75316420]  ;;  %1642 = vrot.lane.b32.xlu0 %v8237_v48, %s6688_s26 }
 0x42b   : > { %v6312_v61 = vpop.eup %6311  ;;  %v3242_v4 = vsel %vm148_vm2, %v6308_v46, %v3240_v23  ;;  %v3342_v19 = vsub.f32 -18.0, %v3338_v18  ;;  %v3456_v43 = vmul.f32 49.999973, %v3446_v42  ;;  %v8386_v55 = vld.sshfl [vmem:[#allocation1 + $0x18] sm:$0xff pattern:$0x75316420]  ;;  %v3435_v25 = vadd.f32 %v3434_v45, %v3433_v3 }
 0x42c   : > { %3244 = vrot.lane.b32.xlu2 %v3242_v4, %s6683_s23  ;;  %v3392_v21 = vadd.f32 %v6312_v61, %v8337_v57  ;;  %v3345_v15 = vmul.f32 1.442695, %v3341_v22  ;;  %v3452_v11 = vrot.slane %v3451_v7, 1  ;;  %v3430_v9 = vadd.f32 %v3429_v37, %v3428_v35  ;;  %3885 = vst [vmem:[#allocation1 + $0x10] ss:$2 sm:$0xff] %v3880_v41  ;;  %s6689_s23 = smov 100  }
 0x42d   : > { %v3347_v32 = vmul.f32 1.442695, %v3342_v19  ;;  %v3460_v17 = vsub.f32 -20.0, %v3456_v43  ;;  %v3558_v46 = vrot.slane %v3557_v60, 4  ;;  %v3564_v14 = vsel %vm192_vm7, %v8326_v20, 0.0 }
 0x42e   : > { %6315 = vpow2.f32 %v3345_v15  ;;  %v3453_v58 = vadd.f32 %v3452_v11, %v3451_v7  ;;  %v3431_v48 = vrot.slane %v3430_v9, 1  ;;  %v3436_v23 = vrot.slane %v3435_v25, 2 }
 0x42f   : > { %6317 = vpow2.f32 %v3347_v32  ;;  %v3466_v54 = vmul.f32 1.442695, %v3460_v17  ;;  %v3559_v57 = vadd.f32 %v3558_v46, %v3557_v60  ;;  %v3565_v22 = vrot.slane %v3564_v14, 4 }
 0x430   : > { %v6314_v18 = vpop.eup %6313  ;;  %v3457_v42 = vmul.f32 49.999973, %v3453_v58  ;;  %v3432_v35 = vadd.f32 %v3431_v48, %v3430_v9  ;;  %v3543_v37 = vsel %vm10082_vm4, %v8344_v16, 0.0  ;;  %v3437_v7 = vadd.f32 %v3436_v23, %v3435_v25  ;;  %v3652_v23 = vld.sshfl [vmem:[#allocation1] sm:$0xff pattern:$0x75316420] }
 0x431   : > { %v3358_v3 = vrot.slane %v6314_v18, 4  ;;  %v3393_v41 = vadd.f32 %v6314_v18, %v8342_v30  ;;  %6319 = vpow2.f32 %v3466_v54  ;;  %v3560_v43 = vrot.slane %v3559_v57, 2 }
 0x432   : > { %v3461_v4 = vsub.f32 -20.0, %v3457_v42  ;;  %v3454_v19 = vmul.f32 49.999973, %v3432_v35  ;;  %v3566_v20 = vadd.f32 %v3565_v22, %v3564_v14  ;;  %v3438_v15 = vrot.slane %v3437_v7, 1 }
 0x433   : > { %v3360_v45 = vsel %vm148_vm2, %v6312_v61, %v3358_v3  ;;  %v3544_v60 = vrot.slane %v3543_v37, 4  ;;  %v3550_v11 = vsel %vm148_vm2, %v8347_v28, 0.0  ;;  %v3561_v32 = vadd.f32 %v3560_v43, %v3559_v57 }
 0x434   : > { %v6316_v9 = vpop.eup %6315  ;;  %1522 = vrot.lane.b32.xlu2 %v8240_v53, %s6687_s24  ;;  %3363 = vrot.lane.b32.xlu0 %v3360_v45, %s6660_s17  ;;  %v3468_v30 = vmul.f32 1.442695, %v3461_v4  ;;  %v3458_v16 = vsub.f32 -20.0, %v3454_v19  ;;  %v3567_v17 = vrot.slane %v3566_v20, 2  ;;  %v3439_v58 = vadd.f32 %v3438_v15, %v3437_v7  ;;  %s6691_s24 = smov 79  }
 0x435   : > { %v6318_v25 = vpop.eup %6317  ;;  %v3390_v46 = vadd.f32 %v6316_v9, %v8368_v52  ;;  %v3545_v61 = vadd.f32 %v3544_v60, %v3543_v37  ;;  %v3551_v48 = vrot.slane %v3550_v11, 4  ;;  %v3562_v42 = vrot.slane %v3561_v32, 1 }
 0x436   : > { %v3357_v14 = vrot.slane %v6318_v25, 4  ;;  %v8401_v54 = vadd.f32 %v6318_v25, %v8377_v8  ;;  %6321 = vpow2.f32 %v3468_v30  ;;  %v3462_v28 = vmul.f32 1.442695, %v3458_v16 }
 0x437   : > { %v6320_v53 = vpop.eup %6319  ;;  %v3455_v18 = vmul.f32 49.999973, %v3439_v58  ;;  %v3568_v35 = vadd.f32 %v3567_v17, %v3566_v20  ;;  %v3546_v22 = vrot.slane %v3545_v61, 2  ;;  %v3552_v52 = vadd.f32 %v3551_v48, %v3550_v11 }
 0x438   : > { %v3359_v57 = vsel %vm148_vm2, %v6316_v9, %v3357_v14  ;;  %v8404_v3 = vadd.f32 %v6320_v53, %v3392_v21  ;;  %6323 = vpow2.f32 %v3462_v28  ;;  %v3563_v7 = vadd.f32 %v3562_v42, %v3561_v32 }
 0x439   : > { %v3459_v37 = vsub.f32 -20.0, %v3455_v18  ;;  %v3569_v4 = vrot.slane %v3568_v35, 1  ;;  %v3547_v19 = vadd.f32 %v3546_v22, %v3545_v61  ;;  %v3553_v8 = vrot.slane %v3552_v52, 2 }
 0x43a   : > { %v3674_v43 = vsel %vm148_vm2, %v8360_v34, 0.0  ;;  %v3681_v45 = vsel %vm192_vm7, %v8364_v26, 0.0  ;;  %v3660_v20 = vsel %vm10082_vm4, %v3652_v23, 0.0  ;;  %v3573_v9 = vmul.f32 49.999973, %v3563_v7 }
 0x43b   : > { %v3464_v15 = vmul.f32 1.442695, %v3459_v37  ;;  %v3570_v60 = vadd.f32 %v3569_v4, %v3568_v35  ;;  %v3548_v21 = vrot.slane %v3547_v19, 1  ;;  %v3554_v11 = vadd.f32 %v3553_v8, %v3552_v52  ;;  %v3653_v23 = vld.sshfl [vmem:[#allocation1 + $0x8] sm:$0xff pattern:$0x75316420] }
 0x43c   : > { %v6322_v30 = vpop.eup %6321  ;;  %3361 = vrot.lane.b32.xlu2 %v3359_v57, %s6660_s17  ;;  %1760 = vrot.lane.b32.xlu0 %v8321_v51, %s6689_s23  ;;  %v3675_v16 = vrot.slane %v3674_v43, 4  ;;  %v3682_v32 = vrot.slane %v3681_v45, 4  ;;  %v3661_v34 = vrot.slane %v3660_v20, 4  ;;  %v3577_v61 = vsub.f32 -10.0, %v3573_v9  ;;  %s10135_s17 = smov 84  }
 0x43d   : > { %v3475_v17 = vrot.slane %v6322_v30, 4  ;;  %v3510_v25 = vadd.f32 %v6322_v30, %v3393_v41  ;;  %6325 = vpow2.f32 %v3464_v15  ;;  %v3574_v26 = vmul.f32 49.999973, %v3570_v60 }
 0x43e   : > { %v6324_v58 = vpop.eup %6323  ;;  %v3549_v48 = vadd.f32 %v3548_v21, %v3547_v19  ;;  %v3555_v14 = vrot.slane %v3554_v11, 1  ;;  %v3676_v28 = vadd.f32 %v3675_v16, %v3674_v43  ;;  %v3683_v51 = vadd.f32 %v3682_v32, %v3681_v45 }
 0x43f   : > { %v3477_v18 = vsel %vm148_vm2, %v6320_v53, %v3475_v17  ;;  %v8415_v42 = vadd.f32 %v6324_v58, %v3390_v46  ;;  %v3578_v35 = vsub.f32 -10.0, %v3574_v26  ;;  %v3583_v22 = vmul.f32 1.442695, %v3577_v61  ;;  %v3888_v17 = vld.sshfl [vmem:[#allocation1 + $0x10] sm:$0xff pattern:$0x75316420] }
 0x440   : > { %v3556_v57 = vadd.f32 %v3555_v14, %v3554_v11  ;;  %v3571_v52 = vmul.f32 49.999973, %v3549_v48  ;;  %v3677_v37 = vrot.slane %v3676_v28, 2  ;;  %v3684_v41 = vrot.slane %v3683_v51, 2 }
 0x441   : > { %v3585_v7 = vmul.f32 1.442695, %v3578_v35  ;;  %v3662_v4 = vadd.f32 %v3661_v34, %v3660_v20  ;;  %v3667_v8 = vsel %vm148_vm2, %v3653_v23, 0.0  ;;  %6327 = vpow2.f32 %v3583_v22 }
 0x442   : > { %v3572_v19 = vmul.f32 49.999973, %v3556_v57  ;;  %v3575_v15 = vsub.f32 -10.0, %v3571_v52  ;;  %v3678_v43 = vadd.f32 %v3677_v37, %v3676_v28  ;;  %v3685_v53 = vadd.f32 %v3684_v41, %v3683_v51 }
 0x443   : > { %v6326_v60 = vpop.eup %6325  ;;  %6329 = vpow2.f32 %v3585_v7  ;;  %v3663_v46 = vrot.slane %v3662_v4, 2  ;;  %v3668_v9 = vrot.slane %v3667_v8, 4  ;;  %v1872_v20 = vmul.f32 %v8357_v6, %v8231_v39 }
 0x444   : > { %1640 = vrot.lane.b32.xlu2 %v8247_v63, %s6688_s26  ;;  %3480 = vrot.lane.b32.xlu0 %v3477_v18, %s6659_s25  ;;  %v3508_v45 = vadd.f32 %v6326_v60, %v8401_v54  ;;  %v3576_v21 = vsub.f32 -10.0, %v3572_v19  ;;  %v3579_v30 = vmul.f32 1.442695, %v3575_v15  ;;  %v3679_v11 = vrot.slane %v3678_v43, 1  ;;  %s6692_s26 = smov 78  }
 0x445   : > { %v3686_v16 = vrot.slane %v3685_v53, 1  ;;  %v3664_v32 = vadd.f32 %v3663_v46, %v3662_v4  ;;  %v3669_v34 = vadd.f32 %v3668_v9, %v3667_v8  ;;  %v3474_v26 = vrot.slane %v6326_v60, 4 }
 0x446   : > { %6331 = vpow2.f32 %v3579_v30  ;;  %v3581_v61 = vmul.f32 1.442695, %v3576_v21  ;;  %v3791_v63 = vsel %vm148_vm2, %v8379_v47, 0.0  ;;  %v3680_v48 = vadd.f32 %v3679_v11, %v3678_v43  ;;  %v8440_v11 = vpop.permute.xlu2 %1050 }
 0x447   : > { %v3687_v14 = vadd.f32 %v3686_v16, %v3685_v53  ;;  %v3665_v28 = vrot.slane %v3664_v32, 1  ;;  %v3670_v54 = vrot.slane %v3669_v34, 2  ;;  %v6328_v23 = vpop.eup %6327  ;;  %v3792_v39 = vrot.slane %v3791_v63, 4 }
 0x448   : > { %6333 = vpow2.f32 %v3581_v61  ;;  %v3798_v18 = vsel %vm192_vm7, %v8386_v55, 0.0  ;;  %v3908_v35 = vsel %vm148_vm2, %v3888_v17, 0.0  ;;  %v3626_v22 = vadd.f32 %v6328_v23, %v8404_v3 }
 0x449   : > { %v6330_v51 = vpop.eup %6329  ;;  %v3690_v57 = vmul.f32 49.999973, %v3680_v48  ;;  %v3691_v52 = vmul.f32 49.999973, %v3687_v14  ;;  %v3666_v37 = vadd.f32 %v3665_v28, %v3664_v32  ;;  %vm1293_vm4 = vcmask 850944   ;;  %v8443_v48 = vld [vmem:[%s6814_s22] sm:$0xff] }
 0x44a   : > { %v3476_v47 = vsel %vm148_vm2, %v6324_v58, %v3474_v26  ;;  %v3627_v7 = vadd.f32 %v6330_v51, %v3510_v25  ;;  %v3671_v41 = vadd.f32 %v3670_v54, %v3669_v34  ;;  %v3793_v4 = vadd.f32 %v3792_v39, %v3791_v63  ;;  %v3889_v34 = vld.sshfl [vmem:[#allocation1 + $0x18] sm:$0xff pattern:$0x75316420] }
 0x44b   : > { %v3694_v8 = vsub.f32 -4.0, %v3690_v57  ;;  %v3695_v19 = vsub.f32 -4.0, %v3691_v52  ;;  %v3688_v15 = vmul.f32 49.999973, %v3666_v37  ;;  %v3799_v43 = vrot.slane %v3798_v18, 4 }
 0x44c   : > { %v8431_v60 = vpop.eup %6331  ;;  %3478 = vrot.lane.b32.xlu2 %v3476_v47, %s6659_s25  ;;  %1877 = vrot.lane.b32.xlu0 %v1872_v20, %s10135_s17  ;;  %v1750_v55 = vsel %vm1749_vm8, %v8054_v0, %v8279_v2  ;;  %v3672_v3 = vrot.slane %v3671_v41, 1  ;;  %v3794_v53 = vrot.slane %v3793_v4, 2  ;;  %v3909_v58 = vrot.slane %v3908_v35, 4  ;;  %s10136_s25 = smov 20  }
 0x44d   : > { %v3624_v25 = vadd.f32 %v8431_v60, %v8415_v42  ;;  %v3700_v46 = vmul.f32 1.442695, %v3694_v8  ;;  %v3702_v9 = vmul.f32 1.442695, %v3695_v19  ;;  %v3692_v21 = vsub.f32 -4.0, %v3688_v15 }
 0x44e   : > { %v6334_v30 = vpop.eup %6333  ;;  %v3673_v16 = vadd.f32 %v3672_v3, %v3671_v41  ;;  %v3795_v32 = vadd.f32 %v3794_v53, %v3793_v4  ;;  %v3800_v20 = vadd.f32 %v3799_v43, %v3798_v18  ;;  %v3910_v17 = vadd.f32 %v3909_v58, %v3908_v35 }
 0x44f   : > { %v3592_v26 = vrot.slane %v6330_v51, 4  ;;  %v3625_v0 = vadd.f32 %v6334_v30, %v3508_v45  ;;  %6335 = vpow2.f32 %v3700_v46  ;;  %v3696_v2 = vmul.f32 1.442695, %v3692_v21 }
 0x450   : > { %6337 = vpow2.f32 %v3702_v9  ;;  %v3689_v61 = vmul.f32 49.999973, %v3673_v16  ;;  %v3796_v63 = vrot.slane %v3795_v32, 1  ;;  %v3801_v42 = vrot.slane %v3800_v20, 2  ;;  %v8454_v16 = vpop.permute.xlu2 %1168 }
 0x451   : > { %v1754_v14 = vmul.f32 %v8443_v48, %v1750_v55  ;;  %6339 = vpow2.f32 %v3696_v2  ;;  %v3911_v28 = vrot.slane %v3910_v17, 2  ;;  %v3915_v54 = vsel %vm192_vm7, %v3889_v34, 0.0 }
 0x452   : > { %v3693_v39 = vsub.f32 -4.0, %v3689_v61  ;;  %v3797_v18 = vadd.f32 %v3796_v63, %v3795_v32  ;;  %v3802_v57 = vadd.f32 %v3801_v42, %v3800_v20  ;;  %v3916_v35 = vrot.slane %v3915_v54, 4 }
 0x453   : > { %v3594_v45 = vsel %vm148_vm2, %v6328_v23, %v3592_v26  ;;  %v3912_v51 = vadd.f32 %v3911_v28, %v3910_v17  ;;  %v10137_v8 = vrot.slane %v7984_v10, 4  ;;  %v3591_v58 = vrot.slane %v6334_v30, 4 }
 0x454   : > { %1758 = vrot.lane.b32.xlu2 %v1754_v14, %s6689_s23  ;;  %3597 = vrot.lane.b32.xlu0 %v3594_v45, %s10136_s25  ;;  %v3698_v52 = vmul.f32 1.442695, %v3693_v39  ;;  %v3803_v37 = vrot.slane %v3802_v57, 1  ;;  %v3807_v47 = vmul.f32 49.999973, %v3797_v18  ;;  %v3917_v41 = vadd.f32 %v3916_v35, %v3915_v54  ;;  %s10144_s23 = smov 62  }
 0x455   : > { %v6336_v4 = vpop.eup %6335  ;;  %v1985_v19 = vsel %vm1293_vm4, %v7984_v10, %v10137_v8  ;;  %v3913_v15 = vrot.slane %v3912_v51, 1  ;;  %v1864_v2 = vrot.slane %v8058_v49, 4  ;;  %v3593_v30 = vsel %vm148_vm2, %v8431_v60, %v3591_v58 }
 0x456   : > { %v6338_v43 = vpop.eup %6337  ;;  %v3743_v55 = vadd.f32 %v6336_v4, %v3626_v22  ;;  %6341 = vpow2.f32 %v3698_v52  ;;  %v3804_v23 = vadd.f32 %v3803_v37, %v3802_v57  ;;  %v3811_v3 = vsub.f32 -2.0, %v3807_v47 }
 0x457   : > { %v6340_v53 = vpop.eup %6339  ;;  %v3744_v46 = vadd.f32 %v6338_v43, %v3627_v7  ;;  %v3914_v9 = vadd.f32 %v3913_v15, %v3912_v51  ;;  %v3918_v21 = vrot.slane %v3917_v41, 2  ;;  %v1989_v22 = vmul.f32 %v8357_v6, %v1985_v19 }
 0x458   : > { %v8456_v32 = vadd.f32 %v6340_v53, %v3624_v25  ;;  %v3808_v20 = vmul.f32 49.999973, %v3804_v23  ;;  %v3817_v34 = vmul.f32 1.442695, %v3811_v3  ;;  %v10139_v25 = vrot.slane %v7982_v62, 4  ;;  %v8474_v62 = vpop.permute.xlu2 %1286 }
 0x459   : > { %v3919_v17 = vadd.f32 %v3918_v21, %v3917_v41  ;;  %v3924_v26 = vmul.f32 49.999973, %v3914_v9  ;;  %v3709_v57 = vrot.slane %v6338_v43, 4  ;;  %v2216_v9 = vrot.slane %v7990_v38, 4 }
 0x45a   : > { %v3812_v61 = vsub.f32 -2.0, %v3808_v20  ;;  %6343 = vpow2.f32 %v3817_v34  ;;  %v1866_v14 = vsel %vm148_vm2, %v1864_v2, %v10139_v25  ;;  %v10142_v21 = vrot.slane %v7984_v10, 4 }
 0x45b   : > { %v3920_v7 = vrot.slane %v3919_v17, 1  ;;  %v3928_v63 = vsub.f32 -4.0, %v3924_v26  ;;  %v1867_v60 = vsel %vm1411_vm6, %v8058_v49, %v1866_v14  ;;  %v3711_v47 = vsel %vm148_vm2, %v6336_v4, %v3709_v57 }
 0x45c   : > { %v6342_v42 = vpop.eup %6341  ;;  %3595 = vrot.lane.b32.xlu2 %v3593_v30, %s10136_s25  ;;  %1994 = vrot.lane.b32.xlu0 %v1989_v22, %s10138_s28  ;;  %v3819_v28 = vmul.f32 1.442695, %v3812_v61  ;;  %v1871_v37 = vmul.f32 %v8443_v48, %v1867_v60  ;;  %v1981_v4 = vrot.slane %v8067_v1, 4  ;;  %v2219_v34 = vsel %vm1057_vm1, %v7990_v38, %v2216_v9  ;;  %s10147_s25 = smov 61  }
 0x45d   : > { %v8467_v54 = vadd.f32 %v6342_v42, %v3625_v0  ;;  %v3921_v39 = vadd.f32 %v3920_v7, %v3919_v17  ;;  %v3934_v18 = vmul.f32 1.442695, %v3928_v63  ;;  %v2099_v0 = vrot.slane %v7986_v31, 4 }
 0x45e   : > { %6345 = vpow2.f32 %v3819_v28  ;;  %v2098_v26 = vrot.slane %v8073_v29, 4  ;;  %v2333_v10 = vrot.slane %v7994_v24, 4  ;;  %v2215_v30 = vrot.slane %v8083_v27, 4 }
 0x45f   : > { %v3925_v35 = vmul.f32 49.999973, %v3921_v39  ;;  %6347 = vpow2.f32 %v3934_v18  ;;  %v2102_v43 = vsel %vm1175_vm3, %v7986_v31, %v2099_v0  ;;  %v1983_v31 = vsel %vm148_vm2, %v1981_v4, %v10142_v21 }
 0x460   : > { %v8471_v45 = vpop.eup %6343  ;;  %v2106_v23 = vmul.f32 %v8357_v6, %v2102_v43  ;;  %v8493_v3 = vpop.permute.xlu2 %3028  ;;  %v1984_v17 = vsel %vm1293_vm4, %v8067_v1, %v1983_v31  ;;  %v2100_v61 = vsel %vm148_vm2, %v2098_v26, %v2099_v0  ;;  %v2337_v38 = vsel %vm2335_vm0, %v7994_v24, %v2333_v10 }
 0x461   : > { %v3860_v51 = vadd.f32 %v8471_v45, %v3743_v55  ;;  %v3929_v52 = vsub.f32 -4.0, %v3925_v35  ;;  %v3708_v55 = vrot.slane %v6342_v42, 4  ;;  %v1988_v2 = vmul.f32 %v8443_v48, %v1984_v17  ;;  %v8532_v24 = vpop.permute.xlu0 %1406 }
 0x462   : > { %v2101_v1 = vsel %vm1175_vm3, %v8073_v29, %v2100_v61  ;;  %v2341_v7 = vmul.f32 %v8357_v6, %v2337_v38  ;;  %v2452_v42 = vrot.slane %v7998_v13, 4  ;;  %v2217_v25 = vsel %vm148_vm2, %v2215_v30, %v2216_v9 }
 0x463   : > { %v3936_v41 = vmul.f32 1.442695, %v3929_v52  ;;  %v2105_v63 = vmul.f32 %v8443_v48, %v2101_v1  ;;  %v2218_v29 = vsel %vm1057_vm1, %v8083_v27, %v2217_v25  ;;  %v2332_v39 = vrot.slane %v8122_v44, 4 }
 0x464   : > { %v8479_v8 = vpop.eup %6345  ;;  %1875 = vrot.lane.b32.xlu2 %v1871_v37, %s10135_s17  ;;  %3714 = vrot.lane.b32.xlu0 %v3711_v47, %s10140_s3  ;;  %v2456_v28 = vsel %vm2454_vm13, %v7998_v13, %v2452_v42  ;;  %v2222_v60 = vmul.f32 %v8443_v48, %v2218_v29  ;;  %v2571_v57 = vrot.slane %v8002_v50, 4  ;;  %v2451_v37 = vrot.slane %v8134_v59, 4 }
 0x465   : > { %v8483_v49 = vpop.eup %6347  ;;  %v3861_v19 = vadd.f32 %v8479_v8, %v3744_v46  ;;  %6349 = vpow2.f32 %v3936_v41  ;;  %v3710_v46 = vsel %vm148_vm2, %v6340_v53, %v3708_v55  ;;  %v2223_v53 = vmul.f32 %v8357_v6, %v2219_v34 }
 0x466   : > { %v8487_v15 = vadd.f32 %v8483_v49, %v3860_v51  ;;  %v2460_v18 = vmul.f32 %v8357_v6, %v2456_v28  ;;  %v2334_v35 = vsel %vm148_vm2, %v2332_v39, %v2333_v10  ;;  %v2575_v52 = vsel %vm2573_vm10, %v8002_v50, %v2571_v57  ;;  %v10146_v10 = vld [vmem:[#allocation26_spill] sm:$0xff] }
 0x467   : > { %v2336_v13 = vsel %vm2335_vm0, %v8122_v44, %v2334_v35  ;;  %v2579_v0 = vmul.f32 %v8357_v6, %v2575_v52  ;;  %v2690_v41 = vrot.slane %v8006_v40, 4  ;;  %v2570_v4 = vrot.slane %v8150_v33, 4 }
 0x468   : > { %v2340_v47 = vmul.f32 %v8443_v48, %v2336_v13  ;;  %v2924_v61 = vrot.slane %v10146_v10, 4  ;;  %v10150_v13 = vld [vmem:[#allocation9_spill] sm:$0xff]  ;;  %vm231_vm0 = vcmask 482304  }
 0x469   : > { %v2693_v50 = vsel %vm588_vm15, %v8006_v40, %v2690_v41  ;;  %v2572_v21 = vsel %vm148_vm2, %v2570_v4, %v2571_v57  ;;  %v8614_v57 = vld [vmem:[%s6814_s22] sm:$0xff]  ;;  %v229_v52 = vrot.slane %v10150_v13, 4 }
 0x46a   : > { %v2574_v40 = vsel %vm2573_vm10, %v8150_v33, %v2572_v21  ;;  %v2927_v30 = vsel %vm352_vm12, %v10146_v10, %v2924_v61  ;;  %v10154_v21 = vld [vmem:[#allocation17_spill] sm:$0xff]  ;;  %vm10085_vm10 = vcmask 1014784  }
 0x46b   : > { %v8495_v58 = vpop.eup %6349  ;;  %v2578_v26 = vmul.f32 %v8443_v48, %v2574_v40  ;;  %v468_v40 = vrot.slane %v10154_v21, 4 }
 0x46c   : > { %3712 = vrot.lane.b32.xlu2 %v3710_v46, %s10140_s3  ;;  %2111 = vrot.lane.b32.xlu0 %v2106_v23, %s10141_s5  ;;  %v8505_v20 = vadd.f32 %v8495_v58, %v3861_v19  ;;  %v2453_v19 = vsel %vm148_vm2, %v2451_v37, %v2452_v42  ;;  %v2697_v23 = vmul.f32 %v8357_v6, %v2693_v50  ;;  %v2807_v46 = vrot.slane %v8052_v5, 4  ;;  %v10145_v6 = vld [vmem:[#allocation21_spill] sm:$0xff]  ;;  %s10149_s3 = smov 60  }
 0x46d   : > { %v2455_v44 = vsel %vm2454_vm13, %v8134_v59, %v2453_v19  ;;  %v2689_v17 = vrot.slane %v10145_v6, 4  ;;  %v10152_v19 = vld [vmem:[#allocation16_spill] sm:$0xff]  ;;  %vm10084_vm13 = vcmask 1006592  }
 0x46e   : > { %v2459_v9 = vmul.f32 %v8443_v48, %v2455_v44  ;;  %v2810_v59 = vsel %vm470_vm14, %v8052_v5, %v2807_v46  ;;  %v350_v50 = vrot.slane %v10152_v19, 4  ;;  %v3826_v44 = vrot.slane %v8479_v8, 4  ;;  %v6519_v8 = vld [vmem:[%s6814_s22 + $0x8] sm:$0xf] }
 0x46f   : > { %v2691_v38 = vsel %vm148_vm2, %v2689_v17, %v2690_v41 }
 0x470   : > { %v2692_v1 = vsel %vm588_vm15, %v10145_v6, %v2691_v38 }
 0x471   : > { %v8514_v22 = vpop.permute.xlu2 %3127  ;;  %v2696_v42 = vmul.f32 %v8443_v48, %v2692_v1  ;;  %v10156_v1 = vld [vmem:[#allocation18_spill] sm:$0xff] }
 0x474   : > { %1992 = vrot.lane.b32.xlu2 %v1988_v2, %s10138_s28  ;;  %2228 = vrot.lane.b32.xlu0 %v2223_v53, %s10143_s20  ;;  %v8582_v53 = vld [vmem:[%s6814_s22 + $0x8] sm:$0xff] }
 0x475   : > { %v2814_v2 = vmul.f32 %v8582_v53, %v2810_v59  ;;  %v2931_v25 = vmul.f32 %v8582_v53, %v2927_v30  ;;  %v10155_v59 = vld [vmem:[#allocation11_spill] sm:$0xff]  ;;  %v586_v30 = vrot.slane %v10156_v1, 4 }
 0x476   : > { %v467_v6 = vrot.slane %v10155_v59, 4 }
 0x479   : > { %v8530_v14 = vpop.permute.xlu2 %1404 }
 0x47c   : > { %2109 = vrot.lane.b32.xlu2 %v2105_v63, %s10141_s5  ;;  %2346 = vrot.lane.b32.xlu0 %v2341_v7, %s6690_s21  ;;  %v10148_v7 = vld [vmem:[#allocation23_spill] sm:$0xff] }
 0x47d   : > { %v2806_v63 = vrot.slane %v10148_v7, 4 }
 0x47f   : > { %v2808_v29 = vsel %vm148_vm2, %v2806_v63, %v2807_v46  ;;  %v10158_v63 = vld [vmem:[#allocation12_spill] sm:$0xff] }
 0x484   : > { %2226 = vrot.lane.b32.xlu2 %v2222_v60, %s10143_s20  ;;  %2465 = vrot.lane.b32.xlu0 %v2460_v18, %s6691_s24  ;;  %v8544_v51 = vpop.permute.xlu0 %3129  ;;  %v2809_v18 = vsel %vm470_vm14, %v10148_v7, %v2808_v29  ;;  %v8611_v60 = vld [vmem:[%s6814_s22] sm:$0xff]  ;;  %v469_v7 = vsel %vm148_vm2, %v467_v6, %v468_v40 }
 0x485   : > { %v2813_v35 = vmul.f32 %v8614_v57, %v2809_v18  ;;  %v10159_v29 = vld [vmem:[#allocation19_spill] sm:$0xff] }
 0x486   : > { %v8546_v27 = vpop.permute.xlu2 %3244  ;;  %v704_v18 = vrot.slane %v10159_v29, 4 }
 0x48c   : > { %2344 = vrot.lane.b32.xlu2 %v2340_v47, %s6690_s21  ;;  %2584 = vrot.lane.b32.xlu0 %v2579_v0, %s6692_s26  ;;  %v8557_v43 = vpop.permute.xlu0 %1524  ;;  %v10151_v47 = vld [vmem:[#allocation8_spill] sm:$0xff]  ;;  %s10169_s21 = smov 87  }
 0x48d   : > { %v228_v41 = vrot.slane %v10151_v47, 4 }
 0x48e   : > { %v8559_v55 = vpop.permute.xlu2 %1522 }
 0x48f   : > { %v230_v4 = vsel %vm148_vm2, %v228_v41, %v229_v52 }
 0x494   : > { %2463 = vrot.lane.b32.xlu2 %v2459_v9, %s6691_s24  ;;  %2702 = vrot.lane.b32.xlu0 %v2697_v23, %s10144_s23  ;;  %v8571_v31 = vpop.permute.xlu0 %3246  ;;  %v233_v23 = vsel %vm231_vm0, %v10150_v13, %v229_v52  ;;  %v10153_v9 = vld [vmem:[#allocation10_spill] sm:$0xff]  ;;  %s10181_s24 = smov 86  }
 0x495   : > { %v349_v46 = vrot.slane %v10153_v9, 4  ;;  %v237_v38 = vmul.f32 %v6519_v8, %v233_v23  ;;  %v10164_v8 = vld [vmem:[#allocation15_spill] sm:$0xff] }
 0x496   : > { %v8573_v34 = vpop.permute.xlu2 %3361 }
 0x497   : > { %v351_v17 = vsel %vm148_vm2, %v349_v46, %v350_v50  ;;  %v10162_v46 = vld [vmem:[#allocation14_spill] sm:$0xff] }
 0x498   : > { %v820_v40 = vrot.slane %v10162_v46, 4 }
 0x49c   : > { %2582 = vrot.lane.b32.xlu2 %v2578_v26, %s6692_s26  ;;  %2819 = vrot.lane.b32.xlu0 %v2814_v2, %s10147_s25  ;;  %v8588_v33 = vpop.permute.xlu0 %1642  ;;  %v3828_v26 = vsel %vm148_vm2, %v8471_v45, %v3826_v44  ;;  %v232_v2 = vsel %vm231_vm0, %v10151_v47, %v230_v4  ;;  %v353_v45 = vsel %vm352_vm12, %v10153_v9, %v351_v17  ;;  %v10160_v47 = vld [vmem:[#allocation13_spill] sm:$0xff]  ;;  %v10161_v4 = vld [vmem:[#allocation20_spill] sm:$0xff]  ;;  %s6694_s26 = smov 57  }
 0x49d   : > { %v236_v52 = vmul.f32 %v8443_v48, %v232_v2  ;;  %v703_v41 = vrot.slane %v10160_v47, 4  ;;  %v821_v23 = vrot.slane %v10161_v4, 4 }
 0x49e   : > { %v8590_v5 = vpop.permute.xlu2 %1640 }
 0x49f   : > { %v356_v9 = vadd.f32 %v353_v45, %v236_v52  ;;  %v705_v17 = vsel %vm148_vm2, %v703_v41, %v704_v18  ;;  %v10166_v18 = vld [vmem:[#allocation27_spill] sm:$0xff]  ;;  %v3943_v52 = vrot.slane %v8495_v58, 4 }
 0x4a0   : > { %v1173_v45 = vrot.slane %v10166_v18, 4 }
 0x4a4   : > { %2700 = vrot.lane.b32.xlu2 %v2696_v42, %s10144_s23  ;;  %2936 = vrot.lane.b32.xlu0 %v2931_v25, %s10149_s3  ;;  %v585_v42 = vrot.slane %v10158_v63, 4  ;;  %v357_v25 = vadd.f32 %v10152_v19, %v237_v38  ;;  %v471_v19 = vsel %vm470_vm14, %v10155_v59, %v469_v7  ;;  %v936_v38 = vrot.slane %v10164_v8, 4  ;;  %v10165_v7 = vld [vmem:[#allocation24_spill] sm:$0xff] }
 0x4a5   : > { %v822_v59 = vsel %vm148_vm2, %v820_v40, %v821_v23  ;;  %vm10083_vm14 = vcmask 998400  }
 0x4a6   : > { %v8604_v28 = vpop.permute.xlu2 %3478  ;;  %v8606_v39 = vpop.permute.xlu0 %3363  ;;  %v475_v50 = vadd.f32 %v10154_v21, %v357_v25  ;;  %v587_v44 = vsel %vm148_vm2, %v585_v42, %v586_v30  ;;  %v474_v30 = vadd.f32 %v471_v19, %v356_v9  ;;  %v1055_v25 = vrot.slane %v10165_v7, 4 }
 0x4a7   : > { %v589_v21 = vsel %vm588_vm15, %v10158_v63, %v587_v44  ;;  %v707_v63 = vsel %vm10085_vm10, %v10160_v47, %v705_v17  ;;  %v1172_v19 = vrot.slane %v8454_v16, 4  ;;  %v824_v40 = vsel %vm10084_vm13, %v10162_v46, %v822_v59 }
 0x4a8   : > { %v593_v6 = vadd.f32 %v10156_v1, %v475_v50  ;;  %v1054_v1 = vrot.slane %v8440_v11, 4  ;;  %v592_v50 = vadd.f32 %v589_v21, %v474_v30  ;;  %v1290_v46 = vrot.slane %v8474_v62, 4 }
 0x4a9   : > { %v1174_v47 = vsel %vm148_vm2, %v1172_v19, %v1173_v45  ;;  %v1527_v45 = vrot.slane %v8557_v43, 4  ;;  %vm1529_vm15 = vcmask 834560   ;;  %vm1765_vm13 = vcmask 818176  }
 0x4aa   : > { %v711_v42 = vadd.f32 %v10159_v29, %v593_v6  ;;  %v1056_v58 = vsel %vm148_vm2, %v1054_v1, %v1055_v25  ;;  %v710_v6 = vadd.f32 %v707_v63, %v592_v50  ;;  %v1176_v59 = vsel %vm1175_vm3, %v8454_v16, %v1174_v47 }
 0x4ab   : > { %v1526_v1 = vrot.slane %v8559_v55, 4  ;;  %vm2470_vm10 = vcmask 646144  }
 0x4ac   : > { %2817 = vrot.lane.b32.xlu2 %v2813_v35, %s10147_s25  ;;  %3749 = vrot.lane.b32.xlu0 %v8611_v60, %s6678_s30  ;;  %s10157_s30 = smov 22   ;;  %v828_v41 = vadd.f32 %v10161_v4, %v711_v42  ;;  %v10167_v4 = vld [vmem:[#allocation29_spill] sm:$0xff]  ;;  %v827_v30 = vadd.f32 %v824_v40, %v710_v6  ;;  %v1408_v42 = vrot.slane %v8530_v14, 4 }
 0x4ad   : > { %v1291_v17 = vrot.slane %v10167_v4, 4 }
 0x4ae   : > { %v8621_v37 = vpop.permute.xlu2 %1758  ;;  %v8623_v0 = vpop.permute.xlu0 %1760 }
 0x4af   : > { %v1763_v6 = vrot.slane %v8623_v0, 4 }
 0x4b4   : > { %3831 = vrot.lane.b32.xlu0 %v3828_v26, %s10157_s30  ;;  %v10163_v26 = vld [vmem:[#allocation22_spill] sm:$0xff] }
 0x4b5   : > { %v937_v2 = vrot.slane %v10163_v26, 4  ;;  %v944_v9 = vadd.f32 %v10163_v26, %v828_v41  ;;  %v1058_v26 = vsel %vm1057_vm1, %v8440_v11, %v1056_v58  ;;  %v1644_v41 = vrot.slane %v8590_v5, 4 }
 0x4b6   : > { %v8648_v35 = vpop.permute.xlu2 %3595  ;;  %v8650_v13 = vpop.permute.xlu0 %3480  ;;  %v1762_v58 = vrot.slane %v8621_v37, 4 }
 0x4b7   : > { %v938_v29 = vsel %vm148_vm2, %v936_v38, %v937_v2  ;;  %v3945_v2 = vsel %vm148_vm2, %v8483_v49, %v3943_v52  ;;  %v1062_v21 = vadd.f32 %v10165_v7, %v944_v9  ;;  %v1409_v7 = vrot.slane %v8532_v24, 4 }
 0x4b8   : > { %v940_v38 = vsel %vm10083_vm14, %v10164_v8, %v938_v29  ;;  %v1292_v8 = vsel %vm148_vm2, %v1290_v46, %v1291_v17  ;;  %v1645_v29 = vrot.slane %v8588_v33, 4  ;;  %v1528_v9 = vsel %vm148_vm2, %v1526_v1, %v1527_v45 }
 0x4b9   : > { %v1180_v25 = vadd.f32 %v10166_v18, %v1062_v21  ;;  %v943_v49 = vadd.f32 %v940_v38, %v827_v30  ;;  %v1410_v18 = vsel %vm148_vm2, %v1408_v42, %v1409_v7  ;;  %v1294_v50 = vsel %vm1293_vm4, %v8474_v62, %v1292_v8 }
 0x4ba   : > { %v1412_v17 = vsel %vm1411_vm6, %v8530_v14, %v1410_v18  ;;  %vm1647_vm14 = vcmask 826368   ;;  %v1646_v62 = vsel %vm148_vm2, %v1644_v41, %v1645_v29  ;;  %v1530_v21 = vsel %vm1529_vm15, %v8559_v55, %v1528_v9 }
 0x4bb   : > { %v1298_v11 = vadd.f32 %v10167_v4, %v1180_v25  ;;  %v1061_v16 = vadd.f32 %v1058_v26, %v943_v49  ;;  %v8719_v4 = vld [vmem:[%s6814_s22 + $0x8] sm:$0xff]  ;;  %v1764_v46 = vsel %vm148_vm2, %v1762_v58, %v1763_v6  ;;  %vm2351_vm15 = vcmask 654336  }
 0x4bc   : > { %3866 = vrot.lane.b32.xlu0 %v8611_v60, %s6675_s13  ;;  %s10168_s13 = smov 23   ;;  %v1766_v7 = vsel %vm1765_vm13, %v8621_v37, %v1764_v46  ;;  %vm10170_vm13 = vcmask 662528  }
 0x4bd   : > { %v1416_v19 = vadd.f32 %v8532_v24, %v1298_v11  ;;  %v1179_v40 = vadd.f32 %v1176_v59, %v1061_v16 }
 0x4be   : > { %v8678_v44 = vpop.permute.xlu2 %1875  ;;  %v1878_v23 = vpop.permute.xlu0 %1877 }
 0x4bf   : > { %v1880_v47 = vrot.slane %v1878_v23, 4  ;;  %v1879_v24 = vrot.slane %v8678_v44, 4  ;;  %v1297_v38 = vadd.f32 %v1294_v50, %v1179_v40 }
 0x4c1   : > { %v1883_v14 = vsel %vm1395_vm11, %v1878_v23, %v1880_v47  ;;  %v1415_v26 = vadd.f32 %v1412_v17, %v1297_v38  ;;  %v1881_v49 = vsel %vm148_vm2, %v1879_v24, %v1880_v47 }
 0x4c4   : > { %3948 = vrot.lane.b32.xlu0 %v3945_v2, %s10168_s13  ;;  %v1534_v2 = vadd.f32 %v8557_v43, %v1416_v19  ;;  %v1648_v43 = vsel %vm1647_vm14, %v8590_v5, %v1646_v62  ;;  %v1882_v5 = vsel %vm1395_vm11, %v8678_v44, %v1881_v49  ;;  %vm10171_vm14 = vmmov %vm10170_vm13 }
 0x4c6   : > { %v8705_v52 = vpop.permute.xlu2 %3712  ;;  %v8707_v63 = vpop.permute.xlu0 %3597  ;;  %v1652_v30 = vadd.f32 %v8588_v33, %v1534_v2  ;;  %v1533_v33 = vadd.f32 %v1530_v21, %v1415_v26 }
 0x4c8   : > { %v1770_v42 = vadd.f32 %v8623_v0, %v1652_v30  ;;  %v1651_v23 = vadd.f32 %v1648_v43, %v1533_v33 }
 0x4ca   : > { %v1887_v1 = vadd.f32 %v1883_v14, %v1770_v42  ;;  %v1769_v0 = vadd.f32 %v1766_v7, %v1651_v23 }
 0x4cc   : > { %3985 = vrot.lane.b32.xlu0 %v8719_v4, %s6673_s27  ;;  %v1886_v41 = vadd.f32 %v1882_v5, %v1769_v0 }
 0x4ce   : > { %v1993_v59 = vpop.permute.xlu2 %1992  ;;  %v1995_v25 = vpop.permute.xlu0 %1994 }
 0x4cf   : > { %v1996_v55 = vrot.slane %v1993_v59, 4  ;;  %v1997_v8 = vrot.slane %v1995_v25, 4 }
 0x4d1   : > { %v1998_v45 = vsel %vm148_vm2, %v1996_v55, %v1997_v8  ;;  %v2000_v11 = vsel %vm1277_vm9, %v1995_v25, %v1997_v8 }
 0x4d2   : > { %v2004_v16 = vadd.f32 %v2000_v11, %v1887_v1  ;;  %v1999_v18 = vsel %vm1277_vm9, %v1993_v59, %v1998_v45 }
 0x4d3   : > { %v2003_v37 = vadd.f32 %v1999_v18, %v1886_v41 }
 0x4d4   : > { %4102 = vrot.lane.b32.xlu0 %v8719_v4, %s6672_s14 }
 0x4d6   : > { %v2110_v29 = vpop.permute.xlu2 %2109  ;;  %v8743_v50 = vpop.permute.xlu0 %3714 }
 0x4d7   : > { %v2113_v9 = vrot.slane %v2110_v29, 4 }
 0x4dc   : > { %4219 = vrot.lane.b32.xlu0 %v8719_v4, %s10169_s21 }
 0x4de   : > { %v2227_v19 = vpop.permute.xlu2 %2226  ;;  %v2112_v40 = vpop.permute.xlu0 %2111 }
 0x4df   : > { %v2114_v58 = vrot.slane %v2112_v40, 4  ;;  %v2230_v24 = vrot.slane %v2227_v19, 4 }
 0x4e1   : > { %v2115_v44 = vsel %vm148_vm2, %v2113_v9, %v2114_v58  ;;  %v2117_v6 = vsel %vm1159_vm5, %v2112_v40, %v2114_v58 }
 0x4e2   : > { %v2121_v47 = vadd.f32 %v2117_v6, %v2004_v16  ;;  %v2116_v17 = vsel %vm1159_vm5, %v2110_v29, %v2115_v44 }
 0x4e3   : > { %v2120_v21 = vadd.f32 %v2116_v17, %v2003_v37 }
 0x4e6   : > { %v2345_v2 = vpop.permute.xlu2 %2344  ;;  %v2229_v62 = vpop.permute.xlu0 %2228 }
 0x4e7   : > { %v2231_v38 = vrot.slane %v2229_v62, 4  ;;  %v2348_v42 = vrot.slane %v2345_v2, 4 }
 0x4e9   : > { %v2232_v30 = vsel %vm148_vm2, %v2230_v24, %v2231_v38  ;;  %v2234_v46 = vsel %vm10170_vm13, %v2229_v62, %v2231_v38  ;;  %vm2589_vm13 = vcmask 637952  }
 0x4ea   : > { %v2233_v14 = vsel %vm10171_vm14, %v2227_v19, %v2232_v30  ;;  %v2238_v26 = vadd.f32 %v2234_v46, %v2121_v47  ;;  %vm10172_vm14 = vcmask 506880  }
 0x4eb   : > { %v2237_v25 = vadd.f32 %v2233_v14, %v2120_v21 }
 0x4ee   : > { %v2347_v43 = vpop.permute.xlu0 %2346  ;;  %v2464_v49 = vpop.permute.xlu2 %2463 }
 0x4ef   : > { %v2349_v59 = vrot.slane %v2347_v43, 4  ;;  %v2467_v45 = vrot.slane %v2464_v49, 4 }
 0x4f1   : > { %v2350_v55 = vsel %vm148_vm2, %v2348_v42, %v2349_v59  ;;  %v2353_v8 = vsel %vm2351_vm15, %v2347_v43, %v2349_v59 }
 0x4f2   : > { %v2352_v33 = vsel %vm2351_vm15, %v2345_v2, %v2350_v55  ;;  %v2357_v7 = vadd.f32 %v2353_v8, %v2238_v26  ;;  %vm10174_vm15 = vcmask 498688  }
 0x4f3   : > { %v2356_v23 = vadd.f32 %v2352_v33, %v2237_v25 }
 0x4f6   : > { %v2466_v1 = vpop.permute.xlu0 %2465  ;;  %v2583_v0 = vpop.permute.xlu2 %2582 }
 0x4f7   : > { %v2468_v11 = vrot.slane %v2466_v1, 4  ;;  %v2586_v37 = vrot.slane %v2583_v0, 4 }
 0x4f9   : > { %v2469_v5 = vsel %vm148_vm2, %v2467_v45, %v2468_v11  ;;  %v2472_v16 = vsel %vm2470_vm10, %v2466_v1, %v2468_v11 }
 0x4fa   : > { %v2471_v18 = vsel %vm2470_vm10, %v2464_v49, %v2469_v5  ;;  %v2476_v41 = vadd.f32 %v2472_v16, %v2357_v7  ;;  %vm10173_vm10 = vmmov %vm10172_vm14 }
 0x4fb   : > { %v2475_v40 = vadd.f32 %v2471_v18, %v2356_v23 }
 0x4fe   : > { %v2585_v29 = vpop.permute.xlu0 %2584  ;;  %v2701_v47 = vpop.permute.xlu2 %2700 }
 0x4ff   : > { %v2587_v19 = vrot.slane %v2585_v29, 4  ;;  %v2704_v2 = vrot.slane %v2701_v47, 4 }
 0x501   : > { %v2588_v9 = vsel %vm148_vm2, %v2586_v37, %v2587_v19  ;;  %v2591_v58 = vsel %vm2589_vm13, %v2585_v29, %v2587_v19 }
 0x502   : > { %v2590_v44 = vsel %vm2589_vm13, %v2583_v0, %v2588_v9  ;;  %v2595_v6 = vadd.f32 %v2591_v58, %v2476_v41  ;;  %vm10175_vm13 = vmmov %vm10174_vm15 }
 0x503   : > { %v2594_v24 = vadd.f32 %v2590_v44, %v2475_v40 }
 0x506   : > { %v2703_v17 = vpop.permute.xlu0 %2702  ;;  %v2818_v46 = vpop.permute.xlu2 %2817 }
 0x507   : > { %v2705_v62 = vrot.slane %v2703_v17, 4  ;;  %v2821_v59 = vrot.slane %v2818_v46, 4 }
 0x509   : > { %v2706_v38 = vsel %vm148_vm2, %v2704_v2, %v2705_v62  ;;  %v2708_v21 = vsel %vm10172_vm14, %v2703_v17, %v2705_v62  ;;  %vm10176_vm14 = vcmask 490496  }
 0x50a   : > { %v2712_v30 = vadd.f32 %v2708_v21, %v2595_v6  ;;  %v2707_v26 = vsel %vm10173_vm10, %v2701_v47, %v2706_v38  ;;  %vm10177_vm10 = vcmask 1044008  }
 0x50b   : > { %v2711_v42 = vadd.f32 %v2707_v26, %v2594_v24 }
 0x50e   : > { %v2820_v14 = vpop.permute.xlu0 %2819 }
 0x50f   : > { %v2822_v43 = vrot.slane %v2820_v14, 4 }
 0x511   : > { %v2825_v25 = vsel %vm10174_vm15, %v2820_v14, %v2822_v43  ;;  %v2823_v55 = vsel %vm148_vm2, %v2821_v59, %v2822_v43  ;;  %vm10185_vm15 = vcmask 23552  }
 0x512   : > { %v2829_v49 = vadd.f32 %v2825_v25, %v2712_v30  ;;  %v2824_v33 = vsel %vm10175_vm13, %v2818_v46, %v2823_v55  ;;  %vm10186_vm13 = vcmask 154624  }
 0x513   : > { %v8765_v1 = vadd.f32 %v2824_v33, %v2711_v42 }
 0x516   : > { %v8761_v8 = vpop.permute.xlu0 %2936 }
 0x517   : > { %v2939_v7 = vrot.slane %v8761_v8, 4 }
 0x519   : > { %v2942_v45 = vsel %vm10176_vm14, %v8761_v8, %v2939_v7  ;;  %vm10187_vm14 = vcmask 179200  }
 0x51a   : > { %v8771_v11 = vadd.f32 %v2942_v45, %v2829_v49 }
 0x51e   : > { %v3750_v23 = vpop.permute.xlu0 %3749 }
 0x51f   : > { %v3753_v5 = vrot.slane %v3750_v23, 4 }
 0x521   : > { %v3755_v16 = vsel %vm148_vm2, %v3753_v5, %v3754_v56  ;;  %v10178_v56 = vrot.slane %v8339_v12, 4 }
 0x522   : > { %v3756_v0 = vsel %vm1057_vm1, %v3750_v23, %v3755_v16  ;;  %vm10179_vm1 = vmmov %vm10177_vm10 }
 0x523   : > { %v3760_v18 = vsub.f32 %v8443_v48, %v3756_v0 }
 0x525   : > { %v3762_v41 = vmul.f32 %v3760_v18, %v3760_v18 }
 0x526   : > { %v8778_v29 = vpop.permute.xlu0 %3831 }
 0x527   : > { %3766 = vst [vmem:[#allocation1] ss:$2 sm:$0xff] %v3762_v41 }
 0x52e   : > { %v3867_v37 = vpop.permute.xlu0 %3866  ;;  %v3769_v19 = vld.sshfl [vmem:[#allocation1] sm:$0xff pattern:$0x75316420]  ;;  %v3770_v40 = vld.sshfl [vmem:[#allocation1 + $0x8] sm:$0xff pattern:$0x75316420] }
 0x52f   : > { %v3870_v9 = vrot.slane %v3867_v37, 4  ;;  %v3777_v58 = vsel %vm10177_vm10, %v3769_v19, 0.0  ;;  %v3784_v44 = vsel %vm148_vm2, %v3770_v40, 0.0  ;;  %vm10188_vm10 = vcmask 162816  }
 0x530   : > { %v3778_v6 = vrot.slane %v3777_v58, 4  ;;  %v3785_v36 = vrot.slane %v3784_v44, 4 }
 0x531   : > { %v3872_v47 = vsel %vm148_vm2, %v3870_v9, %v10178_v56  ;;  %v8799_v9 = vld [vmem:[%s6814_s22 + $0x8] sm:$0xff] }
 0x532   : > { %v3873_v17 = vsel %vm1175_vm3, %v3867_v37, %v3872_v47  ;;  %v3779_v2 = vadd.f32 %v3778_v6, %v3777_v58  ;;  %v3786_v62 = vadd.f32 %v3785_v36, %v3784_v44  ;;  %vm10183_vm3 = vcmask 7168  }
 0x533   : > { %v3877_v24 = vsub.f32 %v8443_v48, %v3873_v17 }
 0x534   : > { %v3780_v38 = vrot.slane %v3779_v2, 2  ;;  %v3787_v21 = vrot.slane %v3786_v62, 2 }
 0x535   : > { %v3879_v30 = vmul.f32 %v3877_v24, %v3877_v24 }
 0x536   : > { %v8787_v46 = vpop.permute.xlu0 %3948  ;;  %v3781_v14 = vadd.f32 %v3780_v38, %v3779_v2  ;;  %v3788_v26 = vadd.f32 %v3787_v21, %v3786_v62 }
 0x537   : > { %3883 = vst [vmem:[#allocation1] ss:$2 sm:$0xff] %v3879_v30 }
 0x538   : > { %v3782_v43 = vrot.slane %v3781_v14, 1  ;;  %v3789_v42 = vrot.slane %v3788_v26, 1 }
 0x53a   : > { %v3783_v59 = vadd.f32 %v3782_v43, %v3781_v14  ;;  %v3790_v12 = vadd.f32 %v3789_v42, %v3788_v26 }
 0x53c   : > { %v3805_v25 = vmul.f32 49.999973, %v3783_v59  ;;  %v3806_v49 = vmul.f32 49.999973, %v3790_v12 }
 0x53e   : > { %v8789_v55 = vpop.permute.xlu0 %3985  ;;  %v3809_v33 = vsub.f32 -2.0, %v3805_v25  ;;  %v3810_v45 = vsub.f32 -2.0, %v3806_v49  ;;  %v3886_v48 = vld.sshfl [vmem:[#allocation1] sm:$0xff pattern:$0x75316420] }
 0x53f   : > { %v3988_v23 = vrot.slane %v8789_v55, 4  ;;  %v3887_v5 = vld.sshfl [vmem:[#allocation1 + $0x8] sm:$0xff pattern:$0x75316420]  ;;  %v3894_v16 = vsel %vm10179_vm1, %v3886_v48, 0.0  ;;  %vm10189_vm1 = vcmask 171008  }
 0x540   : > { %v3813_v0 = vmul.f32 1.442695, %v3809_v33  ;;  %v3815_v18 = vmul.f32 1.442695, %v3810_v45  ;;  %v3895_v41 = vrot.slane %v3894_v16, 4  ;;  %v3901_v37 = vsel %vm148_vm2, %v3887_v5, 0.0 }
 0x541   : > { %v3991_v19 = vsel %vm1293_vm4, %v8789_v55, %v3988_v23  ;;  %v3902_v40 = vrot.slane %v3901_v37, 4 }
 0x542   : > { %v3995_v58 = vsub.f32 %v8799_v9, %v3991_v19  ;;  %6351 = vpow2.f32 %v3813_v0  ;;  %v3896_v44 = vadd.f32 %v3895_v41, %v3894_v16 }
 0x543   : > { %6353 = vpow2.f32 %v3815_v18  ;;  %v3903_v6 = vadd.f32 %v3902_v40, %v3901_v37 }
 0x544   : > { %v3997_v36 = vmul.f32 %v3995_v58, %v3995_v58  ;;  %v3897_v56 = vrot.slane %v3896_v44, 2 }
 0x545   : > { %v3904_v47 = vrot.slane %v3903_v6, 2 }
 0x546   : > { %4002 = vst [vmem:[#allocation1 + $0x10] ss:$2 sm:$0xff] %v3997_v36  ;;  %v8802_v17 = vpop.permute.xlu0 %4102  ;;  %v3898_v2 = vadd.f32 %v3897_v56, %v3896_v44 }
 0x547   : > { %v4105_v62 = vrot.slane %v8802_v17, 4  ;;  %v3905_v24 = vadd.f32 %v3904_v47, %v3903_v6 }
 0x548   : > { %v6352_v38 = vpop.eup %6351  ;;  %v3899_v21 = vrot.slane %v3898_v2, 1 }
 0x549   : > { %v6354_v30 = vpop.eup %6353  ;;  %v4108_v14 = vsel %vm1411_vm6, %v8802_v17, %v4105_v62  ;;  %v3858_v26 = vadd.f32 %v6352_v38, %v8456_v32  ;;  %v3906_v43 = vrot.slane %v3905_v24, 1 }
 0x54a   : > { %v3825_v42 = vrot.slane %v6354_v30, 4  ;;  %v3859_v59 = vadd.f32 %v6354_v30, %v8467_v54  ;;  %v3900_v12 = vadd.f32 %v3899_v21, %v3898_v2  ;;  %v4112_v25 = vsub.f32 %v8799_v9, %v4108_v14  ;;  %v10180_v30 = vld [vmem:[#allocation25_spill] sm:$0xff] }
 0x54b   : > { %v3907_v49 = vadd.f32 %v3906_v43, %v3905_v24  ;;  %v2923_v14 = vrot.slane %v10180_v30, 4 }
 0x54c   : > { %v3827_v33 = vsel %vm148_vm2, %v6352_v38, %v3825_v42  ;;  %v3922_v45 = vmul.f32 49.999973, %v3900_v12  ;;  %v4114_v0 = vmul.f32 %v4112_v25, %v4112_v25  ;;  %v3131_v12 = vrot.slane %v8514_v22, 4 }
 0x54d   : > { %3829 = vrot.lane.b32.xlu2 %v3827_v33, %s10157_s30  ;;  %v3923_v48 = vmul.f32 49.999973, %v3907_v49  ;;  %v4005_v19 = vld.sshfl [vmem:[#allocation1 + $0x10] sm:$0xff pattern:$0x75316420]  ;;  %v3249_v25 = vrot.slane %v8571_v31, 4 }
 0x54e   : > { %v8814_v5 = vpop.permute.xlu0 %4219  ;;  %v3926_v16 = vsub.f32 -4.0, %v3922_v45  ;;  %v4006_v40 = vld.sshfl [vmem:[#allocation1 + $0x18] sm:$0xff pattern:$0x75316420]  ;;  %v3248_v49 = vrot.slane %v8546_v27, 4  ;;  %s6695_s30 = smov 56  }
 0x54f   : > { %v4222_v32 = vrot.slane %v8814_v5, 4  ;;  %v3927_v18 = vsub.f32 -4.0, %v3923_v48  ;;  %4119 = vst [vmem:[#allocation1 + $0x10] ss:$2 sm:$0xff] %v4114_v0  ;;  %v4032_v48 = vsel %vm192_vm7, %v4006_v40, 0.0  ;;  %v3366_v0 = vrot.slane %v8606_v39, 4 }
 0x550   : > { %v3930_v41 = vmul.f32 1.442695, %v3926_v16  ;;  %v3251_v45 = vsel %vm148_vm2, %v3248_v49, %v3249_v25  ;;  %v3599_v25 = vrot.slane %v8648_v35, 4 }
 0x551   : > { %v4225_v54 = vsel %vm1749_vm8, %v8814_v5, %v4222_v32  ;;  %v3932_v37 = vmul.f32 1.442695, %v3927_v18  ;;  %v4033_v18 = vrot.slane %v4032_v48, 4 }
 0x552   : > { %6355 = vpow2.f32 %v3930_v41  ;;  %v4229_v58 = vsub.f32 %v8799_v9, %v4225_v54  ;;  %v3365_v41 = vrot.slane %v8573_v34, 4 }
 0x553   : > { %6357 = vpow2.f32 %v3932_v37  ;;  %v4034_v40 = vadd.f32 %v4033_v18, %v4032_v48 }
 0x554   : > { %v4231_v6 = vmul.f32 %v4229_v58, %v4229_v58  ;;  %v3368_v58 = vsel %vm148_vm2, %v3365_v41, %v3366_v0  ;;  %v3717_v0 = vrot.slane %v8743_v50, 4 }
 0x556   : > { %v8826_v24 = vld.sshfl [vmem:[#allocation1 + $0x10] sm:$0xff pattern:$0x75316420]  ;;  %v8828_v38 = vld.sshfl [vmem:[#allocation1 + $0x18] sm:$0xff pattern:$0x75316420] }
 0x557   : > { %4236 = vst [vmem:[#allocation1 + $0x10] ss:$2 sm:$0xff] %v4231_v6  ;;  %v4035_v6 = vrot.slane %v4034_v40, 2 }
 0x558   : > { %v6356_v44 = vpop.eup %6355 }
 0x559   : > { %v6358_v36 = vpop.eup %6357  ;;  %v8822_v56 = vadd.f32 %v6356_v44, %v3858_v26  ;;  %v2925_v26 = vsel %vm148_vm2, %v2923_v14, %v2924_v61  ;;  %v4036_v14 = vadd.f32 %v4035_v6, %v4034_v40 }
 0x55a   : > { %v3942_v47 = vrot.slane %v6358_v36, 4  ;;  %v8824_v2 = vadd.f32 %v6358_v36, %v3859_v59  ;;  %v2926_v43 = vsel %vm352_vm12, %v10180_v30, %v2925_v26  ;;  %v3132_v59 = vrot.slane %v8544_v51, 4 }
 0x55b   : > { %v2930_v42 = vmul.f32 %v8614_v57, %v2926_v43  ;;  %vm10184_vm12 = vcmask 15360   ;;  %v3482_v36 = vrot.slane %v8604_v28, 4 }
 0x55c   : > { %v3944_v21 = vsel %vm148_vm2, %v6356_v44, %v3942_v47  ;;  %v3134_v10 = vsel %vm148_vm2, %v3131_v12, %v3132_v59  ;;  %v3252_v16 = vsel %vm10184_vm12, %v3251_v45, %v8571_v31  ;;  %v3369_v31 = vsel %vm10185_vm15, %v3368_v58, %v8606_v39 }
 0x55d   : > { %3946 = vrot.lane.b32.xlu2 %v3944_v21, %s10168_s13  ;;  %v3135_v61 = vsel %vm10183_vm3, %v3134_v10, %v8544_v51  ;;  %v4025_v51 = vsel %vm148_vm2, %v4005_v19, 0.0  ;;  %v3256_v54 = vmul.f32 %v8582_v53, %v3252_v16  ;;  %v3483_v19 = vrot.slane %v8650_v13, 4  ;;  %s6696_s13 = smov 40   ;;  %vm10190_vm3 = vmmov %vm10187_vm14 }
 0x55e   : > { %v3139_v33 = vmul.f32 %v8582_v53, %v3135_v61  ;;  %v4026_v37 = vrot.slane %v4025_v51, 4  ;;  %v3373_v47 = vmul.f32 %v8582_v53, %v3369_v31  ;;  %v3600_v59 = vrot.slane %v8707_v63, 4 }
 0x55f   : > { %v3485_v30 = vsel %vm148_vm2, %v3482_v36, %v3483_v19  ;;  %v4037_v10 = vrot.slane %v4036_v14, 1  ;;  %vm10195_vm12 = vcmask 695296   ;;  %vm3149_vm15 = vcmask 474112  }
 0x560   : > { %v4027_v44 = vadd.f32 %v4026_v37, %v4025_v51  ;;  %v3486_v39 = vsel %vm10186_vm13, %v3485_v30, %v8650_v13  ;;  %v3602_v48 = vsel %vm148_vm2, %v3599_v25, %v3600_v59  ;;  %vm3266_vm13 = vcmask 465920  }
 0x561   : > { %v4038_v13 = vadd.f32 %v4037_v10, %v4036_v14  ;;  %v3603_v51 = vsel %vm10188_vm10, %v3602_v48, %v8707_v63  ;;  %vm3500_vm10 = vcmask 326656  }
 0x562   : > { %v4028_v21 = vrot.slane %v4027_v44, 2  ;;  %v3607_v37 = vmul.f32 %v8582_v53, %v3603_v51 }
 0x563   : > { %v4042_v18 = vmul.f32 49.999973, %v4038_v13 }
 0x564   : > { %v4029_v43 = vadd.f32 %v4028_v21, %v4027_v44  ;;  %v3834_v21 = vrot.slane %v8778_v29, 4 }
 0x565   : > { %3983 = vrot.lane.b32.xlu2 %v8611_v60, %s6673_s27  ;;  %s10182_s27 = smov 85   ;;  %v4046_v44 = vsub.f32 -10.0, %v4042_v18 }
 0x566   : > { %v4030_v45 = vrot.slane %v4029_v43, 1 }
 0x567   : > { %v4053_v6 = vmul.f32 1.442695, %v4046_v44 }
 0x568   : > { %v4031_v16 = vadd.f32 %v4030_v45, %v4029_v43 }
 0x569   : > { %6359 = vpow2.f32 %v4053_v6 }
 0x56a   : > { %v4041_v58 = vmul.f32 49.999973, %v4031_v16 }
 0x56c   : > { %v4045_v19 = vsub.f32 -10.0, %v4041_v58 }
 0x56d   : > { %4100 = vrot.lane.b32.xlu2 %v8611_v60, %s6672_s14  ;;  %s6693_s14 = smov 58  }
 0x56e   : > { %v4051_v30 = vmul.f32 1.442695, %v4045_v19 }
 0x56f   : > { %v8918_v59 = vpop.eup %6359 }
 0x570   : > { %6361 = vpow2.f32 %v4051_v30  ;;  %v4060_v48 = vrot.slane %v8918_v59, 4 }
 0x575   : > { %4217 = vrot.lane.b32.xlu2 %v8611_v60, %s10169_s21  ;;  %s6697_s21 = smov 39  }
 0x576   : > { %v8927_v13 = vpop.eup %6361 }
 0x577   : > { %v4062_v55 = vsel %vm148_vm2, %v8927_v13, %v4060_v48 }
 0x578   : > { %4065 = vrot.lane.b32.xlu0 %v4062_v55, %s10191_s2 }
 0x57d   : > { %4336 = vrot.lane.b32.xlu2 %v8719_v4, %s10181_s24 }
 0x585   : > { %2934 = vrot.lane.b32.xlu2 %v2930_v42, %s10149_s3 }
 0x58d   : > { %4453 = vrot.lane.b32.xlu2 %v8719_v4, %s10182_s27 }
 0x595   : > { %3144 = vrot.lane.b32.xlu2 %v3139_v33, %s6693_s14  ;;  %v3490_v33 = vmul.f32 %v8582_v53, %v3486_v39 }
 0x59d   : > { %3261 = vrot.lane.b32.xlu2 %v3256_v54, %s6694_s26  ;;  %v3716_v54 = vrot.slane %v8705_v52, 4 }
 0x59f   : > { %v3719_v40 = vsel %vm148_vm2, %v3716_v54, %v3717_v0 }
 0x5a0   : > { %v3720_v63 = vsel %vm10189_vm1, %v3719_v40, %v8743_v50  ;;  %vm10196_vm1 = vcmask 7168  }
 0x5a5   : > { %3378 = vrot.lane.b32.xlu2 %v3373_v47, %s6695_s30  ;;  %v3724_v47 = vmul.f32 %v8582_v53, %v3720_v63 }
 0x5a7   : > { %v3830_v26 = vpop.permute.xlu2 %3829 }
 0x5a8   : > { %v3833_v42 = vrot.slane %v3830_v26, 4 }
 0x5aa   : > { %v8888_v61 = vsel %vm10187_vm14, %v3833_v42, %v3830_v26  ;;  %v3836_v14 = vsel %vm148_vm2, %v3833_v42, %v3834_v21  ;;  %vm3383_vm14 = vcmask 457728  }
 0x5ab   : > { %v3837_v39 = vsel %vm10190_vm3, %v3836_v14, %v8778_v29  ;;  %vm3617_vm3 = vcmask 318464  }
 0x5ac   : > { %v3841_v42 = vmul.f32 %v8582_v53, %v3837_v39 }
 0x5ad   : > { %3495 = vrot.lane.b32.xlu2 %v3490_v33, %s6696_s13  ;;  %v8923_v33 = vld [vmem:[%s6814_s22] sm:$0xff] }
 0x5b5   : > { %3612 = vrot.lane.b32.xlu2 %v3607_v37, %s6697_s21 }
 0x5b7   : > { %v8905_v31 = vpop.permute.xlu2 %3946 }
 0x5bd   : > { %3729 = vrot.lane.b32.xlu2 %v3724_v47, %s6698_s11 }
 0x5bf   : > { %v3984_v26 = vpop.permute.xlu2 %3983 }
 0x5c0   : > { %v3987_v43 = vrot.slane %v3984_v26, 4 }
 0x5c2   : > { %v3989_v50 = vsel %vm148_vm2, %v3987_v43, %v3988_v23 }
 0x5c3   : > { %v3990_v10 = vsel %vm1293_vm4, %v3984_v26, %v3989_v50  ;;  %vm10192_vm4 = vcmask 1044008  }
 0x5c4   : > { %v3994_v45 = vsub.f32 %v8923_v33, %v3990_v10 }
 0x5c5   : > { %3846 = vrot.lane.b32.xlu2 %v3841_v42, %s6699_s4 }
 0x5c6   : > { %v3996_v29 = vmul.f32 %v3994_v45, %v3994_v45 }
 0x5c7   : > { %v4101_v23 = vpop.permute.xlu2 %4100 }
 0x5c8   : > { %4000 = vst [vmem:[#allocation1] ss:$2 sm:$0xff] %v3996_v29  ;;  %v4104_v53 = vrot.slane %v4101_v23, 4 }
 0x5ca   : > { %v4106_v16 = vsel %vm148_vm2, %v4104_v53, %v4105_v62 }
 0x5cb   : > { %v4107_v51 = vsel %vm1411_vm6, %v4101_v23, %v4106_v16  ;;  %vm10193_vm6 = vcmask 703488  }
 0x5cc   : > { %v4111_v0 = vsub.f32 %v8923_v33, %v4107_v51 }
 0x5cd   : > { %4570 = vrot.lane.b32.xlu2 %v8719_v4, %s10135_s17 }
 0x5ce   : > { %v4113_v18 = vmul.f32 %v4111_v0, %v4111_v0 }
 0x5cf   : > { %v4218_v37 = vpop.permute.xlu2 %4217  ;;  %v4003_v58 = vld.sshfl [vmem:[#allocation1] sm:$0xff pattern:$0x75316420]  ;;  %v4004_v40 = vld.sshfl [vmem:[#allocation1 + $0x8] sm:$0xff pattern:$0x75316420] }
 0x5d0   : > { %v4221_v44 = vrot.slane %v4218_v37, 4  ;;  %v4011_v19 = vsel %vm10192_vm4, %v4003_v58, 0.0  ;;  %v4018_v63 = vsel %vm148_vm2, %v4004_v40, 0.0  ;;  %4117 = vst [vmem:[#allocation1] ss:$2 sm:$0xff] %v4113_v18  ;;  %vm10197_vm4 = vcmask 15360  }
 0x5d1   : > { %v4012_v17 = vrot.slane %v4011_v19, 4  ;;  %v4019_v6 = vrot.slane %v4018_v63, 4  ;;  %v8961_v58 = vld.sshfl [vmem:[#allocation1 + $0x18] sm:$0xff pattern:$0x75316420] }
 0x5d2   : > { %v4223_v62 = vsel %vm148_vm2, %v4221_v44, %v4222_v32 }
 0x5d3   : > { %v4224_v47 = vsel %vm1749_vm8, %v4218_v37, %v4223_v62  ;;  %v4013_v21 = vadd.f32 %v4012_v17, %v4011_v19  ;;  %v4020_v30 = vadd.f32 %v4019_v6, %v4018_v63  ;;  %v8959_v37 = vld.sshfl [vmem:[#allocation1 + $0x10] sm:$0xff pattern:$0x75316420]  ;;  %vm10194_vm8 = vcmask 490496  }
 0x5d4   : > { %v4228_v14 = vsub.f32 %v8923_v33, %v4224_v47 }
 0x5d5   : > { %v4014_v26 = vrot.slane %v4013_v21, 2  ;;  %v4021_v43 = vrot.slane %v4020_v30, 2 }
 0x5d6   : > { %v4230_v39 = vmul.f32 %v4228_v14, %v4228_v14 }
 0x5d7   : > { %v8947_v50 = vpop.permute.xlu2 %4336  ;;  %v4015_v10 = vadd.f32 %v4014_v26, %v4013_v21  ;;  %v4022_v42 = vadd.f32 %v4021_v43, %v4020_v30  ;;  %v8954_v32 = vld.sshfl [vmem:[#allocation1] sm:$0xff pattern:$0x75316420]  ;;  %v8956_v55 = vld.sshfl [vmem:[#allocation1 + $0x8] sm:$0xff pattern:$0x75316420] }
 0x5d8   : > { %v4339_v45 = vrot.slane %v8947_v50, 4  ;;  %4234 = vst [vmem:[#allocation1] ss:$2 sm:$0xff] %v4230_v39 }
 0x5d9   : > { %v4016_v48 = vrot.slane %v4015_v10, 1  ;;  %v4023_v29 = vrot.slane %v4022_v42, 1 }
 0x5da   : > { %v4342_v5 = vsel %vm10193_vm6, %v8947_v50, %v4339_v45  ;;  %vm3734_vm6 = vcmask 310272  }
 0x5db   : > { %v4346_v23 = vsub.f32 %v8799_v9, %v4342_v5  ;;  %v4017_v53 = vadd.f32 %v4016_v48, %v4015_v10  ;;  %v4024_v16 = vadd.f32 %v4023_v29, %v4022_v42  ;;  %v3031_v42 = vrot.slane %v8493_v3, 4 }
 0x5dd   : > { %v4348_v51 = vmul.f32 %v4346_v23, %v4346_v23  ;;  %v4039_v0 = vmul.f32 49.999973, %v4017_v53  ;;  %v4040_v18 = vmul.f32 49.999973, %v4024_v16 }
 0x5df   : > { %v2935_v40 = vpop.permute.xlu2 %2934  ;;  %v4043_v44 = vsub.f32 -10.0, %v4039_v0  ;;  %v4044_v19 = vsub.f32 -10.0, %v4040_v18  ;;  %4353 = vst [vmem:[#allocation1 + $0x10] ss:$2 sm:$0xff] %v4348_v51 }
 0x5e0   : > { %v2938_v63 = vrot.slane %v2935_v40, 4 }
 0x5e1   : > { %v4047_v17 = vmul.f32 1.442695, %v4043_v44  ;;  %v4049_v6 = vmul.f32 1.442695, %v4044_v19 }
 0x5e2   : > { %v2940_v62 = vsel %vm148_vm2, %v2938_v63, %v2939_v7 }
 0x5e3   : > { %v2941_v47 = vsel %vm10194_vm8, %v2935_v40, %v2940_v62  ;;  %6363 = vpow2.f32 %v4047_v17  ;;  %vm10198_vm8 = vcmask 23552  }
 0x5e4   : > { %v8968_v21 = vadd.f32 %v2941_v47, %v8765_v1  ;;  %6365 = vpow2.f32 %v4049_v6 }
 0x5e6   : > { %v8987_v5 = vld.sshfl [vmem:[#allocation1 + $0x10] sm:$0xff pattern:$0x75316420]  ;;  %v8989_v23 = vld.sshfl [vmem:[#allocation1 + $0x18] sm:$0xff pattern:$0x75316420] }
 0x5e7   : > { %v8970_v30 = vpop.permute.xlu2 %4453 }
 0x5e8   : > { %v4456_v14 = vrot.slane %v8970_v30, 4 }
 0x5e9   : > { %v6364_v26 = vpop.eup %6363 }
 0x5ea   : > { %v6366_v43 = vpop.eup %6365  ;;  %v4459_v8 = vsel %vm10195_vm12, %v8970_v30, %v4456_v14  ;;  %v8978_v7 = vadd.f32 %v6364_v26, %v8822_v56  ;;  %vm3851_vm12 = vcmask 302080  }
 0x5eb   : > { %v4463_v39 = vsub.f32 %v8799_v9, %v4459_v8  ;;  %v4059_v10 = vrot.slane %v6366_v43, 4  ;;  %v8982_v1 = vadd.f32 %v6366_v43, %v8824_v2  ;;  %v3034_v2 = vsel %vm231_vm0, %v8493_v3, %v3031_v42 }
 0x5ec   : > { %v3038_v16 = vadd.f32 %v3034_v2, %v8771_v11 }
 0x5ed   : > { %v4465_v48 = vmul.f32 %v4463_v39, %v4463_v39  ;;  %v4061_v29 = vsel %vm148_vm2, %v6364_v26, %v4059_v10  ;;  %v3133_v26 = vsel %vm10196_vm1, %v3131_v12, %v8514_v22  ;;  %v3250_v22 = vsel %vm10197_vm4, %v3248_v49, %v8546_v27 }
 0x5ee   : > { %4063 = vrot.lane.b32.xlu1 %v4061_v29, %s10191_s2  ;;  %v3138_v39 = vmul.f32 %v8614_v57, %v3133_v26  ;;  %v3255_v29 = vmul.f32 %v8614_v57, %v3250_v22  ;;  %v3367_v27 = vsel %vm10198_vm8, %v3365_v41, %v8573_v34  ;;  %vm10199_vm1 = vcmask 154624   ;;  %s6700_s2 = smov 36  }
 0x5ef   : > { %v8991_v56 = vpop.permute.xlu2 %3144  ;;  %4470 = vst [vmem:[#allocation1 + $0x10] ss:$2 sm:$0xff] %v4465_v48  ;;  %v3484_v34 = vsel %vm10199_vm1, %v3482_v36, %v8604_v28  ;;  %vm10200_vm4 = vcmask 162816   ;;  %vm10201_vm8 = vcmask 171008   ;;  %vm10202_vm1 = vcmask 1044008  }
 0x5f0   : > { %v3147_v53 = vrot.slane %v8991_v56, 4  ;;  %v3601_v28 = vsel %vm10200_vm4, %v3599_v25, %v8648_v35  ;;  %v3718_v35 = vsel %vm10201_vm8, %v3716_v54, %v8705_v52  ;;  %v4142_v52 = vsel %vm148_vm2, %v8826_v24, 0.0 }
 0x5f1   : > { %vm10203_vm4 = vcmask 187392  }
 0x5f2   : > { %v3151_v51 = vsel %vm3149_vm15, %v8991_v56, %v3147_v53  ;;  %vm10204_vm8 = vmmov %vm10203_vm4 }
 0x5f3   : > { %v3155_v0 = vadd.f32 %v3151_v51, %v3038_v16 }
 0x5f6   : > { %4334 = vrot.lane.b32.xlu1 %v8611_v60, %s10181_s24  ;;  %s10218_s24 = smov 42  }
 0x5f7   : > { %v9005_v18 = vpop.permute.xlu2 %3261 }
 0x5f8   : > { %v3264_v40 = vrot.slane %v9005_v18, 4 }
 0x5fa   : > { %v3268_v44 = vsel %vm3266_vm13, %v9005_v18, %v3264_v40 }
 0x5fb   : > { %v3272_v11 = vadd.f32 %v3268_v44, %v3155_v0  ;;  %v3372_v0 = vmul.f32 %v8614_v57, %v3367_v27  ;;  %v6522_v57 = vld [vmem:[%s6814_s22] sm:$0xff] }
 0x5fc   : > { %v3723_v25 = vmul.f32 %v6522_v57, %v3718_v35 }
 0x5fe   : > { %4451 = vrot.lane.b32.xlu1 %v8611_v60, %s10182_s27  ;;  %s6702_s27 = smov 34  }
 0x5ff   : > { %v9014_v19 = vpop.permute.xlu2 %3378 }
 0x600   : > { %v3381_v63 = vrot.slane %v9014_v19, 4 }
 0x602   : > { %v3385_v17 = vsel %vm3383_vm14, %v9014_v19, %v3381_v63 }
 0x603   : > { %v3389_v6 = vadd.f32 %v3385_v17, %v3272_v11 }
 0x606   : > { %4568 = vrot.lane.b32.xlu1 %v8611_v60, %s10135_s17  ;;  %s10210_s17 = smov 65  }
 0x607   : > { %v9023_v62 = vpop.permute.xlu2 %3495 }
 0x608   : > { %v3498_v47 = vrot.slane %v9023_v62, 4 }
 0x60a   : > { %v3502_v43 = vsel %vm3500_vm10, %v9023_v62, %v3498_v47 }
 0x60b   : > { %v3506_v8 = vadd.f32 %v3502_v43, %v3389_v6  ;;  %v3489_v6 = vmul.f32 %v6522_v57, %v3484_v34 }
 0x60e   : > { %3142 = vrot.lane.b32.xlu1 %v3138_v39, %s6693_s14  ;;  %v3606_v39 = vmul.f32 %v6522_v57, %v3601_v28  ;;  %s10260_s14 = smov 44  }
 0x60f   : > { %v9036_v60 = vpop.permute.xlu2 %3612 }
 0x610   : > { %v3615_v10 = vrot.slane %v9036_v60, 4 }
 0x612   : > { %v3619_v12 = vsel %vm3617_vm3, %v9036_v60, %v3615_v10 }
 0x613   : > { %v3623_v48 = vadd.f32 %v3619_v12, %v3506_v8  ;;  %v9090_v12 = vld.sshfl [vmem:[#allocation1 + $0x10] sm:$0xff pattern:$0x75316420] }
 0x616   : > { %3259 = vrot.lane.b32.xlu1 %v3255_v29, %s6694_s26  ;;  %v9102_v29 = vld [vmem:[%s6814_s22] sm:$0xff]  ;;  %s6705_s26 = smov 16  }
 0x617   : > { %v9049_v2 = vpop.permute.xlu2 %3729  ;;  %v3840_v27 = vmul.f32 %v9102_v29, %v8888_v61 }
 0x618   : > { %v3732_v16 = vrot.slane %v9049_v2, 4 }
 0x61a   : > { %v3736_v49 = vsel %vm3734_vm6, %v9049_v2, %v3732_v16  ;;  %v4376_v2 = vsel %vm148_vm2, %v8987_v5, 0.0 }
 0x61b   : > { %v3740_v51 = vadd.f32 %v3736_v49, %v3623_v48  ;;  %v9092_v48 = vld.sshfl [vmem:[#allocation1 + $0x18] sm:$0xff pattern:$0x75316420]  ;;  %v4135_v49 = vsel %vm148_vm2, %v8956_v55, 0.0 }
 0x61c   : > { %v4136_v54 = vrot.slane %v4135_v49, 4 }
 0x61e   : > { %3376 = vrot.lane.b32.xlu1 %v3372_v0, %s6695_s30  ;;  %v4137_v55 = vadd.f32 %v4136_v54, %v4135_v49  ;;  %s6706_s30 = smov 15  }
 0x61f   : > { %v9062_v44 = vpop.permute.xlu2 %3846 }
 0x620   : > { %v3849_v11 = vrot.slane %v9062_v44, 4 }
 0x622   : > { %v3853_v41 = vsel %vm3851_vm12, %v9062_v44, %v3849_v11 }
 0x623   : > { %v9073_v17 = vadd.f32 %v3853_v41, %v3740_v51  ;;  %v3950_v51 = vrot.slane %v8905_v31, 4  ;;  %v4143_v41 = vrot.slane %v4142_v52, 4 }
 0x625   : > { %v3952_v34 = vsel %vm10203_vm4, %v3950_v51, %v8905_v31  ;;  %v4144_v24 = vadd.f32 %v4143_v41, %v4142_v52  ;;  %vm10205_vm4 = vcmask 195584  }
 0x626   : > { %3493 = vrot.lane.b32.xlu1 %v3489_v6, %s6696_s13  ;;  %v3951_v6 = vrot.slane %v8787_v46, 4  ;;  %v3957_v28 = vmul.f32 %v9102_v29, %v3952_v34  ;;  %s10267_s13 = smov 45  }
 0x627   : > { %v9077_v26 = vpop.permute.xlu2 %4570 }
 0x628   : > { %v4573_v43 = vrot.slane %v9077_v26, 4 }
 0x62a   : > { %v4576_v36 = vsel %vm1395_vm11, %v9077_v26, %v4573_v43 }
 0x62b   : > { %v4580_v8 = vsub.f32 %v8799_v9, %v4576_v36  ;;  %v4149_v9 = vsel %vm192_vm7, %v8828_v38, 0.0  ;;  %v4128_v38 = vsel %vm10202_vm1, %v8954_v32, 0.0  ;;  %v3953_v36 = vsel %vm148_vm2, %v3950_v51, %v3951_v6 }
 0x62c   : > { %v4150_v0 = vrot.slane %v4149_v9, 4  ;;  %v4129_v57 = vrot.slane %v4128_v38, 4  ;;  %v4138_v32 = vrot.slane %v4137_v55, 2  ;;  %v3954_v31 = vsel %vm10204_vm8, %v3953_v36, %v8787_v46  ;;  %vm10206_vm8 = vmmov %vm10205_vm4 }
 0x62d   : > { %v4582_v22 = vmul.f32 %v4580_v8, %v4580_v8 }
 0x62e   : > { %3610 = vrot.lane.b32.xlu1 %v3606_v39, %s6697_s21  ;;  %v4151_v61 = vadd.f32 %v4150_v0, %v4149_v9  ;;  %v4130_v39 = vadd.f32 %v4129_v57, %v4128_v38  ;;  %v4139_v9 = vadd.f32 %v4138_v32, %v4137_v55  ;;  %s10268_s21 = smov 46  }
 0x62f   : > { %4587 = vst [vmem:[#allocation1 + $0x10] ss:$2 sm:$0xff] %v4582_v22  ;;  %v4145_v22 = vrot.slane %v4144_v24, 2 }
 0x630   : > { %v4152_v8 = vrot.slane %v4151_v61, 2  ;;  %v4140_v51 = vrot.slane %v4139_v9, 1 }
 0x631   : > { %v4146_v0 = vadd.f32 %v4145_v22, %v4144_v24  ;;  %v4237_v22 = vld.sshfl [vmem:[#allocation1] sm:$0xff pattern:$0x75316420] }
 0x632   : > { %v4153_v35 = vadd.f32 %v4152_v8, %v4151_v61  ;;  %v4141_v41 = vadd.f32 %v4140_v51, %v4139_v9  ;;  %v4238_v9 = vld.sshfl [vmem:[#allocation1 + $0x8] sm:$0xff pattern:$0x75316420] }
 0x633   : > { %v4147_v6 = vrot.slane %v4146_v0, 1  ;;  %v4252_v51 = vsel %vm148_vm2, %v4238_v9, 0.0 }
 0x634   : > { %v4154_v54 = vrot.slane %v4153_v35, 1  ;;  %v4157_v61 = vmul.f32 49.999973, %v4141_v41 }
 0x635   : > { %v4148_v38 = vadd.f32 %v4147_v6, %v4146_v0 }
 0x636   : > { %3727 = vrot.lane.b32.xlu1 %v3723_v25, %s6698_s11  ;;  %v4131_v25 = vrot.slane %v4130_v39, 2  ;;  %v4161_v32 = vsub.f32 -20.0, %v4157_v61  ;;  %v4253_v61 = vrot.slane %v4252_v51, 4  ;;  %s10208_s11 = smov 25  }
 0x637   : > { %v4158_v36 = vmul.f32 49.999973, %v4148_v38  ;;  %v4590_v44 = vld.sshfl [vmem:[#allocation1 + $0x10] sm:$0xff pattern:$0x75316420] }
 0x638   : > { %v4132_v34 = vadd.f32 %v4131_v25, %v4130_v39  ;;  %v4166_v25 = vmul.f32 1.442695, %v4161_v32 }
 0x639   : > { %v4162_v24 = vsub.f32 -20.0, %v4158_v36 }
 0x63a   : > { %v4133_v52 = vrot.slane %v4132_v34, 1 }
 0x63c   : > { %v4134_v57 = vadd.f32 %v4133_v52, %v4132_v34  ;;  %v4245_v34 = vsel %vm10202_vm1, %v4237_v22, 0.0  ;;  %vm10207_vm1 = vcmask 703488  }
 0x63e   : > { %3844 = vrot.lane.b32.xlu1 %v3840_v27, %s6699_s4  ;;  %v6524_v27 = vld [vmem:[%s6814_s22 + $0x8] sm:$0xff]  ;;  %v4156_v8 = vmul.f32 49.999973, %v4134_v57  ;;  %v4246_v57 = vrot.slane %v4245_v34, 4  ;;  %s6701_s4 = smov 35  }
 0x63f   : > { %v3958_v49 = vmul.f32 %v6524_v27, %v3954_v31  ;;  %v4066_v31 = vpop.permute.xlu0 %4065 }
 0x646   : > { %3961 = vrot.lane.b32.xlu1 %v3957_v28, %s6700_s2  ;;  %v4155_v28 = vadd.f32 %v4154_v54, %v4153_v35  ;;  %v4160_v35 = vsub.f32 -20.0, %v4156_v8  ;;  %v4168_v54 = vmul.f32 1.442695, %v4162_v24  ;;  %v4247_v24 = vadd.f32 %v4246_v57, %v4245_v34 }
 0x648   : > { %v4159_v46 = vmul.f32 49.999973, %v4155_v28  ;;  %v4164_v52 = vmul.f32 1.442695, %v4160_v35  ;;  %v4681_v35 = vld [vmem:[%s6814_s22] sm:$0xff] }
 0x64a   : > { %v4163_v55 = vsub.f32 -20.0, %v4159_v46 }
 0x64c   : > { %v4170_v39 = vmul.f32 1.442695, %v4163_v55 }
 0x64e   : > { %3963 = vrot.lane.b32.xlu1 %v3958_v49, %s6700_s2  ;;  %v4068_v49 = vrot.slane %v4066_v31, 4  ;;  %6367 = vpow2.f32 %v4170_v39  ;;  %v4254_v39 = vadd.f32 %v4253_v61, %v4252_v51  ;;  %v9167_v61 = vld [vmem:[%s6814_s22 + $0x4] sm:$0xff]  ;;  %s10269_s2 = smov 47  }
 0x64f   : > { %6369 = vpow2.f32 %v4166_v25 }
 0x650   : > { %6371 = vpow2.f32 %v4168_v54  ;;  %v4248_v54 = vrot.slane %v4247_v24, 2  ;;  %v4255_v34 = vrot.slane %v4254_v39, 2 }
 0x651   : > { %6373 = vpow2.f32 %v4164_v52 }
 0x652   : > { %v4249_v52 = vadd.f32 %v4248_v54, %v4247_v24  ;;  %v10211_v54 = vld [vmem:[#allocation28_spill] sm:$0xff] }
 0x654   : > { %v9135_v36 = vpop.eup %6367 }
 0x655   : > { %v9137_v8 = vpop.eup %6369 }
 0x656   : > { %4687 = vrot.lane.b32.xlu1 %v8719_v4, %s10138_s28  ;;  %v4176_v22 = vrot.slane %v9137_v8, 4  ;;  %v9145_v25 = vpop.eup %6371 }
 0x65e   : > { %4804 = vrot.lane.b32.xlu1 %v8719_v4, %s10141_s5 }
 0x660   : > { %v4064_v27 = vpop.permute.xlu1 %4063 }
 0x661   : > { %v4067_v0 = vrot.slane %v4064_v27, 4 }
 0x663   : > { %v4069_v6 = vsel %vm10205_vm4, %v4067_v0, %v4064_v27  ;;  %v4070_v28 = vsel %vm148_vm2, %v4067_v0, %v4068_v49  ;;  %v9148_v27 = vpop.eup %6373  ;;  %vm10209_vm4 = vcmask 695296  }
 0x664   : > { %v4074_v41 = vmul.f32 %v9102_v29, %v4069_v6  ;;  %v4071_v38 = vsel %vm10206_vm8, %v4070_v28, %v4066_v31  ;;  %v4177_v31 = vrot.slane %v9135_v36, 4  ;;  %v4178_v50 = vsel %vm148_vm2, %v9148_v27, %v4176_v22 }
 0x665   : > { %v4075_v46 = vmul.f32 %v4071_v38, %v8719_v4  ;;  %v4259_v28 = vsel %vm148_vm2, %v8959_v37, 0.0  ;;  %v4266_v38 = vsel %vm192_vm7, %v8961_v58, 0.0  ;;  %v4250_v22 = vrot.slane %v4249_v52, 1 }
 0x666   : > { %4921 = vrot.lane.b32.xlu1 %v8719_v4, %s10143_s20  ;;  %4078 = vrot.lane.b32.xlu0 %v4074_v41, %s6701_s4  ;;  %v4179_v0 = vsel %vm148_vm2, %v9145_v25, %v4177_v31  ;;  %v4256_v41 = vadd.f32 %v4255_v34, %v4254_v39  ;;  %v4267_v31 = vrot.slane %v4266_v38, 4  ;;  %v3030_v34 = vrot.slane %v10211_v54, 4 }
 0x667   : > { %4080 = vrot.lane.b32.xlu2 %v4075_v46, %s6701_s4  ;;  %vm10212_vm8 = vcmask 1044008   ;;  %s10270_s4 = smov 66  }
 0x668   : > { %v4335_v55 = vpop.permute.xlu1 %4334  ;;  %v4257_v37 = vrot.slane %v4256_v41, 1 }
 0x669   : > { %v4338_v32 = vrot.slane %v4335_v55, 4 }
 0x66b   : > { %v4340_v4 = vsel %vm148_vm2, %v4338_v32, %v4339_v45 }
 0x66c   : > { %v4341_v9 = vsel %vm10207_vm1, %v4335_v55, %v4340_v4  ;;  %v4260_v55 = vrot.slane %v4259_v28, 4  ;;  %v4251_v4 = vadd.f32 %v4250_v22, %v4249_v52 }
 0x66d   : > { %v4345_v49 = vsub.f32 %v8923_v33, %v4341_v9  ;;  %v4258_v9 = vadd.f32 %v4257_v37, %v4256_v41 }
 0x66e   : > { %4685 = vrot.lane.b32.xlu0 %v4681_v35, %s10138_s28  ;;  %4182 = vrot.lane.b32.xlu1 %v4179_v0, %s10208_s11  ;;  %v4261_v30 = vadd.f32 %v4260_v55, %v4259_v28  ;;  %s10213_s28 = smov 64  }
 0x66f   : > { %v4347_v45 = vmul.f32 %v4345_v49, %v4345_v49  ;;  %4180 = vrot.lane.b32.xlu2 %v4178_v50, %s10208_s11  ;;  %v4274_v55 = vmul.f32 49.999973, %v4258_v9  ;;  %s10271_s11 = smov 68  }
 0x670   : > { %v4452_v51 = vpop.permute.xlu1 %4451  ;;  %v4262_v28 = vrot.slane %v4261_v30, 2 }
 0x671   : > { %v4455_v6 = vrot.slane %v4452_v51, 4  ;;  %4351 = vst [vmem:[#allocation1] ss:$2 sm:$0xff] %v4347_v45  ;;  %v4278_v9 = vsub.f32 -26.0, %v4274_v55 }
 0x672   : > { %v4263_v37 = vadd.f32 %v4262_v28, %v4261_v30  ;;  %v5033_v30 = vld [vmem:[%s6814_s22 + $0xc] sm:$0xf] }
 0x673   : > { %v4457_v46 = vsel %vm148_vm2, %v4455_v6, %v4456_v14  ;;  %v4268_v14 = vadd.f32 %v4267_v31, %v4266_v38  ;;  %v3032_v31 = vsel %vm148_vm2, %v3030_v34, %v3031_v42  ;;  %v4283_v55 = vmul.f32 1.442695, %v4278_v9 }
 0x674   : > { %v4458_v57 = vsel %vm10209_vm4, %v4452_v51, %v4457_v46 }
 0x675   : > { %v4462_v32 = vsub.f32 %v8923_v33, %v4458_v57  ;;  %v4269_v41 = vrot.slane %v4268_v14, 2  ;;  %v4273_v57 = vmul.f32 49.999973, %v4251_v4 }
 0x676   : > { %4802 = vrot.lane.b32.xlu0 %v4681_v35, %s10141_s5  ;;  %s10215_s5 = smov 63  }
 0x677   : > { %v4464_v24 = vmul.f32 %v4462_v32, %v4462_v32  ;;  %5036 = vrot.lane.b32.xlu2 %v9167_v61, %s10210_s17  ;;  %v4277_v4 = vsub.f32 -26.0, %v4273_v57 }
 0x678   : > { %v4569_v58 = vpop.permute.xlu1 %4568  ;;  %v4354_v49 = vld.sshfl [vmem:[#allocation1] sm:$0xff pattern:$0x75316420]  ;;  %v4355_v0 = vld.sshfl [vmem:[#allocation1 + $0x8] sm:$0xff pattern:$0x75316420] }
 0x679   : > { %v4572_v39 = vrot.slane %v4569_v58, 4  ;;  %v4362_v45 = vsel %vm10212_vm8, %v4354_v49, 0.0  ;;  %v4369_v51 = vsel %vm148_vm2, %v4355_v0, 0.0  ;;  %4468 = vst [vmem:[#allocation1] ss:$2 sm:$0xff] %v4464_v24 }
 0x67a   : > { %v4363_v46 = vrot.slane %v4362_v45, 4  ;;  %v4370_v38 = vrot.slane %v4369_v51, 4 }
 0x67b   : > { %v4574_v50 = vsel %vm148_vm2, %v4572_v39, %v4573_v43  ;;  %v4270_v39 = vadd.f32 %v4269_v41, %v4268_v14  ;;  %v4281_v41 = vmul.f32 1.442695, %v4277_v4 }
 0x67c   : > { %v4575_v6 = vsel %vm1395_vm11, %v4569_v58, %v4574_v50  ;;  %v4364_v26 = vadd.f32 %v4363_v46, %v4362_v45  ;;  %v4371_v32 = vadd.f32 %v4370_v38, %v4369_v51  ;;  %vm10214_vm11 = vmmov %vm10212_vm8  ;;  %v4264_v38 = vrot.slane %v4263_v37, 1 }
 0x67d   : > { %v4579_v52 = vsub.f32 %v8923_v33, %v4575_v6  ;;  %6375 = vpow2.f32 %v4281_v41 }
 0x67e   : > { %4919 = vrot.lane.b32.xlu0 %v4681_v35, %s10143_s20  ;;  %v4365_v24 = vrot.slane %v4364_v26, 2  ;;  %v4372_v33 = vrot.slane %v4371_v32, 2  ;;  %v3033_v35 = vsel %vm231_vm0, %v10211_v54, %v3032_v31  ;;  %6377 = vpow2.f32 %v4283_v55  ;;  %s10217_s20 = smov 41  }
 0x67f   : > { %v4581_v43 = vmul.f32 %v4579_v52, %v4579_v52  ;;  %5151 = vrot.lane.b32.xlu2 %v9167_v61, %s10213_s28  ;;  %v3037_v3 = vadd.f32 %v3033_v35, %v8968_v21  ;;  %v4271_v52 = vrot.slane %v4270_v39, 1 }
 0x680   : > { %v3143_v22 = vpop.permute.xlu1 %3142  ;;  %v4366_v49 = vadd.f32 %v4365_v24, %v4364_v26  ;;  %v4373_v0 = vadd.f32 %v4372_v33, %v4371_v32  ;;  %v4471_v50 = vld.sshfl [vmem:[#allocation1] sm:$0xff pattern:$0x75316420]  ;;  %v4472_v45 = vld.sshfl [vmem:[#allocation1 + $0x8] sm:$0xff pattern:$0x75316420] }
 0x681   : > { %v3146_v58 = vrot.slane %v3143_v22, 4  ;;  %v4479_v34 = vsel %vm10214_vm11, %v4471_v50, 0.0  ;;  %v4486_v14 = vsel %vm148_vm2, %v4472_v45, 0.0  ;;  %4585 = vst [vmem:[#allocation1] ss:$2 sm:$0xff] %v4581_v43  ;;  %v4272_v35 = vadd.f32 %v4271_v52, %v4270_v39 }
 0x682   : > { %v4367_v6 = vrot.slane %v4366_v49, 1  ;;  %v4374_v54 = vrot.slane %v4373_v0, 1  ;;  %v4480_v28 = vrot.slane %v4479_v34, 4  ;;  %v4487_v21 = vrot.slane %v4486_v14, 4  ;;  %v5148_v33 = vld [vmem:[%s6814_s22 + $0xc] sm:$0xf] }
 0x683   : > { %v3148_v42 = vsel %vm148_vm2, %v3146_v58, %v3147_v53  ;;  %v4265_v58 = vadd.f32 %v4264_v38, %v4263_v37  ;;  %v4276_v18 = vmul.f32 49.999973, %v4272_v35 }
 0x684   : > { %v3150_v51 = vsel %vm3149_vm15, %v3143_v22, %v3148_v42  ;;  %v4368_v56 = vadd.f32 %v4367_v6, %v4366_v49  ;;  %v4375_v53 = vadd.f32 %v4374_v54, %v4373_v0  ;;  %v4481_v57 = vadd.f32 %v4480_v28, %v4479_v34  ;;  %vm10216_vm15 = vmmov %vm10212_vm8 }
 0x685   : > { %v3154_v46 = vadd.f32 %v3150_v51, %v3037_v3  ;;  %v4488_v26 = vadd.f32 %v4487_v21, %v4486_v14  ;;  %v5378_v3 = vld [vmem:[%s6814_s22 + $0xc] sm:$0xf] }
 0x686   : > { %5038 = vrot.lane.b32.xlu0 %v5033_v30, %s10210_s17  ;;  %v4390_v43 = vmul.f32 49.999973, %v4368_v56  ;;  %v4391_v31 = vmul.f32 49.999973, %v4375_v53  ;;  %v4482_v22 = vrot.slane %v4481_v57, 2  ;;  %v9210_v53 = vpop.eup %6375 }
 0x687   : > { %5266 = vrot.lane.b32.xlu2 %v9167_v61, %s10215_s5  ;;  %v4489_v50 = vrot.slane %v4488_v26, 2 }
 0x688   : > { %v3260_v32 = vpop.permute.xlu1 %3259  ;;  %v4394_v45 = vsub.f32 -16.0, %v4390_v43  ;;  %v4395_v49 = vsub.f32 -16.0, %v4391_v31  ;;  %v4483_v4 = vadd.f32 %v4482_v22, %v4481_v57  ;;  %v4588_v0 = vld.sshfl [vmem:[#allocation1] sm:$0xff pattern:$0x75316420] }
 0x689   : > { %v3263_v24 = vrot.slane %v3260_v32, 4  ;;  %v4490_v42 = vadd.f32 %v4489_v50, %v4488_v26  ;;  %v4589_v30 = vld.sshfl [vmem:[#allocation1 + $0x8] sm:$0xff pattern:$0x75316420]  ;;  %v4596_v34 = vsel %vm10216_vm15, %v4588_v0, 0.0  ;;  %v9212_v26 = vpop.eup %6377 }
 0x68a   : > { %v4398_v37 = vmul.f32 1.442695, %v4394_v45  ;;  %v4400_v39 = vmul.f32 1.442695, %v4395_v49  ;;  %v4484_v51 = vrot.slane %v4483_v4, 1  ;;  %v4597_v28 = vrot.slane %v4596_v34, 4 }
 0x68b   : > { %v3265_v9 = vsel %vm148_vm2, %v3263_v24, %v3264_v40  ;;  %v4491_v54 = vrot.slane %v4490_v42, 1  ;;  %v4603_v38 = vsel %vm148_vm2, %v4589_v30, 0.0  ;;  %v4210_v24 = vadd.f32 %v9137_v8, %v8982_v1  ;;  %v5263_v45 = vld [vmem:[%s6814_s22 + $0xc] sm:$0xf] }
 0x68c   : > { %v3267_v14 = vsel %vm3266_vm13, %v3260_v32, %v3265_v9  ;;  %6379 = vpow2.f32 %v4398_v37  ;;  %v4485_v40 = vadd.f32 %v4484_v51, %v4483_v4  ;;  %v4604_v52 = vrot.slane %v4603_v38, 4 }
 0x68d   : > { %v3271_v6 = vadd.f32 %v3267_v14, %v3154_v46  ;;  %6381 = vpow2.f32 %v4400_v39  ;;  %v4492_v21 = vadd.f32 %v4491_v54, %v4490_v42  ;;  %v4598_v56 = vadd.f32 %v4597_v28, %v4596_v34 }
 0x68e   : > { %5153 = vrot.lane.b32.xlu0 %v5148_v33, %s10213_s28  ;;  %v4275_v46 = vmul.f32 49.999973, %v4265_v58  ;;  %v4507_v57 = vmul.f32 49.999973, %v4485_v40  ;;  %v4605_v55 = vadd.f32 %v4604_v52, %v4603_v38  ;;  %v4209_v32 = vadd.f32 %v9148_v27, %v8978_v7  ;;  %v5494_v27 = vld [vmem:[%s6814_s22 + $0xc] sm:$0xf] }
 0x68f   : > { %5383 = vrot.lane.b32.xlu2 %v5378_v3, %s10144_s23  ;;  %v4508_v31 = vmul.f32 49.999973, %v4492_v21  ;;  %v4599_v22 = vrot.slane %v4598_v56, 2  ;;  %v4280_v33 = vsub.f32 -26.0, %v4276_v18  ;;  %v4327_v3 = vadd.f32 %v9212_v26, %v4210_v24 }
 0x690   : > { %v3377_v41 = vpop.permute.xlu1 %3376  ;;  %v4511_v35 = vsub.f32 -10.0, %v4507_v57  ;;  %v4606_v50 = vrot.slane %v4605_v55, 2  ;;  %v4326_v49 = vadd.f32 %v9210_v53, %v4209_v32  ;;  %v4279_v14 = vsub.f32 -26.0, %v4275_v46  ;;  %v5610_v57 = vld [vmem:[%s6814_s22 + $0xc] sm:$0xf] }
 0x691   : > { %v3380_v43 = vrot.slane %v3377_v41, 4  ;;  %v4512_v4 = vsub.f32 -10.0, %v4508_v31  ;;  %v4600_v0 = vadd.f32 %v4599_v22, %v4598_v56  ;;  %v4287_v39 = vmul.f32 1.442695, %v4280_v33 }
 0x692   : > { %v9223_v9 = vpop.eup %6379  ;;  %v4515_v1 = vmul.f32 1.442695, %v4511_v35  ;;  %v4607_v8 = vadd.f32 %v4606_v50, %v4605_v55  ;;  %v4285_v40 = vmul.f32 1.442695, %v4279_v14  ;;  %vm3968_vm13 = vcmask 293888  }
 0x693   : > { %v3382_v58 = vsel %vm148_vm2, %v3380_v43, %v3381_v63  ;;  %v6382_v42 = vpop.eup %6381  ;;  %v4443_v19 = vadd.f32 %v9223_v9, %v4326_v49  ;;  %v4517_v34 = vmul.f32 1.442695, %v4512_v4  ;;  %v4601_v63 = vrot.slane %v4600_v0, 1 }
 0x694   : > { %v3384_v7 = vsel %vm3383_vm14, %v3377_v41, %v3382_v58  ;;  %v4444_v37 = vadd.f32 %v6382_v42, %v4327_v3  ;;  %6383 = vpow2.f32 %v4515_v1  ;;  %v4608_v54 = vrot.slane %v4607_v8, 1 }
 0x695   : > { %v3388_v30 = vadd.f32 %v3384_v7, %v3271_v6  ;;  %6385 = vpow2.f32 %v4517_v34  ;;  %v4602_v51 = vadd.f32 %v4601_v63, %v4600_v0  ;;  %vm4085_vm14 = vcmask 285696  }
 0x696   : > { %5268 = vrot.lane.b32.xlu0 %v5263_v45, %s10215_s5  ;;  %v4609_v18 = vadd.f32 %v4608_v54, %v4607_v8  ;;  %6387 = vpow2.f32 %v4287_v39  ;;  %v4410_v8 = vrot.slane %v6382_v42, 4 }
 0x697   : > { %5499 = vrot.lane.b32.xlu2 %v5494_v27, %s10147_s25  ;;  %v4624_v6 = vmul.f32 49.999973, %v4602_v51  ;;  %6389 = vpow2.f32 %v4285_v40  ;;  %v4377_v51 = vrot.slane %v4376_v2, 4 }
 0x698   : > { %v3494_v28 = vpop.permute.xlu1 %3493  ;;  %v4625_v21 = vmul.f32 49.999973, %v4609_v18  ;;  %v4412_v63 = vsel %vm148_vm2, %v9223_v9, %v4410_v8 }
 0x699   : > { %v3497_v38 = vrot.slane %v3494_v28, 4  ;;  %v4628_v56 = vsub.f32 -8.0, %v4624_v6  ;;  %v4378_v9 = vadd.f32 %v4377_v51, %v4376_v2  ;;  %v4493_v6 = vsel %vm148_vm2, %v9090_v12, 0.0 }
 0x69a   : > { %v9234_v41 = vpop.eup %6383  ;;  %v4629_v31 = vsub.f32 -8.0, %v4625_v21 }
 0x69b   : > { %v3499_v52 = vsel %vm148_vm2, %v3497_v38, %v3498_v47  ;;  %v9238_v55 = vpop.eup %6385  ;;  %v4560_v43 = vadd.f32 %v9234_v41, %v4443_v19  ;;  %v4632_v22 = vmul.f32 1.442695, %v4628_v56  ;;  %v4379_v18 = vrot.slane %v4378_v9, 2 }
 0x69c   : > { %v3501_v46 = vsel %vm3500_vm10, %v3494_v28, %v3499_v52  ;;  %v4561_v62 = vadd.f32 %v9238_v55, %v4444_v37  ;;  %v4634_v47 = vmul.f32 1.442695, %v4629_v31  ;;  %v9243_v33 = vpop.eup %6387  ;;  %v4383_v28 = vsel %vm192_vm7, %v8989_v23, 0.0  ;;  %v4591_v52 = vld.sshfl [vmem:[#allocation1 + $0x18] sm:$0xff pattern:$0x75316420] }
 0x69d   : > { %v3505_v32 = vadd.f32 %v3501_v46, %v3388_v30  ;;  %6391 = vpow2.f32 %v4632_v22  ;;  %v4294_v50 = vrot.slane %v9243_v33, 4  ;;  %v9249_v45 = vpop.eup %6389  ;;  %v4384_v38 = vrot.slane %v4383_v28, 4 }
 0x69e   : > { %6393 = vpow2.f32 %v4634_v47  ;;  %v4500_v46 = vsel %vm192_vm7, %v9092_v48, 0.0  ;;  %v4380_v31 = vadd.f32 %v4379_v18, %v4378_v9  ;;  %v4617_v22 = vsel %vm192_vm7, %v4591_v52, 0.0 }
 0x69f   : > { %5615 = vrot.lane.b32.xlu2 %v5610_v57, %s10149_s3  ;;  %v4296_v7 = vsel %vm148_vm2, %v9249_v45, %v4294_v50  ;;  %v4385_v40 = vadd.f32 %v4384_v38, %v4383_v28  ;;  %v4494_v57 = vrot.slane %v4493_v6, 4  ;;  %vm10219_vm10 = vcmask 203776  }
 0x6a0   : > { %v3611_v24 = vpop.permute.xlu1 %3610 }
 0x6a1   : > { %v3614_v35 = vrot.slane %v3611_v24, 4  ;;  %v4386_v50 = vrot.slane %v4385_v40, 2 }
 0x6a3   : > { %v3616_v58 = vsel %vm148_vm2, %v3614_v35, %v3615_v10  ;;  %v9252_v4 = vpop.eup %6391 }
 0x6a4   : > { %v3618_v49 = vsel %vm3617_vm3, %v3611_v24, %v3616_v58  ;;  %v9257_v27 = vadd.f32 %v9252_v4, %v4560_v43  ;;  %v9259_v3 = vpop.eup %6393  ;;  %v4501_v24 = vrot.slane %v4500_v46, 4  ;;  %vm10220_vm3 = vcmask 662528  }
 0x6a5   : > { %v3622_v0 = vadd.f32 %v3618_v49, %v3505_v32  ;;  %v9263_v10 = vadd.f32 %v9259_v3, %v4561_v62  ;;  %v4610_v32 = vsel %vm148_vm2, %v4590_v44, 0.0 }
 0x6a6   : > { %v4611_v58 = vrot.slane %v4610_v32, 4 }
 0x6a7   : > { %4299 = vrot.lane.b32.xlu2 %v4296_v7, %s10217_s20  ;;  %v4618_v7 = vrot.slane %v4617_v22, 4 }
 0x6a8   : > { %v3728_v60 = vpop.permute.xlu1 %3727 }
 0x6a9   : > { %v3731_v1 = vrot.slane %v3728_v60, 4 }
 0x6ab   : > { %v3733_v30 = vsel %vm148_vm2, %v3731_v1, %v3732_v16  ;;  %v4502_v1 = vadd.f32 %v4501_v24, %v4500_v46 }
 0x6ac   : > { %v3735_v19 = vsel %vm3734_vm6, %v3728_v60, %v3733_v30  ;;  %vm10221_vm6 = vmmov %vm10219_vm10 }
 0x6ad   : > { %v3739_v34 = vadd.f32 %v3735_v19, %v3622_v0  ;;  %v4495_v0 = vadd.f32 %v4494_v57, %v4493_v6  ;;  %v4387_v19 = vadd.f32 %v4386_v50, %v4385_v40  ;;  %v4094_v50 = vadd.f32 %v8927_v13, %v8487_v15 }
 0x6af   : > { %4414 = vrot.lane.b32.xlu2 %v4412_v63, %s10218_s24  ;;  %v4388_v9 = vrot.slane %v4387_v19, 1 }
 0x6b0   : > { %v3845_v14 = vpop.permute.xlu1 %3844 }
 0x6b1   : > { %v3848_v37 = vrot.slane %v3845_v14, 4 }
 0x6b3   : > { %v3850_v39 = vsel %vm148_vm2, %v3848_v37, %v3849_v11  ;;  %v4619_v37 = vadd.f32 %v4618_v7, %v4617_v22 }
 0x6b4   : > { %v3852_v42 = vsel %vm3851_vm12, %v3845_v14, %v3850_v39  ;;  %v4496_v14 = vrot.slane %v4495_v0, 2  ;;  %vm10224_vm12 = vcmask 531456  }
 0x6b5   : > { %v3856_v16 = vadd.f32 %v3852_v42, %v3739_v34  ;;  %v4612_v34 = vadd.f32 %v4611_v58, %v4610_v32  ;;  %v9312_v42 = vld [vmem:[%s6814_s22 + $0x8] sm:$0xff]  ;;  %v4620_v44 = vrot.slane %v4619_v37, 2  ;;  %vm10225_vm1 = vmmov %vm10224_vm12 }
 0x6b6   : > { %v4497_v6 = vadd.f32 %v4496_v14, %v4495_v0 }
 0x6b7   : > { %v4613_v38 = vrot.slane %v4612_v34, 2  ;;  %v4621_v32 = vadd.f32 %v4620_v44, %v4619_v37 }
 0x6b8   : > { %v3962_v54 = vpop.permute.xlu1 %3961  ;;  %v4498_v57 = vrot.slane %v4497_v6, 1 }
 0x6b9   : > { %v3965_v21 = vrot.slane %v3962_v54, 4  ;;  %v4614_v46 = vadd.f32 %v4613_v38, %v4612_v34 }
 0x6c0   : > { %v3964_v11 = vpop.permute.xlu1 %3963 }
 0x6c1   : > { %v3966_v56 = vrot.slane %v3964_v11, 4  ;;  %v9282_v5 = vpop.permute.xlu2 %4080 }
 0x6c2   : > { %v4083_v23 = vrot.slane %v9282_v5, 4 }
 0x6c3   : > { %v3967_v12 = vsel %vm148_vm2, %v3965_v21, %v3966_v56  ;;  %v3970_v43 = vsel %vm3968_vm13, %v3964_v11, %v3966_v56  ;;  %v4389_v56 = vadd.f32 %v4388_v9, %v4387_v19 }
 0x6c4   : > { %v3974_v62 = vadd.f32 %v3970_v43, %v9073_v17  ;;  %v4087_v47 = vsel %vm4085_vm14, %v9282_v5, %v4083_v23  ;;  %v3969_v48 = vsel %vm3968_vm13, %v3962_v54, %v3967_v12  ;;  %v4381_v17 = vrot.slane %v4380_v31, 1 }
 0x6c5   : > { %v9297_v35 = vadd.f32 %v3969_v48, %v3856_v16  ;;  %v4503_v54 = vrot.slane %v4502_v1, 2  ;;  %v4393_v22 = vmul.f32 49.999973, %v4389_v56  ;;  %v4622_v48 = vrot.slane %v4621_v32, 1 }
 0x6c6   : > { %v9299_v49 = vadd.f32 %v4087_v47, %v3974_v62  ;;  %v4382_v51 = vadd.f32 %v4381_v17, %v4380_v31  ;;  %v4615_v62 = vrot.slane %v4614_v46, 1  ;;  %v4499_v47 = vadd.f32 %v4498_v57, %v4497_v6 }
 0x6c7   : > { %v4504_v52 = vadd.f32 %v4503_v54, %v4502_v1  ;;  %v4397_v34 = vsub.f32 -16.0, %v4393_v22  ;;  %v4211_v6 = vadd.f32 %v9145_v25, %v4094_v50  ;;  %vm10231_vm13 = vcmask 515072  }
 0x6c8   : > { %v9301_v60 = vpop.permute.xlu1 %4687  ;;  %v4392_v40 = vmul.f32 49.999973, %v4382_v51  ;;  %v4616_v14 = vadd.f32 %v4615_v62, %v4614_v46 }
 0x6c9   : > { %v4690_v8 = vrot.slane %v9301_v60, 4  ;;  %v9304_v30 = vpop.permute.xlu2 %4180  ;;  %v4505_v31 = vrot.slane %v4504_v52, 1  ;;  %v4404_v5 = vmul.f32 1.442695, %v4397_v34 }
 0x6ca   : > { %v4184_v63 = vrot.slane %v9304_v30, 4  ;;  %v4396_v43 = vsub.f32 -16.0, %v4392_v40  ;;  %v4626_v40 = vmul.f32 49.999973, %v4616_v14 }
 0x6cb   : > { %v4693_v39 = vsel %vm1277_vm9, %v9301_v60, %v4690_v8  ;;  %v4506_v17 = vadd.f32 %v4505_v31, %v4504_v52 }
 0x6cc   : > { %v4697_v2 = vsub.f32 %v9312_v42, %v4693_v39  ;;  %v4186_v16 = vsel %vm10219_vm10, %v4184_v63, %v9304_v30  ;;  %v4402_v7 = vmul.f32 1.442695, %v4396_v43  ;;  %v4095_v39 = vadd.f32 %v8918_v59, %v8505_v20 }
 0x6cd   : > { %v4191_v28 = vmul.f32 %v9102_v29, %v4186_v16  ;;  %v4623_v16 = vadd.f32 %v4622_v48, %v4621_v32  ;;  %v4510_v38 = vmul.f32 49.999973, %v4506_v17  ;;  %v9355_v32 = vadd.f32 %v9249_v45, %v4211_v6 }
 0x6ce   : > { %v4699_v18 = vmul.f32 %v4697_v2, %v4697_v2  ;;  %v4509_v2 = vmul.f32 49.999973, %v4499_v47  ;;  %v4212_v57 = vadd.f32 %v9135_v36, %v4095_v39  ;;  %6395 = vpow2.f32 %v4402_v7 }
 0x6cf   : > { %4195 = vrot.lane.b32.xlu1 %v4191_v28, %s6702_s27  ;;  %v4630_v47 = vsub.f32 -8.0, %v4626_v40  ;;  %6397 = vpow2.f32 %v4404_v5 }
 0x6d0   : > { %v9321_v11 = vpop.permute.xlu1 %4804  ;;  %4704 = vst [vmem:[#allocation1 + $0x10] ss:$2 sm:$0xff] %v4699_v18  ;;  %v4513_v56 = vsub.f32 -10.0, %v4509_v2  ;;  %v4329_v6 = vadd.f32 %v9243_v33, %v4212_v57 }
 0x6d1   : > { %v4807_v21 = vrot.slane %v9321_v11, 4 }
 0x6d2   : > { %v4519_v36 = vmul.f32 1.442695, %v4513_v56 }
 0x6d3   : > { %v4810_v29 = vsel %vm1159_vm5, %v9321_v11, %v4807_v21 }
 0x6d4   : > { %v4814_v12 = vsub.f32 %v9312_v42, %v4810_v29  ;;  %6399 = vpow2.f32 %v4519_v36 }
 0x6d6   : > { %v4816_v24 = vmul.f32 %v4814_v12, %v4814_v12 }
 0x6d7   : > { %5381 = vrot.lane.b32.xlu1 %v9167_v61, %s10144_s23  ;;  %v4707_v37 = vld.sshfl [vmem:[#allocation1 + $0x10] sm:$0xff pattern:$0x75316420]  ;;  %v4708_v51 = vld.sshfl [vmem:[#allocation1 + $0x18] sm:$0xff pattern:$0x75316420] }
 0x6d8   : > { %v9333_v58 = vpop.permute.xlu1 %4921  ;;  %v4079_v0 = vpop.permute.xlu0 %4078  ;;  %v4727_v54 = vsel %vm148_vm2, %v4707_v37, 0.0  ;;  %v4734_v9 = vsel %vm192_vm7, %v4708_v51, 0.0  ;;  %4821 = vst [vmem:[#allocation1 + $0x10] ss:$2 sm:$0xff] %v4816_v24  ;;  %s6703_s23 = smov 18  }
 0x6d9   : > { %v4924_v1 = vrot.slane %v9333_v58, 4  ;;  %v4082_v19 = vrot.slane %v4079_v0, 4  ;;  %v4728_v28 = vrot.slane %v4727_v54, 4  ;;  %v4735_v18 = vrot.slane %v4734_v9, 4 }
 0x6db   : > { %v4927_v15 = vsel %vm10220_vm3, %v9333_v58, %v4924_v1  ;;  %v4084_v13 = vsel %vm148_vm2, %v4082_v19, %v4083_v23  ;;  %v4729_v52 = vadd.f32 %v4728_v28, %v4727_v54  ;;  %v4627_v23 = vmul.f32 49.999973, %v4623_v16  ;;  %v9369_v16 = vld [vmem:[%s6814_s22 + $0x8] sm:$0xff]  ;;  %v9376_v54 = vpop.eup %6395 }
 0x6dc   : > { %v4931_v20 = vsub.f32 %v9312_v42, %v4927_v15  ;;  %v4086_v59 = vsel %vm4085_vm14, %v4079_v0, %v4084_v13  ;;  %v4736_v46 = vadd.f32 %v4735_v18, %v4734_v9  ;;  %v9382_v18 = vpop.eup %6397  ;;  %v4445_v57 = vadd.f32 %v9376_v54, %v9355_v32  ;;  %vm10232_vm14 = vmmov %vm10231_vm13 }
 0x6dd   : > { %v9351_v44 = vadd.f32 %v4086_v59, %v9297_v35  ;;  %v4730_v29 = vrot.slane %v4729_v52, 2  ;;  %v4514_v35 = vsub.f32 -10.0, %v4510_v38  ;;  %v4631_v45 = vsub.f32 -8.0, %v4627_v23 }
 0x6de   : > { %v4933_v12 = vmul.f32 %v4931_v20, %v4931_v20  ;;  %v4737_v31 = vrot.slane %v4736_v46, 2 }
 0x6df   : > { %5497 = vrot.lane.b32.xlu1 %v9167_v61, %s10147_s25  ;;  %v4731_v48 = vadd.f32 %v4730_v29, %v4729_v52  ;;  %v4824_v50 = vld.sshfl [vmem:[#allocation1 + $0x10] sm:$0xff pattern:$0x75316420]  ;;  %v4825_v19 = vld.sshfl [vmem:[#allocation1 + $0x18] sm:$0xff pattern:$0x75316420] }
 0x6e0   : > { %v4183_v25 = vpop.permute.xlu1 %4182  ;;  %v4686_v43 = vpop.permute.xlu0 %4685  ;;  %v4738_v24 = vadd.f32 %v4737_v31, %v4736_v46  ;;  %v4844_v34 = vsel %vm148_vm2, %v4824_v50, 0.0  ;;  %v4521_v39 = vmul.f32 1.442695, %v4514_v35  ;;  %4938 = vst [vmem:[#allocation1 + $0x10] ss:$2 sm:$0xff] %v4933_v12  ;;  %v4851_v9 = vsel %vm192_vm7, %v4825_v19, 0.0 }
 0x6e1   : > { %v4185_v22 = vrot.slane %v4183_v25, 4  ;;  %v4689_v62 = vrot.slane %v4686_v43, 4  ;;  %v4732_v17 = vrot.slane %v4731_v48, 1  ;;  %v4638_v15 = vmul.f32 1.442695, %v4631_v45  ;;  %v9387_v35 = vpop.permute.xlu2 %5036  ;;  %s6704_s25 = smov 17  }
 0x6e2   : > { %v4739_v2 = vrot.slane %v4738_v24, 1  ;;  %v4845_v28 = vrot.slane %v4844_v34, 4  ;;  %v4852_v38 = vrot.slane %v4851_v9, 4  ;;  %6401 = vpow2.f32 %v4521_v39  ;;  %v5726_v12 = vld [vmem:[%s6814_s22 + $0xc] sm:$0xf] }
 0x6e3   : > { %v4187_v0 = vsel %vm148_vm2, %v4184_v63, %v4185_v22  ;;  %v4691_v7 = vsel %vm148_vm2, %v4689_v62, %v4690_v8  ;;  %v9373_v63 = vld [vmem:[%s6814_s22] sm:$0xff]  ;;  %v4636_v8 = vmul.f32 1.442695, %v4630_v47  ;;  %v4733_v51 = vadd.f32 %v4732_v17, %v4731_v48 }
 0x6e4   : > { %v4188_v14 = vsel %vm10221_vm6, %v4187_v0, %v4183_v25  ;;  %v4692_v37 = vsel %vm1277_vm9, %v4686_v43, %v4691_v7  ;;  %v4740_v13 = vadd.f32 %v4739_v2, %v4738_v24  ;;  %v4846_v5 = vadd.f32 %v4845_v28, %v4844_v34  ;;  %v9396_v24 = vpop.eup %6399  ;;  %vm10223_vm9 = vmmov %vm10220_vm3 }
 0x6e5   : > { %v4192_v30 = vmul.f32 %v9369_v16, %v4188_v14  ;;  %v4696_v60 = vsub.f32 %v9373_v63, %v4692_v37  ;;  %v4743_v59 = vmul.f32 49.999973, %v4733_v51  ;;  %6403 = vpow2.f32 %v4636_v8 }
 0x6e6   : > { %v4744_v52 = vmul.f32 49.999973, %v4740_v13  ;;  %v4853_v46 = vadd.f32 %v4852_v38, %v4851_v9  ;;  %v4293_v29 = vrot.slane %v9212_v26, 4  ;;  %6405 = vpow2.f32 %v4638_v15 }
 0x6e7   : > { %v4698_v20 = vmul.f32 %v4696_v60, %v4696_v60  ;;  %4197 = vrot.lane.b32.xlu0 %v4192_v30, %s6702_s27  ;;  %5613 = vrot.lane.b32.xlu1 %v9167_v61, %s10149_s3  ;;  %v4747_v23 = vsub.f32 -10.0, %v4743_v59  ;;  %v4847_v43 = vrot.slane %v4846_v5, 2  ;;  %v4941_v22 = vld.sshfl [vmem:[#allocation1 + $0x10] sm:$0xff pattern:$0x75316420]  ;;  %v4446_v34 = vadd.f32 %v9382_v18, %v4329_v6  ;;  %s10259_s3 = smov 43  }
 0x6e8   : > { %v4803_v40 = vpop.permute.xlu0 %4802  ;;  %v4748_v25 = vsub.f32 -10.0, %v4744_v52  ;;  %v4854_v62 = vrot.slane %v4853_v46, 2  ;;  %v4942_v26 = vld.sshfl [vmem:[#allocation1 + $0x18] sm:$0xff pattern:$0x75316420]  ;;  %v4961_v45 = vsel %vm148_vm2, %v4941_v22, 0.0  ;;  %v9399_v0 = vpop.eup %6401  ;;  %v4295_v32 = vsel %vm148_vm2, %v9210_v53, %v4293_v29 }
 0x6e9   : > { %v4806_v56 = vrot.slane %v4803_v40, 4  ;;  %4702 = vst [vmem:[#allocation1] ss:$2 sm:$0xff] %v4698_v20  ;;  %v4753_v31 = vmul.f32 1.442695, %v4747_v23  ;;  %v4848_v36 = vadd.f32 %v4847_v43, %v4846_v5  ;;  %v4968_v17 = vsel %vm192_vm7, %v4942_v26, 0.0 }
 0x6ea   : > { %v4755_v48 = vmul.f32 1.442695, %v4748_v25  ;;  %v4855_v11 = vadd.f32 %v4854_v62, %v4853_v46  ;;  %v4562_v30 = vadd.f32 %v9396_v24, %v4445_v57  ;;  %v4563_v51 = vadd.f32 %v9399_v0, %v4446_v34  ;;  %v9426_v25 = vpop.permute.xlu2 %5151  ;;  %s6708_s27 = smov 13  }
 0x6eb   : > { %v4808_v33 = vsel %vm148_vm2, %v4806_v56, %v4807_v21  ;;  %6407 = vpow2.f32 %v4753_v31  ;;  %v4962_v21 = vrot.slane %v4961_v45, 4  ;;  %v4849_v7 = vrot.slane %v4848_v36, 1  ;;  %v9404_v19 = vpop.eup %6403 }
 0x6ec   : > { %v4809_v47 = vsel %vm1159_vm5, %v4803_v40, %v4808_v33  ;;  %6409 = vpow2.f32 %v4755_v48  ;;  %v4856_v14 = vrot.slane %v4855_v11, 1  ;;  %v9409_v37 = vpop.eup %6405  ;;  %v4969_v15 = vrot.slane %v4968_v17, 4  ;;  %vm10222_vm5 = vmmov %vm10212_vm8 }
 0x6ed   : > { %v4813_v50 = vsub.f32 %v9373_v63, %v4809_v47  ;;  %v4850_v53 = vadd.f32 %v4849_v7, %v4848_v36  ;;  %v4963_v60 = vadd.f32 %v4962_v21, %v4961_v45  ;;  %v5040_v13 = vrot.slane %v9387_v35, 4  ;;  %vm10226_vm4 = vmmov %vm10222_vm5 }
 0x6ee   : > { %v4679_v28 = vadd.f32 %v9404_v19, %v4562_v30  ;;  %v4857_v20 = vadd.f32 %v4856_v14, %v4855_v11  ;;  %v4680_v6 = vadd.f32 %v9409_v37, %v4563_v51  ;;  %v4970_v33 = vadd.f32 %v4969_v15, %v4968_v17  ;;  %vm10230_vm15 = vmmov %vm10226_vm4 }
 0x6ef   : > { %4297 = vrot.lane.b32.xlu0 %v4295_v32, %s10217_s20  ;;  %5731 = vrot.lane.b32.xlu1 %v5726_v12, %s6661_s29  ;;  %v4815_v39 = vmul.f32 %v4813_v50, %v4813_v50  ;;  %v4860_v5 = vmul.f32 49.999973, %v4850_v53  ;;  %v4964_v12 = vrot.slane %v4963_v60, 2  ;;  %v5042_v47 = vsel %vm10224_vm12, %v5040_v13, %v9387_v35  ;;  %vm10233_vm10 = vmmov %vm10226_vm4  ;;  %s10272_s20 = smov 69  }
 0x6f0   : > { %v4920_v2 = vpop.permute.xlu0 %4919  ;;  %v4705_v9 = vld.sshfl [vmem:[#allocation1] sm:$0xff pattern:$0x75316420]  ;;  %v4706_v40 = vld.sshfl [vmem:[#allocation1 + $0x8] sm:$0xff pattern:$0x75316420]  ;;  %v5047_v35 = vsub.f32 %v9373_v63, %v5042_v47  ;;  %vm10234_vm3 = vmmov %vm10226_vm4 }
 0x6f1   : > { %v4923_v8 = vrot.slane %v4920_v2, 4  ;;  %v9415_v59 = vpop.eup %6407  ;;  %v4713_v52 = vsel %vm10222_vm5, %v4705_v9, 0.0  ;;  %v4720_v29 = vsel %vm148_vm2, %v4706_v40, 0.0  ;;  %4819 = vst [vmem:[#allocation1] ss:$2 sm:$0xff] %v4815_v39  ;;  %v4864_v62 = vsub.f32 -16.0, %v4860_v5  ;;  %vm10237_vm6 = vmmov %vm10234_vm3 }
 0x6f2   : > { %v9422_v56 = vpop.eup %6409  ;;  %v4714_v46 = vrot.slane %v4713_v52, 4  ;;  %v4796_v43 = vadd.f32 %v9415_v59, %v4679_v28  ;;  %v4861_v22 = vmul.f32 49.999973, %v4857_v20  ;;  %v5155_v21 = vrot.slane %v9426_v25, 4 }
 0x6f3   : > { %v4925_v38 = vsel %vm148_vm2, %v4923_v8, %v4924_v1  ;;  %v4721_v1 = vrot.slane %v4720_v29, 4  ;;  %v9431_v31 = vadd.f32 %v9422_v56, %v4680_v6  ;;  %v4870_v11 = vmul.f32 1.442695, %v4864_v62 }
 0x6f4   : > { %v4926_v23 = vsel %vm10223_vm9, %v4920_v2, %v4925_v38  ;;  %v4715_v57 = vadd.f32 %v4714_v46, %v4713_v52  ;;  %v4865_v50 = vsub.f32 -16.0, %v4861_v22  ;;  %v4965_v17 = vadd.f32 %v4964_v12, %v4963_v60  ;;  %v9444_v52 = vpop.permute.xlu2 %5266 }
 0x6f5   : > { %v4930_v58 = vsub.f32 %v9373_v63, %v4926_v23  ;;  %v4722_v48 = vadd.f32 %v4721_v1, %v4720_v29  ;;  %6411 = vpow2.f32 %v4870_v11  ;;  %v4971_v39 = vrot.slane %v4970_v33, 2 }
 0x6f6   : > { %v4716_v45 = vrot.slane %v4715_v57, 2  ;;  %v4872_v14 = vmul.f32 1.442695, %v4865_v50  ;;  %v4966_v40 = vrot.slane %v4965_v17, 1  ;;  %vm10228_vm8 = vcmask 523264  }
 0x6f7   : > { %5729 = vrot.lane.b32.xlu0 %v9167_v61, %s6661_s29  ;;  %v4932_v26 = vmul.f32 %v4930_v58, %v4930_v58  ;;  %v4723_v7 = vrot.slane %v4722_v48, 2  ;;  %v5049_v58 = vmul.f32 %v5047_v35, %v5047_v35  ;;  %v5157_v1 = vsel %vm10228_vm8, %v5155_v21, %v9426_v25  ;;  %vm10229_vm11 = vmmov %vm10228_vm8 }
 0x6f8   : > { %v5039_v36 = vpop.permute.xlu0 %5038  ;;  %v4717_v34 = vadd.f32 %v4716_v45, %v4715_v57  ;;  %v4822_v30 = vld.sshfl [vmem:[#allocation1] sm:$0xff pattern:$0x75316420]  ;;  %v4823_v53 = vld.sshfl [vmem:[#allocation1 + $0x8] sm:$0xff pattern:$0x75316420]  ;;  %6413 = vpow2.f32 %v4872_v14  ;;  %v4967_v50 = vadd.f32 %v4966_v40, %v4965_v17  ;;  %v5162_v35 = vsub.f32 %v9373_v63, %v5157_v1 }
 0x6f9   : > { %v5041_v32 = vrot.slane %v5039_v36, 4  ;;  %v4724_v61 = vadd.f32 %v4723_v7, %v4722_v48  ;;  %v4830_v15 = vsel %vm10226_vm4, %v4822_v30, 0.0  ;;  %v4837_v28 = vsel %vm148_vm2, %v4823_v53, 0.0  ;;  %4936 = vst [vmem:[#allocation1] ss:$2 sm:$0xff] %v4932_v26 }
 0x6fa   : > { %v4718_v51 = vrot.slane %v4717_v34, 1  ;;  %v4831_v20 = vrot.slane %v4830_v15, 4  ;;  %v4838_v38 = vrot.slane %v4837_v28, 4  ;;  %v5270_v57 = vrot.slane %v9444_v52, 4 }
 0x6fb   : > { %v5043_v2 = vsel %vm148_vm2, %v5040_v13, %v5041_v32  ;;  %v4725_v9 = vrot.slane %v4724_v61, 1  ;;  %v4972_v13 = vadd.f32 %v4971_v39, %v4970_v33  ;;  %v9446_v12 = vpop.eup %6411  ;;  %v5164_v1 = vmul.f32 %v5162_v35, %v5162_v35 }
 0x6fc   : > { %v5044_v8 = vsel %vm10225_vm1, %v5043_v2, %v5039_v36  ;;  %v4719_v6 = vadd.f32 %v4718_v51, %v4717_v34  ;;  %v4832_v46 = vadd.f32 %v4831_v20, %v4830_v15  ;;  %v4839_v29 = vadd.f32 %v4838_v38, %v4837_v28  ;;  %10227 = vst [vmem:[#allocation21_spill] sm:$0xff] %v9446_v12 }
 0x6fd   : > { %v5048_v60 = vsub.f32 %v9312_v42, %v5044_v8  ;;  %v4726_v23 = vadd.f32 %v4725_v9, %v4724_v61  ;;  %v9452_v45 = vadd.f32 %v9446_v12, %v4796_v43  ;;  %v4973_v11 = vrot.slane %v4972_v13, 1 }
 0x6fe   : > { %v4741_v62 = vmul.f32 49.999973, %v4719_v6  ;;  %v4833_v26 = vrot.slane %v4832_v46, 2  ;;  %v4840_v33 = vrot.slane %v4839_v29, 2  ;;  %v9455_v39 = vpop.eup %6413  ;;  %v4977_v20 = vmul.f32 49.999973, %v4967_v50 }
 0x6ff   : > { %v5050_v5 = vmul.f32 %v5048_v60, %v5048_v60  ;;  %v4742_v48 = vmul.f32 49.999973, %v4726_v23  ;;  %v4974_v28 = vadd.f32 %v4973_v11, %v4972_v13  ;;  %v9464_v23 = vadd.f32 %v9455_v39, %v9431_v31 }
 0x700   : > { %v5154_v22 = vpop.permute.xlu0 %5153  ;;  %v4745_v36 = vsub.f32 -10.0, %v4741_v62  ;;  %v4834_v34 = vadd.f32 %v4833_v26, %v4832_v46  ;;  %v4841_v25 = vadd.f32 %v4840_v33, %v4839_v29  ;;  %v4939_v14 = vld.sshfl [vmem:[#allocation1] sm:$0xff pattern:$0x75316420]  ;;  %v5272_v31 = vsel %vm10231_vm13, %v5270_v57, %v9444_v52 }
 0x701   : > { %v5156_v47 = vrot.slane %v5154_v22, 4  ;;  %5055 = vst [vmem:[#allocation1 + $0x10] ss:$2 sm:$0xff] %v5050_v5  ;;  %v4746_v7 = vsub.f32 -10.0, %v4742_v48  ;;  %v4947_v53 = vsel %vm10230_vm15, %v4939_v14, 0.0  ;;  %vm10246_vm5 = vcmask 506880   ;;  %vm10252_vm15 = vmmov %vm10234_vm3 }
 0x702   : > { %v4749_v61 = vmul.f32 1.442695, %v4745_v36  ;;  %v4940_v30 = vld.sshfl [vmem:[#allocation1 + $0x8] sm:$0xff pattern:$0x75316420]  ;;  %v4835_v8 = vrot.slane %v4834_v34, 1  ;;  %vm10247_vm9 = vmmov %vm10246_vm5 }
 0x703   : > { %v5158_v32 = vsel %vm148_vm2, %v5155_v21, %v5156_v47  ;;  %v4751_v17 = vmul.f32 1.442695, %v4746_v7  ;;  %v4842_v51 = vrot.slane %v4841_v25, 1  ;;  %5053 = vst [vmem:[#allocation1] ss:$2 sm:$0xff] %v5049_v58  ;;  %v4948_v21 = vrot.slane %v4947_v53, 4 }
 0x704   : > { %v5159_v2 = vsel %vm10229_vm11, %v5158_v32, %v5154_v22  ;;  %6415 = vpow2.f32 %v4749_v61  ;;  %v4954_v15 = vsel %vm148_vm2, %v4940_v30, 0.0  ;;  %v4836_v60 = vadd.f32 %v4835_v8, %v4834_v34 }
 0x705   : > { %v5163_v43 = vsub.f32 %v9312_v42, %v5159_v2  ;;  %6417 = vpow2.f32 %v4751_v17  ;;  %v4843_v9 = vadd.f32 %v4842_v51, %v4841_v25  ;;  %v4949_v40 = vadd.f32 %v4948_v21, %v4947_v53 }
 0x706   : > { %v4955_v5 = vrot.slane %v4954_v15, 4  ;;  %v4858_v29 = vmul.f32 49.999973, %v4836_v60  ;;  %v4978_v13 = vmul.f32 49.999973, %v4974_v28  ;;  %v4981_v53 = vsub.f32 -26.0, %v4977_v20 }
 0x707   : > { %v5165_v38 = vmul.f32 %v5163_v43, %v5163_v43  ;;  %v4859_v58 = vmul.f32 49.999973, %v4843_v9  ;;  %v4950_v22 = vrot.slane %v4949_v40, 2  ;;  %v5277_v8 = vsub.f32 %v9373_v63, %v5272_v31 }
 0x708   : > { %v5269_v6 = vpop.permute.xlu0 %5268  ;;  %v4956_v62 = vadd.f32 %v4955_v5, %v4954_v15  ;;  %v5058_v47 = vld.sshfl [vmem:[#allocation1 + $0x10] sm:$0xff pattern:$0x75316420]  ;;  %v4862_v26 = vsub.f32 -16.0, %v4858_v29  ;;  %v4982_v17 = vsub.f32 -26.0, %v4978_v13  ;;  %vm10248_vm12 = vcmask 498688  }
 0x709   : > { %v5271_v46 = vrot.slane %v5269_v6, 4  ;;  %v4863_v33 = vsub.f32 -16.0, %v4859_v58  ;;  %v5059_v36 = vld.sshfl [vmem:[#allocation1 + $0x18] sm:$0xff pattern:$0x75316420]  ;;  %v5078_v50 = vsel %vm148_vm2, %v5058_v47, 0.0  ;;  %v4951_v7 = vadd.f32 %v4950_v22, %v4949_v40  ;;  %vm10249_vm1 = vmmov %vm10248_vm12 }
 0x70a   : > { %v9468_v11 = vpop.eup %6415  ;;  %v4957_v34 = vrot.slane %v4956_v62, 2  ;;  %v5056_v25 = vld.sshfl [vmem:[#allocation1] sm:$0xff pattern:$0x75316420]  ;;  %5170 = vst [vmem:[#allocation1 + $0x10] ss:$2 sm:$0xff] %v5165_v38 }
 0x70b   : > { %v5273_v48 = vsel %vm148_vm2, %v5270_v57, %v5271_v46  ;;  %v9473_v14 = vpop.eup %6417  ;;  %v4794_v2 = vadd.f32 %v9468_v11, %v9257_v27  ;;  %v4866_v61 = vmul.f32 1.442695, %v4862_v26  ;;  %v5057_v30 = vld.sshfl [vmem:[#allocation1 + $0x8] sm:$0xff pattern:$0x75316420]  ;;  %v4952_v57 = vrot.slane %v4951_v7, 1 }
 0x70c   : > { %v5274_v32 = vsel %vm10232_vm14, %v5273_v48, %v5269_v6  ;;  %v4795_v43 = vadd.f32 %v9473_v14, %v9263_v10  ;;  %v4868_v52 = vmul.f32 1.442695, %v4863_v33  ;;  %5168 = vst [vmem:[#allocation1] ss:$2 sm:$0xff] %v5164_v1  ;;  %v4958_v51 = vadd.f32 %v4957_v34, %v4956_v62 }
 0x70d   : > { %v5278_v35 = vsub.f32 %v9312_v42, %v5274_v32  ;;  %6419 = vpow2.f32 %v4866_v61  ;;  %v5079_v21 = vrot.slane %v5078_v50, 4  ;;  %v4953_v28 = vadd.f32 %v4952_v57, %v4951_v7 }
 0x70e   : > { %6421 = vpow2.f32 %v4868_v52  ;;  %v5085_v27 = vsel %vm192_vm7, %v5059_v36, 0.0  ;;  %v4959_v60 = vrot.slane %v4958_v51, 1  ;;  %v4987_v38 = vmul.f32 1.442695, %v4981_v53 }
 0x70f   : > { %v5280_v15 = vmul.f32 %v5278_v35, %v5278_v35  ;;  %v5080_v9 = vadd.f32 %v5079_v21, %v5078_v50  ;;  %v5086_v20 = vrot.slane %v5085_v27, 4  ;;  %v4975_v6 = vmul.f32 49.999973, %v4953_v28 }
 0x710   : > { %v4989_v10 = vmul.f32 1.442695, %v4982_v17  ;;  %v5064_v40 = vsel %vm10233_vm10, %v5056_v25, 0.0  ;;  %v4960_v5 = vadd.f32 %v4959_v60, %v4958_v51  ;;  %6423 = vpow2.f32 %v4987_v38 }
 0x711   : > { %v5081_v46 = vrot.slane %v5080_v9, 2  ;;  %v5087_v29 = vadd.f32 %v5086_v20, %v5085_v27  ;;  %v9483_v58 = vld.sshfl [vmem:[#allocation1 + $0x10] sm:$0xff pattern:$0x75316420]  ;;  %v5279_v1 = vmul.f32 %v5277_v8, %v5277_v8  ;;  %v4979_v22 = vsub.f32 -26.0, %v4975_v6 }
 0x712   : > { %v9485_v62 = vld.sshfl [vmem:[#allocation1 + $0x18] sm:$0xff pattern:$0x75316420]  ;;  %6425 = vpow2.f32 %v4989_v10  ;;  %v4976_v13 = vmul.f32 49.999973, %v4960_v5  ;;  %v5065_v33 = vrot.slane %v5064_v40, 4 }
 0x713   : > { %v9487_v47 = vpop.eup %6419  ;;  %v5082_v48 = vadd.f32 %v5081_v46, %v5080_v9  ;;  %v5088_v26 = vrot.slane %v5087_v29, 2  ;;  %5285 = vst [vmem:[#allocation1 + $0x10] ss:$2 sm:$0xff] %v5280_v15  ;;  %v4983_v31 = vmul.f32 1.442695, %v4979_v22  ;;  %v5071_v61 = vsel %vm148_vm2, %v5057_v30, 0.0 }
 0x714   : > { %v9489_v36 = vpop.eup %6421  ;;  %v4911_v50 = vadd.f32 %v9487_v47, %v4794_v2  ;;  %v5171_v32 = vld.sshfl [vmem:[#allocation1] sm:$0xff pattern:$0x75316420]  ;;  %v4980_v34 = vsub.f32 -26.0, %v4976_v13  ;;  %v5066_v21 = vadd.f32 %v5065_v33, %v5064_v40  ;;  %v5072_v9 = vrot.slane %v5071_v61, 4 }
 0x715   : > { %v4912_v7 = vadd.f32 %v9489_v36, %v4795_v43  ;;  %v5083_v25 = vrot.slane %v5082_v48, 1  ;;  %v5172_v35 = vld.sshfl [vmem:[#allocation1 + $0x8] sm:$0xff pattern:$0x75316420]  ;;  %6427 = vpow2.f32 %v4983_v31  ;;  %v5089_v53 = vadd.f32 %v5088_v26, %v5087_v29 }
 0x716   : > { %5283 = vst [vmem:[#allocation1] ss:$2 sm:$0xff] %v5279_v1  ;;  %v5179_v52 = vsel %vm10234_vm3, %v5171_v32, 0.0  ;;  %v5186_v57 = vsel %vm148_vm2, %v5172_v35, 0.0  ;;  %v9496_v17 = vpop.eup %6423  ;;  %v4985_v8 = vmul.f32 1.442695, %v4980_v34 }
 0x717   : > { %10235 = vst [vmem:[#allocation26_spill] sm:$0xff] %v9496_v17  ;;  %v5084_v2 = vadd.f32 %v5083_v25, %v5082_v48  ;;  %v5180_v51 = vrot.slane %v5179_v52, 4  ;;  %v5090_v43 = vrot.slane %v5089_v53, 1  ;;  %v9502_v28 = vadd.f32 %v9496_v17, %v9452_v45 }
 0x718   : > { %v9498_v15 = vpop.eup %6425  ;;  %v5187_v30 = vrot.slane %v5186_v57, 4  ;;  %6429 = vpow2.f32 %v4985_v8  ;;  %v5067_v45 = vrot.slane %v5066_v21, 2  ;;  %vm4202_vm4 = vcmask 277504  }
 0x719   : > { %10236 = vst [vmem:[#allocation23_spill] sm:$0xff] %v9498_v15  ;;  %v5094_v27 = vmul.f32 49.999973, %v5084_v2  ;;  %v9506_v60 = vadd.f32 %v9498_v15, %v9464_v23  ;;  %v5091_v20 = vadd.f32 %v5090_v43, %v5089_v53  ;;  %v5181_v10 = vadd.f32 %v5180_v51, %v5179_v52 }
 0x71a   : > { %v5288_v38 = vld.sshfl [vmem:[#allocation1 + $0x10] sm:$0xff pattern:$0x75316420]  ;;  %v5289_v6 = vld.sshfl [vmem:[#allocation1 + $0x18] sm:$0xff pattern:$0x75316420]  ;;  %v5188_v40 = vadd.f32 %v5187_v30, %v5186_v57  ;;  %v5068_v30 = vadd.f32 %v5067_v45, %v5066_v21 }
 0x71b   : > { %v5098_v5 = vsub.f32 -36.0, %v5094_v27  ;;  %v5308_v46 = vsel %vm148_vm2, %v5288_v38, 0.0  ;;  %v5315_v29 = vsel %vm192_vm7, %v5289_v6, 0.0  ;;  %v9510_v1 = vpop.eup %6427  ;;  %v5095_v22 = vmul.f32 49.999973, %v5091_v20 }
 0x71c   : > { %v5182_v13 = vrot.slane %v5181_v10, 2  ;;  %v5189_v48 = vrot.slane %v5188_v40, 2  ;;  %v5309_v26 = vrot.slane %v5308_v46, 4  ;;  %v9513_v23 = vadd.f32 %v9510_v1, %v4911_v50 }
 0x71d   : > { %v5104_v33 = vmul.f32 1.442695, %v5098_v5  ;;  %v5286_v31 = vld.sshfl [vmem:[#allocation1] sm:$0xff pattern:$0x75316420]  ;;  %v5316_v53 = vrot.slane %v5315_v29, 4  ;;  %v5073_v27 = vadd.f32 %v5072_v9, %v5071_v61 }
 0x71e   : > { %v5287_v32 = vld.sshfl [vmem:[#allocation1 + $0x8] sm:$0xff pattern:$0x75316420]  ;;  %v5294_v34 = vsel %vm10237_vm6, %v5286_v31, 0.0  ;;  %v5183_v25 = vadd.f32 %v5182_v13, %v5181_v10  ;;  %v5190_v35 = vadd.f32 %v5189_v48, %v5188_v40  ;;  %v9516_v52 = vpop.eup %6429  ;;  %v5099_v57 = vsub.f32 -36.0, %v5095_v22  ;;  %vm10257_vm6 = vmmov %vm10234_vm3 }
 0x71f   : > { %v5295_v8 = vrot.slane %v5294_v34, 4  ;;  %v5301_v2 = vsel %vm148_vm2, %v5287_v32, 0.0  ;;  %v5310_v51 = vadd.f32 %v5309_v26, %v5308_v46  ;;  %v9520_v43 = vadd.f32 %v9516_v52, %v4912_v7 }
 0x720   : > { %v5302_v50 = vrot.slane %v5301_v2, 4  ;;  %v5184_v38 = vrot.slane %v5183_v25, 1  ;;  %v5191_v6 = vrot.slane %v5190_v35, 1  ;;  %6431 = vpow2.f32 %v5104_v33 }
 0x721   : > { %v5296_v20 = vadd.f32 %v5295_v8, %v5294_v34  ;;  %v5311_v5 = vrot.slane %v5310_v51, 2  ;;  %v5317_v40 = vadd.f32 %v5316_v53, %v5315_v29  ;;  %v5106_v13 = vmul.f32 1.442695, %v5099_v57 }
 0x722   : > { %v5303_v10 = vadd.f32 %v5302_v50, %v5301_v2  ;;  %v5185_v22 = vadd.f32 %v5184_v38, %v5183_v25  ;;  %v5192_v31 = vadd.f32 %v5191_v6, %v5190_v35  ;;  %v5069_v46 = vrot.slane %v5068_v30, 1 }
 0x723   : > { %v5297_v48 = vrot.slane %v5296_v20, 2  ;;  %v5318_v32 = vrot.slane %v5317_v40, 2  ;;  %v5074_v26 = vrot.slane %v5073_v27, 2  ;;  %v5312_v12 = vadd.f32 %v5311_v5, %v5310_v51 }
 0x724   : > { %v5304_v17 = vrot.slane %v5303_v10, 2  ;;  %v5207_v15 = vmul.f32 49.999973, %v5185_v22  ;;  %v5208_v61 = vmul.f32 49.999973, %v5192_v31  ;;  %v5070_v9 = vadd.f32 %v5069_v46, %v5068_v30 }
 0x725   : > { %v5298_v7 = vadd.f32 %v5297_v48, %v5296_v20  ;;  %v5075_v45 = vadd.f32 %v5074_v26, %v5073_v27  ;;  %6433 = vpow2.f32 %v5106_v13  ;;  %v5319_v53 = vadd.f32 %v5318_v32, %v5317_v40 }
 0x726   : > { %v5305_v21 = vadd.f32 %v5304_v17, %v5303_v10  ;;  %v5211_v33 = vsub.f32 -26.0, %v5207_v15  ;;  %v9522_v8 = vpop.eup %6431  ;;  %v5092_v35 = vmul.f32 49.999973, %v5070_v9  ;;  %v5313_v2 = vrot.slane %v5312_v12, 1 }
 0x727   : > { %v5299_v34 = vrot.slane %v5298_v7, 1  ;;  %v5076_v25 = vrot.slane %v5075_v45, 1  ;;  %v5193_v50 = vsel %vm148_vm2, %v9483_v58, 0.0  ;;  %v5212_v51 = vsub.f32 -26.0, %v5208_v61 }
 0x728   : > { %v5306_v29 = vrot.slane %v5305_v21, 1  ;;  %v5096_v38 = vsub.f32 -36.0, %v5092_v35  ;;  %v5215_v27 = vmul.f32 1.442695, %v5211_v33  ;;  %v9528_v15 = vadd.f32 %v9522_v8, %v9502_v28 }
 0x729   : > { %v5300_v57 = vadd.f32 %v5299_v34, %v5298_v7  ;;  %v5077_v17 = vadd.f32 %v5076_v25, %v5075_v45  ;;  %v5320_v5 = vrot.slane %v5319_v53, 1  ;;  %v5314_v48 = vadd.f32 %v5313_v2, %v5312_v12  ;;  %v5384_v25 = vpop.permute.xlu2 %5383 }
 0x72a   : > { %v5307_v20 = vadd.f32 %v5306_v29, %v5305_v21  ;;  %v5100_v22 = vmul.f32 1.442695, %v5096_v38  ;;  %v5194_v31 = vrot.slane %v5193_v50, 4  ;;  %v5217_v32 = vmul.f32 1.442695, %v5212_v51 }
 0x72b   : > { %v5322_v30 = vmul.f32 49.999973, %v5300_v57  ;;  %v5093_v10 = vmul.f32 49.999973, %v5077_v17  ;;  %v9530_v40 = vpop.eup %6433  ;;  %v5200_v26 = vsel %vm192_vm7, %v9485_v62, 0.0  ;;  %6435 = vpow2.f32 %v5215_v27 }
 0x72c   : > { %v5323_v6 = vmul.f32 49.999973, %v5307_v20  ;;  %v5195_v21 = vadd.f32 %v5194_v31, %v5193_v50  ;;  %v5201_v28 = vrot.slane %v5200_v26, 4  ;;  %v5321_v61 = vadd.f32 %v5320_v5, %v5319_v53 }
 0x72d   : > { %v5326_v13 = vsub.f32 -20.0, %v5322_v30  ;;  %v5097_v46 = vsub.f32 -36.0, %v5093_v10  ;;  %6437 = vpow2.f32 %v5100_v22  ;;  %v5146_v12 = vadd.f32 %v9530_v40, %v9506_v60 }
 0x72e   : > { %v5327_v58 = vsub.f32 -20.0, %v5323_v6  ;;  %v5196_v45 = vrot.slane %v5195_v21, 2  ;;  %v5202_v34 = vadd.f32 %v5201_v28, %v5200_v26  ;;  %v5324_v29 = vmul.f32 49.999973, %v5314_v48 }
 0x72f   : > { %v5330_v7 = vmul.f32 1.442695, %v5326_v13  ;;  %v5102_v9 = vmul.f32 1.442695, %v5097_v46  ;;  %v5325_v62 = vmul.f32 49.999973, %v5321_v61 }
 0x730   : > { %v5332_v33 = vmul.f32 1.442695, %v5327_v58  ;;  %v5197_v35 = vadd.f32 %v5196_v45, %v5195_v21  ;;  %v5203_v57 = vrot.slane %v5202_v34, 2  ;;  %v5328_v51 = vsub.f32 -20.0, %v5324_v29 }
 0x731   : > { %6439 = vpow2.f32 %v5330_v7  ;;  %v9536_v2 = vpop.eup %6435  ;;  %v5329_v27 = vsub.f32 -20.0, %v5325_v62  ;;  %v5500_v7 = vpop.permute.xlu2 %5499  ;;  %vm10250_vm8 = vcmask 490496   ;;  %vm10253_vm13 = vcmask 334848  }
 0x732   : > { %6441 = vpow2.f32 %v5217_v32  ;;  %10238 = vst [vmem:[#allocation9_spill] sm:$0xff] %v9536_v2  ;;  %v5198_v50 = vrot.slane %v5197_v35, 1  ;;  %v5204_v53 = vadd.f32 %v5203_v57, %v5202_v34  ;;  %v5334_v22 = vmul.f32 1.442695, %v5328_v51  ;;  %vm10251_vm11 = vmmov %vm10250_vm8 }
 0x733   : > { %6443 = vpow2.f32 %v5102_v9  ;;  %v9538_v20 = vpop.eup %6437  ;;  %v5336_v26 = vmul.f32 1.442695, %v5329_v27  ;;  %vm10255_vm14 = vcmask 343040   ;;  %vm10256_vm10 = vmmov %vm10253_vm13 }
 0x734   : > { %10239 = vst [vmem:[#allocation8_spill] sm:$0xff] %v9538_v20  ;;  %6445 = vpow2.f32 %v5332_v33  ;;  %v5143_v60 = vadd.f32 %v9538_v20, %v9513_v23  ;;  %v5199_v17 = vadd.f32 %v5198_v50, %v5197_v35  ;;  %v5205_v38 = vrot.slane %v5204_v53, 1 }
 0x735   : > { %6447 = vpow2.f32 %v5334_v22  ;;  %v5386_v35 = vrot.slane %v5384_v25, 4 }
 0x736   : > { %v5258_v5 = vadd.f32 %v9536_v2, %v5143_v60  ;;  %v5206_v10 = vadd.f32 %v5205_v38, %v5204_v53  ;;  %v5209_v13 = vmul.f32 49.999973, %v5199_v17 }
 0x737   : > { %v9542_v30 = vpop.eup %6439 }
 0x738   : > { %v9544_v6 = vpop.eup %6441  ;;  %v5210_v58 = vmul.f32 49.999973, %v5206_v10  ;;  %v5213_v32 = vsub.f32 -26.0, %v5209_v13  ;;  %v9552_v23 = vadd.f32 %v9542_v30, %v5258_v5 }
 0x739   : > { %10240 = vst [vmem:[#allocation16_spill] sm:$0xff] %v9544_v6  ;;  %v9547_v48 = vpop.eup %6443  ;;  %v5616_v50 = vpop.permute.xlu2 %5615 }
 0x73a   : > { %10241 = vst [vmem:[#allocation10_spill] sm:$0xff] %v9547_v48  ;;  %v5144_v31 = vadd.f32 %v9547_v48, %v9520_v43  ;;  %v9554_v46 = vpop.eup %6445  ;;  %v5214_v21 = vsub.f32 -26.0, %v5210_v58  ;;  %v5219_v28 = vmul.f32 1.442695, %v5213_v32 }
 0x73b   : > { %v9560_v43 = vpop.eup %6447 }
 0x73c   : > { %v5259_v61 = vadd.f32 %v9544_v6, %v5144_v31  ;;  %6449 = vpow2.f32 %v5219_v28  ;;  %v5221_v45 = vmul.f32 1.442695, %v5214_v21  ;;  %10242 = vst [vmem:[#allocation17_spill] sm:$0xff] %v9560_v43  ;;  %v5502_v31 = vrot.slane %v5500_v7, 4 }
 0x73d   : > { %6451 = vpow2.f32 %v5336_v26 }
 0x73e   : > { %v9558_v34 = vadd.f32 %v9554_v46, %v5259_v61  ;;  %6453 = vpow2.f32 %v5221_v45  ;;  %v9587_v45 = vld [vmem:[%s6814_s22 + $0x8] sm:$0xff] }
 0x741   : > { %v4196_v9 = vpop.permute.xlu1 %4195  ;;  %v4300_v26 = vpop.permute.xlu2 %4299 }
 0x742   : > { %v9562_v33 = vpop.eup %6449 }
 0x743   : > { %10243 = vst [vmem:[#allocation11_spill] sm:$0xff] %v9562_v33  ;;  %v9564_v29 = vpop.eup %6451  ;;  %v5260_v57 = vadd.f32 %v9562_v33, %v9528_v15 }
 0x744   : > { %10244 = vst [vmem:[#allocation18_spill] sm:$0xff] %v9564_v29  ;;  %v9568_v62 = vpop.eup %6453 }
 0x745   : > { %10245 = vst [vmem:[#allocation12_spill] sm:$0xff] %v9568_v62  ;;  %v5261_v60 = vadd.f32 %v9568_v62, %v5146_v12  ;;  %v9572_v17 = vadd.f32 %v9560_v43, %v5260_v57 }
 0x747   : > { %v9577_v5 = vadd.f32 %v9564_v29, %v5261_v60 }
 0x749   : > { %v5382_v53 = vpop.permute.xlu1 %5381 }
 0x74a   : > { %v5385_v51 = vrot.slane %v5382_v53, 4 }
 0x74c   : > { %v5387_v38 = vsel %vm10246_vm5, %v5385_v51, %v5382_v53  ;;  %v5388_v27 = vsel %vm148_vm2, %v5385_v51, %v5386_v35  ;;  %v5618_v35 = vrot.slane %v5616_v50, 4  ;;  %vm10261_vm5 = vmmov %vm10234_vm3 }
 0x74d   : > { %v5389_v15 = vsel %vm10247_vm9, %v5388_v27, %v5384_v25  ;;  %v5392_v10 = vsub.f32 %v9373_v63, %v5387_v38  ;;  %v4199_v38 = vrot.slane %v4196_v9, 4  ;;  %vm10263_vm9 = vmmov %vm10255_vm14 }
 0x74e   : > { %v5393_v13 = vsub.f32 %v9312_v42, %v5389_v15 }
 0x74f   : > { %v5394_v22 = vmul.f32 %v5392_v10, %v5392_v10 }
 0x750   : > { %v5395_v12 = vmul.f32 %v5393_v13, %v5393_v13 }
 0x751   : > { %v5498_v58 = vpop.permute.xlu1 %5497  ;;  %5398 = vst [vmem:[#allocation1] ss:$2 sm:$0xff] %v5394_v22 }
 0x752   : > { %v5501_v32 = vrot.slane %v5498_v58, 4  ;;  %5400 = vst [vmem:[#allocation1 + $0x10] ss:$2 sm:$0xff] %v5395_v12 }
 0x754   : > { %v5503_v21 = vsel %vm10248_vm12, %v5501_v32, %v5498_v58  ;;  %v5504_v28 = vsel %vm148_vm2, %v5501_v32, %v5502_v31  ;;  %vm10264_vm12 = vcmask 351232  }
 0x755   : > { %v5505_v61 = vsel %vm10249_vm1, %v5504_v28, %v5500_v7  ;;  %v5508_v25 = vsub.f32 %v9373_v63, %v5503_v21  ;;  %v9594_v21 = vpop.permute.xlu2 %4414  ;;  %vm10265_vm1 = vmmov %vm10264_vm12 }
 0x756   : > { %v5509_v42 = vsub.f32 %v9587_v45, %v5505_v61 }
 0x757   : > { %v5510_v57 = vmul.f32 %v5508_v25, %v5508_v25 }
 0x758   : > { %v5511_v53 = vmul.f32 %v5509_v42, %v5509_v42  ;;  %v5401_v10 = vld.sshfl [vmem:[#allocation1] sm:$0xff pattern:$0x75316420]  ;;  %v5402_v13 = vld.sshfl [vmem:[#allocation1 + $0x8] sm:$0xff pattern:$0x75316420] }
 0x759   : > { %v5614_v51 = vpop.permute.xlu1 %5613  ;;  %v4198_v60 = vpop.permute.xlu0 %4197  ;;  %v5403_v22 = vld.sshfl [vmem:[#allocation1 + $0x10] sm:$0xff pattern:$0x75316420]  ;;  %5514 = vst [vmem:[#allocation1] ss:$2 sm:$0xff] %v5510_v57 }
 0x75a   : > { %v5617_v27 = vrot.slane %v5614_v51, 4  ;;  %v4200_v15 = vrot.slane %v4198_v60, 4  ;;  %v5404_v32 = vld.sshfl [vmem:[#allocation1 + $0x18] sm:$0xff pattern:$0x75316420]  ;;  %v5423_v57 = vsel %vm148_vm2, %v5403_v22, 0.0 }
 0x75b   : > { %5516 = vst [vmem:[#allocation1 + $0x10] ss:$2 sm:$0xff] %v5511_v53 }
 0x75c   : > { %v5619_v7 = vsel %vm10250_vm8, %v5617_v27, %v5614_v51  ;;  %v5620_v31 = vsel %vm148_vm2, %v5617_v27, %v5618_v35  ;;  %v4201_v12 = vsel %vm148_vm2, %v4199_v38, %v4200_v15  ;;  %v4204_v58 = vsel %vm4202_vm4, %v4198_v60, %v4200_v15 }
 0x75d   : > { %v5621_v28 = vsel %vm10251_vm11, %v5620_v31, %v5616_v50  ;;  %v5624_v61 = vsub.f32 %v9373_v63, %v5619_v7  ;;  %v4203_v25 = vsel %vm4202_vm4, %v4196_v9, %v4201_v12  ;;  %v9600_v42 = vadd.f32 %v4204_v58, %v9299_v49 }
 0x75e   : > { %v5625_v35 = vsub.f32 %v9587_v45, %v5621_v28  ;;  %v9604_v51 = vadd.f32 %v4203_v25, %v9351_v44  ;;  %v5430_v60 = vsel %vm192_vm7, %v5404_v32, 0.0  ;;  %v5424_v38 = vrot.slane %v5423_v57, 4 }
 0x75f   : > { %v5431_v27 = vrot.slane %v5430_v60, 4  ;;  %v4411_v63 = vrot.slane %v9382_v18, 4  ;;  %v5409_v9 = vsel %vm10252_vm15, %v5401_v10, 0.0  ;;  %v5416_v49 = vsel %vm148_vm2, %v5402_v13, 0.0 }
 0x760   : > { %v5627_v53 = vmul.f32 %v5625_v35, %v5625_v35  ;;  %v5425_v7 = vadd.f32 %v5424_v38, %v5423_v57  ;;  %v5410_v31 = vrot.slane %v5409_v9, 4  ;;  %v4302_v12 = vrot.slane %v4300_v26, 4  ;;  %v5517_v33 = vld.sshfl [vmem:[#allocation1] sm:$0xff pattern:$0x75316420] }
 0x761   : > { %v4298_v15 = vpop.permute.xlu0 %4297  ;;  %v5432_v44 = vadd.f32 %v5431_v27, %v5430_v60  ;;  %v5626_v22 = vmul.f32 %v5624_v61, %v5624_v61  ;;  %v5417_v32 = vrot.slane %v5416_v49, 4  ;;  %v10254_v35 = vrot.slane %v9594_v21, 4  ;;  %v9621_v60 = vld [vmem:[%s6814_s22] sm:$0xff]  ;;  %v5732_v27 = vpop.permute.xlu1 %5731 }
 0x762   : > { %v4301_v58 = vrot.slane %v4298_v15, 4  ;;  %v5426_v28 = vrot.slane %v5425_v7, 2  ;;  %v5411_v50 = vadd.f32 %v5410_v31, %v5409_v9  ;;  %v5519_v62 = vld.sshfl [vmem:[#allocation1 + $0x10] sm:$0xff pattern:$0x75316420]  ;;  %vm10266_vm4 = vcmask 359424  }
 0x763   : > { %v5433_v25 = vrot.slane %v5432_v44, 2  ;;  %v9614_v13 = vld.sshfl [vmem:[#allocation1 + $0x18] sm:$0xff pattern:$0x75316420]  ;;  %v4420_v57 = vsel %vm10255_vm14, %v10254_v35, %v9594_v21  ;;  %v5418_v20 = vadd.f32 %v5417_v32, %v5416_v49  ;;  %vm4436_vm8 = vcmask 138240   ;;  %vm10273_vm11 = vmmov %vm10266_vm4 }
 0x764   : > { %v4303_v18 = vsel %vm10253_vm13, %v4301_v58, %v4298_v15  ;;  %v4304_v10 = vsel %vm148_vm2, %v4301_v58, %v4302_v12  ;;  %v5427_v9 = vadd.f32 %v5426_v28, %v5425_v7  ;;  %5632 = vst [vmem:[#allocation1 + $0x10] ss:$2 sm:$0xff] %v5627_v53  ;;  %v5518_v15 = vld.sshfl [vmem:[#allocation1 + $0x8] sm:$0xff pattern:$0x75316420]  ;;  %v5525_v58 = vsel %vm10234_vm3, %v5517_v33, 0.0 }
 0x765   : > { %v4308_v61 = vmul.f32 %v9621_v60, %v4303_v18  ;;  %v4305_v38 = vsel %vm10256_vm10, %v4304_v10, %v4300_v26  ;;  %v5434_v12 = vadd.f32 %v5433_v25, %v5432_v44  ;;  %5630 = vst [vmem:[#allocation1] ss:$2 sm:$0xff] %v5626_v22  ;;  %v5526_v48 = vrot.slane %v5525_v58, 4 }
 0x766   : > { %v4309_v31 = vmul.f32 %v9369_v16, %v4305_v38  ;;  %v5428_v35 = vrot.slane %v5427_v9, 1  ;;  %v5532_v43 = vsel %vm148_vm2, %v5518_v15, 0.0  ;;  %v5412_v18 = vrot.slane %v5411_v50, 2 }
 0x767   : > { %4312 = vrot.lane.b32.xlu0 %v4308_v61, %s6703_s23  ;;  %v5734_v26 = vrot.slane %v5732_v27, 4  ;;  %v5435_v53 = vrot.slane %v5434_v12, 1  ;;  %v5533_v28 = vrot.slane %v5532_v43, 4  ;;  %v4413_v16 = vsel %vm148_vm2, %v9376_v54, %v4411_v63  ;;  %v6530_v63 = vld [vmem:[%s6814_s22] sm:$0xff] }
 0x768   : > { %4314 = vrot.lane.b32.xlu1 %v4309_v31, %s6703_s23  ;;  %v4528_v33 = vrot.slane %v9399_v0, 4  ;;  %v5429_v49 = vadd.f32 %v5428_v35, %v5427_v9  ;;  %v5527_v44 = vadd.f32 %v5526_v48, %v5525_v58  ;;  %v4425_v22 = vmul.f32 %v9621_v60, %v4420_v57  ;;  %s10285_s23 = smov 67  }
 0x769   : > { %v5730_v10 = vpop.permute.xlu0 %5729  ;;  %v5436_v25 = vadd.f32 %v5435_v53, %v5434_v12  ;;  %v5534_v61 = vadd.f32 %v5533_v28, %v5532_v43  ;;  %v5413_v31 = vadd.f32 %v5412_v18, %v5411_v50  ;;  %v5419_v7 = vrot.slane %v5418_v20, 2 }
 0x76a   : > { %v5733_v32 = vrot.slane %v5730_v10, 4  ;;  %v5439_v38 = vmul.f32 49.999973, %v5429_v49  ;;  %v5528_v15 = vrot.slane %v5527_v44, 2  ;;  %v5539_v54 = vsel %vm148_vm2, %v5519_v62, 0.0 }
 0x76b   : > { %v5440_v6 = vmul.f32 49.999973, %v5436_v25  ;;  %v5635_v58 = vld.sshfl [vmem:[#allocation1 + $0x10] sm:$0xff pattern:$0x75316420]  ;;  %v5535_v53 = vrot.slane %v5534_v61, 2 }
 0x76c   : > { %v5735_v29 = vsel %vm231_vm0, %v5733_v32, %v5730_v10  ;;  %v5736_v2 = vsel %vm148_vm2, %v5733_v32, %v5734_v26  ;;  %v5443_v9 = vsub.f32 -18.0, %v5439_v38  ;;  %v5633_v57 = vld.sshfl [vmem:[#allocation1] sm:$0xff pattern:$0x75316420]  ;;  %v5529_v12 = vadd.f32 %v5528_v15, %v5527_v44 }
 0x76d   : > { %v5737_v0 = vsel %vm231_vm0, %v5736_v2, %v5732_v27  ;;  %v5740_v48 = vsub.f32 %v6530_v63, %v5735_v29  ;;  %v5444_v35 = vsub.f32 -18.0, %v5440_v6  ;;  %v5634_v50 = vld.sshfl [vmem:[#allocation1 + $0x8] sm:$0xff pattern:$0x75316420]  ;;  %v5641_v18 = vsel %vm10257_vm6, %v5633_v57, 0.0 }
 0x76e   : > { %v5741_v43 = vsub.f32 %v9587_v45, %v5737_v0  ;;  %v5449_v26 = vmul.f32 1.442695, %v5443_v9  ;;  %v5642_v62 = vrot.slane %v5641_v18, 4  ;;  %v5648_v2 = vsel %vm148_vm2, %v5634_v50, 0.0 }
 0x76f   : > { %v5742_v28 = vmul.f32 %v5740_v48, %v5740_v48  ;;  %4416 = vrot.lane.b32.xlu0 %v4413_v16, %s10218_s24  ;;  %v5451_v29 = vmul.f32 1.442695, %v5444_v35  ;;  %v5649_v10 = vrot.slane %v5648_v2, 4  ;;  %v5636_v49 = vld.sshfl [vmem:[#allocation1 + $0x18] sm:$0xff pattern:$0x75316420]  ;;  %v5420_v32 = vadd.f32 %v5419_v7, %v5418_v20 }
 0x770   : > { %v5743_v27 = vmul.f32 %v5741_v43, %v5741_v43  ;;  %4429 = vrot.lane.b32.xlu1 %v4425_v22, %s6704_s25  ;;  %v5643_v45 = vadd.f32 %v5642_v62, %v5641_v18  ;;  %v5530_v6 = vrot.slane %v5529_v12, 1  ;;  %v5414_v44 = vrot.slane %v5413_v31, 1  ;;  %s6707_s24 = smov 14  }
 0x771   : > { %5746 = vst [vmem:[#allocation1] ss:$2 sm:$0xff] %v5742_v28  ;;  %6455 = vpow2.f32 %v5451_v29  ;;  %v5650_v25 = vadd.f32 %v5649_v10, %v5648_v2  ;;  %v5655_v16 = vsel %vm148_vm2, %v5635_v58, 0.0  ;;  %v5662_v38 = vsel %vm192_vm7, %v5636_v49, 0.0 }
 0x772   : > { %5748 = vst [vmem:[#allocation1 + $0x10] ss:$2 sm:$0xff] %v5743_v27  ;;  %6457 = vpow2.f32 %v5449_v26  ;;  %v5644_v15 = vrot.slane %v5643_v45, 2  ;;  %v5536_v0 = vadd.f32 %v5535_v53, %v5534_v61  ;;  %v5656_v63 = vrot.slane %v5655_v16, 4 }
 0x773   : > { %v5651_v22 = vrot.slane %v5650_v25, 2  ;;  %v5531_v48 = vadd.f32 %v5530_v6, %v5529_v12  ;;  %v5663_v9 = vrot.slane %v5662_v38, 4  ;;  %v5540_v35 = vrot.slane %v5539_v54, 4 }
 0x774   : > { %v5645_v57 = vadd.f32 %v5644_v15, %v5643_v45  ;;  %v5657_v43 = vadd.f32 %v5656_v63, %v5655_v16  ;;  %v10258_v50 = vrot.slane %v9238_v55, 4  ;;  %v4530_v7 = vsel %vm148_vm2, %v9396_v24, %v4528_v33 }
 0x775   : > { %v5652_v58 = vadd.f32 %v5651_v22, %v5650_v25  ;;  %v5664_v18 = vadd.f32 %v5663_v9, %v5662_v38  ;;  %v5537_v61 = vrot.slane %v5536_v0, 1  ;;  %v5415_v28 = vadd.f32 %v5414_v44, %v5413_v31 }
 0x776   : > { %v4529_v20 = vsel %vm148_vm2, %v9234_v41, %v10258_v50  ;;  %v5658_v53 = vrot.slane %v5657_v43, 2  ;;  %v5421_v12 = vrot.slane %v5420_v32, 1  ;;  %v5646_v62 = vrot.slane %v5645_v57, 1 }
 0x777   : > { %4531 = vrot.lane.b32.xlu0 %v4529_v20, %s10259_s3  ;;  %v9652_v26 = vpop.eup %6455  ;;  %v5553_v55 = vmul.f32 49.999973, %v5531_v48  ;;  %v5665_v2 = vrot.slane %v5664_v18, 2  ;;  %v5541_v29 = vadd.f32 %v5540_v35, %v5539_v54  ;;  %v4644_v24 = vrot.slane %v9259_v3, 4 }
 0x778   : > { %4533 = vrot.lane.b32.xlu1 %v4530_v7, %s10259_s3  ;;  %v6458_v27 = vpop.eup %6457  ;;  %v5458_v41 = vrot.slane %v9652_v26, 4  ;;  %v5653_v33 = vrot.slane %v5652_v58, 1  ;;  %v5659_v10 = vadd.f32 %v5658_v53, %v5657_v43  ;;  %v5538_v6 = vadd.f32 %v5537_v61, %v5536_v0  ;;  %s6710_s3 = smov 121  }
 0x779   : > { %v5666_v49 = vadd.f32 %v5665_v2, %v5664_v18  ;;  %v5751_v31 = vld.sshfl [vmem:[#allocation1 + $0x10] sm:$0xff pattern:$0x75316420]  ;;  %v5422_v44 = vadd.f32 %v5421_v12, %v5420_v32  ;;  %v9660_v25 = vmul.f32 49.999973, %v5415_v28  ;;  %v5647_v16 = vadd.f32 %v5646_v62, %v5645_v57 }
 0x77a   : > { %v9658_v45 = vsel %vm148_vm2, %v6458_v27, %v5458_v41  ;;  %v5752_v38 = vld.sshfl [vmem:[#allocation1 + $0x18] sm:$0xff pattern:$0x75316420]  ;;  %v5771_v15 = vsel %vm148_vm2, %v5751_v31, 0.0  ;;  %v5557_v63 = vsub.f32 -20.0, %v5553_v55  ;;  %v9664_v54 = vadd.f32 %v6458_v27, %v9572_v17 }
 0x77b   : > { %v5772_v3 = vrot.slane %v5771_v15, 4  ;;  %v5778_v22 = vsel %vm192_vm7, %v5752_v38, 0.0  ;;  %v5660_v48 = vrot.slane %v5659_v10, 1  ;;  %v5542_v9 = vrot.slane %v5541_v29, 2 }
 0x77c   : > { %v4646_v43 = vsel %vm148_vm2, %v9252_v4, %v4644_v24  ;;  %v5654_v0 = vadd.f32 %v5653_v33, %v5652_v58  ;;  %v5779_v32 = vrot.slane %v5778_v22, 4  ;;  %v5667_v35 = vrot.slane %v5666_v49, 1  ;;  %v5749_v28 = vld.sshfl [vmem:[#allocation1] sm:$0xff pattern:$0x75316420] }
 0x77d   : > { %v5773_v50 = vadd.f32 %v5772_v3, %v5771_v15  ;;  %v5554_v57 = vmul.f32 49.999973, %v5538_v6  ;;  %v5661_v20 = vadd.f32 %v5660_v48, %v5659_v10  ;;  %v5438_v7 = vmul.f32 49.999973, %v5422_v44 }
 0x77e   : > { %v5780_v18 = vadd.f32 %v5779_v32, %v5778_v22  ;;  %v5561_v17 = vmul.f32 1.442695, %v5557_v63  ;;  %v5668_v61 = vadd.f32 %v5667_v35, %v5666_v49  ;;  %v5441_v53 = vsub.f32 -18.0, %v9660_v25  ;;  %v5750_v6 = vld.sshfl [vmem:[#allocation1 + $0x8] sm:$0xff pattern:$0x75316420] }
 0x77f   : > { %v5669_v12 = vmul.f32 49.999973, %v5647_v16  ;;  %v5774_v62 = vrot.slane %v5773_v50, 2  ;;  %v5671_v55 = vmul.f32 49.999973, %v5661_v20  ;;  %v5543_v2 = vadd.f32 %v5542_v9, %v5541_v29 }
 0x780   : > { %4648 = vrot.lane.b32.xlu1 %v4646_v43, %s10260_s14  ;;  %v5670_v4 = vmul.f32 49.999973, %v5654_v0  ;;  %v5781_v58 = vrot.slane %v5780_v18, 2  ;;  %v5672_v27 = vmul.f32 49.999973, %v5668_v61  ;;  %v5546_v41 = vsel %vm192_vm7, %v9614_v13, 0.0 }
 0x781   : > { %v5775_v24 = vadd.f32 %v5774_v62, %v5773_v50  ;;  %v5558_v33 = vsub.f32 -20.0, %v5554_v57  ;;  %v5675_v10 = vsub.f32 -26.0, %v5671_v55  ;;  %v5544_v31 = vrot.slane %v5543_v2, 1 }
 0x782   : > { %v5782_v44 = vadd.f32 %v5781_v58, %v5780_v18  ;;  %v5676_v49 = vsub.f32 -26.0, %v5672_v27  ;;  %v5547_v38 = vrot.slane %v5546_v41, 4  ;;  %v5757_v25 = vsel %vm10261_vm5, %v5749_v28, 0.0 }
 0x783   : > { %v5776_v16 = vrot.slane %v5775_v24, 1  ;;  %v5681_v15 = vmul.f32 1.442695, %v5675_v10  ;;  %v5545_v63 = vadd.f32 %v5544_v31, %v5543_v2  ;;  %v5758_v29 = vrot.slane %v5757_v25, 4 }
 0x784   : > { %v5783_v3 = vrot.slane %v5782_v44, 1  ;;  %v5683_v22 = vmul.f32 1.442695, %v5676_v49  ;;  %v5548_v48 = vadd.f32 %v5547_v38, %v5546_v41  ;;  %v5764_v9 = vsel %vm148_vm2, %v5750_v6, 0.0 }
 0x785   : > { %v5673_v13 = vsub.f32 -26.0, %v5669_v12  ;;  %v5777_v43 = vadd.f32 %v5776_v16, %v5775_v24  ;;  %v5555_v0 = vmul.f32 49.999973, %v5545_v63  ;;  %v5759_v32 = vadd.f32 %v5758_v29, %v5757_v25 }
 0x786   : > { %v5784_v35 = vadd.f32 %v5783_v3, %v5782_v44  ;;  %6459 = vpow2.f32 %v5683_v22  ;;  %v5549_v50 = vrot.slane %v5548_v48, 2  ;;  %v5765_v57 = vrot.slane %v5764_v9, 4 }
 0x787   : > { %v5787_v20 = vmul.f32 49.999973, %v5777_v43  ;;  %v5559_v18 = vsub.f32 -20.0, %v5555_v0  ;;  %v5760_v61 = vrot.slane %v5759_v32, 2  ;;  %v9677_v28 = vadd.f32 %v9652_v26, %v9577_v5 }
 0x788   : > { %6461 = vpow2.f32 %v5681_v15  ;;  %v5442_v62 = vsub.f32 -18.0, %v5438_v7  ;;  %v5550_v55 = vadd.f32 %v5549_v50, %v5548_v48  ;;  %v5766_v2 = vadd.f32 %v5765_v57, %v5764_v9 }
 0x789   : > { %v5674_v58 = vsub.f32 -26.0, %v5670_v4  ;;  %v5563_v12 = vmul.f32 1.442695, %v5558_v33  ;;  %v5565_v27 = vmul.f32 1.442695, %v5559_v18  ;;  %v5761_v41 = vadd.f32 %v5760_v61, %v5759_v32 }
 0x78a   : > { %v5788_v24 = vmul.f32 49.999973, %v5784_v35  ;;  %v5445_v10 = vmul.f32 1.442695, %v5441_v53  ;;  %v5551_v31 = vrot.slane %v5550_v55, 1  ;;  %v5767_v6 = vrot.slane %v5766_v2, 2 }
 0x78b   : > { %v5677_v44 = vmul.f32 1.442695, %v5673_v13  ;;  %v5791_v49 = vsub.f32 -36.0, %v5787_v20  ;;  %6463 = vpow2.f32 %v5565_v27  ;;  %v5762_v38 = vrot.slane %v5761_v41, 1 }
 0x78c   : > { %v6460_v25 = vpop.eup %6459  ;;  %6465 = vpow2.f32 %v5561_v17  ;;  %v5447_v5 = vmul.f32 1.442695, %v5442_v62  ;;  %v5552_v26 = vadd.f32 %v5551_v31, %v5550_v55  ;;  %v5768_v16 = vadd.f32 %v5767_v6, %v5766_v2 }
 0x78d   : > { %v5679_v7 = vmul.f32 1.442695, %v5674_v58  ;;  %6467 = vpow2.f32 %v5563_v12  ;;  %v5690_v15 = vrot.slane %v6460_v25, 4  ;;  %v5763_v4 = vadd.f32 %v5762_v38, %v5761_v41 }
 0x78e   : > { %v6462_v33 = vpop.eup %6461  ;;  %v5792_v63 = vsub.f32 -36.0, %v5788_v24  ;;  %6469 = vpow2.f32 %v5445_v10  ;;  %v5556_v29 = vmul.f32 49.999973, %v5552_v26  ;;  %v5769_v53 = vrot.slane %v5768_v16, 1 }
 0x78f   : > { %6471 = vpow2.f32 %v5677_v44  ;;  %v5797_v3 = vmul.f32 1.442695, %v5791_v49  ;;  %v9680_v22 = vsel %vm148_vm2, %v6462_v33, %v5690_v15  ;;  %v5785_v48 = vmul.f32 49.999973, %v5763_v4 }
 0x790   : > { %6473 = vpow2.f32 %v5447_v5  ;;  %v5560_v17 = vsub.f32 -20.0, %v5556_v29  ;;  %v5770_v9 = vadd.f32 %v5769_v53, %v5768_v16  ;;  %v5799_v32 = vmul.f32 1.442695, %v5792_v63 }
 0x791   : > { %v6464_v13 = vpop.eup %6463  ;;  %6475 = vpow2.f32 %v5679_v7  ;;  %v5789_v43 = vsub.f32 -36.0, %v5785_v48  ;;  %vm4319_vm7 = vcmask 146432   ;;  %vm10274_vm15 = vcmask 367616  }
 0x792   : > { %v9682_v0 = vpop.eup %6465  ;;  %v5567_v35 = vmul.f32 1.442695, %v5560_v17  ;;  %v5786_v50 = vmul.f32 49.999973, %v5770_v9  ;;  %v5607_v57 = vadd.f32 %v6464_v13, %v9664_v54  ;;  %6477 = vpow2.f32 %v5797_v3  ;;  %vm10279_vm14 = vmmov %vm10274_vm15 }
 0x793   : > { %v9685_v20 = vpop.eup %6467  ;;  %v5793_v18 = vmul.f32 1.442695, %v5789_v43  ;;  %vm4553_vm13 = vcmask 130048   ;;  %vm10282_vm10 = vcmask 375808   ;;  %vm10289_vm3 = vcmask 384000  }
 0x794   : > { %v9687_v61 = vpop.eup %6469  ;;  %6479 = vpow2.f32 %v5567_v35  ;;  %v5790_v62 = vsub.f32 -36.0, %v5786_v50  ;;  %v5723_v55 = vadd.f32 %v6462_v33, %v5607_v57  ;;  %vm10290_vm6 = vcmask 515072  }
 0x795   : > { %v9689_v2 = vpop.eup %6471  ;;  %6481 = vpow2.f32 %v5793_v18  ;;  %v5489_v54 = vadd.f32 %v9687_v61, %v9552_v23  ;;  %vm4670_vm5 = vcmask 121856  }
 0x796   : > { %v9691_v58 = vpop.eup %6473  ;;  %6483 = vpow2.f32 %v5799_v32  ;;  %v5795_v12 = vmul.f32 1.442695, %v5790_v62 }
 0x797   : > { %v9693_v27 = vpop.eup %6475  ;;  %v5490_v24 = vadd.f32 %v9691_v58, %v9558_v34  ;;  %v5605_v31 = vadd.f32 %v9682_v0, %v5489_v54 }
 0x798   : > { %6485 = vpow2.f32 %v5795_v12  ;;  %v9697_v41 = vpop.eup %6477 }
 0x799   : > { %v5606_v38 = vadd.f32 %v9685_v20, %v5490_v24  ;;  %v5721_v26 = vadd.f32 %v9689_v2, %v5605_v31  ;;  %v5839_v34 = vadd.f32 %v9697_v41, %v5723_v55 }
 0x79a   : > { %v6480_v10 = vpop.eup %6479 }
 0x79b   : > { %v9702_v6 = vpop.eup %6481  ;;  %v5574_v44 = vrot.slane %v6480_v10, 4  ;;  %v5608_v49 = vadd.f32 %v6480_v10, %v9677_v28  ;;  %v5722_v7 = vadd.f32 %v9693_v27, %v5606_v38  ;;  %v5843_v63 = vadd.f32 1e-08, %v5839_v34  ;;  %v9737_v34 = vld [vmem:[%s6814_s22 + $0x8] sm:$0xff] }
 0x79c   : > { %v9706_v5 = vpop.eup %6483  ;;  %v5837_v4 = vadd.f32 %v9702_v6, %v5721_v26  ;;  %v10262_v38 = vrot.slane %v9594_v21, 4 }
 0x79d   : > { %v9710_v23 = vsel %vm148_vm2, %v6464_v13, %v5574_v44  ;;  %v5724_v16 = vadd.f32 %v6460_v25, %v5608_v49 }
 0x79e   : > { %v9714_v15 = vpop.eup %6485  ;;  %v5841_v3 = vadd.f32 1e-08, %v5837_v4 }
 0x79f   : > { %v5840_v28 = vadd.f32 %v9706_v5, %v5724_v16  ;;  %v5838_v33 = vadd.f32 %v9714_v15, %v5722_v7 }
 0x7a1   : > { %v5844_v29 = vadd.f32 1e-08, %v5840_v28  ;;  %v5842_v53 = vadd.f32 1e-08, %v5838_v33 }
 0x7a3   : > { %6487 = vrcp.f32 %v5844_v29 }
 0x7a4   : > { %6489 = vrcp.f32 %v5842_v53 }
 0x7a5   : > { %6491 = vrcp.f32 %v5843_v63 }
 0x7a6   : > { %6493 = vrcp.f32 %v5841_v3 }
 0x7a9   : > { %v6488_v25 = vpop.eup %6487 }
 0x7aa   : > { %v6490_v48 = vpop.eup %6489  ;;  %v5854_v17 = vrot.slane %v6488_v25, 4 }
 0x7ab   : > { %v6492_v9 = vpop.eup %6491  ;;  %v5853_v13 = vrot.slane %v6490_v48, 4  ;;  %v4645_v48 = vrot.slane %v9409_v37, 4 }
 0x7ac   : > { %v6494_v43 = vpop.eup %6493  ;;  %v9720_v32 = vsel %vm148_vm2, %v6492_v9, %v5854_v17 }
 0x7ad   : > { %v9723_v35 = vsel %vm148_vm2, %v6494_v43, %v5853_v13  ;;  %v4647_v13 = vsel %vm148_vm2, %v9404_v19, %v4645_v48  ;;  %v4761_v43 = vrot.slane %v9473_v14, 4  ;;  %v4878_v19 = vrot.slane %v9489_v36, 4 }
 0x7ae   : > { %v4995_v14 = vrot.slane %v9516_v52, 4  ;;  %v5342_v36 = vrot.slane %v9554_v46, 4 }
 0x7d9   : > { %v4313_v50 = vpop.permute.xlu0 %4312 }
 0x7da   : > { %v4316_v57 = vrot.slane %v4313_v50, 4  ;;  %v4315_v18 = vpop.permute.xlu1 %4314 }
 0x7db   : > { %v4317_v62 = vrot.slane %v4315_v18, 4 }
 0x7dd   : > { %v4318_v55 = vsel %vm148_vm2, %v4316_v57, %v4317_v62  ;;  %v4321_v12 = vsel %vm4319_vm7, %v4315_v18, %v4317_v62  ;;  %v4763_v57 = vsel %vm148_vm2, %v9468_v11, %v4761_v43  ;;  %v5113_v11 = vrot.slane %v9530_v40, 4  ;;  %v10278_v43 = vld [vmem:[#allocation16_spill] sm:$0xff] }
 0x7de   : > { %v4320_v54 = vsel %vm4319_vm7, %v4313_v50, %v4318_v55  ;;  %v9727_v24 = vadd.f32 %v4321_v12, %v9600_v42  ;;  %v4762_v50 = vrot.slane %v9422_v56, 4  ;;  %v4997_v56 = vsel %vm148_vm2, %v9510_v1, %v4995_v14 }
 0x7df   : > { %v9730_v10 = vadd.f32 %v4320_v54, %v9604_v51  ;;  %v5689_v1 = vrot.slane %v9693_v27, 4  ;;  %vm4787_vm7 = vcmask 113664  }
 0x7e0   : > { %v4764_v37 = vsel %vm148_vm2, %v9415_v59, %v4762_v50  ;;  %v5115_v59 = vsel %vm148_vm2, %v9522_v8, %v5113_v11  ;;  %v5806_v8 = vrot.slane %v9706_v5, 4  ;;  %v5227_v50 = vrot.slane %v10278_v43, 4 }
 0x7e1   : > { %v4417_v31 = vpop.permute.xlu0 %4416  ;;  %v5691_v52 = vsel %vm148_vm2, %v9689_v2, %v5689_v1 }
 0x7e2   : > { %v4419_v44 = vrot.slane %v4417_v31, 4  ;;  %v4430_v49 = vpop.permute.xlu1 %4429  ;;  %v5808_v40 = vsel %vm148_vm2, %v9697_v41, %v5806_v8 }
 0x7e3   : > { %v4433_v46 = vrot.slane %v4430_v49, 4 }
 0x7e4   : > { %v4421_v26 = vsel %vm148_vm2, %v10262_v38, %v4419_v44 }
 0x7e5   : > { %v4422_v16 = vsel %vm10263_vm9, %v4421_v26, %v4417_v31  ;;  %vm10292_vm9 = vmmov %vm10282_vm10 }
 0x7e6   : > { %v4426_v7 = vmul.f32 %v9737_v34, %v4422_v16 }
 0x7e8   : > { %4431 = vrot.lane.b32.xlu2 %v4426_v7, %s6704_s25  ;;  %s10301_s25 = smov 122  }
 0x7e9   : > { %v4532_v42 = vpop.permute.xlu0 %4531 }
 0x7ea   : > { %v4535_v4 = vrot.slane %v4532_v42, 4  ;;  %v4534_v28 = vpop.permute.xlu1 %4533 }
 0x7eb   : > { %v4536_v51 = vrot.slane %v4534_v28, 4 }
 0x7ec   : > { %v4537_v33 = vsel %vm10264_vm12, %v4535_v4, %v4532_v42  ;;  %vm10293_vm12 = vmmov %vm10289_vm3 }
 0x7ed   : > { %v4542_v63 = vmul.f32 %v9621_v60, %v4537_v33  ;;  %v4538_v21 = vsel %vm148_vm2, %v4535_v4, %v4536_v51  ;;  %v4879_v4 = vrot.slane %v9455_v39, 4 }
 0x7ee   : > { %v4539_v29 = vsel %vm10265_vm1, %v4538_v21, %v4534_v28  ;;  %vm10294_vm1 = vmmov %vm10290_vm6 }
 0x7ef   : > { %v4543_v53 = vmul.f32 %v9737_v34, %v4539_v29  ;;  %v10275_v29 = vld [vmem:[#allocation21_spill] sm:$0xff] }
 0x7f0   : > { %4546 = vrot.lane.b32.xlu2 %v4542_v63, %s6705_s26 }
 0x7f1   : > { %4548 = vrot.lane.b32.xlu0 %v4543_v53, %s6705_s26  ;;  %v4881_v53 = vsel %vm148_vm2, %v10275_v29, %v4879_v4  ;;  %s6712_s26 = smov 119  }
 0x7f2   : > { %v4649_v3 = vpop.permute.xlu1 %4648 }
 0x7f3   : > { %v4652_v25 = vrot.slane %v4649_v3, 4 }
 0x7f5   : > { %v4654_v17 = vsel %vm10266_vm4, %v4652_v25, %v4649_v3  ;;  %vm10295_vm4 = vcmask 523264  }
 0x7f6   : > { %v4659_v9 = vmul.f32 %v9621_v60, %v4654_v17  ;;  %v4880_v60 = vsel %vm148_vm2, %v9487_v47, %v4878_v19  ;;  %v5344_v47 = vsel %vm148_vm2, %v9542_v30, %v5342_v36  ;;  %v10277_v17 = vld [vmem:[#allocation26_spill] sm:$0xff] }
 0x7f8   : > { %4650 = vrot.lane.b32.xlu2 %v4647_v13, %s10260_s14  ;;  %s6711_s14 = smov 120  }
 0x7f9   : > { %4663 = vrot.lane.b32.xlu0 %v4659_v9, %s6706_s30 }
 0x800   : > { %4765 = vrot.lane.b32.xlu2 %v4763_v57, %s10267_s13 }
 0x801   : > { %4767 = vrot.lane.b32.xlu0 %v4764_v37, %s10267_s13 }
 0x809   : > { %4882 = vrot.lane.b32.xlu0 %v4880_v60, %s10268_s21  ;;  %v10280_v60 = vld [vmem:[#allocation9_spill] sm:$0xff] }
 0x80a   : > { %v5229_v14 = vsel %vm148_vm2, %v10280_v60, %v5227_v50 }
 0x811   : > { %4999 = vrot.lane.b32.xlu0 %v4997_v56, %s10269_s2 }
 0x819   : > { %5118 = vrot.lane.b32.xlu0 %v5115_v59, %s10215_s5  ;;  %v10281_v59 = vld [vmem:[#allocation18_spill] sm:$0xff] }
 0x81a   : > { %v5343_v36 = vrot.slane %v10281_v59, 4 }
 0x821   : > { %5346 = vrot.lane.b32.xlu0 %v5344_v47, %s10210_s17 }
 0x829   : > { %5463 = vrot.lane.b32.xlu0 %v9658_v45, %s10270_s4 }
 0x831   : > { %5693 = vrot.lane.b32.xlu0 %v5691_v52, %s10271_s11  ;;  %v10283_v52 = vld [vmem:[#allocation17_spill] sm:$0xff] }
 0x832   : > { %v5345_v8 = vsel %vm148_vm2, %v10283_v52, %v5343_v36  ;;  %v9868_v36 = vld [vmem:[%s6814_s22 + $0x4] sm:$0xff] }
 0x839   : > { %5811 = vrot.lane.b32.xlu0 %v5808_v40, %s10272_s20  ;;  %v5573_v40 = vrot.slane %v9685_v20, 4 }
 0x842   : > { %v4432_v30 = vpop.permute.xlu2 %4431 }
 0x843   : > { %v4434_v18 = vrot.slane %v4432_v30, 4 }
 0x845   : > { %v4435_v45 = vsel %vm148_vm2, %v4433_v46, %v4434_v18  ;;  %v4438_v27 = vsel %vm4436_vm8, %v4432_v30, %v4434_v18  ;;  %v10284_v30 = vld [vmem:[#allocation10_spill] sm:$0xff]  ;;  %v5575_v18 = vsel %vm148_vm2, %v9682_v0, %v5573_v40 }
 0x846   : > { %v4437_v62 = vsel %vm4436_vm8, %v4430_v49, %v4435_v45  ;;  %v4442_v2 = vadd.f32 %v4438_v27, %v9727_v24  ;;  %v6532_v49 = vld [vmem:[%s6814_s22] sm:$0xff]  ;;  %v5112_v46 = vrot.slane %v10284_v30, 4  ;;  %v10286_v45 = vld [vmem:[#allocation8_spill] sm:$0xff]  ;;  %vm10296_vm8 = vmmov %vm10295_vm4 }
 0x847   : > { %v4441_v55 = vadd.f32 %v4437_v62, %v9730_v10  ;;  %v10287_v62 = vld [vmem:[#allocation12_spill] sm:$0xff] }
 0x848   : > { %v5114_v27 = vsel %vm148_vm2, %v10286_v45, %v5112_v46 }
 0x84a   : > { %v4547_v12 = vpop.permute.xlu2 %4546 }
 0x84b   : > { %v4550_v10 = vrot.slane %v4547_v12, 4 }
 0x852   : > { %v4651_v5 = vpop.permute.xlu2 %4650 }
 0x853   : > { %v4653_v54 = vrot.slane %v4651_v5, 4 }
 0x855   : > { %v4655_v41 = vsel %vm148_vm2, %v4652_v25, %v4653_v54  ;;  %v10276_v25 = vld [vmem:[#allocation23_spill] sm:$0xff]  ;;  %v5805_v54 = vrot.slane %v9714_v15, 4 }
 0x856   : > { %v4656_v31 = vsel %vm10273_vm11, %v4655_v41, %v4651_v5  ;;  %v4996_v48 = vrot.slane %v10276_v25, 4  ;;  %vm10298_vm11 = vcmask 531456  }
 0x857   : > { %v4660_v44 = vmul.f32 %v9737_v34, %v4656_v31  ;;  %v5807_v41 = vsel %vm148_vm2, %v9702_v6, %v5805_v54 }
 0x858   : > { %v4998_v9 = vsel %vm148_vm2, %v10277_v17, %v4996_v48 }
 0x859   : > { %4665 = vrot.lane.b32.xlu1 %v4660_v44, %s6706_s30  ;;  %s6713_s30 = smov 118  }
 0x85a   : > { %v4766_v38 = vpop.permute.xlu2 %4765 }
 0x85b   : > { %v4769_v26 = vrot.slane %v4766_v38, 4 }
 0x85d   : > { %v4771_v16 = vsel %vm10274_vm15, %v4769_v26, %v4766_v38  ;;  %vm10299_vm15 = vmmov %vm10298_vm11 }
 0x85e   : > { %v4776_v7 = vmul.f32 %v6532_v49, %v4771_v16 }
 0x861   : > { %4780 = vrot.lane.b32.xlu1 %v4776_v7, %s6707_s24 }
 0x863   : > { %v4549_v24 = vpop.permute.xlu0 %4548 }
 0x864   : > { %v4551_v42 = vrot.slane %v4549_v24, 4 }
 0x866   : > { %v4552_v28 = vsel %vm148_vm2, %v4550_v10, %v4551_v42  ;;  %v4555_v51 = vsel %vm4553_vm13, %v4549_v24, %v4551_v42 }
 0x867   : > { %v4554_v33 = vsel %vm4553_vm13, %v4547_v12, %v4552_v28  ;;  %v9798_v63 = vadd.f32 %v4555_v51, %v4442_v2  ;;  %v5228_v2 = vrot.slane %v10287_v62, 4  ;;  %v5457_v12 = vrot.slane %v9691_v58, 4 }
 0x868   : > { %v4558_v21 = vadd.f32 %v4554_v33, %v4441_v55  ;;  %v10288_v55 = vld [vmem:[#allocation11_spill] sm:$0xff]  ;;  %vm10300_vm13 = vcmask 539648  }
 0x869   : > { %4884 = vrot.lane.b32.xlu1 %v4881_v53, %s10268_s21  ;;  %v5230_v20 = vsel %vm148_vm2, %v10288_v55, %v5228_v2  ;;  %v5459_v0 = vsel %vm148_vm2, %v9687_v61, %v5457_v12 }
 0x86b   : > { %v4664_v3 = vpop.permute.xlu0 %4663 }
 0x86c   : > { %v4667_v16 = vrot.slane %v4664_v3, 4 }
 0x871   : > { %5001 = vrot.lane.b32.xlu1 %v4998_v9, %s10269_s2 }
 0x873   : > { %v4768_v39 = vpop.permute.xlu0 %4767 }
 0x874   : > { %v4770_v13 = vrot.slane %v4768_v39, 4 }
 0x876   : > { %v4772_v57 = vsel %vm148_vm2, %v4769_v26, %v4770_v13 }
 0x877   : > { %v4773_v37 = vsel %vm10279_vm14, %v4772_v57, %v4768_v39  ;;  %vm10302_vm14 = vmmov %vm10300_vm13 }
 0x878   : > { %v4777_v19 = vmul.f32 %v9737_v34, %v4773_v37 }
 0x879   : > { %5231 = vrot.lane.b32.xlu1 %v5229_v14, %s10213_s28 }
 0x87a   : > { %4782 = vrot.lane.b32.xlu2 %v4777_v19, %s6707_s24 }
 0x87b   : > { %v4883_v56 = vpop.permute.xlu0 %4882 }
 0x87c   : > { %v4886_v11 = vrot.slane %v4883_v56, 4 }
 0x87e   : > { %v4888_v47 = vsel %vm10282_vm10, %v4886_v11, %v4883_v56  ;;  %vm10303_vm10 = vcmask 547840  }
 0x87f   : > { %v4893_v1 = vmul.f32 %v6532_v49, %v4888_v47 }
 0x881   : > { %5348 = vrot.lane.b32.xlu1 %v5345_v8, %s10210_s17  ;;  %s6709_s17 = smov 12  }
 0x882   : > { %4897 = vrot.lane.b32.xlu2 %v4893_v1, %s6708_s27 }
 0x883   : > { %v5000_v5 = vpop.permute.xlu0 %4999 }
 0x889   : > { %5577 = vrot.lane.b32.xlu1 %v5575_v18, %s10285_s23 }
 0x88a   : > { %5116 = vrot.lane.b32.xlu2 %v5114_v27, %s10215_s5  ;;  %s10297_s5 = smov 123  }
 0x88b   : > { %v5119_v31 = vpop.permute.xlu0 %5118 }
 0x88c   : > { %v5121_v38 = vrot.slane %v5119_v31, 4 }
 0x88e   : > { %v5124_v61 = vsel %vm10290_vm6, %v5119_v31, %v5121_v38  ;;  %vm10305_vm6 = vcmask 556032  }
 0x891   : > { %5695 = vrot.lane.b32.xlu1 %v9680_v22, %s10271_s11  ;;  %v5003_v22 = vrot.slane %v5000_v5, 4 }
 0x892   : > { %5233 = vrot.lane.b32.xlu2 %v5230_v20, %s10213_s28  ;;  %s10291_s28 = smov 124  }
 0x893   : > { %v5005_v58 = vsel %vm10289_vm3, %v5003_v22, %v5000_v5  ;;  %v5347_v50 = vpop.permute.xlu0 %5346  ;;  %vm10304_vm3 = vmmov %vm10303_vm10 }
 0x894   : > { %v5010_v44 = vmul.f32 %v6532_v49, %v5005_v58  ;;  %v5350_v55 = vrot.slane %v5347_v50, 4 }
 0x89a   : > { %5461 = vrot.lane.b32.xlu2 %v5459_v0, %s10270_s4 }
 0x89b   : > { %v5464_v30 = vpop.permute.xlu0 %5463 }
 0x89c   : > { %v5466_v0 = vrot.slane %v5464_v30, 4 }
 0x8a2   : > { %5579 = vrot.lane.b32.xlu2 %v9710_v23, %s10285_s23  ;;  %v6533_v23 = vld [vmem:[%s6814_s22 + $0xc] sm:$0xf] }
 0x8a3   : > { %v5128_v26 = vmul.f32 %v6533_v23, %v5124_v61  ;;  %v5694_v31 = vpop.permute.xlu0 %5693  ;;  %v6536_v61 = vld [vmem:[%s6814_s22 + $0xc] sm:$0xf] }
 0x8aa   : > { %5809 = vrot.lane.b32.xlu2 %v5807_v41, %s10272_s20  ;;  %s5874_s20 = scalar_lea.sflag [#allocation4], %s6810_s16 }
 0x8b2   : > { %5014 = vrot.lane.b32.xlu2 %v5010_v44, %s6709_s17 }
 0x8ba   : > { %5133 = vrot.lane.b32.xlu2 %v5128_v26, %s10291_s28 }
 0x8cb   : > { %v4666_v15 = vpop.permute.xlu1 %4665 }
 0x8cc   : > { %v4668_v6 = vrot.slane %v4666_v15, 4 }
 0x8ce   : > { %v4669_v7 = vsel %vm148_vm2, %v4667_v16, %v4668_v6  ;;  %v4672_v24 = vsel %vm4670_vm5, %v4666_v15, %v4668_v6 }
 0x8cf   : > { %v4671_v10 = vsel %vm4670_vm5, %v4664_v3, %v4669_v7  ;;  %v4676_v49 = vadd.f32 %v4672_v24, %v9798_v63  ;;  %v5469_v7 = vsel %vm10302_vm14, %v5464_v30, %v5466_v0  ;;  %vm10306_vm5 = vmmov %vm10305_vm6  ;;  %vm5715_vm14 = vcmask 973824  }
 0x8d0   : > { %v4675_v42 = vadd.f32 %v4671_v10, %v4558_v21 }
 0x8d3   : > { %v4781_v4 = vpop.permute.xlu1 %4780 }
 0x8d4   : > { %v4784_v28 = vrot.slane %v4781_v4, 4  ;;  %v4783_v51 = vpop.permute.xlu2 %4782 }
 0x8d5   : > { %v4785_v33 = vrot.slane %v4783_v51, 4 }
 0x8d7   : > { %v4786_v29 = vsel %vm148_vm2, %v4784_v28, %v4785_v33  ;;  %v4789_v53 = vsel %vm4787_vm7, %v4783_v51, %v4785_v33  ;;  %v6538_v28 = vld [vmem:[%s6814_s22 + $0xc] sm:$0xf] }
 0x8d8   : > { %v4788_v25 = vsel %vm4787_vm7, %v4781_v4, %v4786_v29  ;;  %v9852_v48 = vadd.f32 %v4789_v53, %v4676_v49  ;;  %v5812_v53 = vpop.permute.xlu0 %5811  ;;  %vm10307_vm7 = vcmask 564224  }
 0x8d9   : > { %v9854_v17 = vadd.f32 %v4788_v25, %v4675_v42  ;;  %v6537_v42 = vld [vmem:[%s6814_s22 + $0xc] sm:$0xf] }
 0x8da   : > { %v5473_v4 = vmul.f32 %v6537_v42, %v5469_v7 }
 0x8db   : > { %v4885_v9 = vpop.permute.xlu1 %4884 }
 0x8dc   : > { %v4887_v39 = vrot.slane %v4885_v9, 4  ;;  %v9856_v3 = vpop.permute.xlu2 %4897 }
 0x8de   : > { %v4889_v63 = vsel %vm148_vm2, %v4886_v11, %v4887_v39 }
 0x8df   : > { %v4890_v21 = vsel %vm10292_vm9, %v4889_v63, %v4885_v9  ;;  %v5697_v9 = vrot.slane %v5694_v31, 4  ;;  %vm10308_vm9 = vmmov %vm10307_vm7 }
 0x8e0   : > { %v4894_v13 = vmul.f32 %v9737_v34, %v4890_v21  ;;  %v5814_v21 = vrot.slane %v5812_v53, 4 }
 0x8e2   : > { %4899 = vrot.lane.b32.xlu1 %v4894_v13, %s6708_s27 }
 0x8e3   : > { %v5002_v43 = vpop.permute.xlu1 %5001 }
 0x8e4   : > { %v5004_v57 = vrot.slane %v5002_v43, 4  ;;  %v5117_v37 = vpop.permute.xlu2 %5116 }
 0x8e5   : > { %v5120_v19 = vrot.slane %v5117_v37, 4 }
 0x8e6   : > { %v5006_v60 = vsel %vm148_vm2, %v5003_v22, %v5004_v57 }
 0x8e7   : > { %v5007_v14 = vsel %vm10293_vm12, %v5006_v60, %v5002_v43  ;;  %v5122_v56 = vsel %vm148_vm2, %v5120_v19, %v5121_v38  ;;  %vm4904_vm12 = vcmask 105472  }
 0x8e8   : > { %v5011_v11 = vmul.f32 %v9737_v34, %v5007_v14  ;;  %v5123_v59 = vsel %vm10294_vm1, %v5117_v37, %v5122_v56  ;;  %v6535_v34 = vld [vmem:[%s6814_s22 + $0xc] sm:$0xf]  ;;  %vm5021_vm1 = vcmask 97280  }
 0x8e9   : > { %v5127_v47 = vmul.f32 %v9868_v36, %v5123_v59  ;;  %v6539_v14 = vld [vmem:[%s6814_s22 + $0xc] sm:$0xf]  ;;  %v5817_v59 = vsel %vm10308_vm9, %v5812_v53, %v5814_v21 }
 0x8ea   : > { %5016 = vrot.lane.b32.xlu0 %v5011_v11, %s6709_s17 }
 0x8eb   : > { %5131 = vrot.lane.b32.xlu1 %v5127_v47, %s10291_s28  ;;  %v5232_v1 = vpop.permute.xlu1 %5231  ;;  %v6540_v47 = vld [vmem:[%s6814_s22 + $0xc] sm:$0xf]  ;;  %s5972_s22 = smul.u32 12, %s6810_s16  ;;  %s6591_s28 = scalar_lea.hbm %s9965_s1, 24 }
 0x8ec   : > { %v5235_v52 = vrot.slane %v5232_v1, 4  ;;  %v5234_v8 = vpop.permute.xlu2 %5233 }
 0x8ed   : > { %v5236_v40 = vrot.slane %v5234_v8, 4 }
 0x8ef   : > { %v5237_v46 = vsel %vm148_vm2, %v5235_v52, %v5236_v40  ;;  %v5239_v18 = vsel %vm10295_vm4, %v5234_v8, %v5236_v40  ;;  %vm10309_vm4 = vcmask 1014784  }
 0x8f0   : > { %v5243_v45 = vmul.f32 %v6535_v34, %v5239_v18  ;;  %v5238_v27 = vsel %vm10296_vm8, %v5232_v1, %v5237_v46  ;;  %v5821_v1 = vmul.f32 %v6540_v47, %v5817_v59  ;;  %vm10310_vm8 = vcmask 1006592  }
 0x8f1   : > { %v5242_v62 = vmul.f32 %v9868_v36, %v5238_v27  ;;  %v4901_v27 = vrot.slane %v9856_v3, 4 }
 0x8f3   : > { %5248 = vrot.lane.b32.xlu1 %v5243_v45, %s10297_s5  ;;  %5246 = vrot.lane.b32.xlu0 %v5242_v62, %s10297_s5  ;;  %v5349_v2 = vpop.permute.xlu1 %5348 }
 0x8f4   : > { %v5351_v20 = vrot.slane %v5349_v2, 4  ;;  %v5462_v12 = vpop.permute.xlu2 %5461 }
 0x8f5   : > { %v5465_v5 = vrot.slane %v5462_v12, 4 }
 0x8f6   : > { %v5352_v54 = vsel %vm148_vm2, %v5350_v55, %v5351_v20  ;;  %v5354_v22 = vsel %vm10298_vm11, %v5349_v2, %v5351_v20  ;;  %vm10311_vm11 = vcmask 998400  }
 0x8f7   : > { %v5467_v41 = vsel %vm148_vm2, %v5465_v5, %v5466_v0  ;;  %v5353_v58 = vsel %vm10299_vm15, %v5347_v50, %v5352_v54  ;;  %v5358_v23 = vmul.f32 %v6536_v61, %v5354_v22  ;;  %vm5483_vm15 = vcmask 990208  }
 0x8f8   : > { %v5468_v44 = vsel %vm10300_vm13, %v5462_v12, %v5467_v41  ;;  %v5357_v38 = vmul.f32 %v9868_v36, %v5353_v58  ;;  %vm5599_vm13 = vcmask 982016  }
 0x8f9   : > { %v5472_v26 = vmul.f32 %v9868_v36, %v5468_v44 }
 0x8fa   : > { %5361 = vrot.lane.b32.xlu2 %v5357_v38, %s10301_s25 }
 0x8fb   : > { %5476 = vrot.lane.b32.xlu1 %v5472_v26, %s6710_s3  ;;  %5363 = vrot.lane.b32.xlu0 %v5358_v23, %s10301_s25  ;;  %v5578_v15 = vpop.permute.xlu1 %5577 }
 0x8fc   : > { %v5581_v16 = vrot.slane %v5578_v15, 4  ;;  %v5580_v6 = vpop.permute.xlu2 %5579 }
 0x8fd   : > { %v5582_v24 = vrot.slane %v5580_v6, 4 }
 0x8ff   : > { %v5583_v10 = vsel %vm148_vm2, %v5581_v16, %v5582_v24  ;;  %v5585_v49 = vsel %vm10303_vm10, %v5580_v6, %v5582_v24  ;;  %vm5831_vm10 = vcmask 965632  }
 0x900   : > { %v5589_v51 = vmul.f32 %v6538_v28, %v5585_v49  ;;  %v5584_v33 = vsel %vm10304_vm3, %v5578_v15, %v5583_v10  ;;  %vm5871_vm3 = vcmask 732160  }
 0x901   : > { %v5588_v29 = vmul.f32 %v9868_v36, %v5584_v33 }
 0x902   : > { %5478 = vrot.lane.b32.xlu2 %v5473_v4, %s6710_s3 }
 0x903   : > { %5594 = vrot.lane.b32.xlu1 %v5589_v51, %s6711_s14  ;;  %5592 = vrot.lane.b32.xlu0 %v5588_v29, %s6711_s14  ;;  %v5696_v25 = vpop.permute.xlu1 %5695 }
 0x904   : > { %v5698_v39 = vrot.slane %v5696_v25, 4  ;;  %v5810_v63 = vpop.permute.xlu2 %5809 }
 0x905   : > { %v5813_v13 = vrot.slane %v5810_v63, 4 }
 0x906   : > { %v5699_v43 = vsel %vm148_vm2, %v5697_v9, %v5698_v39  ;;  %v5701_v50 = vsel %vm10305_vm6, %v5696_v25, %v5698_v39 }
 0x907   : > { %v5815_v57 = vsel %vm148_vm2, %v5813_v13, %v5814_v21  ;;  %v5700_v37 = vsel %vm10306_vm5, %v5694_v31, %v5699_v43  ;;  %v5705_v56 = vmul.f32 %v6539_v14, %v5701_v50 }
 0x908   : > { %v5816_v19 = vsel %vm10307_vm7, %v5810_v63, %v5815_v57  ;;  %v5704_v60 = vmul.f32 %v9868_v36, %v5700_v37 }
 0x909   : > { %v5820_v11 = vmul.f32 %v9868_v36, %v5816_v19 }
 0x90a   : > { %5708 = vrot.lane.b32.xlu2 %v5704_v60, %s6712_s26 }
 0x90b   : > { %5824 = vrot.lane.b32.xlu1 %v5820_v11, %s6713_s30  ;;  %5710 = vrot.lane.b32.xlu0 %v5705_v56, %s6712_s26 }
 0x90c   : > { %v5015_v52 = vpop.permute.xlu2 %5014 }
 0x90d   : > { %v5018_v55 = vrot.slane %v5015_v52, 4 }
 0x912   : > { %5826 = vrot.lane.b32.xlu2 %v5821_v1, %s6713_s30 }
 0x913   : > { %5859 = vrot.lane.b32.xlu1 %v9720_v32, %s6661_s29  ;;  %5857 = vrot.lane.b32.xlu0 %v9723_v35, %s6661_s29  ;;  %s5973_s29 = smul.u32 12, %s6745_s10  ;;  %s134_s10 = scalar_lea.vmem [#allocation5], %s5972_s22 }
 0x914   : > { %v5134_v40 = vpop.permute.xlu2 %5133  ;;  %s5887_s4 = sshll.u32 %s134_s10, 4  ;;  %s5888_s4 = int_to_ptr.vmem [resolvable:$true] %s5887_s4 }
 0x915   : > { %v5136_v22 = vrot.slane %v5134_v40, 4  ;;  %s5885_s2 = scalar_lea.hbm %s9965_s1, %s5973_s29 }
 0x916   : > { %s5889_s11 = sshll.u32 %s5885_s2, 4  ;;  %s5890_s11 = int_to_ptr.hbm [resolvable:$true] %s5889_s11 }
 0x917   : > { %s6585_s24 = sshra.s32 %s5890_s11, 4  ;;  %s6586_s24 = int_to_ptr.hbm [resolvable:$true] %s6585_s24 }
 0x918   : > { %s6587_s27 = scalar_lea.hbm %s6586_s24, 12  ;;  %p6592_p0 = scmp.lt.s32.totalorder %s6586_s24, %s9965_s1 }
 0x919   : > { %p6588_p6 = scmp.ne.s32.totalorder %s6586_s24, %s6587_s27  ;;  %p6593_p1 = scmp.lt.s32.totalorder %s6591_s28, %s6587_s27 }
 0x91b   : > { %p6589_p9 = pnand %p6588_p6, %p6774_p11  ;;  %p6594_p3 = por %p6593_p1, %p6592_p0 }
 0x91d   : > { %p6590_p13 = pneg %p6589_p9 }
 0x91f   : > { %p6595_p4 = pnand %p6594_p3, %p6590_p13 }
 0x954   : > { %v4900_v8 = vpop.permute.xlu1 %4899  ;;  %v5362_v46 = vpop.permute.xlu2 %5361 }
 0x955   : > { %v4902_v45 = vrot.slane %v4900_v8, 4  ;;  %v5365_v16 = vrot.slane %v5362_v46, 4 }
 0x957   : > { %v4903_v32 = vsel %vm148_vm2, %v4901_v27, %v4902_v45  ;;  %v4906_v12 = vsel %vm4904_vm12, %v4900_v8, %v4902_v45 }
 0x958   : > { %v4905_v54 = vsel %vm4904_vm12, %v9856_v3, %v4903_v32  ;;  %v4910_v44 = vadd.f32 %v4906_v12, %v9852_v48 }
 0x959   : > { %v4909_v61 = vadd.f32 %v4905_v54, %v9854_v17 }
 0x95c   : > { %v5017_v36 = vpop.permute.xlu0 %5016  ;;  %v5479_v2 = vpop.permute.xlu2 %5478 }
 0x95d   : > { %v5132_v30 = vpop.permute.xlu1 %5131  ;;  %v5019_v62 = vrot.slane %v5017_v36, 4  ;;  %v5481_v25 = vrot.slane %v5479_v2, 4 }
 0x95e   : > { %v5135_v5 = vrot.slane %v5132_v30, 4 }
 0x95f   : > { %v5020_v0 = vsel %vm148_vm2, %v5018_v55, %v5019_v62  ;;  %v5023_v41 = vsel %vm5021_vm1, %v5017_v36, %v5019_v62 }
 0x960   : > { %v5022_v38 = vsel %vm5021_vm1, %v5015_v52, %v5020_v0  ;;  %v5137_v23 = vsel %vm148_vm2, %v5135_v5, %v5136_v22  ;;  %v5027_v15 = vadd.f32 %v5023_v41, %v4910_v44 }
 0x961   : > { %v5026_v6 = vadd.f32 %v5022_v38, %v4909_v61  ;;  %v5138_v3 = vsel %vm10309_vm4, %v5132_v30, %v5137_v23 }
 0x962   : > { %v5142_v4 = vadd.f32 %v5134_v40, %v5027_v15 }
 0x963   : > { %v5141_v28 = vadd.f32 %v5138_v3, %v5026_v6 }
 0x964   : > { %v5709_v7 = vpop.permute.xlu2 %5708 }
 0x965   : > { %v5247_v18 = vpop.permute.xlu0 %5246  ;;  %v5249_v34 = vpop.permute.xlu1 %5248  ;;  %v5712_v57 = vrot.slane %v5709_v7, 4 }
 0x966   : > { %v5250_v58 = vrot.slane %v5247_v18, 4  ;;  %v5251_v31 = vrot.slane %v5249_v34, 4  ;;  %v5257_v29 = vadd.f32 %v5249_v34, %v5142_v4 }
 0x968   : > { %v5252_v24 = vsel %vm148_vm2, %v5250_v58, %v5251_v31 }
 0x969   : > { %v5253_v48 = vsel %vm10310_vm8, %v5247_v18, %v5252_v24 }
 0x96a   : > { %v5256_v9 = vadd.f32 %v5253_v48, %v5141_v28 }
 0x96c   : > { %v5827_v19 = vpop.permute.xlu2 %5826 }
 0x96d   : > { %v5364_v20 = vpop.permute.xlu0 %5363  ;;  %v5477_v35 = vpop.permute.xlu1 %5476  ;;  %v5829_v8 = vrot.slane %v5827_v19, 4 }
 0x96e   : > { %v5366_v26 = vrot.slane %v5364_v20, 4  ;;  %v5480_v17 = vrot.slane %v5477_v35, 4  ;;  %v5372_v39 = vadd.f32 %v5364_v20, %v5257_v29 }
 0x970   : > { %v5367_v42 = vsel %vm148_vm2, %v5365_v16, %v5366_v26  ;;  %v5482_v21 = vsel %vm148_vm2, %v5480_v17, %v5481_v25  ;;  %v5488_v14 = vadd.f32 %v5479_v2, %v5372_v39 }
 0x971   : > { %v5368_v53 = vsel %vm10311_vm11, %v5362_v46, %v5367_v42  ;;  %v5484_v60 = vsel %vm5483_vm15, %v5477_v35, %v5482_v21 }
 0x972   : > { %v5371_v63 = vadd.f32 %v5368_v53, %v5256_v9 }
 0x974   : > { %v5487_v11 = vadd.f32 %v5484_v60, %v5371_v63 }
 0x975   : > { %v5593_v10 = vpop.permute.xlu0 %5592  ;;  %v5595_v49 = vpop.permute.xlu1 %5594 }
 0x976   : > { %v5596_v51 = vrot.slane %v5593_v10, 4  ;;  %v5597_v33 = vrot.slane %v5595_v49, 4  ;;  %v5604_v1 = vadd.f32 %v5595_v49, %v5488_v14 }
 0x978   : > { %v5598_v13 = vsel %vm148_vm2, %v5596_v51, %v5597_v33 }
 0x979   : > { %v5600_v56 = vsel %vm5599_vm13, %v5593_v10, %v5598_v13 }
 0x97a   : > { %v5603_v40 = vadd.f32 %v5600_v56, %v5487_v11 }
 0x97d   : > { %v5711_v43 = vpop.permute.xlu0 %5710  ;;  %v5825_v50 = vpop.permute.xlu1 %5824 }
 0x97e   : > { %v5713_v37 = vrot.slane %v5711_v43, 4  ;;  %v5828_v47 = vrot.slane %v5825_v50, 4  ;;  %v5720_v36 = vadd.f32 %v5711_v43, %v5604_v1 }
 0x980   : > { %v5714_v59 = vsel %vm148_vm2, %v5712_v57, %v5713_v37  ;;  %v5830_v46 = vsel %vm148_vm2, %v5828_v47, %v5829_v8  ;;  %v5836_v62 = vadd.f32 %v5827_v19, %v5720_v36 }
 0x981   : > { %v5716_v52 = vsel %vm5715_vm14, %v5709_v7, %v5714_v59  ;;  %v5832_v2 = vsel %vm5831_vm10, %v5825_v50, %v5830_v46 }
 0x982   : > { %v5719_v30 = vadd.f32 %v5716_v52, %v5603_v40 }
 0x984   : > { %v5835_v55 = vadd.f32 %v5832_v2, %v5719_v30 }
 0x985   : > { %v5858_v18 = vpop.permute.xlu0 %5857  ;;  %v5860_v34 = vpop.permute.xlu1 %5859 }
 0x986   : > { %v5861_v45 = vrot.slane %v5858_v18, 4  ;;  %v5862_v27 = vrot.slane %v5860_v34, 4 }
 0x988   : > { %v5863_v32 = vsel %vm148_vm2, %v5861_v45, %v5862_v27  ;;  %v5865_v20 = vsel %vm231_vm0, %v5860_v34, %v5862_v27 }
 0x989   : > { %v5864_v35 = vsel %vm231_vm0, %v5858_v18, %v5863_v32  ;;  %v5869_v12 = vmul.f32 %v5865_v20, %v5836_v62 }
 0x98a   : > { %v5868_v0 = vmul.f32 %v5864_v35, %v5835_v55 }
 0x98b   : > { %5872 = vst.msk [vmem:[%s134_s10 + $0x8] sm:$0xf] %vm5871_vm3, %v5869_v12 }
 0x98c   : > { %5870 = vst [vmem:[%s134_s10] sm:$0xff] %v5868_v0 }
 0x98d   : > { %6598 = shalt.err (!%p6595_p4)
}
 0x98e   : > { %5976 = dma.vmem_to_hbm [thread:$0]  (%p6774_p11), %s5888_s4, 192, %s5890_s11, %s5874_s20  }
 0x98f PF: > { %s5901_s16 = sand.u32 1, %s6625_s6   ;;  %p10312_p7 = scmp.ge.s32.totalorder %s6637_s9, 2 }
 0x990   : > { %s5902_s3 = scalar_lea.sflag [#allocation4], %s5901_s16 }
 0x991   : > { %p5983_p5 = pnand %p10312_p7, %p6778_p12 }
 0x993   : > { %p5984_p8 = pneg %p5983_p5 }
 0x995   : > { %6620 = dma.done.wait (%p5984_p8), %s5902_s3, 192  }
 0x996   : > { %6622 = vsyncadd (%p5984_p8), %s5902_s3, 4294967104  ;;  %p14_p10 = scmp.ge.s32.totalorder %s6749_s12, 4   ;;  %s10313_s6 = smov %s6629_s7 }
 0x997   : > { %s10314_s7 = smov %s6633_s8  ;;  %s10315_s8 = smov %s6761_s15 }
 0x998   : > { %s10316_s9 = smov %s6749_s12  ;;  %16 = sbr.rel (!%p14_p10) target bundleno = 5 (0x5), region = 118 }
 0x99d   :  { %5908 = vsyncpa [#allocation3], 1 }
 0x99e   :  { %5910 = vsyncpa [#allocation3 + $0x1], 1 }
 0x99f   :  { %5911 = vsyncpa [#allocation4], 1 }
 0x9a0   :  { %5913 = vsyncpa [#allocation4 + $0x1], 1 }

</bundles_post_ra>
